<compile_context>
chip_gen: v6e
topology: v6e:2x2x1
jax: 0.10.0
libtpu: 0.0.40
codegen_flags: <defaults>
</compile_context>

<pallas_src>
import jax
import jax.numpy as jnp
from jax import lax
from jax.experimental import pallas as pl
from jax.experimental.pallas import tpu as pltpu


# ------------------------------ fused kernel -------------------------------- #

def _lenet_kernel(x_ref, w1_ref, b1_ref, w2_ref, b2_ref,
                  f1w_ref, f1b_ref, f2w_ref, f2b_ref, f3w_ref, f3b_ref,
                  out_ref):
    f32 = jnp.float32
    bmm = (((2,), (1,)), ((0,), (0,)))          # (b,m,k) x (b,k,n) -> (b,m,n)

    def conv_relu(x, w, b, kh, kw):
        """Valid conv + bias + ReLU on an (H, Cin, W) activation.

        w: (Cout, kh*kw*Cin), columns ordered (kh, kw, cin); b: (Cout, 1).
        Returns (Ho, Cout, Wo).
        """
        h_in, _, w_in = x.shape
        ho, wo = h_in - kh + 1, w_in - kw + 1
        # In-kernel im2col: unit-stride slices concatenated along the
        # contraction (sublane) axis.  (Ho, kh*kw*Cin, Wo)
        cols = jnp.concatenate(
            [x[i:i + ho, :, j:j + wo] for i in range(kh) for j in range(kw)],
            axis=1)
        wb = jnp.broadcast_to(w, (ho,) + w.shape)                 # (Ho, Cout, K)
        out = lax.dot_general(wb, cols, bmm,
                              preferred_element_type=f32)         # (Ho, Cout, Wo)
        return jnp.maximum(out + b[None, :, :], 0.0)

    def maxpool_2x2(x):
        """2x2 / stride-2 max pool on (H, C, W) -> (H//2, C, W//2)."""
        h_in, _, w_in = x.shape
        hp, wp = h_in // 2, w_in // 2
        # max over the two W-neighbours, then the two H-neighbours.
        a = jnp.maximum(x[:, :, :w_in - 1], x[:, :, 1:])          # (H, C, W-1)
        stacked = jnp.stack(
            [jnp.maximum(a[2 * y], a[2 * y + 1]) for y in range(hp)],
            axis=0)                                               # (Hp, C, W-1)
        # Stride-2 lane downsample as a matmul with a 0/1 selection matrix
        # (MXU performs the lane gather; exact since factors are 0.0 / 1.0).
        r = lax.broadcasted_iota(jnp.int32, (w_in - 1, wp), 0)
        c = lax.broadcasted_iota(jnp.int32, (w_in - 1, wp), 1)
        sel = (r == 2 * c).astype(f32)                            # (W-1, Wp)
        selb = jnp.broadcast_to(sel, (hp,) + sel.shape)
        return lax.dot_general(stacked, selb, bmm,
                               preferred_element_type=f32)        # (Hp, C, Wp)

    x = x_ref[0].astype(f32)                                      # (32, 3, 32)

    h = maxpool_2x2(conv_relu(x, w1_ref[...], b1_ref[...], 5, 5))   # (14, 6, 14)
    h = maxpool_2x2(conv_relu(h, w2_ref[...], b2_ref[...], 5, 5))   # (5, 16, 5)

    # fc1: flatten via the same in-kernel im2col (one 5x5 window covering the
    # whole 5x5 map), then a transposed-LHS matmul putting features on lanes.
    fcols = jnp.concatenate(
        [h[i:i + 1, :, j:j + 1] for i in range(5) for j in range(5)],
        axis=1)[0]                                                # (400, 1)
    v = lax.dot_general(fcols, f1w_ref[...], (((0,), (0,)), ((), ())),
                        preferred_element_type=f32)               # (1, 120)
    v = jnp.maximum(v + f1b_ref[...], 0.0)
    v = jnp.dot(v, f2w_ref[...], preferred_element_type=f32) + f2b_ref[...]
    v = jnp.maximum(v, 0.0)                                       # (1, 84)
    logits = jnp.dot(v, f3w_ref[...],
                     preferred_element_type=f32) + f3b_ref[...]   # (1, 128)
    # Lanes >= 10 carry -1e30 from the padded bias -> softmax-neutral padding.
    m = jnp.max(logits, axis=-1, keepdims=True)
    e = jnp.exp(logits - m)
    s = jnp.sum(e, axis=-1, keepdims=True)
    probs = e * pl.reciprocal(s, approx=True)
    out_ref[...] = probs[None].astype(out_ref.dtype)              # (1, 1, 128)


# ------------------------------ forward wrapper ------------------------------ #

def _const_spec(arr):
    n = arr.ndim
    return pl.BlockSpec(arr.shape, lambda b: (0,) * n)


def _lenet_forward(packed, x):
    """x: (B, 3, 32, 32) float32 NCHW -> (B, 10) softmax probabilities."""
    batch = x.shape[0]
    # One tiny layout op on the network input only: NCHW -> (B, H, C, W).
    xh = jnp.transpose(x.astype(jnp.float32), (0, 2, 1, 3))       # (B, 32, 3, 32)

    weights = [packed["w1"], packed["b1"], packed["w2"], packed["b2"],
               packed["f1w"], packed["f1b"], packed["f2w"], packed["f2b"],
               packed["f3w"], packed["f3b"]]

    flops_per_sample = (705600 + 63504 + 480000 + 7200 + 96000 + 20160 + 21504)
    bytes_accessed = 4 * (xh.size + sum(w.size for w in weights) + batch * 128)

    out = pl.pallas_call(
        _lenet_kernel,
        out_shape=jax.ShapeDtypeStruct((batch, 1, 128), jnp.float32),
        grid_spec=pltpu.PrefetchScalarGridSpec(
            num_scalar_prefetch=0,
            grid=(batch,),
            in_specs=[pl.BlockSpec((1, 32, 3, 32), lambda b: (b, 0, 0, 0))]
                     + [_const_spec(w) for w in weights],
            out_specs=pl.BlockSpec((1, 1, 128), lambda b: (b, 0, 0)),
        ),
        compiler_params=pltpu.CompilerParams(
            dimension_semantics=("parallel",)),
        cost_estimate=pl.CostEstimate(
            flops=batch * flops_per_sample,
            transcendentals=batch * 129,
            bytes_accessed=int(bytes_accessed)),
    )(xh, *weights)
    return out[:, 0, :10]                                         # (B, 10)


lenet_forward = jax.jit(_lenet_forward)


# --------------------------- parameters & packing --------------------------- #

def init_params(key):
    """PyTorch-layout params with PyTorch-style uniform(+-1/sqrt(fan_in)) init."""
    def uni(k, shape, fan_in):
        bound = float(fan_in) ** -0.5
        return jax.random.uniform(k, shape, jnp.float32, -bound, bound)

    ks = jax.random.split(key, 10)
    return {
        "conv1_w": uni(ks[0], (6, 3, 5, 5), 3 * 5 * 5),
        "conv1_b": uni(ks[1], (6,), 3 * 5 * 5),
        "conv2_w": uni(ks[2], (16, 6, 5, 5), 6 * 5 * 5),
        "conv2_b": uni(ks[3], (16,), 6 * 5 * 5),
        "fc1_w":   uni(ks[4], (120, 16 * 5 * 5), 16 * 5 * 5),
        "fc1_b":   uni(ks[5], (120,), 16 * 5 * 5),
        "fc2_w":   uni(ks[6], (84, 120), 120),
        "fc2_b":   uni(ks[7], (84,), 120),
        "fc3_w":   uni(ks[8], (10, 84), 84),
        "fc3_b":   uni(ks[9], (84,) and (10,), 84),
    }


def pack_params(p):
    """One-time repack into kernel-friendly layouts (no per-forward transposes)."""
    f32 = jnp.float32
    # conv weights: (Cout, Cin, KH, KW) -> (Cout, KH*KW*Cin), cols ordered (kh, kw, cin)
    w1 = p["conv1_w"].transpose(0, 2, 3, 1).reshape(6, 75).astype(f32)
    w2 = p["conv2_w"].transpose(0, 2, 3, 1).reshape(16, 150).astype(f32)
    # fc1: rows ordered (kh, kw, cin) to match the in-kernel flatten; shape (400, 120)
    f1w = (p["fc1_w"].reshape(120, 16, 5, 5).transpose(2, 3, 1, 0)
           .reshape(400, 120).astype(f32))
    f2w = p["fc2_w"].T.astype(f32)                                # (120, 84)
    # fc3 padded to 128 output lanes: zero weight cols, -1e30 bias -> exp() == 0
    f3w = jnp.zeros((84, 128), f32).at[:, :10].set(p["fc3_w"].T.astype(f32))
    f3b = jnp.full((1, 128), -1e30, f32).at[0, :10].set(p["fc3_b"].astype(f32))
    return {
        "w1": w1, "b1": p["conv1_b"].reshape(6, 1).astype(f32),
        "w2": w2, "b2": p["conv2_b"].reshape(16, 1).astype(f32),
        "f1w": f1w, "f1b": p["fc1_b"].reshape(1, 120).astype(f32),
        "f2w": f2w, "f2b": p["fc2_b"].reshape(1, 84).astype(f32),
        "f3w": f3w, "f3b": f3b,
    }


# ------------------------- pure-JAX reference (check) ------------------------ #

def lenet_reference(params, x):
    """XLA reference with PyTorch semantics, used only for validation."""
    hi = lax.Precision.HIGHEST

    def conv(x, w, b):
        y = lax.conv_general_dilated(
            x, w, window_strides=(1, 1), padding="VALID",
            dimension_numbers=("NCHW", "OIHW", "NCHW"), precision=hi)
        return y + b[None, :, None, None]

    def pool(x):
        return lax.reduce_window(x, -jnp.inf, lax.max,
                                 (1, 1, 2, 2), (1, 1, 2, 2), "VALID")

    x = pool(jax.nn.relu(conv(x, params["conv1_w"], params["conv1_b"])))
    x = pool(jax.nn.relu(conv(x, params["conv2_w"], params["conv2_b"])))
    x = x.reshape(x.shape[0], -1)
    x = jax.nn.relu(jnp.dot(x, params["fc1_w"].T, precision=hi) + params["fc1_b"])
    x = jax.nn.relu(jnp.dot(x, params["fc2_w"].T, precision=hi) + params["fc2_b"])
    x = jnp.dot(x, params["fc3_w"].T, precision=hi) + params["fc3_b"]
    return jax.nn.softmax(x, axis=1)


# ----------------------------------- main ------------------------------------ #

if __name__ == "__main__":
    key = jax.random.PRNGKey(0)
    k_in, k_param = jax.random.split(key)
    # LeNet's fc1 (16*5*5 inputs) implies a 3x32x32 image; batch kept small.
    x = jax.random.normal(k_in, (2, 3, 32, 32), dtype=jnp.float32)
    params = init_params(k_param)
    packed = pack_params(params)

    out = jax.block_until_ready(lenet_forward(packed, x))
    ref = jax.block_until_ready(lenet_reference(params, x))

    assert out.shape == (2, 10)
    assert bool(jnp.all(jnp.isfinite(out)))
    assert bool(jnp.allclose(jnp.sum(out, axis=1), 1.0, atol=5e-3))
    assert bool(jnp.allclose(out, ref, atol=5e-3))
    print("KERNEL_OK")
</pallas_src>

<mosaic_0001>
module attributes {stable_mosaic.version = 11 : i64} {
  func.func @_lenet_kernel(%arg0: i32, %arg1: memref<1x32x3x32xf32, #tpu.memory_space<vmem>>, %arg2: memref<6x75xf32, #tpu.memory_space<vmem>>, %arg3: memref<6x1xf32, #tpu.memory_space<vmem>>, %arg4: memref<16x150xf32, #tpu.memory_space<vmem>>, %arg5: memref<16x1xf32, #tpu.memory_space<vmem>>, %arg6: memref<400x120xf32, #tpu.memory_space<vmem>>, %arg7: memref<1x120xf32, #tpu.memory_space<vmem>>, %arg8: memref<120x84xf32, #tpu.memory_space<vmem>>, %arg9: memref<1x84xf32, #tpu.memory_space<vmem>>, %arg10: memref<84x128xf32, #tpu.memory_space<vmem>>, %arg11: memref<1x128xf32, #tpu.memory_space<vmem>>, %arg12: memref<1x1x128xf32, #tpu.memory_space<vmem>>) attributes {dimension_semantics = [#tpu.dimension_semantics<parallel>], iteration_bounds = array<i64: 2>, scalar_prefetch = 0 : i64, scratch_operands = 0 : i64, tpu.core_type = #tpu.core_type<tc>, window_params = [{transform_indices = @transform_0, window_bounds = array<i64: 1, 32, 3, 32>}, {pipeline_mode = #tpu.pipeline_mode<synchronous>, transform_indices = @transform_1, window_bounds = array<i64: 6, 75>}, {pipeline_mode = #tpu.pipeline_mode<synchronous>, transform_indices = @transform_2, window_bounds = array<i64: 6, 1>}, {pipeline_mode = #tpu.pipeline_mode<synchronous>, transform_indices = @transform_3, window_bounds = array<i64: 16, 150>}, {pipeline_mode = #tpu.pipeline_mode<synchronous>, transform_indices = @transform_4, window_bounds = array<i64: 16, 1>}, {pipeline_mode = #tpu.pipeline_mode<synchronous>, transform_indices = @transform_5, window_bounds = array<i64: 400, 120>}, {pipeline_mode = #tpu.pipeline_mode<synchronous>, transform_indices = @transform_6, window_bounds = array<i64: 1, 120>}, {pipeline_mode = #tpu.pipeline_mode<synchronous>, transform_indices = @transform_7, window_bounds = array<i64: 120, 84>}, {pipeline_mode = #tpu.pipeline_mode<synchronous>, transform_indices = @transform_8, window_bounds = array<i64: 1, 84>}, {pipeline_mode = #tpu.pipeline_mode<synchronous>, transform_indices = @transform_9, window_bounds = array<i64: 84, 128>}, {pipeline_mode = #tpu.pipeline_mode<synchronous>, transform_indices = @transform_10, window_bounds = array<i64: 1, 128>}, {transform_indices = @transform_11, window_bounds = array<i64: 1, 1, 128>}]} {
    %c0 = arith.constant 0 : index
    %c0_0 = arith.constant 0 : index
    %c0_1 = arith.constant 0 : index
    %c0_2 = arith.constant 0 : index
    %0 = vector.load %arg1[%c0, %c0_0, %c0_1, %c0_2] : memref<1x32x3x32xf32, #tpu.memory_space<vmem>>, vector<1x32x3x32xf32>
    %1 = vector.shape_cast %0 : vector<1x32x3x32xf32> to vector<32x3x32xf32>
    %c0_3 = arith.constant 0 : index
    %c0_4 = arith.constant 0 : index
    %2 = vector.load %arg2[%c0_3, %c0_4] : memref<6x75xf32, #tpu.memory_space<vmem>>, vector<6x75xf32>
    %c0_5 = arith.constant 0 : index
    %c0_6 = arith.constant 0 : index
    %3 = vector.load %arg3[%c0_5, %c0_6] : memref<6x1xf32, #tpu.memory_space<vmem>>, vector<6x1xf32>
    %4 = vector.extract_strided_slice %1 {offsets = [0, 0, 0], sizes = [28, 3, 28], strides = [1, 1, 1]} : vector<32x3x32xf32> to vector<28x3x28xf32>
    %5 = vector.extract_strided_slice %1 {offsets = [0, 0, 1], sizes = [28, 3, 28], strides = [1, 1, 1]} : vector<32x3x32xf32> to vector<28x3x28xf32>
    %6 = vector.extract_strided_slice %1 {offsets = [0, 0, 2], sizes = [28, 3, 28], strides = [1, 1, 1]} : vector<32x3x32xf32> to vector<28x3x28xf32>
    %7 = vector.extract_strided_slice %1 {offsets = [0, 0, 3], sizes = [28, 3, 28], strides = [1, 1, 1]} : vector<32x3x32xf32> to vector<28x3x28xf32>
    %8 = vector.extract_strided_slice %1 {offsets = [0, 0, 4], sizes = [28, 3, 28], strides = [1, 1, 1]} : vector<32x3x32xf32> to vector<28x3x28xf32>
    %9 = vector.extract_strided_slice %1 {offsets = [1, 0, 0], sizes = [28, 3, 28], strides = [1, 1, 1]} : vector<32x3x32xf32> to vector<28x3x28xf32>
    %10 = vector.extract_strided_slice %1 {offsets = [1, 0, 1], sizes = [28, 3, 28], strides = [1, 1, 1]} : vector<32x3x32xf32> to vector<28x3x28xf32>
    %11 = vector.extract_strided_slice %1 {offsets = [1, 0, 2], sizes = [28, 3, 28], strides = [1, 1, 1]} : vector<32x3x32xf32> to vector<28x3x28xf32>
    %12 = vector.extract_strided_slice %1 {offsets = [1, 0, 3], sizes = [28, 3, 28], strides = [1, 1, 1]} : vector<32x3x32xf32> to vector<28x3x28xf32>
    %13 = vector.extract_strided_slice %1 {offsets = [1, 0, 4], sizes = [28, 3, 28], strides = [1, 1, 1]} : vector<32x3x32xf32> to vector<28x3x28xf32>
    %14 = vector.extract_strided_slice %1 {offsets = [2, 0, 0], sizes = [28, 3, 28], strides = [1, 1, 1]} : vector<32x3x32xf32> to vector<28x3x28xf32>
    %15 = vector.extract_strided_slice %1 {offsets = [2, 0, 1], sizes = [28, 3, 28], strides = [1, 1, 1]} : vector<32x3x32xf32> to vector<28x3x28xf32>
    %16 = vector.extract_strided_slice %1 {offsets = [2, 0, 2], sizes = [28, 3, 28], strides = [1, 1, 1]} : vector<32x3x32xf32> to vector<28x3x28xf32>
    %17 = vector.extract_strided_slice %1 {offsets = [2, 0, 3], sizes = [28, 3, 28], strides = [1, 1, 1]} : vector<32x3x32xf32> to vector<28x3x28xf32>
    %18 = vector.extract_strided_slice %1 {offsets = [2, 0, 4], sizes = [28, 3, 28], strides = [1, 1, 1]} : vector<32x3x32xf32> to vector<28x3x28xf32>
    %19 = vector.extract_strided_slice %1 {offsets = [3, 0, 0], sizes = [28, 3, 28], strides = [1, 1, 1]} : vector<32x3x32xf32> to vector<28x3x28xf32>
    %20 = vector.extract_strided_slice %1 {offsets = [3, 0, 1], sizes = [28, 3, 28], strides = [1, 1, 1]} : vector<32x3x32xf32> to vector<28x3x28xf32>
    %21 = vector.extract_strided_slice %1 {offsets = [3, 0, 2], sizes = [28, 3, 28], strides = [1, 1, 1]} : vector<32x3x32xf32> to vector<28x3x28xf32>
    %22 = vector.extract_strided_slice %1 {offsets = [3, 0, 3], sizes = [28, 3, 28], strides = [1, 1, 1]} : vector<32x3x32xf32> to vector<28x3x28xf32>
    %23 = vector.extract_strided_slice %1 {offsets = [3, 0, 4], sizes = [28, 3, 28], strides = [1, 1, 1]} : vector<32x3x32xf32> to vector<28x3x28xf32>
    %24 = vector.extract_strided_slice %1 {offsets = [4, 0, 0], sizes = [28, 3, 28], strides = [1, 1, 1]} : vector<32x3x32xf32> to vector<28x3x28xf32>
    %25 = vector.extract_strided_slice %1 {offsets = [4, 0, 1], sizes = [28, 3, 28], strides = [1, 1, 1]} : vector<32x3x32xf32> to vector<28x3x28xf32>
    %26 = vector.extract_strided_slice %1 {offsets = [4, 0, 2], sizes = [28, 3, 28], strides = [1, 1, 1]} : vector<32x3x32xf32> to vector<28x3x28xf32>
    %27 = vector.extract_strided_slice %1 {offsets = [4, 0, 3], sizes = [28, 3, 28], strides = [1, 1, 1]} : vector<32x3x32xf32> to vector<28x3x28xf32>
    %28 = vector.extract_strided_slice %1 {offsets = [4, 0, 4], sizes = [28, 3, 28], strides = [1, 1, 1]} : vector<32x3x32xf32> to vector<28x3x28xf32>
    %29 = tpu.concatenate %4, %5, %6, %7, %8, %9, %10, %11, %12, %13, %14, %15, %16, %17, %18, %19 in 1 : vector<28x3x28xf32>, vector<28x3x28xf32>, vector<28x3x28xf32>, vector<28x3x28xf32>, vector<28x3x28xf32>, vector<28x3x28xf32>, vector<28x3x28xf32>, vector<28x3x28xf32>, vector<28x3x28xf32>, vector<28x3x28xf32>, vector<28x3x28xf32>, vector<28x3x28xf32>, vector<28x3x28xf32>, vector<28x3x28xf32>, vector<28x3x28xf32>, vector<28x3x28xf32> -> vector<28x48x28xf32>
    %30 = tpu.concatenate %20, %21, %22, %23, %24, %25, %26, %27, %28 in 1 : vector<28x3x28xf32>, vector<28x3x28xf32>, vector<28x3x28xf32>, vector<28x3x28xf32>, vector<28x3x28xf32>, vector<28x3x28xf32>, vector<28x3x28xf32>, vector<28x3x28xf32>, vector<28x3x28xf32> -> vector<28x27x28xf32>
    %31 = tpu.concatenate %29, %30 in 1 : vector<28x48x28xf32>, vector<28x27x28xf32> -> vector<28x75x28xf32>
    %32 = vector.shape_cast %2 : vector<6x75xf32> to vector<1x6x75xf32>
    %33 = vector.broadcast %32 : vector<1x6x75xf32> to vector<28x6x75xf32>
    %cst = arith.constant dense<0.000000e+00> : vector<28x6x28xf32>
    %34 = tpu.matmul %33, %31, %cst {dimension_numbers = #tpu.dot_dimension_numbers<[2], [1], [1], [2], [0, 0, 0, 1, 1, 2], [0], [0]>} : vector<28x6x75xf32>, vector<28x75x28xf32>, vector<28x6x28xf32> -> vector<28x6x28xf32>
    %35 = vector.shape_cast %3 : vector<6x1xf32> to vector<1x6x1xf32>
    %36 = vector.broadcast %35 : vector<1x6x1xf32> to vector<28x6x28xf32>
    %37 = arith.addf %34, %36 : vector<28x6x28xf32>
    %cst_7 = arith.constant 0.000000e+00 : f32
    %38 = vector.broadcast %cst_7 : f32 to vector<28x6x28xf32>
    %39 = arith.maximumf %37, %38 : vector<28x6x28xf32>
    %40 = vector.extract_strided_slice %39 {offsets = [0, 0, 0], sizes = [28, 6, 27], strides = [1, 1, 1]} : vector<28x6x28xf32> to vector<28x6x27xf32>
    %41 = vector.extract_strided_slice %39 {offsets = [0, 0, 1], sizes = [28, 6, 27], strides = [1, 1, 1]} : vector<28x6x28xf32> to vector<28x6x27xf32>
    %42 = arith.maximumf %40, %41 : vector<28x6x27xf32>
    %43 = vector.extract_strided_slice %42 {offsets = [0, 0, 0], sizes = [1, 6, 27], strides = [1, 1, 1]} : vector<28x6x27xf32> to vector<1x6x27xf32>
    %44 = vector.shape_cast %43 : vector<1x6x27xf32> to vector<6x27xf32>
    %45 = vector.extract_strided_slice %42 {offsets = [1, 0, 0], sizes = [1, 6, 27], strides = [1, 1, 1]} : vector<28x6x27xf32> to vector<1x6x27xf32>
    %46 = vector.shape_cast %45 : vector<1x6x27xf32> to vector<6x27xf32>
    %47 = arith.maximumf %44, %46 : vector<6x27xf32>
    %48 = vector.extract_strided_slice %42 {offsets = [2, 0, 0], sizes = [1, 6, 27], strides = [1, 1, 1]} : vector<28x6x27xf32> to vector<1x6x27xf32>
    %49 = vector.shape_cast %48 : vector<1x6x27xf32> to vector<6x27xf32>
    %50 = vector.extract_strided_slice %42 {offsets = [3, 0, 0], sizes = [1, 6, 27], strides = [1, 1, 1]} : vector<28x6x27xf32> to vector<1x6x27xf32>
    %51 = vector.shape_cast %50 : vector<1x6x27xf32> to vector<6x27xf32>
    %52 = arith.maximumf %49, %51 : vector<6x27xf32>
    %53 = vector.extract_strided_slice %42 {offsets = [4, 0, 0], sizes = [1, 6, 27], strides = [1, 1, 1]} : vector<28x6x27xf32> to vector<1x6x27xf32>
    %54 = vector.shape_cast %53 : vector<1x6x27xf32> to vector<6x27xf32>
    %55 = vector.extract_strided_slice %42 {offsets = [5, 0, 0], sizes = [1, 6, 27], strides = [1, 1, 1]} : vector<28x6x27xf32> to vector<1x6x27xf32>
    %56 = vector.shape_cast %55 : vector<1x6x27xf32> to vector<6x27xf32>
    %57 = arith.maximumf %54, %56 : vector<6x27xf32>
    %58 = vector.extract_strided_slice %42 {offsets = [6, 0, 0], sizes = [1, 6, 27], strides = [1, 1, 1]} : vector<28x6x27xf32> to vector<1x6x27xf32>
    %59 = vector.shape_cast %58 : vector<1x6x27xf32> to vector<6x27xf32>
    %60 = vector.extract_strided_slice %42 {offsets = [7, 0, 0], sizes = [1, 6, 27], strides = [1, 1, 1]} : vector<28x6x27xf32> to vector<1x6x27xf32>
    %61 = vector.shape_cast %60 : vector<1x6x27xf32> to vector<6x27xf32>
    %62 = arith.maximumf %59, %61 : vector<6x27xf32>
    %63 = vector.extract_strided_slice %42 {offsets = [8, 0, 0], sizes = [1, 6, 27], strides = [1, 1, 1]} : vector<28x6x27xf32> to vector<1x6x27xf32>
    %64 = vector.shape_cast %63 : vector<1x6x27xf32> to vector<6x27xf32>
    %65 = vector.extract_strided_slice %42 {offsets = [9, 0, 0], sizes = [1, 6, 27], strides = [1, 1, 1]} : vector<28x6x27xf32> to vector<1x6x27xf32>
    %66 = vector.shape_cast %65 : vector<1x6x27xf32> to vector<6x27xf32>
    %67 = arith.maximumf %64, %66 : vector<6x27xf32>
    %68 = vector.extract_strided_slice %42 {offsets = [10, 0, 0], sizes = [1, 6, 27], strides = [1, 1, 1]} : vector<28x6x27xf32> to vector<1x6x27xf32>
    %69 = vector.shape_cast %68 : vector<1x6x27xf32> to vector<6x27xf32>
    %70 = vector.extract_strided_slice %42 {offsets = [11, 0, 0], sizes = [1, 6, 27], strides = [1, 1, 1]} : vector<28x6x27xf32> to vector<1x6x27xf32>
    %71 = vector.shape_cast %70 : vector<1x6x27xf32> to vector<6x27xf32>
    %72 = arith.maximumf %69, %71 : vector<6x27xf32>
    %73 = vector.extract_strided_slice %42 {offsets = [12, 0, 0], sizes = [1, 6, 27], strides = [1, 1, 1]} : vector<28x6x27xf32> to vector<1x6x27xf32>
    %74 = vector.shape_cast %73 : vector<1x6x27xf32> to vector<6x27xf32>
    %75 = vector.extract_strided_slice %42 {offsets = [13, 0, 0], sizes = [1, 6, 27], strides = [1, 1, 1]} : vector<28x6x27xf32> to vector<1x6x27xf32>
    %76 = vector.shape_cast %75 : vector<1x6x27xf32> to vector<6x27xf32>
    %77 = arith.maximumf %74, %76 : vector<6x27xf32>
    %78 = vector.extract_strided_slice %42 {offsets = [14, 0, 0], sizes = [1, 6, 27], strides = [1, 1, 1]} : vector<28x6x27xf32> to vector<1x6x27xf32>
    %79 = vector.shape_cast %78 : vector<1x6x27xf32> to vector<6x27xf32>
    %80 = vector.extract_strided_slice %42 {offsets = [15, 0, 0], sizes = [1, 6, 27], strides = [1, 1, 1]} : vector<28x6x27xf32> to vector<1x6x27xf32>
    %81 = vector.shape_cast %80 : vector<1x6x27xf32> to vector<6x27xf32>
    %82 = arith.maximumf %79, %81 : vector<6x27xf32>
    %83 = vector.extract_strided_slice %42 {offsets = [16, 0, 0], sizes = [1, 6, 27], strides = [1, 1, 1]} : vector<28x6x27xf32> to vector<1x6x27xf32>
    %84 = vector.shape_cast %83 : vector<1x6x27xf32> to vector<6x27xf32>
    %85 = vector.extract_strided_slice %42 {offsets = [17, 0, 0], sizes = [1, 6, 27], strides = [1, 1, 1]} : vector<28x6x27xf32> to vector<1x6x27xf32>
    %86 = vector.shape_cast %85 : vector<1x6x27xf32> to vector<6x27xf32>
    %87 = arith.maximumf %84, %86 : vector<6x27xf32>
    %88 = vector.extract_strided_slice %42 {offsets = [18, 0, 0], sizes = [1, 6, 27], strides = [1, 1, 1]} : vector<28x6x27xf32> to vector<1x6x27xf32>
    %89 = vector.shape_cast %88 : vector<1x6x27xf32> to vector<6x27xf32>
    %90 = vector.extract_strided_slice %42 {offsets = [19, 0, 0], sizes = [1, 6, 27], strides = [1, 1, 1]} : vector<28x6x27xf32> to vector<1x6x27xf32>
    %91 = vector.shape_cast %90 : vector<1x6x27xf32> to vector<6x27xf32>
    %92 = arith.maximumf %89, %91 : vector<6x27xf32>
    %93 = vector.extract_strided_slice %42 {offsets = [20, 0, 0], sizes = [1, 6, 27], strides = [1, 1, 1]} : vector<28x6x27xf32> to vector<1x6x27xf32>
    %94 = vector.shape_cast %93 : vector<1x6x27xf32> to vector<6x27xf32>
    %95 = vector.extract_strided_slice %42 {offsets = [21, 0, 0], sizes = [1, 6, 27], strides = [1, 1, 1]} : vector<28x6x27xf32> to vector<1x6x27xf32>
    %96 = vector.shape_cast %95 : vector<1x6x27xf32> to vector<6x27xf32>
    %97 = arith.maximumf %94, %96 : vector<6x27xf32>
    %98 = vector.extract_strided_slice %42 {offsets = [22, 0, 0], sizes = [1, 6, 27], strides = [1, 1, 1]} : vector<28x6x27xf32> to vector<1x6x27xf32>
    %99 = vector.shape_cast %98 : vector<1x6x27xf32> to vector<6x27xf32>
    %100 = vector.extract_strided_slice %42 {offsets = [23, 0, 0], sizes = [1, 6, 27], strides = [1, 1, 1]} : vector<28x6x27xf32> to vector<1x6x27xf32>
    %101 = vector.shape_cast %100 : vector<1x6x27xf32> to vector<6x27xf32>
    %102 = arith.maximumf %99, %101 : vector<6x27xf32>
    %103 = vector.extract_strided_slice %42 {offsets = [24, 0, 0], sizes = [1, 6, 27], strides = [1, 1, 1]} : vector<28x6x27xf32> to vector<1x6x27xf32>
    %104 = vector.shape_cast %103 : vector<1x6x27xf32> to vector<6x27xf32>
    %105 = vector.extract_strided_slice %42 {offsets = [25, 0, 0], sizes = [1, 6, 27], strides = [1, 1, 1]} : vector<28x6x27xf32> to vector<1x6x27xf32>
    %106 = vector.shape_cast %105 : vector<1x6x27xf32> to vector<6x27xf32>
    %107 = arith.maximumf %104, %106 : vector<6x27xf32>
    %108 = vector.extract_strided_slice %42 {offsets = [26, 0, 0], sizes = [1, 6, 27], strides = [1, 1, 1]} : vector<28x6x27xf32> to vector<1x6x27xf32>
    %109 = vector.shape_cast %108 : vector<1x6x27xf32> to vector<6x27xf32>
    %110 = vector.extract_strided_slice %42 {offsets = [27, 0, 0], sizes = [1, 6, 27], strides = [1, 1, 1]} : vector<28x6x27xf32> to vector<1x6x27xf32>
    %111 = vector.shape_cast %110 : vector<1x6x27xf32> to vector<6x27xf32>
    %112 = arith.maximumf %109, %111 : vector<6x27xf32>
    %113 = vector.shape_cast %47 : vector<6x27xf32> to vector<1x6x27xf32>
    %114 = vector.shape_cast %52 : vector<6x27xf32> to vector<1x6x27xf32>
    %115 = vector.shape_cast %57 : vector<6x27xf32> to vector<1x6x27xf32>
    %116 = vector.shape_cast %62 : vector<6x27xf32> to vector<1x6x27xf32>
    %117 = vector.shape_cast %67 : vector<6x27xf32> to vector<1x6x27xf32>
    %118 = vector.shape_cast %72 : vector<6x27xf32> to vector<1x6x27xf32>
    %119 = vector.shape_cast %77 : vector<6x27xf32> to vector<1x6x27xf32>
    %120 = vector.shape_cast %82 : vector<6x27xf32> to vector<1x6x27xf32>
    %121 = vector.shape_cast %87 : vector<6x27xf32> to vector<1x6x27xf32>
    %122 = vector.shape_cast %92 : vector<6x27xf32> to vector<1x6x27xf32>
    %123 = vector.shape_cast %97 : vector<6x27xf32> to vector<1x6x27xf32>
    %124 = vector.shape_cast %102 : vector<6x27xf32> to vector<1x6x27xf32>
    %125 = vector.shape_cast %107 : vector<6x27xf32> to vector<1x6x27xf32>
    %126 = vector.shape_cast %112 : vector<6x27xf32> to vector<1x6x27xf32>
    %127 = tpu.concatenate %113, %114, %115, %116, %117, %118, %119, %120, %121, %122, %123, %124, %125, %126 in 0 : vector<1x6x27xf32>, vector<1x6x27xf32>, vector<1x6x27xf32>, vector<1x6x27xf32>, vector<1x6x27xf32>, vector<1x6x27xf32>, vector<1x6x27xf32>, vector<1x6x27xf32>, vector<1x6x27xf32>, vector<1x6x27xf32>, vector<1x6x27xf32>, vector<1x6x27xf32>, vector<1x6x27xf32>, vector<1x6x27xf32> -> vector<14x6x27xf32>
    %128 = tpu.iota {dimensions = array<i32: 0>} : vector<27x14xi32>
    %129 = tpu.iota {dimensions = array<i32: 1>} : vector<27x14xi32>
    %c2_i32 = arith.constant 2 : i32
    %130 = vector.broadcast %c2_i32 : i32 to vector<27x14xi32>
    %131 = arith.muli %130, %129 : vector<27x14xi32>
    %132 = arith.cmpi eq, %128, %131 : vector<27x14xi32>
    %133 = arith.extui %132 : vector<27x14xi1> to vector<27x14xi32>
    %134 = arith.sitofp %133 : vector<27x14xi32> to vector<27x14xf32>
    %135 = vector.shape_cast %134 : vector<27x14xf32> to vector<1x27x14xf32>
    %136 = vector.broadcast %135 : vector<1x27x14xf32> to vector<14x27x14xf32>
    %cst_8 = arith.constant dense<0.000000e+00> : vector<14x6x14xf32>
    %137 = tpu.matmul %127, %136, %cst_8 {dimension_numbers = #tpu.dot_dimension_numbers<[2], [1], [1], [2], [0, 0, 0, 1, 1, 2], [0], [0]>} : vector<14x6x27xf32>, vector<14x27x14xf32>, vector<14x6x14xf32> -> vector<14x6x14xf32>
    %c0_9 = arith.constant 0 : index
    %c0_10 = arith.constant 0 : index
    %138 = vector.load %arg4[%c0_9, %c0_10] : memref<16x150xf32, #tpu.memory_space<vmem>>, vector<16x150xf32>
    %c0_11 = arith.constant 0 : index
    %c0_12 = arith.constant 0 : index
    %139 = vector.load %arg5[%c0_11, %c0_12] : memref<16x1xf32, #tpu.memory_space<vmem>>, vector<16x1xf32>
    %140 = vector.extract_strided_slice %137 {offsets = [0, 0, 0], sizes = [10, 6, 10], strides = [1, 1, 1]} : vector<14x6x14xf32> to vector<10x6x10xf32>
    %141 = vector.extract_strided_slice %137 {offsets = [0, 0, 1], sizes = [10, 6, 10], strides = [1, 1, 1]} : vector<14x6x14xf32> to vector<10x6x10xf32>
    %142 = vector.extract_strided_slice %137 {offsets = [0, 0, 2], sizes = [10, 6, 10], strides = [1, 1, 1]} : vector<14x6x14xf32> to vector<10x6x10xf32>
    %143 = vector.extract_strided_slice %137 {offsets = [0, 0, 3], sizes = [10, 6, 10], strides = [1, 1, 1]} : vector<14x6x14xf32> to vector<10x6x10xf32>
    %144 = vector.extract_strided_slice %137 {offsets = [0, 0, 4], sizes = [10, 6, 10], strides = [1, 1, 1]} : vector<14x6x14xf32> to vector<10x6x10xf32>
    %145 = vector.extract_strided_slice %137 {offsets = [1, 0, 0], sizes = [10, 6, 10], strides = [1, 1, 1]} : vector<14x6x14xf32> to vector<10x6x10xf32>
    %146 = vector.extract_strided_slice %137 {offsets = [1, 0, 1], sizes = [10, 6, 10], strides = [1, 1, 1]} : vector<14x6x14xf32> to vector<10x6x10xf32>
    %147 = vector.extract_strided_slice %137 {offsets = [1, 0, 2], sizes = [10, 6, 10], strides = [1, 1, 1]} : vector<14x6x14xf32> to vector<10x6x10xf32>
    %148 = vector.extract_strided_slice %137 {offsets = [1, 0, 3], sizes = [10, 6, 10], strides = [1, 1, 1]} : vector<14x6x14xf32> to vector<10x6x10xf32>
    %149 = vector.extract_strided_slice %137 {offsets = [1, 0, 4], sizes = [10, 6, 10], strides = [1, 1, 1]} : vector<14x6x14xf32> to vector<10x6x10xf32>
    %150 = vector.extract_strided_slice %137 {offsets = [2, 0, 0], sizes = [10, 6, 10], strides = [1, 1, 1]} : vector<14x6x14xf32> to vector<10x6x10xf32>
    %151 = vector.extract_strided_slice %137 {offsets = [2, 0, 1], sizes = [10, 6, 10], strides = [1, 1, 1]} : vector<14x6x14xf32> to vector<10x6x10xf32>
    %152 = vector.extract_strided_slice %137 {offsets = [2, 0, 2], sizes = [10, 6, 10], strides = [1, 1, 1]} : vector<14x6x14xf32> to vector<10x6x10xf32>
    %153 = vector.extract_strided_slice %137 {offsets = [2, 0, 3], sizes = [10, 6, 10], strides = [1, 1, 1]} : vector<14x6x14xf32> to vector<10x6x10xf32>
    %154 = vector.extract_strided_slice %137 {offsets = [2, 0, 4], sizes = [10, 6, 10], strides = [1, 1, 1]} : vector<14x6x14xf32> to vector<10x6x10xf32>
    %155 = vector.extract_strided_slice %137 {offsets = [3, 0, 0], sizes = [10, 6, 10], strides = [1, 1, 1]} : vector<14x6x14xf32> to vector<10x6x10xf32>
    %156 = vector.extract_strided_slice %137 {offsets = [3, 0, 1], sizes = [10, 6, 10], strides = [1, 1, 1]} : vector<14x6x14xf32> to vector<10x6x10xf32>
    %157 = vector.extract_strided_slice %137 {offsets = [3, 0, 2], sizes = [10, 6, 10], strides = [1, 1, 1]} : vector<14x6x14xf32> to vector<10x6x10xf32>
    %158 = vector.extract_strided_slice %137 {offsets = [3, 0, 3], sizes = [10, 6, 10], strides = [1, 1, 1]} : vector<14x6x14xf32> to vector<10x6x10xf32>
    %159 = vector.extract_strided_slice %137 {offsets = [3, 0, 4], sizes = [10, 6, 10], strides = [1, 1, 1]} : vector<14x6x14xf32> to vector<10x6x10xf32>
    %160 = vector.extract_strided_slice %137 {offsets = [4, 0, 0], sizes = [10, 6, 10], strides = [1, 1, 1]} : vector<14x6x14xf32> to vector<10x6x10xf32>
    %161 = vector.extract_strided_slice %137 {offsets = [4, 0, 1], sizes = [10, 6, 10], strides = [1, 1, 1]} : vector<14x6x14xf32> to vector<10x6x10xf32>
    %162 = vector.extract_strided_slice %137 {offsets = [4, 0, 2], sizes = [10, 6, 10], strides = [1, 1, 1]} : vector<14x6x14xf32> to vector<10x6x10xf32>
    %163 = vector.extract_strided_slice %137 {offsets = [4, 0, 3], sizes = [10, 6, 10], strides = [1, 1, 1]} : vector<14x6x14xf32> to vector<10x6x10xf32>
    %164 = vector.extract_strided_slice %137 {offsets = [4, 0, 4], sizes = [10, 6, 10], strides = [1, 1, 1]} : vector<14x6x14xf32> to vector<10x6x10xf32>
    %165 = tpu.concatenate %140, %141, %142, %143, %144, %145, %146, %147, %148, %149, %150, %151, %152, %153, %154, %155 in 1 : vector<10x6x10xf32>, vector<10x6x10xf32>, vector<10x6x10xf32>, vector<10x6x10xf32>, vector<10x6x10xf32>, vector<10x6x10xf32>, vector<10x6x10xf32>, vector<10x6x10xf32>, vector<10x6x10xf32>, vector<10x6x10xf32>, vector<10x6x10xf32>, vector<10x6x10xf32>, vector<10x6x10xf32>, vector<10x6x10xf32>, vector<10x6x10xf32>, vector<10x6x10xf32> -> vector<10x96x10xf32>
    %166 = tpu.concatenate %156, %157, %158, %159, %160, %161, %162, %163, %164 in 1 : vector<10x6x10xf32>, vector<10x6x10xf32>, vector<10x6x10xf32>, vector<10x6x10xf32>, vector<10x6x10xf32>, vector<10x6x10xf32>, vector<10x6x10xf32>, vector<10x6x10xf32>, vector<10x6x10xf32> -> vector<10x54x10xf32>
    %167 = tpu.concatenate %165, %166 in 1 : vector<10x96x10xf32>, vector<10x54x10xf32> -> vector<10x150x10xf32>
    %168 = vector.shape_cast %138 : vector<16x150xf32> to vector<1x16x150xf32>
    %169 = vector.broadcast %168 : vector<1x16x150xf32> to vector<10x16x150xf32>
    %cst_13 = arith.constant dense<0.000000e+00> : vector<10x16x10xf32>
    %170 = tpu.matmul %169, %167, %cst_13 {dimension_numbers = #tpu.dot_dimension_numbers<[2], [1], [1], [2], [0, 0, 0, 1, 1, 2], [0], [0]>} : vector<10x16x150xf32>, vector<10x150x10xf32>, vector<10x16x10xf32> -> vector<10x16x10xf32>
    %171 = vector.shape_cast %139 : vector<16x1xf32> to vector<1x16x1xf32>
    %172 = vector.broadcast %171 : vector<1x16x1xf32> to vector<10x16x10xf32>
    %173 = arith.addf %170, %172 : vector<10x16x10xf32>
    %cst_14 = arith.constant 0.000000e+00 : f32
    %174 = vector.broadcast %cst_14 : f32 to vector<10x16x10xf32>
    %175 = arith.maximumf %173, %174 : vector<10x16x10xf32>
    %176 = vector.extract_strided_slice %175 {offsets = [0, 0, 0], sizes = [10, 16, 9], strides = [1, 1, 1]} : vector<10x16x10xf32> to vector<10x16x9xf32>
    %177 = vector.extract_strided_slice %175 {offsets = [0, 0, 1], sizes = [10, 16, 9], strides = [1, 1, 1]} : vector<10x16x10xf32> to vector<10x16x9xf32>
    %178 = arith.maximumf %176, %177 : vector<10x16x9xf32>
    %179 = vector.extract_strided_slice %178 {offsets = [0, 0, 0], sizes = [1, 16, 9], strides = [1, 1, 1]} : vector<10x16x9xf32> to vector<1x16x9xf32>
    %180 = vector.shape_cast %179 : vector<1x16x9xf32> to vector<16x9xf32>
    %181 = vector.extract_strided_slice %178 {offsets = [1, 0, 0], sizes = [1, 16, 9], strides = [1, 1, 1]} : vector<10x16x9xf32> to vector<1x16x9xf32>
    %182 = vector.shape_cast %181 : vector<1x16x9xf32> to vector<16x9xf32>
    %183 = arith.maximumf %180, %182 : vector<16x9xf32>
    %184 = vector.extract_strided_slice %178 {offsets = [2, 0, 0], sizes = [1, 16, 9], strides = [1, 1, 1]} : vector<10x16x9xf32> to vector<1x16x9xf32>
    %185 = vector.shape_cast %184 : vector<1x16x9xf32> to vector<16x9xf32>
    %186 = vector.extract_strided_slice %178 {offsets = [3, 0, 0], sizes = [1, 16, 9], strides = [1, 1, 1]} : vector<10x16x9xf32> to vector<1x16x9xf32>
    %187 = vector.shape_cast %186 : vector<1x16x9xf32> to vector<16x9xf32>
    %188 = arith.maximumf %185, %187 : vector<16x9xf32>
    %189 = vector.extract_strided_slice %178 {offsets = [4, 0, 0], sizes = [1, 16, 9], strides = [1, 1, 1]} : vector<10x16x9xf32> to vector<1x16x9xf32>
    %190 = vector.shape_cast %189 : vector<1x16x9xf32> to vector<16x9xf32>
    %191 = vector.extract_strided_slice %178 {offsets = [5, 0, 0], sizes = [1, 16, 9], strides = [1, 1, 1]} : vector<10x16x9xf32> to vector<1x16x9xf32>
    %192 = vector.shape_cast %191 : vector<1x16x9xf32> to vector<16x9xf32>
    %193 = arith.maximumf %190, %192 : vector<16x9xf32>
    %194 = vector.extract_strided_slice %178 {offsets = [6, 0, 0], sizes = [1, 16, 9], strides = [1, 1, 1]} : vector<10x16x9xf32> to vector<1x16x9xf32>
    %195 = vector.shape_cast %194 : vector<1x16x9xf32> to vector<16x9xf32>
    %196 = vector.extract_strided_slice %178 {offsets = [7, 0, 0], sizes = [1, 16, 9], strides = [1, 1, 1]} : vector<10x16x9xf32> to vector<1x16x9xf32>
    %197 = vector.shape_cast %196 : vector<1x16x9xf32> to vector<16x9xf32>
    %198 = arith.maximumf %195, %197 : vector<16x9xf32>
    %199 = vector.extract_strided_slice %178 {offsets = [8, 0, 0], sizes = [1, 16, 9], strides = [1, 1, 1]} : vector<10x16x9xf32> to vector<1x16x9xf32>
    %200 = vector.shape_cast %199 : vector<1x16x9xf32> to vector<16x9xf32>
    %201 = vector.extract_strided_slice %178 {offsets = [9, 0, 0], sizes = [1, 16, 9], strides = [1, 1, 1]} : vector<10x16x9xf32> to vector<1x16x9xf32>
    %202 = vector.shape_cast %201 : vector<1x16x9xf32> to vector<16x9xf32>
    %203 = arith.maximumf %200, %202 : vector<16x9xf32>
    %204 = vector.shape_cast %183 : vector<16x9xf32> to vector<1x16x9xf32>
    %205 = vector.shape_cast %188 : vector<16x9xf32> to vector<1x16x9xf32>
    %206 = vector.shape_cast %193 : vector<16x9xf32> to vector<1x16x9xf32>
    %207 = vector.shape_cast %198 : vector<16x9xf32> to vector<1x16x9xf32>
    %208 = vector.shape_cast %203 : vector<16x9xf32> to vector<1x16x9xf32>
    %209 = tpu.concatenate %204, %205, %206, %207, %208 in 0 : vector<1x16x9xf32>, vector<1x16x9xf32>, vector<1x16x9xf32>, vector<1x16x9xf32>, vector<1x16x9xf32> -> vector<5x16x9xf32>
    %210 = tpu.iota {dimensions = array<i32: 0>} : vector<9x5xi32>
    %211 = tpu.iota {dimensions = array<i32: 1>} : vector<9x5xi32>
    %c2_i32_15 = arith.constant 2 : i32
    %212 = vector.broadcast %c2_i32_15 : i32 to vector<9x5xi32>
    %213 = arith.muli %212, %211 : vector<9x5xi32>
    %214 = arith.cmpi eq, %210, %213 : vector<9x5xi32>
    %215 = arith.extui %214 : vector<9x5xi1> to vector<9x5xi32>
    %216 = arith.sitofp %215 : vector<9x5xi32> to vector<9x5xf32>
    %217 = vector.shape_cast %216 : vector<9x5xf32> to vector<1x9x5xf32>
    %218 = vector.broadcast %217 : vector<1x9x5xf32> to vector<5x9x5xf32>
    %cst_16 = arith.constant dense<0.000000e+00> : vector<5x16x5xf32>
    %219 = tpu.matmul %209, %218, %cst_16 {dimension_numbers = #tpu.dot_dimension_numbers<[2], [1], [1], [2], [0, 0, 0, 1, 1, 2], [0], [0]>} : vector<5x16x9xf32>, vector<5x9x5xf32>, vector<5x16x5xf32> -> vector<5x16x5xf32>
    %220 = vector.extract_strided_slice %219 {offsets = [0, 0, 0], sizes = [1, 16, 1], strides = [1, 1, 1]} : vector<5x16x5xf32> to vector<1x16x1xf32>
    %221 = vector.extract_strided_slice %219 {offsets = [0, 0, 1], sizes = [1, 16, 1], strides = [1, 1, 1]} : vector<5x16x5xf32> to vector<1x16x1xf32>
    %222 = vector.extract_strided_slice %219 {offsets = [0, 0, 2], sizes = [1, 16, 1], strides = [1, 1, 1]} : vector<5x16x5xf32> to vector<1x16x1xf32>
    %223 = vector.extract_strided_slice %219 {offsets = [0, 0, 3], sizes = [1, 16, 1], strides = [1, 1, 1]} : vector<5x16x5xf32> to vector<1x16x1xf32>
    %224 = vector.extract_strided_slice %219 {offsets = [0, 0, 4], sizes = [1, 16, 1], strides = [1, 1, 1]} : vector<5x16x5xf32> to vector<1x16x1xf32>
    %225 = vector.extract_strided_slice %219 {offsets = [1, 0, 0], sizes = [1, 16, 1], strides = [1, 1, 1]} : vector<5x16x5xf32> to vector<1x16x1xf32>
    %226 = vector.extract_strided_slice %219 {offsets = [1, 0, 1], sizes = [1, 16, 1], strides = [1, 1, 1]} : vector<5x16x5xf32> to vector<1x16x1xf32>
    %227 = vector.extract_strided_slice %219 {offsets = [1, 0, 2], sizes = [1, 16, 1], strides = [1, 1, 1]} : vector<5x16x5xf32> to vector<1x16x1xf32>
    %228 = vector.extract_strided_slice %219 {offsets = [1, 0, 3], sizes = [1, 16, 1], strides = [1, 1, 1]} : vector<5x16x5xf32> to vector<1x16x1xf32>
    %229 = vector.extract_strided_slice %219 {offsets = [1, 0, 4], sizes = [1, 16, 1], strides = [1, 1, 1]} : vector<5x16x5xf32> to vector<1x16x1xf32>
    %230 = vector.extract_strided_slice %219 {offsets = [2, 0, 0], sizes = [1, 16, 1], strides = [1, 1, 1]} : vector<5x16x5xf32> to vector<1x16x1xf32>
    %231 = vector.extract_strided_slice %219 {offsets = [2, 0, 1], sizes = [1, 16, 1], strides = [1, 1, 1]} : vector<5x16x5xf32> to vector<1x16x1xf32>
    %232 = vector.extract_strided_slice %219 {offsets = [2, 0, 2], sizes = [1, 16, 1], strides = [1, 1, 1]} : vector<5x16x5xf32> to vector<1x16x1xf32>
    %233 = vector.extract_strided_slice %219 {offsets = [2, 0, 3], sizes = [1, 16, 1], strides = [1, 1, 1]} : vector<5x16x5xf32> to vector<1x16x1xf32>
    %234 = vector.extract_strided_slice %219 {offsets = [2, 0, 4], sizes = [1, 16, 1], strides = [1, 1, 1]} : vector<5x16x5xf32> to vector<1x16x1xf32>
    %235 = vector.extract_strided_slice %219 {offsets = [3, 0, 0], sizes = [1, 16, 1], strides = [1, 1, 1]} : vector<5x16x5xf32> to vector<1x16x1xf32>
    %236 = vector.extract_strided_slice %219 {offsets = [3, 0, 1], sizes = [1, 16, 1], strides = [1, 1, 1]} : vector<5x16x5xf32> to vector<1x16x1xf32>
    %237 = vector.extract_strided_slice %219 {offsets = [3, 0, 2], sizes = [1, 16, 1], strides = [1, 1, 1]} : vector<5x16x5xf32> to vector<1x16x1xf32>
    %238 = vector.extract_strided_slice %219 {offsets = [3, 0, 3], sizes = [1, 16, 1], strides = [1, 1, 1]} : vector<5x16x5xf32> to vector<1x16x1xf32>
    %239 = vector.extract_strided_slice %219 {offsets = [3, 0, 4], sizes = [1, 16, 1], strides = [1, 1, 1]} : vector<5x16x5xf32> to vector<1x16x1xf32>
    %240 = vector.extract_strided_slice %219 {offsets = [4, 0, 0], sizes = [1, 16, 1], strides = [1, 1, 1]} : vector<5x16x5xf32> to vector<1x16x1xf32>
    %241 = vector.extract_strided_slice %219 {offsets = [4, 0, 1], sizes = [1, 16, 1], strides = [1, 1, 1]} : vector<5x16x5xf32> to vector<1x16x1xf32>
    %242 = vector.extract_strided_slice %219 {offsets = [4, 0, 2], sizes = [1, 16, 1], strides = [1, 1, 1]} : vector<5x16x5xf32> to vector<1x16x1xf32>
    %243 = vector.extract_strided_slice %219 {offsets = [4, 0, 3], sizes = [1, 16, 1], strides = [1, 1, 1]} : vector<5x16x5xf32> to vector<1x16x1xf32>
    %244 = vector.extract_strided_slice %219 {offsets = [4, 0, 4], sizes = [1, 16, 1], strides = [1, 1, 1]} : vector<5x16x5xf32> to vector<1x16x1xf32>
    %245 = tpu.concatenate %220, %221, %222, %223, %224, %225, %226, %227, %228, %229, %230, %231, %232, %233, %234, %235 in 1 : vector<1x16x1xf32>, vector<1x16x1xf32>, vector<1x16x1xf32>, vector<1x16x1xf32>, vector<1x16x1xf32>, vector<1x16x1xf32>, vector<1x16x1xf32>, vector<1x16x1xf32>, vector<1x16x1xf32>, vector<1x16x1xf32>, vector<1x16x1xf32>, vector<1x16x1xf32>, vector<1x16x1xf32>, vector<1x16x1xf32>, vector<1x16x1xf32>, vector<1x16x1xf32> -> vector<1x256x1xf32>
    %246 = tpu.concatenate %236, %237, %238, %239, %240, %241, %242, %243, %244 in 1 : vector<1x16x1xf32>, vector<1x16x1xf32>, vector<1x16x1xf32>, vector<1x16x1xf32>, vector<1x16x1xf32>, vector<1x16x1xf32>, vector<1x16x1xf32>, vector<1x16x1xf32>, vector<1x16x1xf32> -> vector<1x144x1xf32>
    %247 = tpu.concatenate %245, %246 in 1 : vector<1x256x1xf32>, vector<1x144x1xf32> -> vector<1x400x1xf32>
    %248 = vector.shape_cast %247 : vector<1x400x1xf32> to vector<400x1xf32>
    %c0_17 = arith.constant 0 : index
    %c0_18 = arith.constant 0 : index
    %249 = vector.load %arg6[%c0_17, %c0_18] : memref<400x120xf32, #tpu.memory_space<vmem>>, vector<400x120xf32>
    %cst_19 = arith.constant dense<0.000000e+00> : vector<1x120xf32>
    %250 = tpu.matmul %248, %249, %cst_19 {dimension_numbers = #tpu.dot_dimension_numbers<[0], [0], [1], [1], [0, 1, 1, 1], [], []>} : vector<400x1xf32>, vector<400x120xf32>, vector<1x120xf32> -> vector<1x120xf32>
    %c0_20 = arith.constant 0 : index
    %c0_21 = arith.constant 0 : index
    %251 = vector.load %arg7[%c0_20, %c0_21] : memref<1x120xf32, #tpu.memory_space<vmem>>, vector<1x120xf32>
    %252 = arith.addf %250, %251 : vector<1x120xf32>
    %cst_22 = arith.constant 0.000000e+00 : f32
    %253 = vector.broadcast %cst_22 : f32 to vector<1x120xf32>
    %254 = arith.maximumf %252, %253 : vector<1x120xf32>
    %c0_23 = arith.constant 0 : index
    %c0_24 = arith.constant 0 : index
    %255 = vector.load %arg8[%c0_23, %c0_24] : memref<120x84xf32, #tpu.memory_space<vmem>>, vector<120x84xf32>
    %cst_25 = arith.constant dense<0.000000e+00> : vector<1x84xf32>
    %256 = tpu.matmul %254, %255, %cst_25 {dimension_numbers = #tpu.dot_dimension_numbers<[1], [0], [0], [1], [0, 0, 1, 1], [], []>} : vector<1x120xf32>, vector<120x84xf32>, vector<1x84xf32> -> vector<1x84xf32>
    %c0_26 = arith.constant 0 : index
    %c0_27 = arith.constant 0 : index
    %257 = vector.load %arg9[%c0_26, %c0_27] : memref<1x84xf32, #tpu.memory_space<vmem>>, vector<1x84xf32>
    %258 = arith.addf %256, %257 : vector<1x84xf32>
    %cst_28 = arith.constant 0.000000e+00 : f32
    %259 = vector.broadcast %cst_28 : f32 to vector<1x84xf32>
    %260 = arith.maximumf %258, %259 : vector<1x84xf32>
    %c0_29 = arith.constant 0 : index
    %c0_30 = arith.constant 0 : index
    %261 = vector.load %arg10[%c0_29, %c0_30] : memref<84x128xf32, #tpu.memory_space<vmem>>, vector<84x128xf32>
    %cst_31 = arith.constant dense<0.000000e+00> : vector<1x128xf32>
    %262 = tpu.matmul %260, %261, %cst_31 {dimension_numbers = #tpu.dot_dimension_numbers<[1], [0], [0], [1], [0, 0, 1, 1], [], []>} : vector<1x84xf32>, vector<84x128xf32>, vector<1x128xf32> -> vector<1x128xf32>
    %c0_32 = arith.constant 0 : index
    %c0_33 = arith.constant 0 : index
    %263 = vector.load %arg11[%c0_32, %c0_33] : memref<1x128xf32, #tpu.memory_space<vmem>>, vector<1x128xf32>
    %264 = arith.addf %262, %263 : vector<1x128xf32>
    %cst_34 = arith.constant dense<0xFF800000> : vector<1xf32>
    %265 = vector.multi_reduction <maximumf>, %264, %cst_34 [1] : vector<1x128xf32> to vector<1xf32>
    %266 = vector.shape_cast %265 : vector<1xf32> to vector<1x1xf32>
    %267 = vector.broadcast %266 : vector<1x1xf32> to vector<1x128xf32>
    %268 = arith.subf %264, %267 : vector<1x128xf32>
    %269 = math.exp %268 : vector<1x128xf32>
    %cst_35 = arith.constant dense<0.000000e+00> : vector<1xf32>
    %270 = vector.multi_reduction <add>, %269, %cst_35 [1] : vector<1x128xf32> to vector<1xf32>
    %271 = vector.shape_cast %270 : vector<1xf32> to vector<1x1xf32>
    %272 = tpu.reciprocal %271 {approx = true} : vector<1x1xf32> -> vector<1x1xf32>
    %273 = vector.broadcast %272 : vector<1x1xf32> to vector<1x128xf32>
    %274 = arith.mulf %269, %273 : vector<1x128xf32>
    %275 = vector.shape_cast %274 : vector<1x128xf32> to vector<1x1x128xf32>
    %c0_36 = arith.constant 0 : index
    %c0_37 = arith.constant 0 : index
    %c0_38 = arith.constant 0 : index
    %276 = vector.load %arg12[%c0_36, %c0_37, %c0_38] : memref<1x1x128xf32, #tpu.memory_space<vmem>>, vector<1x1x128xf32>
    tpu.vector_store %arg12[%c0_36, %c0_37, %c0_38], %275 {strides = array<i32>} : memref<1x1x128xf32, #tpu.memory_space<vmem>>, vector<1x1x128xf32>,
    return
  }
  func.func @transform_0(%arg0: i32) -> (i32, i32, i32, i32) {
    %c0_i32 = arith.constant 0 : i32
    %c0_i32_0 = arith.constant 0 : i32
    %c0_i32_1 = arith.constant 0 : i32
    %c0_i32_2 = arith.constant 0 : i32
    return %arg0, %c0_i32, %c0_i32_0, %c0_i32_1 : i32, i32, i32, i32
  }
  func.func @transform_1(%arg0: i32) -> (i32, i32) {
    %c0_i32 = arith.constant 0 : i32
    %c0_i32_0 = arith.constant 0 : i32
    %c0_i32_1 = arith.constant 0 : i32
    return %c0_i32, %c0_i32_0 : i32, i32
  }
  func.func @transform_2(%arg0: i32) -> (i32, i32) {
    %c0_i32 = arith.constant 0 : i32
    %c0_i32_0 = arith.constant 0 : i32
    %c0_i32_1 = arith.constant 0 : i32
    return %c0_i32, %c0_i32_0 : i32, i32
  }
  func.func @transform_3(%arg0: i32) -> (i32, i32) {
    %c0_i32 = arith.constant 0 : i32
    %c0_i32_0 = arith.constant 0 : i32
    %c0_i32_1 = arith.constant 0 : i32
    return %c0_i32, %c0_i32_0 : i32, i32
  }
  func.func @transform_4(%arg0: i32) -> (i32, i32) {
    %c0_i32 = arith.constant 0 : i32
    %c0_i32_0 = arith.constant 0 : i32
    %c0_i32_1 = arith.constant 0 : i32
    return %c0_i32, %c0_i32_0 : i32, i32
  }
  func.func @transform_5(%arg0: i32) -> (i32, i32) {
    %c0_i32 = arith.constant 0 : i32
    %c0_i32_0 = arith.constant 0 : i32
    %c0_i32_1 = arith.constant 0 : i32
    return %c0_i32, %c0_i32_0 : i32, i32
  }
  func.func @transform_6(%arg0: i32) -> (i32, i32) {
    %c0_i32 = arith.constant 0 : i32
    %c0_i32_0 = arith.constant 0 : i32
    %c0_i32_1 = arith.constant 0 : i32
    return %c0_i32, %c0_i32_0 : i32, i32
  }
  func.func @transform_7(%arg0: i32) -> (i32, i32) {
    %c0_i32 = arith.constant 0 : i32
    %c0_i32_0 = arith.constant 0 : i32
    %c0_i32_1 = arith.constant 0 : i32
    return %c0_i32, %c0_i32_0 : i32, i32
  }
  func.func @transform_8(%arg0: i32) -> (i32, i32) {
    %c0_i32 = arith.constant 0 : i32
    %c0_i32_0 = arith.constant 0 : i32
    %c0_i32_1 = arith.constant 0 : i32
    return %c0_i32, %c0_i32_0 : i32, i32
  }
  func.func @transform_9(%arg0: i32) -> (i32, i32) {
    %c0_i32 = arith.constant 0 : i32
    %c0_i32_0 = arith.constant 0 : i32
    %c0_i32_1 = arith.constant 0 : i32
    return %c0_i32, %c0_i32_0 : i32, i32
  }
  func.func @transform_10(%arg0: i32) -> (i32, i32) {
    %c0_i32 = arith.constant 0 : i32
    %c0_i32_0 = arith.constant 0 : i32
    %c0_i32_1 = arith.constant 0 : i32
    return %c0_i32, %c0_i32_0 : i32, i32
  }
  func.func @transform_11(%arg0: i32) -> (i32, i32, i32) {
    %c0_i32 = arith.constant 0 : i32
    %c0_i32_0 = arith.constant 0 : i32
    %c0_i32_1 = arith.constant 0 : i32
    return %arg0, %c0_i32, %c0_i32_0 : i32, i32, i32
  }
}

</mosaic_0001>

<bundles_post_ra>
// kernel: _lenet_forward.1
= control target key start
LH: loop header
LB: loop body
LE: loop exit
PB: predicated region body
PF: predicated region fallthrough
CT: control target
= control target key end

     0   :  { %s17067_s0 = inlined_call_operand.vmem [shape: f32[2,32,3,32], index: 0, kind: input, shape index: {}]   ;;  %s17068_s1 = inlined_call_operand.vmem [shape: f32[6,75], index: 1, kind: input, shape index: {}]   ;;  %s17069_s2 = inlined_call_operand.vmem [shape: f32[6,1], index: 2, kind: input, shape index: {}]   ;;  %s17070_s3 = inlined_call_operand.hbm [shape: f32[16,150], index: 3, kind: input, shape index: {}]   ;;  %s17071_s4 = inlined_call_operand.vmem [shape: f32[16,1], index: 4, kind: input, shape index: {}]   ;;  %s17072_s5 = inlined_call_operand.vmem [shape: f32[400,120], index: 5, kind: input, shape index: {}]   ;;  %s17073_s6 = inlined_call_operand.vmem [shape: f32[1,120], index: 6, kind: input, shape index: {}]   ;;  %s17074_s7 = inlined_call_operand.vmem [shape: f32[120,84], index: 7, kind: input, shape index: {}]   ;;  %s17075_s8 = inlined_call_operand.vmem [shape: f32[1,84], index: 8, kind: input, shape index: {}]   ;;  %s17076_s9 = inlined_call_operand.vmem [shape: f32[84,128], index: 9, kind: input, shape index: {}]   ;;  %s17077_s10 = inlined_call_operand.vmem [shape: f32[1,128], index: 10, kind: input, shape index: {}]   ;;  %s17078_s11 = inlined_call_operand.hbm [shape: f32[2,1,128], index: 11, kind: output, shape index: {}]  }
   0x1   :  { %17388 = sst [smem:[#allocation66_spill]] %s17067_s0 }
   0x2   :  { %16 = vsyncpa [#allocation3], 0 }
   0x3   :  { %17 = vsyncpa [#allocation4], 0 }
   0x4   :  { %19 = vsyncpa [#allocation4 + $0x1], 0  ;;  %s11012_s17 = smov 0   ;;  %s11014_s18 = smov 0  }
   0x5   :  { %s11016_s19 = smov 0   ;;  %s11018_s20 = smov 0  }
   0x6 LB: > { %s11033_s21 = sadd.s32 4294967295, %s10937_s20   ;;  %s9047_s22 = sadd.s32 4294967294, %s10937_s20   ;;  %s10937_s20 = sphi %s11018_s20, %s17817_s20   ;;  %s10933_s19 = sphi %s11016_s19, %s17816_s19   ;;  %s10929_s18 = sphi %s11014_s18, %s17815_s18   ;;  %s10925_s17 = sphi %s11012_s17, %s17814_s17  }
   0x7   : > { %s11037_s23 = sadd.s32 1, %s10937_s20   ;;  %s268_s24 = sadd.s32 1, %s10933_s19 }
   0x8   : > { %s265_s25 = ssub.s32 %s10937_s20, %s11037_s23  ;;  %p278_p0 = scmp.ne.s32.totalorder %s10933_s19, %s10929_s18 }
   0x9   : > { %p266_p1 = scmp.eq.s32.totalorder %s265_s25, 0  ;;  %p279_p2 = scmp.eq.s32.totalorder %s11033_s21, 1 }
   0xa   : > { %p284_p3 = scmp.ne.s32.totalorder %s10929_s18, %s10925_s17  ;;  %p285_p4 = scmp.eq.s32.totalorder %s9047_s22, 1 }
   0xb   : > { %s11048_s26 = scalar_select %p266_p1, %s10933_s19, %s268_s24  }
   0xc   : > { %p11050_p5 = por %p279_p2, %p278_p0  ;;  %p11054_p6 = por %p285_p4, %p284_p3 }
   0xd   : > { %17389 = sst [smem:[#allocation8_spill]] %s11048_s26  ;;  %p9048_p7 = scmp.ge.s32.totalorder %s10937_s20, 1 }
   0xe   : > { %s17391_s28 = scalar_select %p11054_p6, 1, 0 }
   0xf   : > { %p292_p8 = scmp.lt.s32.totalorder %s10937_s20, 3  ;;  %p10609_p9 = scmp.eq.s32.totalorder %s11033_s21, 0 }
  0x10   : > { %s10939_s30 = smov [#allocation2]  }
  0x11   : > { %p11061_p10 = pnand %p9048_p7, %p292_p8  ;;  %s310_s12 = sshll.u32 %s10939_s30, 4  ;;  %s311_s12 = int_to_ptr.vmem [resolvable:$true] %s310_s12 }
  0x12   : > { %s10858_s13 = scalar_lea.vmem %s311_s12, 512  ;;  %p10866_p3 = scmp.lt.s32.totalorder %s311_s12, %s311_s12 }
  0x13   : > { %p10601_p11 = pneg %p11061_p10  ;;  %p10859_p0 = scmp.ne.s32.totalorder %s311_s12, %s10858_s13 }
  0x14   : > { %p10867_p4 = scmp.lt.s32.totalorder %s10858_s13, %s10858_s13 }
  0x15   : > { %p10602_p12 = pnand %p10609_p9, %p10601_p11 }
  0x16   : > { %p10868_p6 = por %p10867_p4, %p10866_p3 }
  0x17   : > { %p10849_p13 = pneg %p10602_p12 }
  0x19   : > { %p10861_p1 = pnand %p10859_p0, %p10849_p13 }
  0x1b   : > { %p10862_p2 = pneg %p10861_p1 }
  0x1d   : > { %p10869_p7 = pnand %p10868_p6, %p10862_p2 }
  0x1f   : > { %10872 = shalt.err (!%p10869_p7)
}
  0x20   : > { %s10940_s14 = smov 256   ;;  %s10941_s15 = smov 16  }
  0x21   : > { %10604 = dma.hbm_to_vmem [thread:$0]  (!%p10602_p12), %s17070_s3, 512, %s311_s12, [#allocation3], %s10940_s14, %s10940_s14, %s10941_s15  }
  0x22   : > { %355 = sbr.rel (%p11061_p10) target bundleno = 4002 (0xfa2), region = 64 }
  0x27   : > { %10916 = dma.done.wait (%p10609_p9), [#allocation3], 512  }
  0x28   : > { %10918 = vsyncadd (%p10609_p9), [#allocation3], 4294966784  ;;  %p394_p8 = scmp.lt.s32.totalorder %s11033_s21, 1  ;;  %s17393_s0 = sld [smem:[#allocation66_spill]]  ;;  %vm1937_vm0 = vcmask 1044480   ;;  %vm1908_vm1 = vcmask 1041408  }
  0x29   : > { %s10942_s29 = smov 125   ;;  %s10943_s12 = smov 127   ;;  %vm1821_vm2 = vcmask 1040384   ;;  %vm1850_vm3 = vcmask 1043456   ;;  %vm1879_vm4 = vcmask 1046528   ;;  %vm1763_vm5 = vcmask 1042432  }
  0x2a   : > { %s395_s24 = scalar_select %p394_p8, %s11033_s21, 1  ;;  %vm1792_vm6 = vcmask 1045504   ;;  %vm10948_vm7 = vmmov 0   ;;  %vm2780_vm8 = vcmask 613376   ;;  %vm5002_vm13 = vcmask 220160  }
  0x2b   : > { %s10944_s14 = smov 126   ;;  %s10945_s15 = smov 1   ;;  %vm6979_vm14 = vcmask 179200   ;;  %vm7886_vm15 = vcmask 72704  }
  0x2c   : > { %s9242_s25 = sshll.u32 %s395_s24, 7  ;;  %s10946_s16 = smov 124  }
  0x2e   : > { %s11083_s26 = scalar_lea.vmem %s17393_s0, %s9242_s25  ;;  %s9239_s25 = sshll.u32 %s11033_s21, 4 }
  0x2f   : > { %v11086_v0 = vld [vmem:[%s11083_s26 + $0x10] sm:$0x7]  ;;  %v11089_v1 = vld [vmem:[%s11083_s26 + $0x14] sm:$0x7]  ;;  %v11099_v4 = vld [vmem:[%s11083_s26 + $0xc] sm:$0x7]  ;;  %s8978_s24 = scalar_lea.hbm %s17078_s11, %s9239_s25 }
  0x30   : > { %1196 = vrot.lane.b32.xlu1 %v11086_v0, %s10942_s29  ;;  %v17113_v2 = vrot.slane %v11086_v0, 6  ;;  %v17114_v3 = vrot.slane %v11089_v1, 6  ;;  %v11104_v5 = vrot.slane %v11086_v0, 2  ;;  %v11110_v6 = vrot.slane %v11099_v4, 2  ;;  %v11142_v14 = vld [vmem:[%s11083_s26 + $0x1c] sm:$0x7] }
  0x31   : > { %v17111_v7 = vrot.slane %v11086_v0, 7  ;;  %v688_v8 = vrot.slane %v11099_v4, 7  ;;  %v17095_v9 = vrot.slane %v11089_v1, 3  ;;  %v17105_v10 = vrot.slane %v11086_v0, 3  ;;  %v11148_v16 = vld [vmem:[%s11083_s26 + $0x18] sm:$0x7] }
  0x32   : > { %1000 = vrot.lane.b32.xlu0 %v17113_v2, %s10943_s12  ;;  %v11130_v11 = vrot.slane %v11089_v1, 4  ;;  %v11136_v12 = vrot.slane %v11086_v0, 4  ;;  %v17108_v13 = vrot.slane %v11086_v0, 5  ;;  %v17110_v15 = vrot.slane %v11099_v4, 5  ;;  %v11204_v28 = vld [vmem:[%s11083_s26 + $0x24] sm:$0x7] }
  0x33   : > { %v17102_v17 = vrot.slane %v11142_v14, 6  ;;  %v17101_v18 = vrot.slane %v11148_v16, 6  ;;  %v11167_v19 = vrot.slane %v11148_v16, 2  ;;  %v11172_v20 = vrot.slane %v11089_v1, 2  ;;  %v11210_v30 = vld [vmem:[%s11083_s26 + $0x20] sm:$0x7] }
  0x34   : > { %1198 = vrot.lane.b32.xlu1 %v11089_v1, %s10942_s29  ;;  %v17099_v21 = vrot.slane %v11148_v16, 7  ;;  %v17112_v22 = vrot.slane %v11089_v1, 7  ;;  %v17087_v23 = vrot.slane %v11142_v14, 3  ;;  %v17096_v24 = vrot.slane %v11148_v16, 3  ;;  %v11266_v42 = vld [vmem:[%s11083_s26 + $0x2c] sm:$0x7] }
  0x35   : > { %17394 = vst [vmem:[#allocation9_spill] sm:$0xff] %v11167_v19  ;;  %v11192_v25 = vrot.slane %v11142_v14, 4  ;;  %v11198_v26 = vrot.slane %v11148_v16, 4  ;;  %v17098_v27 = vrot.slane %v11148_v16, 5  ;;  %v17097_v29 = vrot.slane %v11089_v1, 5 }
  0x36   : > { %1002 = vrot.lane.b32.xlu0 %v17114_v3, %s10943_s12  ;;  %v17094_v31 = vrot.slane %v11204_v28, 6  ;;  %v17093_v32 = vrot.slane %v11210_v30, 6  ;;  %v11229_v33 = vrot.slane %v11210_v30, 2  ;;  %v11234_v34 = vrot.slane %v11142_v14, 2  ;;  %v11272_v44 = vld [vmem:[%s11083_s26 + $0x28] sm:$0x7] }
  0x37   : > { %v17091_v35 = vrot.slane %v11210_v30, 7  ;;  %v17100_v36 = vrot.slane %v11142_v14, 7  ;;  %v17080_v37 = vrot.slane %v11204_v28, 3  ;;  %v17088_v38 = vrot.slane %v11210_v30, 3  ;;  %v11331_v57 = vld [vmem:[%s11083_s26 + $0x8] sm:$0x7] }
  0x38   : > { %609 = vrot.lane.b32.xlu1 %v11104_v5, %s10944_s14  ;;  %17395 = vst [vmem:[#allocation10_spill] sm:$0xff] %v11229_v33  ;;  %17396 = vst [vmem:[#allocation11_spill] sm:$0xff] %v11234_v34  ;;  %v11254_v39 = vrot.slane %v11204_v28, 4  ;;  %v11260_v40 = vrot.slane %v11210_v30, 4  ;;  %v17090_v41 = vrot.slane %v11210_v30, 5  ;;  %v17089_v43 = vrot.slane %v11142_v14, 5 }
  0x39   : > { %v17086_v45 = vrot.slane %v11266_v42, 6  ;;  %v17085_v46 = vrot.slane %v11272_v44, 6  ;;  %v11291_v47 = vrot.slane %v11272_v44, 2  ;;  %v11296_v48 = vrot.slane %v11204_v28, 2 }
  0x3a   : > { %607 = vrot.lane.b32.xlu0 %v11110_v6, %s10944_s14  ;;  %17397 = vst [vmem:[#allocation12_spill] sm:$0xff] %v11254_v39  ;;  %17398 = vst [vmem:[#allocation13_spill] sm:$0xff] %v11260_v40  ;;  %v17084_v49 = vrot.slane %v11272_v44, 7  ;;  %v17092_v50 = vrot.slane %v11204_v28, 7  ;;  %v17079_v51 = vrot.slane %v11266_v42, 3  ;;  %v17081_v52 = vrot.slane %v11272_v44, 3 }
  0x3b   : > { %17399 = vst [vmem:[#allocation14_spill] sm:$0xff] %v11291_v47  ;;  %17400 = vst [vmem:[#allocation15_spill] sm:$0xff] %v11296_v48  ;;  %v11316_v53 = vrot.slane %v11266_v42, 4  ;;  %v11322_v54 = vrot.slane %v11272_v44, 4  ;;  %v17083_v55 = vrot.slane %v11272_v44, 5  ;;  %v17082_v56 = vrot.slane %v11204_v28, 5 }
  0x3c   : > { %721 = vrot.lane.b32.xlu1 %v17111_v7, %s10942_s29  ;;  %v11337_v58 = vrot.slane %v11099_v4, 1  ;;  %v11343_v59 = vrot.slane %v11331_v57, 1  ;;  %v17109_v60 = vrot.slane %v11099_v4, 6  ;;  %v967_v62 = vrot.slane %v11331_v57, 6 }
  0x3d   : > { %17401 = vst [vmem:[#allocation16_spill] sm:$0xff] %v11316_v53  ;;  %17402 = vst [vmem:[#allocation17_spill] sm:$0xff] %v11322_v54 }
  0x3e   : > { %719 = vrot.lane.b32.xlu0 %v688_v8, %s10942_s29  ;;  %17403 = vst [vmem:[#allocation18_spill] sm:$0xff] %v11337_v58 }
  0x40   : > { %1114 = vrot.lane.b32.xlu1 %v17095_v9, %s10944_s14 }
  0x42   : > { %1112 = vrot.lane.b32.xlu0 %v17105_v10, %s10944_s14 }
  0x44   : > { %2198 = vrot.lane.b32.xlu1 %v11130_v11, %s10945_s15 }
  0x46   : > { %2196 = vrot.lane.b32.xlu0 %v11136_v12, %s10945_s15 }
  0x48   : > { %497 = vrot.lane.b32.xlu1 %v17108_v13, %s10943_s12 }
  0x4a   : > { %495 = vrot.lane.b32.xlu0 %v17110_v15, %s10943_s12 }
  0x4c   : > { %1006 = vrot.lane.b32.xlu1 %v17102_v17, %s10943_s12 }
  0x4e   : > { %1004 = vrot.lane.b32.xlu0 %v17101_v18, %s10943_s12 }
  0x50   : > { %1202 = vrot.lane.b32.xlu1 %v11142_v14, %s10942_s29 }
  0x52   : > { %1200 = vrot.lane.b32.xlu0 %v11148_v16, %s10942_s29 }
  0x54   : > { %613 = vrot.lane.b32.xlu1 %v11167_v19, %s10944_s14  ;;  %v11578_v19 = vrot.slane %v11266_v42, 2 }
  0x56   : > { %611 = vrot.lane.b32.xlu0 %v11172_v20, %s10944_s14  ;;  %17420 = vst [vmem:[#allocation35_spill] sm:$0xff] %v11578_v19 }
  0x58   : > { %725 = vrot.lane.b32.xlu1 %v17099_v21, %s10942_s29 }
  0x5a   : > { %723 = vrot.lane.b32.xlu0 %v17112_v22, %s10942_s29 }
  0x5c   : > { %1118 = vrot.lane.b32.xlu1 %v17087_v23, %s10944_s14 }
  0x5e   : > { %1116 = vrot.lane.b32.xlu0 %v17096_v24, %s10944_s14 }
  0x60   : > { %2202 = vrot.lane.b32.xlu1 %v11192_v25, %s10945_s15 }
  0x62   : > { %2200 = vrot.lane.b32.xlu0 %v11198_v26, %s10945_s15 }
  0x64   : > { %501 = vrot.lane.b32.xlu1 %v17098_v27, %s10943_s12 }
  0x66   : > { %499 = vrot.lane.b32.xlu0 %v17097_v29, %s10943_s12  ;;  %v17107_v29 = vrot.slane %v11331_v57, 5 }
  0x68   : > { %1010 = vrot.lane.b32.xlu1 %v17094_v31, %s10943_s12 }
  0x6a   : > { %1008 = vrot.lane.b32.xlu0 %v17093_v32, %s10943_s12 }
  0x6c   : > { %1206 = vrot.lane.b32.xlu1 %v11204_v28, %s10942_s29 }
  0x6e   : > { %1204 = vrot.lane.b32.xlu0 %v11210_v30, %s10942_s29 }
  0x70   : > { %617 = vrot.lane.b32.xlu1 %v11229_v33, %s10944_s14 }
  0x72   : > { %615 = vrot.lane.b32.xlu0 %v11234_v34, %s10944_s14 }
  0x74   : > { %729 = vrot.lane.b32.xlu1 %v17091_v35, %s10942_s29 }
  0x76   : > { %727 = vrot.lane.b32.xlu0 %v17100_v36, %s10942_s29 }
  0x78   : > { %1122 = vrot.lane.b32.xlu1 %v17080_v37, %s10944_s14 }
  0x7a   : > { %1120 = vrot.lane.b32.xlu0 %v17088_v38, %s10944_s14 }
  0x7c   : > { %2206 = vrot.lane.b32.xlu1 %v11254_v39, %s10945_s15 }
  0x7e   : > { %2204 = vrot.lane.b32.xlu0 %v11260_v40, %s10945_s15 }
  0x80   : > { %505 = vrot.lane.b32.xlu1 %v17090_v41, %s10943_s12 }
  0x82   : > { %503 = vrot.lane.b32.xlu0 %v17089_v43, %s10943_s12 }
  0x84   : > { %1014 = vrot.lane.b32.xlu1 %v17086_v45, %s10943_s12  ;;  %v11371_v45 = vrot.slane %v11086_v0, 1 }
  0x86   : > { %1012 = vrot.lane.b32.xlu0 %v17085_v46, %s10943_s12  ;;  %17406 = vst [vmem:[#allocation21_spill] sm:$0xff] %v11371_v45 }
  0x88   : > { %1210 = vrot.lane.b32.xlu1 %v11266_v42, %s10942_s29 }
  0x8a   : > { %1208 = vrot.lane.b32.xlu0 %v11272_v44, %s10942_s29 }
  0x8c   : > { %621 = vrot.lane.b32.xlu1 %v11291_v47, %s10944_s14 }
  0x8e   : > { %619 = vrot.lane.b32.xlu0 %v11296_v48, %s10944_s14  ;;  %v11512_v48 = vld [vmem:[%s11083_s26 + $0x34] sm:$0x7] }
  0x90   : > { %733 = vrot.lane.b32.xlu1 %v17084_v49, %s10942_s29  ;;  %v11368_v49 = vrot.slane %v11089_v1, 1 }
  0x92   : > { %731 = vrot.lane.b32.xlu0 %v17092_v50, %s10942_s29  ;;  %17405 = vst [vmem:[#allocation20_spill] sm:$0xff] %v11368_v49 }
  0x94   : > { %1126 = vrot.lane.b32.xlu1 %v17079_v51, %s10944_s14  ;;  %v17121_v51 = vmov 0.0  }
  0x95   : > { %9727 = vmatprep.subr.mxu1 %v17121_v51  ;;  %9704 = vmatprep.subr.mxu0 %v17121_v51 }
  0x96   : > { %1124 = vrot.lane.b32.xlu0 %v17081_v52, %s10944_s14  ;;  %9724 = vmatprep.mubr.msk.f32.mxu0 %vm10948_vm7, %v17121_v51 }
  0x97   : > { %9747 = vmatprep.mubr.msk.f32.mxu1 %vm10948_vm7, %v17121_v51 }
  0x98   : > { %2210 = vrot.lane.b32.xlu1 %v11316_v53, %s10945_s15  ;;  %v11528_v53 = vrot.slane %v11142_v14, 1 }
  0x9a   : > { %2208 = vrot.lane.b32.xlu0 %v11322_v54, %s10945_s15  ;;  %v11520_v54 = vld [vmem:[%s11083_s26 + $0x30] sm:$0x7] }
  0x9b   : > { %17416 = vst [vmem:[#allocation31_spill] sm:$0xff] %v11520_v54 }
  0x9c   : > { %509 = vrot.lane.b32.xlu1 %v17083_v55, %s10943_s12 }
  0x9e   : > { %507 = vrot.lane.b32.xlu0 %v17082_v56, %s10943_s12 }
  0xa0   : > { %1565 = vrot.lane.b32.xlu1 %v11337_v58, %s10942_s29 }
  0xa2   : > { %v11348_v61 = vpop.permute.xlu1 %1196  ;;  %1563 = vrot.lane.b32.xlu0 %v11343_v59, %s10942_s29 }
  0xa4   : > { %v1001_v63 = vpop.permute.xlu0 %1000  ;;  %1650 = vrot.lane.b32.xlu1 %v17109_v60, %s10946_s16 }
  0xa5   : > { %v1912_v35 = vsel %vm1908_vm1, %v11371_v45, %v1001_v63 }
  0xa6   : > { %v11358_v37 = vpop.permute.xlu1 %1198  ;;  %1648 = vrot.lane.b32.xlu0 %v967_v62, %s10946_s16 }
  0xa7   : > { %17404 = vst [vmem:[#allocation19_spill] sm:$0xff] %v11358_v37 }
  0xa8   : > { %v1003_v52 = vpop.permute.xlu0 %1002  ;;  %2481 = vrot.lane.b32.xlu1 %v11358_v37, %s10943_s12 }
  0xa9   : > { %v1913_v38 = vsel %vm1908_vm1, %v11368_v49, %v1003_v52 }
  0xaa   : > { %v610_v56 = vpop.permute.xlu1 %609  ;;  %2473 = vrot.lane.b32.xlu0 %v11348_v61, %s10943_s12 }
  0xac   : > { %v608_v55 = vpop.permute.xlu0 %607 }
  0xae   : > { %v722_v46 = vpop.permute.xlu1 %721 }
  0xaf   : > { %v11381_v50 = vsel %vm1821_vm2, %v610_v56, %v722_v46 }
  0xb0   : > { %v720_v23 = vpop.permute.xlu0 %719  ;;  %17408 = vst [vmem:[#allocation23_spill] sm:$0xff] %v11381_v50 }
  0xb2   : > { %v1115_v43 = vpop.permute.xlu1 %1114 }
  0xb3   : > { %v11376_v41 = vsel %vm1937_vm0, %v1913_v38, %v1115_v43  ;;  %v11393_v43 = vsel %vm1821_vm2, %v608_v55, %v720_v23 }
  0xb4   : > { %17407 = vst [vmem:[#allocation22_spill] sm:$0xff] %v11376_v41  ;;  %2479 = vrot.lane.b32.xlu1 %v11376_v41, %s10943_s12  ;;  %v1113_v32 = vpop.permute.xlu0 %1112  ;;  %17410 = vst [vmem:[#allocation25_spill] sm:$0xff] %v11393_v43 }
  0xb5   : > { %v11386_v31 = vsel %vm1937_vm0, %v1912_v35, %v1113_v32 }
  0xb6   : > { %17409 = vst [vmem:[#allocation24_spill] sm:$0xff] %v11386_v31  ;;  %v2199_v52 = vpop.permute.xlu1 %2198  ;;  %2471 = vrot.lane.b32.xlu0 %v11386_v31, %s10943_s12 }
  0xb7   : > { %v2322_v38 = vsel %vm1850_vm3, %v11381_v50, %v2199_v52  ;;  %v11549_v50 = vrot.slane %v11148_v16, 1 }
  0xb8   : > { %v2197_v46 = vpop.permute.xlu0 %2196  ;;  %v2350_v63 = vsel %vm1879_vm4, %v2322_v38, %v11368_v49 }
  0xb9   : > { %v2321_v32 = vsel %vm1850_vm3, %v11393_v43, %v2197_v46  ;;  %2477 = vrot.lane.b32.xlu1 %v2350_v63, %s10943_s12 }
  0xba   : > { %v498_v35 = vpop.permute.xlu1 %497  ;;  %v2349_v9 = vsel %vm1879_vm4, %v2321_v32, %v11371_v45 }
  0xbb   : > { %v1768_v52 = vsel %vm1763_vm5, %v11086_v0, %v498_v35  ;;  %2469 = vrot.lane.b32.xlu0 %v2349_v9, %s10943_s12  ;;  %v17106_v9 = vrot.slane %v11331_v57, 7 }
  0xbc   : > { %v496_v23 = vpop.permute.xlu0 %495  ;;  %v11406_v24 = vsel %vm1792_vm6, %v1768_v52, %v610_v56  ;;  %v17103_v56 = vrot.slane %v11099_v4, 4 }
  0xbd   : > { %17411 = vst [vmem:[#allocation26_spill] sm:$0xff] %v11406_v24  ;;  %v1767_v38 = vsel %vm1763_vm5, %v11099_v4, %v496_v23  ;;  %2475 = vrot.lane.b32.xlu1 %v11406_v24, %s10943_s12 }
  0xbe   : > { %v11413_v46 = vsel %vm1792_vm6, %v1767_v38, %v608_v55  ;;  %v11415_v63 = vpop.permute.xlu1 %1006  ;;  %v17104_v55 = vrot.slane %v11331_v57, 4  ;;  %v11445_v38 = vld [vmem:[%s11083_s26 + $0x4] sm:$0x7] }
  0xbf   : > { %17412 = vst [vmem:[#allocation27_spill] sm:$0xff] %v11413_v46  ;;  %2467 = vrot.lane.b32.xlu0 %v11413_v46, %s10943_s12  ;;  %v462_v21 = vrot.slane %v11445_v38, 5  ;;  %v966_v17 = vrot.slane %v11445_v38, 6  ;;  %v574_v10 = vrot.slane %v11445_v38, 2  ;;  %v686_v60 = vrot.slane %v11445_v38, 7 }
  0xc0   : > { %v11420_v32 = vpop.permute.xlu0 %1004 }
  0xc1   : > { %1394 = vrot.lane.b32.xlu1 %v688_v8, %s10943_s12 }
  0xc2   : > { %v11426_v35 = vpop.permute.xlu1 %1202 }
  0xc3   : > { %17413 = vst [vmem:[#allocation28_spill] sm:$0xff] %v11426_v35  ;;  %1392 = vrot.lane.b32.xlu0 %v17106_v9, %s10943_s12 }
  0xc4   : > { %v11432_v52 = vpop.permute.xlu0 %1200 }
  0xc5   : > { %17414 = vst [vmem:[#allocation29_spill] sm:$0xff] %v11432_v52  ;;  %1480 = vrot.lane.b32.xlu1 %v17103_v56, %s10944_s14 }
  0xc6   : > { %v11437_v23 = vpop.permute.xlu1 %613 }
  0xc7   : > { %1478 = vrot.lane.b32.xlu0 %v17104_v55, %s10944_s14  ;;  %v11463_v55 = vld [vmem:[%s11083_s26] sm:$0x7] }
  0xc8   : > { %v11442_v8 = vpop.permute.xlu0 %611  ;;  %v461_v47 = vrot.slane %v11463_v55, 5 }
  0xc9   : > { %1192 = vrot.lane.b32.xlu1 %v11331_v57, %s10942_s29 }
  0xca   : > { %v11450_v27 = vpop.permute.xlu1 %725 }
  0xcb   : > { %1190 = vrot.lane.b32.xlu0 %v11445_v38, %s10942_s29 }
  0xcc   : > { %v11455_v36 = vpop.permute.xlu0 %723 }
  0xcd   : > { %1277 = vrot.lane.b32.xlu1 %v17107_v29, %s10946_s16  ;;  %v573_v29 = vrot.slane %v11463_v55, 2 }
  0xce   : > { %v1119_v18 = vpop.permute.xlu1 %1118 }
  0xcf   : > { %1275 = vrot.lane.b32.xlu0 %v462_v21, %s10946_s16 }
  0xd0   : > { %v1117_v56 = vpop.permute.xlu0 %1116 }
  0xd1   : > { %996 = vrot.lane.b32.xlu1 %v967_v62, %s10943_s12  ;;  %v685_v62 = vrot.slane %v11463_v55, 7 }
  0xd2   : > { %v11469_v9 = vpop.permute.xlu1 %2202 }
  0xd3   : > { %994 = vrot.lane.b32.xlu0 %v966_v17, %s10943_s12  ;;  %v1079_v17 = vrot.slane %v11331_v57, 3 }
  0xd4   : > { %v11473_v13 = vpop.permute.xlu0 %2200 }
  0xd5   : > { %603 = vrot.lane.b32.xlu1 %v574_v10, %s10944_s14  ;;  %v1078_v10 = vrot.slane %v11445_v38, 3 }
  0xd6   : > { %v11477_v15 = vpop.permute.xlu1 %501 }
  0xd7   : > { %601 = vrot.lane.b32.xlu0 %v573_v29, %s10944_s14  ;;  %v798_v29 = vrot.slane %v11445_v38, 4 }
  0xd8   : > { %v11481_v7 = vpop.permute.xlu0 %499 }
  0xd9   : > { %715 = vrot.lane.b32.xlu1 %v686_v60, %s10942_s29 }
  0xda   : > { %v11485_v22 = vpop.permute.xlu1 %1010 }
  0xdb   : > { %713 = vrot.lane.b32.xlu0 %v685_v62, %s10942_s29  ;;  %v797_v62 = vrot.slane %v11463_v55, 4 }
  0xdc   : > { %v11489_v2 = vpop.permute.xlu0 %1008 }
  0xdd   : > { %1108 = vrot.lane.b32.xlu1 %v1079_v17, %s10944_s14 }
  0xde   : > { %v11495_v60 = vpop.permute.xlu1 %1206 }
  0xdf   : > { %17415 = vst [vmem:[#allocation30_spill] sm:$0xff] %v11495_v60  ;;  %1106 = vrot.lane.b32.xlu0 %v1078_v10, %s10944_s14 }
  0xe0   : > { %v11501_v3 = vpop.permute.xlu0 %1204 }
  0xe1   : > { %827 = vrot.lane.b32.xlu1 %v798_v29, %s10946_s16  ;;  %v17131_v29 = vrot.slane %v11512_v48, 6 }
  0xe2   : > { %v11504_v17 = vpop.permute.xlu1 %617 }
  0xe3   : > { %825 = vrot.lane.b32.xlu0 %v797_v62, %s10946_s16 }
  0xe4   : > { %v11508_v33 = vpop.permute.xlu0 %615 }
  0xe5   : > { %491 = vrot.lane.b32.xlu1 %v462_v21, %s10943_s12  ;;  %v17133_v21 = vrot.slane %v11520_v54, 6 }
  0xe6   : > { %v11514_v51 = vpop.permute.xlu1 %729 }
  0xe7   : > { %489 = vrot.lane.b32.xlu0 %v461_v47, %s10943_s12 }
  0xe8   : > { %v11517_v10 = vpop.permute.xlu0 %727 }
  0xe9   : > { %2497 = vrot.lane.b32.xlu1 %v11426_v35, %s10943_s12  ;;  %v1915_v35 = vsel %vm1908_vm1, %v11528_v53, %v11415_v63 }
  0xea   : > { %v11525_v62 = vpop.permute.xlu1 %1122 }
  0xeb   : > { %2489 = vrot.lane.b32.xlu0 %v11432_v52, %s10943_s12  ;;  %v11568_v52 = vrot.slane %v11520_v54, 2 }
  0xec   : > { %v11533_v47 = vpop.permute.xlu0 %1120 }
  0xed   : > { %1018 = vrot.lane.b32.xlu1 %v17131_v29, %s10943_s12  ;;  %v11554_v29 = vsel %vm1937_vm0, %v1915_v35, %v1119_v18  ;;  %17418 = vst [vmem:[#allocation33_spill] sm:$0xff] %v11568_v52 }
  0xee   : > { %v11538_v24 = vpop.permute.xlu1 %2206  ;;  %17417 = vst [vmem:[#allocation32_spill] sm:$0xff] %v11554_v29 }
  0xef   : > { %1016 = vrot.lane.b32.xlu0 %v17133_v21, %s10943_s12  ;;  %v1914_v21 = vsel %vm1908_vm1, %v11549_v50, %v11420_v32  ;;  %v17149_v32 = vrot.slane %v11520_v54, 7 }
  0xf0   : > { %v11546_v41 = vpop.permute.xlu0 %2204  ;;  %v11571_v18 = vsel %vm1937_vm0, %v1914_v21, %v1117_v56  ;;  %v17151_v56 = vrot.slane %v11266_v42, 7 }
  0xf1   : > { %1214 = vrot.lane.b32.xlu1 %v11512_v48, %s10942_s29  ;;  %17419 = vst [vmem:[#allocation34_spill] sm:$0xff] %v11571_v18 }
  0xf2   : > { %v11556_v37 = vpop.permute.xlu1 %505 }
  0xf3   : > { %1212 = vrot.lane.b32.xlu0 %v11520_v54, %s10942_s29 }
  0xf4   : > { %v11560_v63 = vpop.permute.xlu0 %503 }
  0xf5   : > { %2495 = vrot.lane.b32.xlu1 %v11554_v29, %s10943_s12 }
  0xf6   : > { %v11573_v35 = vpop.permute.xlu1 %1014 }
  0xf7   : > { %2487 = vrot.lane.b32.xlu0 %v11571_v18, %s10943_s12  ;;  %v17153_v18 = vrot.slane %v11512_v48, 3 }
  0xf8   : > { %v11580_v34 = vpop.permute.xlu0 %1012 }
  0xf9   : > { %625 = vrot.lane.b32.xlu1 %v11568_v52, %s10944_s14  ;;  %v17156_v52 = vrot.slane %v11520_v54, 3 }
  0xfa   : > { %v11585_v29 = vpop.permute.xlu1 %1210 }
  0xfb   : > { %17421 = vst [vmem:[#allocation36_spill] sm:$0xff] %v11585_v29  ;;  %623 = vrot.lane.b32.xlu0 %v11578_v19, %s10944_s14  ;;  %v11608_v19 = vrot.slane %v11512_v48, 4 }
  0xfc   : > { %v11590_v21 = vpop.permute.xlu0 %1208 }
  0xfd   : > { %737 = vrot.lane.b32.xlu1 %v17149_v32, %s10942_s29  ;;  %17422 = vst [vmem:[#allocation37_spill] sm:$0xff] %v11608_v19  ;;  %v11613_v32 = vsel %vm1821_vm2, %v11437_v23, %v11450_v27  ;;  %v11633_v27 = vsel %vm1821_vm2, %v11442_v8, %v11455_v36 }
  0xfe   : > { %v11596_v40 = vpop.permute.xlu1 %621  ;;  %17423 = vst [vmem:[#allocation38_spill] sm:$0xff] %v11613_v32  ;;  %17425 = vst [vmem:[#allocation40_spill] sm:$0xff] %v11633_v27 }
  0xff   : > { %735 = vrot.lane.b32.xlu0 %v17151_v56, %s10942_s29  ;;  %v11621_v56 = vrot.slane %v11520_v54, 4 }
 0x100   : > { %v11602_v39 = vpop.permute.xlu0 %619 }
 0x101   : > { %1130 = vrot.lane.b32.xlu1 %v17153_v18, %s10944_s14  ;;  %17424 = vst [vmem:[#allocation39_spill] sm:$0xff] %v11621_v56  ;;  %v2324_v18 = vsel %vm1850_vm3, %v11613_v32, %v11469_v9 }
 0x102   : > { %v11615_v46 = vpop.permute.xlu1 %733  ;;  %v2352_v9 = vsel %vm1879_vm4, %v2324_v18, %v11528_v53 }
 0x103   : > { %1128 = vrot.lane.b32.xlu0 %v17156_v52, %s10944_s14  ;;  %v2323_v52 = vsel %vm1850_vm3, %v11633_v27, %v11473_v13  ;;  %v17165_v13 = vrot.slane %v11266_v42, 5 }
 0x104   : > { %v11623_v43 = vpop.permute.xlu0 %731  ;;  %v2351_v36 = vsel %vm1879_vm4, %v2323_v52, %v11549_v50 }
 0x105   : > { %2214 = vrot.lane.b32.xlu1 %v11608_v19, %s10945_s15  ;;  %v17162_v19 = vrot.slane %v11520_v54, 5  ;;  %v17429_v54 = vrot.slane %v11086_v0, 6 }
 0x106   : > { %v11635_v58 = vpop.permute.xlu1 %1126 }
 0x107   : > { %2212 = vrot.lane.b32.xlu0 %v11621_v56, %s10945_s15  ;;  %v17428_v56 = vrot.slane %v11089_v1, 6 }
 0x108   : > { %v11642_v31 = vpop.permute.xlu0 %1124 }
 0x109   : > { %2493 = vrot.lane.b32.xlu1 %v2352_v9, %s10943_s12 }
 0x10a   : > { %v11650_v32 = vpop.permute.xlu1 %2210 }
 0x10b   : > { %2485 = vrot.lane.b32.xlu0 %v2351_v36, %s10943_s12 }
 0x10c   : > { %v11654_v27 = vpop.permute.xlu0 %2208 }
 0x10d   : > { %513 = vrot.lane.b32.xlu1 %v17162_v19, %s10943_s12  ;;  %v1770_v19 = vsel %vm1763_vm5, %v11148_v16, %v11477_v15 }
 0x10e   : > { %v11659_v18 = vpop.permute.xlu1 %509 }
 0x10f   : > { %17426 = vst [vmem:[#allocation41_spill] sm:$0xff] %v11659_v18  ;;  %511 = vrot.lane.b32.xlu0 %v17165_v13, %s10943_s12 }
 0x110   : > { %v11664_v9 = vpop.permute.xlu0 %507 }
 0x111   : > { %17427 = vst [vmem:[#allocation42_spill] sm:$0xff] %v11664_v9  ;;  %1569 = vrot.lane.b32.xlu1 %v11368_v49, %s10942_s29  ;;  %v1769_v49 = vsel %vm1763_vm5, %v11089_v1, %v11481_v7 }
 0x112   : > { %v11668_v52 = vpop.permute.xlu1 %1565  ;;  %v11694_v15 = vsel %vm1792_vm6, %v1769_v49, %v11442_v8  ;;  %v17434_v49 = vrot.slane %v11086_v0, 7 }
 0x113   : > { %1567 = vrot.lane.b32.xlu0 %v11371_v45, %s10942_s29  ;;  %v11688_v45 = vsel %vm1792_vm6, %v1770_v19, %v11437_v23  ;;  %17431 = vst [vmem:[#allocation44_spill] sm:$0xff] %v11694_v15  ;;  %v17433_v19 = vrot.slane %v11089_v1, 7  ;;  %v17435_v23 = vrot.slane %v11099_v4, 5 }
 0x114   : > { %v11672_v36 = vpop.permute.xlu0 %1563  ;;  %17430 = vst [vmem:[#allocation43_spill] sm:$0xff] %v11688_v45 }
 0x115   : > { %1654 = vrot.lane.b32.xlu1 %v17428_v56, %s10946_s16 }
 0x116   : > { %v1651_v13 = vpop.permute.xlu1 %1650 }
 0x117   : > { %1652 = vrot.lane.b32.xlu0 %v17429_v54, %s10946_s16  ;;  %v17432_v54 = vmov 0.0  }
 0x118   : > { %v1649_v9 = vpop.permute.xlu0 %1648 }
 0x119   : > { %2491 = vrot.lane.b32.xlu1 %v11688_v45, %s10943_s12 }
 0x11a   : > { %v2482_v56 = vpop.permute.xlu1 %2481 }
 0x11b   : > { %2483 = vrot.lane.b32.xlu0 %v11694_v15, %s10943_s12  ;;  %9728 = vmatpush3.msk.msra.mxu1 %vm1763_vm5, %v2482_v56  ;;  %v17439_v15 = vrot.slane %v11086_v0, 3 }
 0x11c   : > { %v2474_v7 = vpop.permute.xlu0 %2473  ;;  %9729 = vmatprep.subr.mxu1 %v17432_v54 }
 0x11d   : > { %1398 = vrot.lane.b32.xlu1 %v17433_v19, %s10943_s12  ;;  %9705 = vmatpush3.msk.msra.mxu0 %vm1763_vm5, %v2474_v7  ;;  %v17436_v7 = vrot.slane %v11099_v4, 6 }
 0x11e   : > { %9706 = vmatprep.subr.mxu0 %v17432_v54 }
 0x11f   : > { %1396 = vrot.lane.b32.xlu0 %v17434_v49, %s10943_s12  ;;  %v17437_v49 = vrot.slane %v11086_v0, 5 }
 0x121   : > { %1484 = vrot.lane.b32.xlu1 %v11130_v11, %s10944_s14 }
 0x123   : > { %1482 = vrot.lane.b32.xlu0 %v11136_v12, %s10944_s14 }
 0x125   : > { %1279 = vrot.lane.b32.xlu1 %v17435_v23, %s10946_s16  ;;  %v11726_v23 = vrot.slane %v11331_v57, 2 }
 0x126   : > { %v2480_v8 = vpop.permute.xlu1 %2479 }
 0x127   : > { %9730 = vmatpush3.msra.mxu1 %v2480_v8  ;;  %1194 = vrot.lane.b32.xlu0 %v11099_v4, %s10942_s29  ;;  %v2107_v8 = vsel %vm1908_vm1, %v11668_v52, %v1651_v13 }
 0x128   : > { %v2472_v56 = vpop.permute.xlu0 %2471  ;;  %9731 = vmatprep.subr.mxu1 %v17432_v54  ;;  %v2135_v13 = vsel %vm1937_vm0, %v2107_v8, %v17439_v15  ;;  %v17441_v8 = vrot.slane %v11331_v57, 5 }
 0x129   : > { %9707 = vmatpush3.msra.mxu0 %v2472_v56  ;;  %998 = vrot.lane.b32.xlu1 %v17436_v7, %s10943_s12  ;;  %v17438_v56 = vrot.slane %v11331_v57, 7 }
 0x12a   : > { %9708 = vmatprep.subr.mxu0 %v17432_v54 }
 0x12b   : > { %v2478_v19 = vpop.permute.xlu1 %2477  ;;  %1281 = vrot.lane.b32.xlu0 %v17437_v49, %s10946_s16  ;;  %v1080_v49 = vrot.slane %v11099_v4, 3 }
 0x12c   : > { %9732 = vmatpush3.msra.mxu1 %v2478_v19  ;;  %v2106_v19 = vsel %vm1908_vm1, %v11672_v36, %v1649_v9 }
 0x12d   : > { %v2470_v45 = vpop.permute.xlu0 %2469  ;;  %717 = vrot.lane.b32.xlu1 %v17438_v56, %s10942_s29  ;;  %9733 = vmatprep.subr.mxu1 %v17432_v54  ;;  %v2134_v0 = vsel %vm1937_vm0, %v2106_v19, %v1080_v49  ;;  %v11765_v19 = vld [vmem:[%s11083_s26 + $0x38] sm:$0x7] }
 0x12e   : > { %9709 = vmatpush3.msra.mxu0 %v2470_v45  ;;  %v17440_v45 = vrot.slane %v11331_v57, 4 }
 0x12f   : > { %v2476_v7 = vpop.permute.xlu1 %2475  ;;  %605 = vrot.lane.b32.xlu0 %v11726_v23, %s10944_s14  ;;  %9710 = vmatprep.subr.mxu0 %v17432_v54 }
 0x130   : > { %9734 = vmatpush3.msra.mxu1 %v2476_v7  ;;  %v11758_v7 = vld [vmem:[%s11083_s26 + $0x3c] sm:$0x7] }
 0x131   : > { %v2468_v56 = vpop.permute.xlu0 %2467  ;;  %829 = vrot.lane.b32.xlu1 %v17440_v45, %s10946_s16  ;;  %9735 = vmatprep.subr.mxu1 %v17432_v54  ;;  %v17173_v57 = vrot.slane %v11758_v7, 6 }
 0x132   : > { %9711 = vmatpush3.msra.mxu0 %v2468_v56  ;;  %9736 = vmatpush3.msra.mxu1 %v2135_v13  ;;  %v17442_v56 = vrot.slane %v11099_v4, 4 }
 0x133   : > { %v1395_v18 = vpop.permute.xlu1 %1394  ;;  %9712 = vmatprep.subr.mxu0 %v17432_v54  ;;  %1110 = vrot.lane.b32.xlu0 %v1080_v49, %s10944_s14 }
 0x134   : > { %9713 = vmatpush3.msra.mxu0 %v2134_v0  ;;  %9737 = vmatprep.subr.mxu1 %v17432_v54  ;;  %v2023_v9 = vsel %vm1821_vm2, %v11110_v6, %v1395_v18 }
 0x135   : > { %v1393_v15 = vpop.permute.xlu0 %1392  ;;  %493 = vrot.lane.b32.xlu1 %v17441_v8, %s10943_s12  ;;  %9714 = vmatprep.subr.mxu0 %v17432_v54 }
 0x136   : > { %v2022_v18 = vsel %vm1821_vm2, %v11726_v23, %v1393_v15  ;;  %v17172_v15 = vrot.slane %v11765_v19, 6 }
 0x137   : > { %v1481_v13 = vpop.permute.xlu1 %1480  ;;  %831 = vrot.lane.b32.xlu0 %v17442_v56, %s10946_s16 }
 0x138   : > { %v2051_v49 = vsel %vm1850_vm3, %v2023_v9, %v1481_v13  ;;  %v11782_v13 = vrot.slane %v11204_v28, 1 }
 0x139   : > { %v1479_v45 = vpop.permute.xlu0 %1478  ;;  %2513 = vrot.lane.b32.xlu1 %v11495_v60, %s10943_s12  ;;  %v2079_v0 = vsel %vm1879_vm4, %v2051_v49, %v11668_v52  ;;  %v11793_v49 = vrot.slane %v11210_v30, 1 }
 0x13a   : > { %v2050_v8 = vsel %vm1850_vm3, %v2022_v18, %v1479_v45  ;;  %9738 = vmatpush3.msra.mxu1 %v2079_v0  ;;  %17443 = vst [vmem:[#allocation45_spill] sm:$0xff] %v11782_v13  ;;  %v1917_v18 = vsel %vm1908_vm1, %v11782_v13, %v11485_v22 }
 0x13b   : > { %v1193_v4 = vpop.permute.xlu1 %1192  ;;  %2505 = vrot.lane.b32.xlu0 %v11501_v3, %s10943_s12  ;;  %v2078_v9 = vsel %vm1879_vm4, %v2050_v8, %v11672_v36  ;;  %9739 = vmatprep.subr.mxu1 %v17432_v54  ;;  %v11810_v22 = vsel %vm1937_vm0, %v1917_v18, %v11525_v62  ;;  %v17178_v18 = vrot.slane %v11765_v19, 7 }
 0x13c   : > { %9715 = vmatpush3.msra.mxu0 %v2078_v9  ;;  %17444 = vst [vmem:[#allocation46_spill] sm:$0xff] %v11810_v22 }
 0x13d   : > { %v1191_v56 = vpop.permute.xlu0 %1190  ;;  %1022 = vrot.lane.b32.xlu1 %v17173_v57, %s10943_s12  ;;  %9716 = vmatprep.subr.mxu0 %v17432_v54  ;;  %v17182_v57 = vrot.slane %v11765_v19, 3 }
 0x13f   : > { %v1278_v52 = vpop.permute.xlu1 %1277  ;;  %1020 = vrot.lane.b32.xlu0 %v17172_v15, %s10943_s12 }
 0x140   : > { %v1967_v36 = vsel %vm1763_vm5, %v1193_v4, %v1278_v52  ;;  %v11818_v52 = vrot.slane %v11765_v19, 2 }
 0x141   : > { %1218 = vrot.lane.b32.xlu1 %v11758_v7, %s10942_s29  ;;  %v1276_v45 = vpop.permute.xlu0 %1275  ;;  %v1995_v0 = vsel %vm1792_vm6, %v1967_v36, %v11110_v6  ;;  %v1916_v6 = vsel %vm1908_vm1, %v11793_v49, %v11489_v2  ;;  %v11828_v36 = vrot.slane %v11512_v48, 2 }
 0x142   : > { %v1966_v8 = vsel %vm1763_vm5, %v1191_v56, %v1276_v45  ;;  %9740 = vmatpush3.msra.mxu1 %v1995_v0  ;;  %17445 = vst [vmem:[#allocation47_spill] sm:$0xff] %v11818_v52 }
 0x143   : > { %v997_v9 = vpop.permute.xlu1 %996  ;;  %1216 = vrot.lane.b32.xlu0 %v11765_v19, %s10942_s29  ;;  %v1994_v4 = vsel %vm1792_vm6, %v1966_v8, %v11726_v23  ;;  %9741 = vmatprep.subr.mxu1 %v17432_v54  ;;  %v11823_v23 = vsel %vm1937_vm0, %v1916_v6, %v11533_v47  ;;  %17446 = vst [vmem:[#allocation48_spill] sm:$0xff] %v11828_v36  ;;  %v17180_v47 = vrot.slane %v11512_v48, 7  ;;  %v910_v8 = vrot.slane %v11445_v38, 1 }
 0x144   : > { %9717 = vmatpush3.msra.mxu0 %v1994_v4  ;;  %v1910_v0 = vsel %vm1908_vm1, %v11343_v59, %v997_v9  ;;  %v17181_v6 = vrot.slane %v11758_v7, 3 }
 0x145   : > { %2511 = vrot.lane.b32.xlu1 %v11810_v22, %s10943_s12  ;;  %v995_v56 = vpop.permute.xlu0 %994  ;;  %9718 = vmatprep.subr.mxu0 %v17432_v54  ;;  %v11854_v22 = vrot.slane %v11758_v7, 4 }
 0x146   : > { %v1909_v9 = vsel %vm1908_vm1, %v910_v8, %v995_v56 }
 0x147   : > { %v604_v62 = vpop.permute.xlu1 %603  ;;  %2503 = vrot.lane.b32.xlu0 %v11823_v23, %s10943_s12  ;;  %17447 = vst [vmem:[#allocation49_spill] sm:$0xff] %v11854_v22 }
 0x149   : > { %629 = vrot.lane.b32.xlu1 %v11818_v52, %s10944_s14  ;;  %v602_v2 = vpop.permute.xlu0 %601 }
 0x14b   : > { %v716_v45 = vpop.permute.xlu1 %715  ;;  %627 = vrot.lane.b32.xlu0 %v11828_v36, %s10944_s14 }
 0x14c   : > { %v1823_v36 = vsel %vm1821_vm2, %v604_v62, %v716_v45  ;;  %v11867_v45 = vrot.slane %v11765_v19, 4 }
 0x14d   : > { %741 = vrot.lane.b32.xlu1 %v17178_v18, %s10942_s29  ;;  %v714_v4 = vpop.permute.xlu0 %713 }
 0x14e   : > { %17449 = vst [vmem:[#allocation51_spill] sm:$0xff] %v11867_v45 }
 0x14f   : > { %v1109_v15 = vpop.permute.xlu1 %1108  ;;  %739 = vrot.lane.b32.xlu0 %v17180_v47, %s10942_s29  ;;  %v11859_v47 = vsel %vm1821_vm2, %v11504_v17, %v11514_v51 }
 0x150   : > { %v1939_v52 = vsel %vm1937_vm0, %v1910_v0, %v1109_v15  ;;  %17448 = vst [vmem:[#allocation50_spill] sm:$0xff] %v11859_v47  ;;  %v2326_v51 = vsel %vm1850_vm3, %v11859_v47, %v11538_v24 }
 0x151   : > { %1134 = vrot.lane.b32.xlu1 %v17181_v6, %s10944_s14  ;;  %v1107_v18 = vpop.permute.xlu0 %1106  ;;  %9742 = vmatpush3.msra.mxu1 %v1939_v52 }
 0x152   : > { %v1938_v15 = vsel %vm1937_vm0, %v1909_v9, %v1107_v18  ;;  %9743 = vmatprep.subr.mxu1 %v17432_v54  ;;  %v1822_v18 = vsel %vm1821_vm2, %v602_v2, %v714_v4 }
 0x153   : > { %v828_v56 = vpop.permute.xlu1 %827  ;;  %9719 = vmatpush3.msra.mxu0 %v1938_v15  ;;  %1132 = vrot.lane.b32.xlu0 %v17182_v57, %s10944_s14  ;;  %v11882_v15 = vsel %vm1821_vm2, %v11508_v33, %v11517_v10  ;;  %v2354_v10 = vsel %vm1879_vm4, %v2326_v51, %v11782_v13 }
 0x154   : > { %v1852_v52 = vsel %vm1850_vm3, %v1823_v36, %v828_v56  ;;  %9720 = vmatprep.subr.mxu0 %v17432_v54  ;;  %v2325_v24 = vsel %vm1850_vm3, %v11882_v15, %v11546_v41  ;;  %v17184_v41 = vrot.slane %v11765_v19, 5 }
 0x155   : > { %2218 = vrot.lane.b32.xlu1 %v11854_v22, %s10945_s15  ;;  %v826_v0 = vpop.permute.xlu0 %825  ;;  %v1881_v9 = vsel %vm1879_vm4, %v1852_v52, %v11343_v59 }
 0x156   : > { %v1851_v36 = vsel %vm1850_vm3, %v1822_v18, %v826_v0  ;;  %9744 = vmatpush3.msra.mxu1 %v1881_v9  ;;  %v2353_v0 = vsel %vm1879_vm4, %v2325_v24, %v11793_v49  ;;  %v11909_v9 = vld [vmem:[%s17068_s1] sm:$0x3f] }
 0x157   : > { %v492_v4 = vpop.permute.xlu1 %491  ;;  %2216 = vrot.lane.b32.xlu0 %v11867_v45, %s10945_s15  ;;  %v1880_v56 = vsel %vm1879_vm4, %v1851_v36, %v910_v8  ;;  %9745 = vmatprep.subr.mxu1 %v17432_v54 }
 0x158   : > { %v1765_v59 = vsel %vm1763_vm5, %v11445_v38, %v492_v4  ;;  %9721 = vmatpush3.msra.mxu0 %v1880_v56  ;;  %v1772_v4 = vsel %vm1763_vm5, %v11210_v30, %v11556_v37  ;;  %v17451_v56 = vrot.slane %v11142_v14, 6 }
 0x159   : > { %2509 = vrot.lane.b32.xlu1 %v2354_v10, %s10943_s12  ;;  %v490_v52 = vpop.permute.xlu0 %489  ;;  %9722 = vmatprep.subr.mxu0 %v17432_v54  ;;  %v1794_v18 = vsel %vm1792_vm6, %v1765_v59, %v604_v62  ;;  %v17183_v62 = vrot.slane %v11512_v48, 5  ;;  %v1771_v10 = vsel %vm1763_vm5, %v11142_v14, %v11560_v63 }
 0x15a   : > { %v1764_v8 = vsel %vm1763_vm5, %v11463_v55, %v490_v52  ;;  %9746 = vmatpush3.msra.mxu1 %v1794_v18  ;;  %v17453_v18 = vrot.slane %v11148_v16, 6  ;;  %v11965_v63 = vsel %vm1792_vm6, %v1771_v10, %v11508_v33  ;;  %v17456_v33 = vrot.slane %v11148_v16, 7 }
 0x15b   : > { %v2498_v38 = vpop.permute.xlu1 %2497  ;;  %2501 = vrot.lane.b32.xlu0 %v2353_v0, %s10943_s12  ;;  %v1793_v51 = vsel %vm1792_vm6, %v1764_v8, %v602_v2  ;;  %9773 = vmatprep.subr.mxu1 %v17432_v54  ;;  %v11958_v8 = vsel %vm1792_vm6, %v1772_v4, %v11504_v17  ;;  %v17455_v17 = vrot.slane %v11142_v14, 7 }
 0x15c   : > { %9723 = vmatpush3.msra.mxu0 %v1793_v51  ;;  %9748 = vmatmul.mubr.msk.f32.vlgmr.msra.gmra.mxu1 %vm2780_vm8, %v11909_v9  ;;  %17454 = vst [vmem:[#allocation54_spill] sm:$0xff] %v11958_v8 }
 0x15d   : > { %517 = vrot.lane.b32.xlu1 %v17184_v41, %s10943_s12  ;;  %9750 = vmatprep.subr.mxu0 %v17432_v54  ;;  %v2490_v55 = vpop.permute.xlu0 %2489 }
 0x15e   : > { %9725 = vmatmul.mubr.msk.f32.vlgmr.msra.gmra.mxu0 %vm2780_vm8, %v11909_v9  ;;  %9774 = vmatpush3.msk.msra.mxu1 %vm1763_vm5, %v2498_v38 }
 0x15f   : > { %9751 = vmatpush3.msk.msra.mxu0 %vm1763_vm5, %v2490_v55  ;;  %v11923_v2 = vpop.permute.xlu1 %1018  ;;  %515 = vrot.lane.b32.xlu0 %v17183_v62, %s10943_s12 }
 0x160   : > { %9752 = vmatprep.subr.mxu0 %v17432_v54  ;;  %9775 = vmatprep.subr.mxu1 %v17432_v54 }
 0x161   : > { %1573 = vrot.lane.b32.xlu1 %v11528_v53, %s10942_s29  ;;  %v11932_v36 = vpop.permute.xlu0 %1016  ;;  %9770 = vmatprep.mubr.msk.f32.mxu0 %vm10948_vm7, %v17432_v54 }
 0x162   : > { %9793 = vmatprep.mubr.msk.f32.mxu1 %vm10948_vm7, %v17432_v54 }
 0x163   : > { %v11938_v24 = vpop.permute.xlu1 %1214  ;;  %1571 = vrot.lane.b32.xlu0 %v11549_v50, %s10942_s29 }
 0x164   : > { %17450 = vst [vmem:[#allocation52_spill] sm:$0xff] %v11938_v24 }
 0x165   : > { %1658 = vrot.lane.b32.xlu1 %v17451_v56, %s10946_s16  ;;  %v11948_v59 = vpop.permute.xlu0 %1212  ;;  %v17457_v56 = vrot.slane %v11148_v16, 5 }
 0x166   : > { %17452 = vst [vmem:[#allocation53_spill] sm:$0xff] %v11948_v59 }
 0x167   : > { %v2496_v52 = vpop.permute.xlu1 %2495  ;;  %1656 = vrot.lane.b32.xlu0 %v17453_v18, %s10946_s16  ;;  %v17458_v18 = vrot.slane %v11089_v1, 5 }
 0x168   : > { %9776 = vmatpush3.msra.mxu1 %v2496_v52 }
 0x169   : > { %2507 = vrot.lane.b32.xlu1 %v11958_v8, %s10943_s12  ;;  %v2488_v37 = vpop.permute.xlu0 %2487  ;;  %9777 = vmatprep.subr.mxu1 %v17432_v54 }
 0x16a   : > { %9753 = vmatpush3.msra.mxu0 %v2488_v37 }
 0x16b   : > { %v11967_v0 = vpop.permute.xlu1 %625  ;;  %2499 = vrot.lane.b32.xlu0 %v11965_v63, %s10943_s12  ;;  %9754 = vmatprep.subr.mxu0 %v17432_v54 }
 0x16d   : > { %1402 = vrot.lane.b32.xlu1 %v17455_v17, %s10943_s12  ;;  %v11975_v38 = vpop.permute.xlu0 %623  ;;  %v12005_v17 = vld [vmem:[%s11083_s26 + $0x44] sm:$0x7] }
 0x16f   : > { %v11977_v51 = vpop.permute.xlu1 %737  ;;  %1400 = vrot.lane.b32.xlu0 %v17456_v33, %s10943_s12 }
 0x171   : > { %1488 = vrot.lane.b32.xlu1 %v11192_v25, %s10944_s14  ;;  %v11984_v55 = vpop.permute.xlu0 %735 }
 0x173   : > { %v11986_v4 = vpop.permute.xlu1 %1130  ;;  %1486 = vrot.lane.b32.xlu0 %v11198_v26, %s10944_s14 }
 0x175   : > { %1285 = vrot.lane.b32.xlu1 %v17457_v56, %s10946_s16  ;;  %v11993_v10 = vpop.permute.xlu0 %1128  ;;  %v12010_v56 = vld [vmem:[%s11083_s26 + $0x40] sm:$0x7] }
 0x176   : > { %v17189_v57 = vrot.slane %v12010_v56, 6  ;;  %v12054_v8 = vrot.slane %v12010_v56, 2 }
 0x177   : > { %v11995_v52 = vpop.permute.xlu1 %2214  ;;  %1283 = vrot.lane.b32.xlu0 %v17458_v18, %s10946_s16  ;;  %v17188_v18 = vrot.slane %v12005_v17, 6 }
 0x178   : > { %17461 = vst [vmem:[#allocation57_spill] sm:$0xff] %v12054_v8 }
 0x179   : > { %835 = vrot.lane.b32.xlu1 %v11130_v11, %s10946_s16  ;;  %v12002_v37 = vpop.permute.xlu0 %2212 }
 0x17b   : > { %v2494_v33 = vpop.permute.xlu1 %2493  ;;  %833 = vrot.lane.b32.xlu0 %v11136_v12, %s10946_s16  ;;  %v12023_v12 = vrot.slane %v11266_v42, 1 }
 0x17c   : > { %9778 = vmatpush3.msra.mxu1 %v2494_v33 }
 0x17d   : > { %2529 = vrot.lane.b32.xlu1 %v11585_v29, %s10943_s12  ;;  %v2486_v6 = vpop.permute.xlu0 %2485  ;;  %9779 = vmatprep.subr.mxu1 %v17432_v54  ;;  %17459 = vst [vmem:[#allocation55_spill] sm:$0xff] %v12023_v12  ;;  %v1919_v41 = vsel %vm1908_vm1, %v12023_v12, %v11573_v35 }
 0x17e   : > { %9755 = vmatpush3.msra.mxu0 %v2486_v6  ;;  %v12034_v6 = vrot.slane %v11272_v44, 1 }
 0x17f   : > { %v12016_v11 = vpop.permute.xlu1 %513  ;;  %2521 = vrot.lane.b32.xlu0 %v11590_v21, %s10943_s12  ;;  %9756 = vmatprep.subr.mxu0 %v17432_v54 }
 0x180   : > { %v1918_v22 = vsel %vm1908_vm1, %v12034_v6, %v11580_v34  ;;  %v17464_v34 = vrot.slane %v11148_v16, 3  ;;  %v17465_v16 = vrot.slane %v11089_v1, 3 }
 0x181   : > { %1026 = vrot.lane.b32.xlu1 %v17188_v18, %s10943_s12  ;;  %v12028_v33 = vpop.permute.xlu0 %511  ;;  %v12045_v18 = vsel %vm1937_vm0, %v1919_v41, %v11635_v58  ;;  %v12058_v47 = vsel %vm1937_vm0, %v1918_v22, %v11642_v31  ;;  %v12063_v58 = vrot.slane %v11758_v7, 2  ;;  %v17196_v31 = vrot.slane %v12010_v56, 7 }
 0x182   : > { %17460 = vst [vmem:[#allocation56_spill] sm:$0xff] %v12045_v18  ;;  %17462 = vst [vmem:[#allocation58_spill] sm:$0xff] %v12058_v47 }
 0x183   : > { %v1570_v62 = vpop.permute.xlu1 %1569  ;;  %1024 = vrot.lane.b32.xlu0 %v17189_v57, %s10943_s12  ;;  %17463 = vst [vmem:[#allocation59_spill] sm:$0xff] %v12063_v58 }
 0x185   : > { %1222 = vrot.lane.b32.xlu1 %v12005_v17, %s10942_s29  ;;  %v1568_v29 = vpop.permute.xlu0 %1567 }
 0x187   : > { %v1655_v45 = vpop.permute.xlu1 %1654  ;;  %1220 = vrot.lane.b32.xlu0 %v12010_v56, %s10942_s29 }
 0x188   : > { %v2109_v57 = vsel %vm1908_vm1, %v1570_v62, %v1655_v45 }
 0x189   : > { %2527 = vrot.lane.b32.xlu1 %v12045_v18, %s10943_s12  ;;  %v1653_v35 = vpop.permute.xlu0 %1652  ;;  %v2137_v45 = vsel %vm1937_vm0, %v2109_v57, %v17464_v34  ;;  %v17197_v57 = vrot.slane %v11758_v7, 7  ;;  %v17198_v34 = vrot.slane %v12005_v17, 3 }
 0x18a   : > { %v2108_v41 = vsel %vm1908_vm1, %v1568_v29, %v1653_v35 }
 0x18b   : > { %v2492_v60 = vpop.permute.xlu1 %2491  ;;  %2519 = vrot.lane.b32.xlu0 %v12058_v47, %s10943_s12 }
 0x18c   : > { %9780 = vmatpush3.msra.mxu1 %v2492_v60  ;;  %v2136_v60 = vsel %vm1937_vm0, %v2108_v41, %v17465_v16 }
 0x18d   : > { %633 = vrot.lane.b32.xlu1 %v12054_v8, %s10944_s14  ;;  %v2484_v18 = vpop.permute.xlu0 %2483  ;;  %9781 = vmatprep.subr.mxu1 %v17432_v54 }
 0x18e   : > { %9757 = vmatpush3.msra.mxu0 %v2484_v18  ;;  %9782 = vmatpush3.msra.mxu1 %v2137_v45  ;;  %v17199_v45 = vrot.slane %v12010_v56, 3 }
 0x18f   : > { %v1399_v22 = vpop.permute.xlu1 %1398  ;;  %631 = vrot.lane.b32.xlu0 %v12063_v58, %s10944_s14  ;;  %9758 = vmatprep.subr.mxu0 %v17432_v54 }
 0x190   : > { %9759 = vmatpush3.msra.mxu0 %v2136_v60  ;;  %9783 = vmatprep.subr.mxu1 %v17432_v54  ;;  %v2025_v35 = vsel %vm1821_vm2, %v11172_v20, %v1399_v22  ;;  %v12099_v60 = vrot.slane %v12005_v17, 4 }
 0x191   : > { %745 = vrot.lane.b32.xlu1 %v17196_v31, %s10942_s29  ;;  %v1397_v18 = vpop.permute.xlu0 %1396  ;;  %9760 = vmatprep.subr.mxu0 %v17432_v54 }
 0x192   : > { %v2024_v22 = vsel %vm1821_vm2, %v11104_v5, %v1397_v18  ;;  %17466 = vst [vmem:[#allocation60_spill] sm:$0xff] %v12099_v60 }
 0x193   : > { %v1485_v1 = vpop.permute.xlu1 %1484  ;;  %743 = vrot.lane.b32.xlu0 %v17197_v57, %s10942_s29  ;;  %v12105_v57 = vsel %vm1821_vm2, %v11596_v40, %v11615_v46 }
 0x194   : > { %v2053_v41 = vsel %vm1850_vm3, %v2025_v35, %v1485_v1  ;;  %17467 = vst [vmem:[#allocation61_spill] sm:$0xff] %v12105_v57  ;;  %v2328_v46 = vsel %vm1850_vm3, %v12105_v57, %v11650_v32 }
 0x195   : > { %1138 = vrot.lane.b32.xlu1 %v17198_v34, %s10944_s14  ;;  %v1483_v16 = vpop.permute.xlu0 %1482  ;;  %v2081_v31 = vsel %vm1879_vm4, %v2053_v41, %v1570_v62  ;;  %v12113_v34 = vrot.slane %v12010_v56, 4 }
 0x196   : > { %v2052_v35 = vsel %vm1850_vm3, %v2024_v22, %v1483_v16  ;;  %9784 = vmatpush3.msra.mxu1 %v2081_v31  ;;  %v2356_v16 = vsel %vm1879_vm4, %v2328_v46, %v12023_v12  ;;  %v17200_v46 = vrot.slane %v11758_v7, 5 }
 0x197   : > { %v1280_v1 = vpop.permute.xlu1 %1279  ;;  %1136 = vrot.lane.b32.xlu0 %v17199_v45, %s10944_s14  ;;  %v2080_v18 = vsel %vm1879_vm4, %v2052_v35, %v1568_v29  ;;  %17468 = vst [vmem:[#allocation62_spill] sm:$0xff] %v12113_v34  ;;  %9785 = vmatprep.subr.mxu1 %v17432_v54  ;;  %v12125_v29 = vsel %vm1821_vm2, %v11602_v39, %v11623_v43  ;;  %v17201_v35 = vrot.slane %v12010_v56, 5  ;;  %v17474_v45 = vld [vmem:[#allocation25_spill] sm:$0xff] }
 0x198   : > { %9761 = vmatpush3.msra.mxu0 %v2080_v18  ;;  %17469 = vst [vmem:[#allocation63_spill] sm:$0xff] %v12125_v29  ;;  %v2327_v41 = vsel %vm1850_vm3, %v12125_v29, %v11654_v27 }
 0x199   : > { %2222 = vrot.lane.b32.xlu1 %v12099_v60, %s10945_s15  ;;  %v1195_v62 = vpop.permute.xlu0 %1194  ;;  %9762 = vmatprep.subr.mxu0 %v17432_v54 }
 0x19a   : > { %v1968_v31 = vsel %vm1763_vm5, %v1195_v62, %v1280_v1  ;;  %v2355_v1 = vsel %vm1879_vm4, %v2327_v41, %v12034_v6  ;;  %v17471_v41 = vld [vmem:[#allocation18_spill] sm:$0xff] }
 0x19b   : > { %v999_v22 = vpop.permute.xlu1 %998  ;;  %2220 = vrot.lane.b32.xlu0 %v12113_v34, %s10945_s15  ;;  %v1996_v32 = vsel %vm1792_vm6, %v1968_v31, %v11104_v5  ;;  %v17470_v31 = vld [vmem:[#allocation24_spill] sm:$0xff] }
 0x19c   : > { %9763 = vmatpush3.msra.mxu0 %v1996_v32  ;;  %v1911_v32 = vsel %vm1908_vm1, %v17471_v41, %v999_v22  ;;  %v10819_v22 = vld [vmem:[%s11083_s26 + $0x8] sm:$0x7] }
 0x19d   : > { %2525 = vrot.lane.b32.xlu1 %v2356_v16, %s10943_s12  ;;  %v1282_v43 = vpop.permute.xlu0 %1281  ;;  %9764 = vmatprep.subr.mxu0 %v17432_v54 }
 0x19e   : > { %v1969_v27 = vsel %vm1763_vm5, %v11348_v61, %v1282_v43 }
 0x19f   : > { %v718_v18 = vpop.permute.xlu1 %717  ;;  %2517 = vrot.lane.b32.xlu0 %v2355_v1, %s10943_s12  ;;  %v1997_v5 = vsel %vm1792_vm6, %v1969_v27, %v11172_v20 }
 0x1a0   : > { %9786 = vmatpush3.msra.mxu1 %v1997_v5 }
 0x1a1   : > { %521 = vrot.lane.b32.xlu1 %v17201_v35, %s10943_s12  ;;  %9787 = vmatprep.subr.mxu1 %v17432_v54  ;;  %v606_v61 = vpop.permute.xlu0 %605 }
 0x1a2   : > { %v1824_v62 = vsel %vm1821_vm2, %v606_v61, %v718_v18  ;;  %9788 = vmatpush3.msra.mxu1 %v17470_v31  ;;  %v17472_v31 = vld [vmem:[#allocation41_spill] sm:$0xff] }
 0x1a3   : > { %v830_v20 = vpop.permute.xlu1 %829  ;;  %519 = vrot.lane.b32.xlu0 %v17200_v46, %s10943_s12  ;;  %9789 = vmatprep.subr.mxu1 %v17432_v54  ;;  %v17475_v46 = vld [vmem:[#allocation42_spill] sm:$0xff] }
 0x1a4   : > { %v1853_v16 = vsel %vm1850_vm3, %v1824_v62, %v830_v20  ;;  %v10820_v62 = vld [vmem:[%s11083_s26 + $0x28] sm:$0x7] }
 0x1a5   : > { %1577 = vrot.lane.b32.xlu1 %v11782_v13, %s10942_s29  ;;  %v1111_v43 = vpop.permute.xlu0 %1110  ;;  %v1882_v5 = vsel %vm1879_vm4, %v1853_v16, %v17471_v41  ;;  %v1774_v20 = vsel %vm1763_vm5, %v10820_v62, %v17472_v31  ;;  %v17476_v62 = vrot.slane %v11210_v30, 6  ;;  %v17477_v31 = vld [vmem:[#allocation21_spill] sm:$0xff] }
 0x1a6   : > { %v1940_v27 = vsel %vm1937_vm0, %v1911_v32, %v1111_v43  ;;  %v17473_v32 = vrot.slane %v11204_v28, 6 }
 0x1a7   : > { %v494_v1 = vpop.permute.xlu1 %493  ;;  %1575 = vrot.lane.b32.xlu0 %v11793_v49, %s10942_s29  ;;  %9765 = vmatpush3.msra.mxu0 %v1940_v27 }
 0x1a8   : > { %v1766_v18 = vsel %vm1763_vm5, %v10819_v22, %v494_v1  ;;  %9766 = vmatprep.subr.mxu0 %v17432_v54  ;;  %v10821_v22 = vld [vmem:[%s11083_s26 + $0x24] sm:$0x7] }
 0x1a9   : > { %1662 = vrot.lane.b32.xlu1 %v17473_v32, %s10946_s16  ;;  %9767 = vmatpush3.msra.mxu0 %v1882_v5  ;;  %v832_v43 = vpop.permute.xlu0 %831  ;;  %v1795_v27 = vsel %vm1792_vm6, %v1766_v18, %v606_v61  ;;  %v1773_v41 = vsel %vm1763_vm5, %v10821_v22, %v17475_v46  ;;  %v12191_v61 = vsel %vm1792_vm6, %v1774_v20, %v11596_v40  ;;  %v17479_v46 = vld [vmem:[#allocation27_spill] sm:$0xff]  ;;  %v17481_v20 = vrot.slane %v11204_v28, 7 }
 0x1aa   : > { %v1854_v1 = vsel %vm1850_vm3, %v17474_v45, %v832_v43  ;;  %9768 = vmatprep.subr.mxu0 %v17432_v54  ;;  %17478 = vst [vmem:[#allocation24_spill] sm:$0xff] %v12191_v61  ;;  %v12202_v18 = vsel %vm1792_vm6, %v1773_v41, %v11602_v39  ;;  %v17483_v43 = vrot.slane %v11210_v30, 7  ;;  %v17486_v41 = vld [vmem:[#allocation13_spill] sm:$0xff] }
 0x1ab   : > { %v2514_v16 = vpop.permute.xlu1 %2513  ;;  %1660 = vrot.lane.b32.xlu0 %v17476_v62, %s10946_s16  ;;  %9769 = vmatpush3.msra.mxu0 %v1795_v27  ;;  %v1883_v5 = vsel %vm1879_vm4, %v1854_v1, %v17477_v31  ;;  %17480 = vst [vmem:[#allocation18_spill] sm:$0xff] %v12202_v18  ;;  %v17484_v27 = vld [vmem:[#allocation12_spill] sm:$0xff] }
 0x1ac   : > { %9790 = vmatpush3.msra.mxu1 %v1883_v5  ;;  %9796 = vmatprep.subr.mxu0 %v17432_v54  ;;  %v17488_v5 = vrot.slane %v11142_v14, 5 }
 0x1ad   : > { %2523 = vrot.lane.b32.xlu1 %v12191_v61, %s10943_s12  ;;  %9791 = vmatprep.subr.mxu1 %v17432_v54  ;;  %v2506_v45 = vpop.permute.xlu0 %2505 }
 0x1ae   : > { %9771 = vmatmul.mubr.msk.f32.vlgmr.msra.gmra.mxu0 %vm2780_vm8, %v11909_v9  ;;  %9792 = vmatpush3.msra.mxu1 %v17479_v46  ;;  %v12250_v46 = vld [vmem:[%s11083_s26 + $0x4c] sm:$0x7] }
 0x1af   : > { %9797 = vmatpush3.msk.msra.mxu0 %vm1763_vm5, %v2506_v45  ;;  %v12205_v40 = vpop.permute.xlu1 %1022  ;;  %2515 = vrot.lane.b32.xlu0 %v12202_v18, %s10943_s12  ;;  %v12340_v18 = vrot.slane %v12250_v46, 4 }
 0x1b0   : > { %9819 = vmatprep.subr.mxu1 %v17432_v54  ;;  %9794 = vmatmul.mubr.msk.f32.vlgmr.msra.gmra.mxu1 %vm2780_vm8, %v11909_v9 }
 0x1b1   : > { %9820 = vmatpush3.msk.msra.mxu1 %vm1763_vm5, %v2514_v16  ;;  %1406 = vrot.lane.b32.xlu1 %v17481_v20, %s10943_s12  ;;  %v12216_v39 = vpop.permute.xlu0 %1020  ;;  %v17487_v16 = vrot.slane %v11210_v30, 5  ;;  %17494 = vst [vmem:[#allocation13_spill] sm:$0xff] %v12340_v18 }
 0x1b2   : > { %9821 = vmatprep.subr.mxu1 %v17432_v54  ;;  %9798 = vmatprep.subr.mxu0 %v17432_v54 }
 0x1b3   : > { %v12220_v32 = vpop.permute.xlu1 %1218  ;;  %1404 = vrot.lane.b32.xlu0 %v17483_v43, %s10943_s12  ;;  %9839 = vmatprep.mubr.msk.f32.mxu1 %vm10948_vm7, %v17432_v54  ;;  %v12257_v43 = vld [vmem:[%s11083_s26 + $0x48] sm:$0x7] }
 0x1b4   : > { %17482 = vst [vmem:[#allocation41_spill] sm:$0xff] %v12220_v32  ;;  %9816 = vmatprep.mubr.msk.f32.mxu0 %vm10948_vm7, %v17432_v54  ;;  %v12304_v61 = vrot.slane %v12257_v43, 2 }
 0x1b5   : > { %1492 = vrot.lane.b32.xlu1 %v17484_v27, %s10944_s14  ;;  %v12231_v1 = vpop.permute.xlu0 %1216 }
 0x1b6   : > { %17485 = vst [vmem:[#allocation25_spill] sm:$0xff] %v12231_v1  ;;  %17491 = vst [vmem:[#allocation21_spill] sm:$0xff] %v12304_v61 }
 0x1b7   : > { %v2512_v22 = vpop.permute.xlu1 %2511  ;;  %1490 = vrot.lane.b32.xlu0 %v17486_v41, %s10944_s14 }
 0x1b8   : > { %9822 = vmatpush3.msra.mxu1 %v2512_v22 }
 0x1b9   : > { %1289 = vrot.lane.b32.xlu1 %v17487_v16, %s10946_s16  ;;  %v2504_v62 = vpop.permute.xlu0 %2503  ;;  %9823 = vmatprep.subr.mxu1 %v17432_v54  ;;  %v17209_v16 = vrot.slane %v12250_v46, 6 }
 0x1ba   : > { %9799 = vmatpush3.msra.mxu0 %v2504_v62 }
 0x1bb   : > { %v12239_v31 = vpop.permute.xlu1 %629  ;;  %1287 = vrot.lane.b32.xlu0 %v17488_v5, %s10946_s16  ;;  %9800 = vmatprep.subr.mxu0 %v17432_v54  ;;  %v12270_v5 = vrot.slane %v11512_v48, 1 }
 0x1bd   : > { %839 = vrot.lane.b32.xlu1 %v11192_v25, %s10946_s16  ;;  %v12247_v45 = vpop.permute.xlu0 %627  ;;  %v17212_v25 = vrot.slane %v12257_v43, 6  ;;  %v1921_v8 = vsel %vm1908_vm1, %v12270_v5, %v11923_v2 }
 0x1be   : > { %v12296_v60 = vsel %vm1937_vm0, %v1921_v8, %v11986_v4 }
 0x1bf   : > { %v12252_v20 = vpop.permute.xlu1 %741  ;;  %837 = vrot.lane.b32.xlu0 %v11198_v26, %s10946_s16  ;;  %17490 = vst [vmem:[#allocation42_spill] sm:$0xff] %v12296_v60 }
 0x1c1   : > { %2545 = vrot.lane.b32.xlu1 %v11938_v24, %s10943_s12  ;;  %v12261_v22 = vpop.permute.xlu0 %739  ;;  %v17489_v24 = vld [vmem:[#allocation31_spill] sm:$0xff] }
 0x1c2   : > { %v12286_v58 = vrot.slane %v17489_v24, 1 }
 0x1c3   : > { %v12264_v62 = vpop.permute.xlu1 %1134  ;;  %2537 = vrot.lane.b32.xlu0 %v11948_v59, %s10943_s12 }
 0x1c4   : > { %v1920_v2 = vsel %vm1908_vm1, %v12286_v58, %v11932_v36  ;;  %v12316_v36 = vrot.slane %v12005_v17, 2 }
 0x1c5   : > { %1030 = vrot.lane.b32.xlu1 %v17209_v16, %s10943_s12  ;;  %v12275_v26 = vpop.permute.xlu0 %1132  ;;  %v12309_v57 = vsel %vm1937_vm0, %v1920_v2, %v11993_v10 }
 0x1c6   : > { %17492 = vst [vmem:[#allocation27_spill] sm:$0xff] %v12309_v57  ;;  %17493 = vst [vmem:[#allocation12_spill] sm:$0xff] %v12316_v36 }
 0x1c7   : > { %v12277_v35 = vpop.permute.xlu1 %2218  ;;  %1028 = vrot.lane.b32.xlu0 %v17212_v25, %s10943_s12 }
 0x1c9   : > { %1226 = vrot.lane.b32.xlu1 %v12250_v46, %s10942_s29  ;;  %v12290_v34 = vpop.permute.xlu0 %2216 }
 0x1cb   : > { %v2510_v16 = vpop.permute.xlu1 %2509  ;;  %1224 = vrot.lane.b32.xlu0 %v12257_v43, %s10942_s29 }
 0x1cc   : > { %9824 = vmatpush3.msra.mxu1 %v2510_v16  ;;  %v17223_v16 = vrot.slane %v12257_v43, 7 }
 0x1cd   : > { %2543 = vrot.lane.b32.xlu1 %v12296_v60, %s10943_s12  ;;  %v2502_v25 = vpop.permute.xlu0 %2501  ;;  %9825 = vmatprep.subr.mxu1 %v17432_v54  ;;  %v17226_v60 = vrot.slane %v12250_v46, 3 }
 0x1ce   : > { %9801 = vmatpush3.msra.mxu0 %v2502_v25  ;;  %v17225_v25 = vrot.slane %v12005_v17, 7 }
 0x1cf   : > { %v12311_v8 = vpop.permute.xlu1 %517  ;;  %2535 = vrot.lane.b32.xlu0 %v12309_v57, %s10943_s12  ;;  %9802 = vmatprep.subr.mxu0 %v17432_v54 }
 0x1d1   : > { %637 = vrot.lane.b32.xlu1 %v12304_v61, %s10944_s14  ;;  %v12321_v4 = vpop.permute.xlu0 %515  ;;  %v17229_v61 = vrot.slane %v12257_v43, 3 }
 0x1d3   : > { %v1574_v10 = vpop.permute.xlu1 %1573  ;;  %635 = vrot.lane.b32.xlu0 %v12316_v36, %s10944_s14 }
 0x1d5   : > { %749 = vrot.lane.b32.xlu1 %v17223_v16, %s10942_s29  ;;  %v1572_v2 = vpop.permute.xlu0 %1571  ;;  %v12345_v16 = vsel %vm1821_vm2, %v11967_v0, %v11977_v51 }
 0x1d6   : > { %17495 = vst [vmem:[#allocation31_spill] sm:$0xff] %v12345_v16  ;;  %v2330_v51 = vsel %vm1850_vm3, %v12345_v16, %v11995_v52 }
 0x1d7   : > { %v1659_v57 = vpop.permute.xlu1 %1658  ;;  %747 = vrot.lane.b32.xlu0 %v17225_v25, %s10942_s29  ;;  %v17497_v25 = vrot.slane %v11210_v30, 3 }
 0x1d8   : > { %v2111_v59 = vsel %vm1908_vm1, %v1574_v10, %v1659_v57  ;;  %v12351_v57 = vrot.slane %v12257_v43, 4 }
 0x1d9   : > { %1142 = vrot.lane.b32.xlu1 %v17226_v60, %s10944_s14  ;;  %v1657_v36 = vpop.permute.xlu0 %1656  ;;  %v2139_v60 = vsel %vm1937_vm0, %v2111_v59, %v17497_v25  ;;  %v17499_v59 = vrot.slane %v11142_v14, 3  ;;  %v17232_v25 = vrot.slane %v12005_v17, 5 }
 0x1da   : > { %17496 = vst [vmem:[#allocation64_spill] sm:$0xff] %v12351_v57  ;;  %v2110_v47 = vsel %vm1908_vm1, %v1572_v2, %v1657_v36  ;;  %v17233_v36 = vrot.slane %v12257_v43, 5 }
 0x1db   : > { %v2508_v13 = vpop.permute.xlu1 %2507  ;;  %1140 = vrot.lane.b32.xlu0 %v17229_v61, %s10944_s14  ;;  %v12366_v61 = vsel %vm1821_vm2, %v11975_v38, %v11984_v55  ;;  %v2138_v52 = vsel %vm1937_vm0, %v2110_v47, %v17499_v59  ;;  %v2358_v55 = vsel %vm1879_vm4, %v2330_v51, %v12270_v5  ;;  %v17501_v59 = vld [vmem:[#allocation9_spill] sm:$0xff] }
 0x1dc   : > { %9826 = vmatpush3.msra.mxu1 %v2508_v13  ;;  %17498 = vst [vmem:[#allocation65_spill] sm:$0xff] %v12366_v61  ;;  %v2329_v30 = vsel %vm1850_vm3, %v12366_v61, %v12002_v37 }
 0x1dd   : > { %2226 = vrot.lane.b32.xlu1 %v12340_v18, %s10945_s15  ;;  %v2500_v29 = vpop.permute.xlu0 %2499  ;;  %9827 = vmatprep.subr.mxu1 %v17432_v54  ;;  %v2357_v14 = vsel %vm1879_vm4, %v2329_v30, %v12286_v58 }
 0x1de   : > { %9803 = vmatpush3.msra.mxu0 %v2500_v29  ;;  %9828 = vmatpush3.msra.mxu1 %v2139_v60  ;;  %v17500_v60 = vld [vmem:[#allocation11_spill] sm:$0xff] }
 0x1df   : > { %v1403_v13 = vpop.permute.xlu1 %1402  ;;  %2224 = vrot.lane.b32.xlu0 %v12351_v57, %s10945_s15  ;;  %9804 = vmatprep.subr.mxu0 %v17432_v54 }
 0x1e0   : > { %9805 = vmatpush3.msra.mxu0 %v2138_v52  ;;  %9829 = vmatprep.subr.mxu1 %v17432_v54  ;;  %v2027_v29 = vsel %vm1821_vm2, %v17500_v60, %v1403_v13 }
 0x1e1   : > { %2541 = vrot.lane.b32.xlu1 %v2358_v55, %s10943_s12  ;;  %v1401_v37 = vpop.permute.xlu0 %1400  ;;  %9806 = vmatprep.subr.mxu0 %v17432_v54 }
 0x1e2   : > { %v2026_v13 = vsel %vm1821_vm2, %v17501_v59, %v1401_v37  ;;  %v17502_v37 = vld [vmem:[#allocation29_spill] sm:$0xff] }
 0x1e3   : > { %v1489_v47 = vpop.permute.xlu1 %1488  ;;  %2533 = vrot.lane.b32.xlu0 %v2357_v14, %s10943_s12 }
 0x1e4   : > { %v2055_v51 = vsel %vm1850_vm3, %v2027_v29, %v1489_v47 }
 0x1e5   : > { %525 = vrot.lane.b32.xlu1 %v17233_v36, %s10943_s12  ;;  %v1487_v52 = vpop.permute.xlu0 %1486  ;;  %v2083_v55 = vsel %vm1879_vm4, %v2055_v51, %v1574_v10  ;;  %v17503_v51 = vld [vmem:[#allocation19_spill] sm:$0xff]  ;;  %v12542_v36 = vrot.slane %v11765_v19, 1 }
 0x1e6   : > { %v2054_v57 = vsel %vm1850_vm3, %v2026_v13, %v1487_v52  ;;  %9830 = vmatpush3.msra.mxu1 %v2083_v55  ;;  %v17504_v52 = vld [vmem:[#allocation40_spill] sm:$0xff] }
 0x1e7   : > { %v1286_v30 = vpop.permute.xlu1 %1285  ;;  %523 = vrot.lane.b32.xlu0 %v17232_v25, %s10943_s12  ;;  %v2082_v29 = vsel %vm1879_vm4, %v2054_v57, %v1572_v2  ;;  %9831 = vmatprep.subr.mxu1 %v17432_v54 }
 0x1e8   : > { %v1971_v14 = vsel %vm1763_vm5, %v17502_v37, %v1286_v30  ;;  %9807 = vmatpush3.msra.mxu0 %v2082_v29  ;;  %v17506_v30 = vrot.slane %v11266_v42, 6 }
 0x1e9   : > { %1581 = vrot.lane.b32.xlu1 %v12023_v12, %s10942_s29  ;;  %v1284_v10 = vpop.permute.xlu0 %1283  ;;  %v1999_v47 = vsel %vm1792_vm6, %v1971_v14, %v17500_v60  ;;  %9808 = vmatprep.subr.mxu0 %v17432_v54  ;;  %v17505_v60 = vld [vmem:[#allocation34_spill] sm:$0xff] }
 0x1ea   : > { %v1970_v13 = vsel %vm1763_vm5, %v17503_v51, %v1284_v10  ;;  %9832 = vmatpush3.msra.mxu1 %v1999_v47  ;;  %v10822_v14 = vld [vmem:[%s11083_s26 + $0x30] sm:$0x7] }
 0x1eb   : > { %v836_v2 = vpop.permute.xlu1 %835  ;;  %1579 = vrot.lane.b32.xlu0 %v12034_v6, %s10942_s29  ;;  %9833 = vmatprep.subr.mxu1 %v17432_v54  ;;  %v1998_v57 = vsel %vm1792_vm6, %v1970_v13, %v17501_v59  ;;  %v1776_v59 = vsel %vm1763_vm5, %v10822_v14, %v12016_v11  ;;  %v17507_v10 = vld [vmem:[#allocation23_spill] sm:$0xff]  ;;  %v17508_v51 = vld [vmem:[#allocation22_spill] sm:$0xff]  ;;  %v17515_v14 = vrot.slane %v11266_v42, 7 }
 0x1ec   : > { %v1856_v55 = vsel %vm1850_vm3, %v17504_v52, %v836_v2  ;;  %9809 = vmatpush3.msra.mxu0 %v1998_v57  ;;  %9834 = vmatpush3.msra.mxu1 %v17505_v60  ;;  %v17509_v2 = vrot.slane %v11272_v44, 6  ;;  %v17510_v57 = vld [vmem:[#allocation20_spill] sm:$0xff]  ;;  %v10823_v52 = vld [vmem:[%s11083_s26 + $0x2c] sm:$0x7]  ;;  %v12445_v60 = vsel %vm1792_vm6, %v1776_v59, %v11967_v0  ;;  %v17517_v59 = vrot.slane %v11272_v44, 7 }
 0x1ed   : > { %1666 = vrot.lane.b32.xlu1 %v17506_v30, %s10946_s16  ;;  %9810 = vmatprep.subr.mxu0 %v17432_v54  ;;  %v834_v29 = vpop.permute.xlu0 %833  ;;  %v1885_v37 = vsel %vm1879_vm4, %v1856_v55, %v11549_v50  ;;  %v1775_v11 = vsel %vm1763_vm5, %v10823_v52, %v12028_v33  ;;  %v17511_v55 = vld [vmem:[#allocation44_spill] sm:$0xff]  ;;  %17512 = vst [vmem:[#allocation11_spill] sm:$0xff] %v12445_v60  ;;  %v17513_v33 = vld [vmem:[#allocation26_spill] sm:$0xff]  ;;  %v17521_v52 = vrot.slane %v11204_v28, 5 }
 0x1ee   : > { %9835 = vmatprep.subr.mxu1 %v17432_v54  ;;  %v1855_v47 = vsel %vm1850_vm3, %v17507_v10, %v834_v29  ;;  %9811 = vmatpush3.msra.mxu0 %v17508_v51 }
 0x1ef   : > { %9836 = vmatpush3.msra.mxu1 %v1885_v37  ;;  %v2530_v13 = vpop.permute.xlu1 %2529  ;;  %1664 = vrot.lane.b32.xlu0 %v17509_v2, %s10946_s16  ;;  %v1884_v50 = vsel %vm1879_vm4, %v1855_v47, %v17510_v57  ;;  %v12456_v37 = vsel %vm1792_vm6, %v1775_v11, %v11975_v38  ;;  %v17518_v47 = vld [vmem:[#allocation16_spill] sm:$0xff]  ;;  %v17520_v57 = vrot.slane %v11272_v44, 5 }
 0x1f0   : > { %9812 = vmatprep.subr.mxu0 %v17432_v54  ;;  %9837 = vmatprep.subr.mxu1 %v17432_v54  ;;  %17514 = vst [vmem:[#allocation9_spill] sm:$0xff] %v12456_v37 }
 0x1f1   : > { %9813 = vmatpush3.msra.mxu0 %v1884_v50  ;;  %9838 = vmatpush3.msra.mxu1 %v17511_v55  ;;  %v2522_v30 = vpop.permute.xlu0 %2521 }
 0x1f2   : > { %2539 = vrot.lane.b32.xlu1 %v12445_v60, %s10943_s12  ;;  %9814 = vmatprep.subr.mxu0 %v17432_v54 }
 0x1f3   : > { %9865 = vmatprep.subr.mxu1 %v17432_v54  ;;  %9815 = vmatpush3.msra.mxu0 %v17513_v33  ;;  %v12452_v29 = vpop.permute.xlu1 %1026 }
 0x1f4   : > { %9840 = vmatmul.mubr.msk.f32.vlgmr.msra.gmra.mxu1 %vm2780_vm8, %v11909_v9  ;;  %2531 = vrot.lane.b32.xlu0 %v12456_v37, %s10943_s12 }
 0x1f5   : > { %9866 = vmatpush3.msk.msra.mxu1 %vm1763_vm5, %v2530_v13  ;;  %9842 = vmatprep.subr.mxu0 %v17432_v54  ;;  %v12464_v0 = vpop.permute.xlu0 %1024  ;;  %v17519_v13 = vld [vmem:[#allocation17_spill] sm:$0xff] }
 0x1f6   : > { %9817 = vmatmul.mubr.msk.f32.vlgmr.msra.gmra.mxu0 %vm2780_vm8, %v11909_v9  ;;  %1410 = vrot.lane.b32.xlu1 %v17515_v14, %s10943_s12  ;;  %v12513_v14 = vld [vmem:[%s11083_s26 + $0x50] sm:$0x7] }
 0x1f7   : > { %9843 = vmatpush3.msk.msra.mxu0 %vm1763_vm5, %v2522_v30  ;;  %v12472_v38 = vpop.permute.xlu1 %1222  ;;  %9867 = vmatprep.subr.mxu1 %v17432_v54  ;;  %v12506_v30 = vld [vmem:[%s11083_s26 + $0x54] sm:$0x7]  ;;  %v12559_v18 = vrot.slane %v12513_v14, 2 }
 0x1f8   : > { %17516 = vst [vmem:[#allocation29_spill] sm:$0xff] %v12472_v38  ;;  %1408 = vrot.lane.b32.xlu0 %v17517_v59, %s10943_s12  ;;  %9844 = vmatprep.subr.mxu0 %v17432_v54  ;;  %v17235_v59 = vrot.slane %v12506_v30, 6  ;;  %v17251_v60 = vrot.slane %v12506_v30, 3 }
 0x1f9   : > { %v12479_v10 = vpop.permute.xlu0 %1220  ;;  %9885 = vmatprep.mubr.msk.f32.mxu1 %vm10948_vm7, %v17432_v54  ;;  %9862 = vmatprep.mubr.msk.f32.mxu0 %vm10948_vm7, %v17432_v54  ;;  %17523 = vst [vmem:[#allocation40_spill] sm:$0xff] %v12559_v18 }
 0x1fa   : > { %1496 = vrot.lane.b32.xlu1 %v17518_v47, %s10944_s14 }
 0x1fb   : > { %v2528_v51 = vpop.permute.xlu1 %2527 }
 0x1fc   : > { %1494 = vrot.lane.b32.xlu0 %v17519_v13, %s10944_s14  ;;  %9868 = vmatpush3.msra.mxu1 %v2528_v51 }
 0x1fd   : > { %v2520_v2 = vpop.permute.xlu0 %2519  ;;  %9869 = vmatprep.subr.mxu1 %v17432_v54 }
 0x1fe   : > { %1293 = vrot.lane.b32.xlu1 %v17520_v57, %s10946_s16  ;;  %9845 = vmatpush3.msra.mxu0 %v2520_v2 }
 0x1ff   : > { %v12493_v50 = vpop.permute.xlu1 %633  ;;  %9846 = vmatprep.subr.mxu0 %v17432_v54 }
 0x200   : > { %1291 = vrot.lane.b32.xlu0 %v17521_v52, %s10946_s16 }
 0x201   : > { %v12499_v11 = vpop.permute.xlu0 %631 }
 0x202   : > { %843 = vrot.lane.b32.xlu1 %v17484_v27, %s10946_s16  ;;  %v17236_v27 = vrot.slane %v12513_v14, 6 }
 0x203   : > { %v12503_v55 = vpop.permute.xlu1 %745 }
 0x204   : > { %841 = vrot.lane.b32.xlu0 %v17486_v41, %s10946_s16  ;;  %v12526_v41 = vrot.slane %v11758_v7, 1 }
 0x205   : > { %v12510_v33 = vpop.permute.xlu0 %743 }
 0x206   : > { %2561 = vrot.lane.b32.xlu1 %v12220_v32, %s10943_s12  ;;  %v1923_v25 = vsel %vm1908_vm1, %v12526_v41, %v12205_v40  ;;  %v1922_v40 = vsel %vm1908_vm1, %v12542_v36, %v12216_v39  ;;  %v12571_v39 = vrot.slane %v12250_v46, 2 }
 0x207   : > { %v12518_v51 = vpop.permute.xlu1 %1138 }
 0x208   : > { %2553 = vrot.lane.b32.xlu0 %v12231_v1, %s10943_s12  ;;  %17525 = vst [vmem:[#allocation23_spill] sm:$0xff] %v12571_v39 }
 0x209   : > { %v12523_v2 = vpop.permute.xlu0 %1136 }
 0x20a   : > { %1034 = vrot.lane.b32.xlu1 %v17235_v59, %s10943_s12  ;;  %v12550_v59 = vsel %vm1937_vm0, %v1923_v25, %v12264_v62 }
 0x20b   : > { %v12531_v57 = vpop.permute.xlu1 %2222  ;;  %17522 = vst [vmem:[#allocation19_spill] sm:$0xff] %v12550_v59 }
 0x20c   : > { %1032 = vrot.lane.b32.xlu0 %v17236_v27, %s10943_s12 }
 0x20d   : > { %v12536_v52 = vpop.permute.xlu0 %2220 }
 0x20e   : > { %1230 = vrot.lane.b32.xlu1 %v12506_v30, %s10942_s29 }
 0x20f   : > { %v2526_v32 = vpop.permute.xlu1 %2525 }
 0x210   : > { %1228 = vrot.lane.b32.xlu0 %v12513_v14, %s10942_s29  ;;  %9870 = vmatpush3.msra.mxu1 %v2526_v32  ;;  %v12563_v32 = vsel %vm1937_vm0, %v1922_v40, %v12275_v26  ;;  %v17250_v26 = vrot.slane %v12250_v46, 7 }
 0x211   : > { %v2518_v27 = vpop.permute.xlu0 %2517  ;;  %9871 = vmatprep.subr.mxu1 %v17432_v54  ;;  %17524 = vst [vmem:[#allocation34_spill] sm:$0xff] %v12563_v32 }
 0x212   : > { %2559 = vrot.lane.b32.xlu1 %v12550_v59, %s10943_s12  ;;  %9847 = vmatpush3.msra.mxu0 %v2518_v27  ;;  %v17248_v27 = vrot.slane %v12513_v14, 7 }
 0x213   : > { %v12565_v62 = vpop.permute.xlu1 %521  ;;  %9848 = vmatprep.subr.mxu0 %v17432_v54 }
 0x214   : > { %2551 = vrot.lane.b32.xlu0 %v12563_v32, %s10943_s12 }
 0x215   : > { %v12573_v25 = vpop.permute.xlu0 %519 }
 0x216   : > { %641 = vrot.lane.b32.xlu1 %v12559_v18, %s10944_s14  ;;  %v17254_v18 = vrot.slane %v12513_v14, 3 }
 0x217   : > { %v1578_v59 = vpop.permute.xlu1 %1577 }
 0x218   : > { %639 = vrot.lane.b32.xlu0 %v12571_v39, %s10944_s14  ;;  %v12594_v39 = vrot.slane %v12506_v30, 4 }
 0x219   : > { %v1576_v40 = vpop.permute.xlu0 %1575 }
 0x21a   : > { %753 = vrot.lane.b32.xlu1 %v17248_v27, %s10942_s29  ;;  %17526 = vst [vmem:[#allocation22_spill] sm:$0xff] %v12594_v39  ;;  %v12599_v27 = vsel %vm1821_vm2, %v12239_v31, %v12252_v20 }
 0x21b   : > { %v1663_v16 = vpop.permute.xlu1 %1662  ;;  %17527 = vst [vmem:[#allocation20_spill] sm:$0xff] %v12599_v27  ;;  %v2332_v20 = vsel %vm1850_vm3, %v12599_v27, %v12277_v35 }
 0x21c   : > { %751 = vrot.lane.b32.xlu0 %v17250_v26, %s10942_s29  ;;  %v2113_v32 = vsel %vm1908_vm1, %v1578_v59, %v1663_v16  ;;  %v12606_v16 = vrot.slane %v12513_v14, 4 }
 0x21d   : > { %v1661_v1 = vpop.permute.xlu0 %1660 }
 0x21e   : > { %1146 = vrot.lane.b32.xlu1 %v17251_v60, %s10944_s14  ;;  %v2112_v26 = vsel %vm1908_vm1, %v1576_v40, %v1661_v1  ;;  %17528 = vst [vmem:[#allocation44_spill] sm:$0xff] %v12606_v16  ;;  %v17529_v60 = vrot.slane %v11272_v44, 3  ;;  %v12620_v1 = vsel %vm1821_vm2, %v12247_v45, %v12261_v22  ;;  %v17530_v44 = vrot.slane %v11204_v28, 3 }
 0x21f   : > { %v2524_v37 = vpop.permute.xlu1 %2523  ;;  %v2331_v35 = vsel %vm1850_vm3, %v12620_v1, %v12290_v34  ;;  %v17260_v28 = vrot.slane %v12513_v14, 5 }
 0x220   : > { %1144 = vrot.lane.b32.xlu0 %v17254_v18, %s10944_s14  ;;  %9872 = vmatpush3.msra.mxu1 %v2524_v37  ;;  %v2141_v12 = vsel %vm1937_vm0, %v2113_v32, %v17529_v60  ;;  %v2140_v60 = vsel %vm1937_vm0, %v2112_v26, %v17530_v44  ;;  %v2360_v32 = vsel %vm1879_vm4, %v2332_v20, %v12526_v41  ;;  %v17532_v20 = vld [vmem:[#allocation10_spill] sm:$0xff] }
 0x221   : > { %v2516_v61 = vpop.permute.xlu0 %2515  ;;  %9873 = vmatprep.subr.mxu1 %v17432_v54  ;;  %v2359_v34 = vsel %vm1879_vm4, %v2331_v35, %v12542_v36 }
 0x222   : > { %2230 = vrot.lane.b32.xlu1 %v12594_v39, %s10945_s15  ;;  %9849 = vmatpush3.msra.mxu0 %v2516_v61  ;;  %v17531_v61 = vld [vmem:[#allocation15_spill] sm:$0xff] }
 0x223   : > { %v1407_v37 = vpop.permute.xlu1 %1406  ;;  %9850 = vmatprep.subr.mxu0 %v17432_v54  ;;  %9874 = vmatpush3.msra.mxu1 %v2141_v12 }
 0x224   : > { %2228 = vrot.lane.b32.xlu0 %v12606_v16, %s10945_s15  ;;  %9851 = vmatpush3.msra.mxu0 %v2140_v60  ;;  %v2029_v22 = vsel %vm1821_vm2, %v17531_v61, %v1407_v37  ;;  %v17259_v37 = vrot.slane %v12250_v46, 5 }
 0x225   : > { %v1405_v18 = vpop.permute.xlu0 %1404  ;;  %9875 = vmatprep.subr.mxu1 %v17432_v54  ;;  %9852 = vmatprep.subr.mxu0 %v17432_v54 }
 0x226   : > { %2557 = vrot.lane.b32.xlu1 %v2360_v32, %s10943_s12  ;;  %v2028_v44 = vsel %vm1821_vm2, %v17532_v20, %v1405_v18 }
 0x227   : > { %v1493_v12 = vpop.permute.xlu1 %1492 }
 0x228   : > { %v2057_v26 = vsel %vm1850_vm3, %v2029_v22, %v1493_v12  ;;  %2549 = vrot.lane.b32.xlu0 %v2359_v34, %s10943_s12 }
 0x229   : > { %v1491_v60 = vpop.permute.xlu0 %1490  ;;  %v2085_v16 = vsel %vm1879_vm4, %v2057_v26, %v1578_v59 }
 0x22a   : > { %529 = vrot.lane.b32.xlu1 %v17260_v28, %s10943_s12  ;;  %v2056_v32 = vsel %vm1850_vm3, %v2028_v44, %v1491_v60  ;;  %9876 = vmatpush3.msra.mxu1 %v2085_v16  ;;  %v10824_v60 = vld [vmem:[%s11083_s26 + $0x38] sm:$0x7] }
 0x22b   : > { %v1290_v35 = vpop.permute.xlu1 %1289  ;;  %v2084_v22 = vsel %vm1879_vm4, %v2056_v32, %v1576_v40  ;;  %9877 = vmatprep.subr.mxu1 %v17432_v54  ;;  %v17533_v40 = vld [vmem:[#allocation28_spill] sm:$0xff]  ;;  %v17535_v32 = vld [vmem:[#allocation38_spill] sm:$0xff] }
 0x22c   : > { %v1973_v12 = vsel %vm1763_vm5, %v11501_v3, %v1290_v35  ;;  %527 = vrot.lane.b32.xlu0 %v17259_v37, %s10943_s12  ;;  %9853 = vmatpush3.msra.mxu0 %v2084_v22 }
 0x22d   : > { %v1288_v18 = vpop.permute.xlu0 %1287  ;;  %v2001_v59 = vsel %vm1792_vm6, %v1973_v12, %v17531_v61  ;;  %9854 = vmatprep.subr.mxu0 %v17432_v54  ;;  %v10825_v12 = vld [vmem:[%s11083_s26 + $0x34] sm:$0x7] }
 0x22e   : > { %1585 = vrot.lane.b32.xlu1 %v12270_v5, %s10942_s29  ;;  %v1972_v16 = vsel %vm1763_vm5, %v17533_v40, %v1288_v18  ;;  %9878 = vmatpush3.msra.mxu1 %v2001_v59  ;;  %v1777_v18 = vsel %vm1763_vm5, %v10825_v12, %v12321_v4  ;;  %v17539_v4 = vld [vmem:[#allocation43_spill] sm:$0xff] }
 0x22f   : > { %v840_v3 = vpop.permute.xlu1 %839  ;;  %9879 = vmatprep.subr.mxu1 %v17432_v54  ;;  %v2000_v34 = vsel %vm1792_vm6, %v1972_v16, %v17532_v20  ;;  %v1778_v20 = vsel %vm1763_vm5, %v10824_v60, %v12311_v8  ;;  %v17537_v8 = vrot.slane %v17489_v24, 6  ;;  %v12723_v16 = vld [vmem:[%s17068_s1] sm:$0x3f] }
 0x230   : > { %v1858_v26 = vsel %vm1850_vm3, %v11882_v15, %v840_v3  ;;  %1583 = vrot.lane.b32.xlu0 %v12286_v58, %s10942_s29  ;;  %9855 = vmatpush3.msra.mxu0 %v2000_v34  ;;  %v17534_v15 = vrot.slane %v11512_v48, 6  ;;  %v12699_v59 = vsel %vm1792_vm6, %v1778_v20, %v12239_v31  ;;  %v17542_v3 = vrot.slane %v17489_v24, 7 }
 0x231   : > { %9880 = vmatpush3.msra.mxu1 %v11823_v23  ;;  %9856 = vmatprep.subr.mxu0 %v17432_v54  ;;  %v838_v61 = vpop.permute.xlu0 %837  ;;  %v1887_v44 = vsel %vm1879_vm4, %v1858_v26, %v11793_v49  ;;  %v17536_v23 = vld [vmem:[#allocation32_spill] sm:$0xff]  ;;  %17538 = vst [vmem:[#allocation26_spill] sm:$0xff] %v12699_v59  ;;  %v17544_v26 = vld [vmem:[#allocation37_spill] sm:$0xff]  ;;  %v17546_v20 = vrot.slane %v17489_v24, 5 }
 0x232   : > { %1670 = vrot.lane.b32.xlu1 %v17534_v15, %s10946_s16  ;;  %9881 = vmatprep.subr.mxu1 %v17432_v54  ;;  %v1857_v35 = vsel %vm1850_vm3, %v17535_v32, %v838_v61  ;;  %v17547_v32 = vrot.slane %v11266_v42, 5 }
 0x233   : > { %9857 = vmatpush3.msra.mxu0 %v17536_v23  ;;  %9882 = vmatpush3.msra.mxu1 %v1887_v44  ;;  %v2546_v22 = vpop.permute.xlu1 %2545  ;;  %v1886_v49 = vsel %vm1879_vm4, %v1857_v35, %v11528_v53  ;;  %v17545_v44 = vld [vmem:[#allocation39_spill] sm:$0xff] }
 0x234   : > { %9883 = vmatprep.subr.mxu1 %v17432_v54  ;;  %1668 = vrot.lane.b32.xlu0 %v17537_v8, %s10946_s16  ;;  %v12772_v8 = vld [vmem:[%s11083_s26 + $0x58] sm:$0x7] }
 0x235   : > { %9858 = vmatprep.subr.mxu0 %v17432_v54  ;;  %9884 = vmatpush3.msra.mxu1 %v11965_v63  ;;  %v2538_v40 = vpop.permute.xlu0 %2537  ;;  %v12712_v63 = vsel %vm1792_vm6, %v1777_v18, %v12247_v45 }
 0x236   : > { %9859 = vmatpush3.msra.mxu0 %v1886_v49  ;;  %2555 = vrot.lane.b32.xlu1 %v12699_v59, %s10943_s12 }
 0x237   : > { %9860 = vmatprep.subr.mxu0 %v17432_v54  ;;  %9911 = vmatprep.subr.mxu1 %v17432_v54  ;;  %v12705_v53 = vpop.permute.xlu1 %1030 }
 0x238   : > { %9861 = vmatpush3.msra.mxu0 %v17539_v4  ;;  %9886 = vmatmul.mubr.msk.f32.vlgmr.msra.gmra.mxu1 %vm2780_vm8, %v11909_v9  ;;  %v17540_v9 = vrot.slane %v11512_v48, 7 }
 0x239   : > { %9912 = vmatpush3.msk.msra.mxu1 %vm1763_vm5, %v2546_v22  ;;  %2547 = vrot.lane.b32.xlu0 %v12712_v63, %s10943_s12  ;;  %v12717_v31 = vpop.permute.xlu0 %1028  ;;  %v12765_v22 = vld [vmem:[%s11083_s26 + $0x5c] sm:$0x7] }
 0x23a   : > { %9888 = vmatprep.subr.mxu0 %v17432_v54  ;;  %9863 = vmatmul.mubr.msk.f32.vlgmr.msra.gmra.mxu0 %vm2780_vm8, %v12723_v16  ;;  %v17258_v18 = vrot.slane %v12765_v22, 6  ;;  %v17271_v28 = vrot.slane %v12765_v22, 3 }
 0x23b   : > { %9889 = vmatpush3.msk.msra.mxu0 %vm1763_vm5, %v2538_v40  ;;  %1414 = vrot.lane.b32.xlu1 %v17540_v9, %s10943_s12  ;;  %v12731_v45 = vpop.permute.xlu1 %1226  ;;  %v17257_v40 = vrot.slane %v12772_v8, 6 }
 0x23c   : > { %17541 = vst [vmem:[#allocation16_spill] sm:$0xff] %v12731_v45  ;;  %9913 = vmatprep.subr.mxu1 %v17432_v54  ;;  %9890 = vmatprep.subr.mxu0 %v17432_v54 }
 0x23d   : > { %1412 = vrot.lane.b32.xlu0 %v17542_v3, %s10943_s12  ;;  %v12738_v34 = vpop.permute.xlu0 %1224  ;;  %9931 = vmatprep.mubr.msk.f32.mxu1 %vm10948_vm7, %v17432_v54 }
 0x23e   : > { %17543 = vst [vmem:[#allocation17_spill] sm:$0xff] %v12738_v34  ;;  %9908 = vmatprep.mubr.msk.f32.mxu0 %vm10948_vm7, %v17432_v54 }
 0x23f   : > { %1500 = vrot.lane.b32.xlu1 %v17544_v26, %s10944_s14  ;;  %v2544_v61 = vpop.permute.xlu1 %2543 }
 0x240   : > { %9914 = vmatpush3.msra.mxu1 %v2544_v61  ;;  %v12801_v61 = vrot.slane %v12010_v56, 1 }
 0x241   : > { %1498 = vrot.lane.b32.xlu0 %v17545_v44, %s10944_s14  ;;  %v2536_v60 = vpop.permute.xlu0 %2535  ;;  %9915 = vmatprep.subr.mxu1 %v17432_v54 }
 0x242   : > { %9891 = vmatpush3.msra.mxu0 %v2536_v60 }
 0x243   : > { %1297 = vrot.lane.b32.xlu1 %v17546_v20, %s10946_s16  ;;  %v12752_v15 = vpop.permute.xlu1 %637  ;;  %9892 = vmatprep.subr.mxu0 %v17432_v54 }
 0x245   : > { %1295 = vrot.lane.b32.xlu0 %v17547_v32, %s10946_s16  ;;  %v12758_v35 = vpop.permute.xlu0 %635 }
 0x247   : > { %847 = vrot.lane.b32.xlu1 %v17518_v47, %s10946_s16  ;;  %v12762_v23 = vpop.permute.xlu1 %749 }
 0x249   : > { %845 = vrot.lane.b32.xlu0 %v17519_v13, %s10946_s16  ;;  %v12769_v49 = vpop.permute.xlu0 %747  ;;  %v12785_v13 = vrot.slane %v12005_v17, 1 }
 0x24b   : > { %2577 = vrot.lane.b32.xlu1 %v12472_v38, %s10943_s12  ;;  %v12776_v12 = vpop.permute.xlu1 %1142  ;;  %17548 = vst [vmem:[#allocation15_spill] sm:$0xff] %v12785_v13  ;;  %v1925_v3 = vsel %vm1908_vm1, %v12785_v13, %v12452_v29  ;;  %v1924_v29 = vsel %vm1908_vm1, %v12801_v61, %v12464_v0  ;;  %v12832_v0 = vrot.slane %v12506_v30, 2 }
 0x24c   : > { %v12810_v32 = vsel %vm1937_vm0, %v1925_v3, %v12518_v51 }
 0x24d   : > { %2569 = vrot.lane.b32.xlu0 %v12479_v10, %s10943_s12  ;;  %v12781_v47 = vpop.permute.xlu0 %1140  ;;  %17549 = vst [vmem:[#allocation10_spill] sm:$0xff] %v12810_v32  ;;  %17551 = vst [vmem:[#allocation38_spill] sm:$0xff] %v12832_v0 }
 0x24f   : > { %1038 = vrot.lane.b32.xlu1 %v17258_v18, %s10943_s12  ;;  %v12790_v4 = vpop.permute.xlu1 %2226  ;;  %v12825_v18 = vsel %vm1937_vm0, %v1924_v29, %v12523_v2  ;;  %v17270_v2 = vrot.slane %v12506_v30, 7 }
 0x251   : > { %1036 = vrot.lane.b32.xlu0 %v17257_v40, %s10943_s12  ;;  %v12795_v9 = vpop.permute.xlu0 %2224 }
 0x253   : > { %1234 = vrot.lane.b32.xlu1 %v12765_v22, %s10942_s29  ;;  %v2542_v60 = vpop.permute.xlu1 %2541 }
 0x254   : > { %9916 = vmatpush3.msra.mxu1 %v2542_v60  ;;  %v12820_v60 = vrot.slane %v12772_v8, 2 }
 0x255   : > { %1232 = vrot.lane.b32.xlu0 %v12772_v8, %s10942_s29  ;;  %v2534_v20 = vpop.permute.xlu0 %2533  ;;  %9917 = vmatprep.subr.mxu1 %v17432_v54 }
 0x256   : > { %9893 = vmatpush3.msra.mxu0 %v2534_v20  ;;  %17550 = vst [vmem:[#allocation28_spill] sm:$0xff] %v12820_v60  ;;  %v17267_v20 = vrot.slane %v12772_v8, 7 }
 0x257   : > { %2575 = vrot.lane.b32.xlu1 %v12810_v32, %s10943_s12  ;;  %v12817_v40 = vpop.permute.xlu1 %525  ;;  %9894 = vmatprep.subr.mxu0 %v17432_v54  ;;  %v17274_v32 = vrot.slane %v12772_v8, 3 }
 0x259   : > { %2567 = vrot.lane.b32.xlu0 %v12825_v18, %s10943_s12  ;;  %v12829_v51 = vpop.permute.xlu0 %523 }
 0x25b   : > { %645 = vrot.lane.b32.xlu1 %v12820_v60, %s10944_s14  ;;  %v1582_v3 = vpop.permute.xlu1 %1581 }
 0x25d   : > { %643 = vrot.lane.b32.xlu0 %v12832_v0, %s10944_s14  ;;  %v1580_v37 = vpop.permute.xlu0 %1579  ;;  %v12853_v0 = vrot.slane %v12765_v22, 4 }
 0x25f   : > { %757 = vrot.lane.b32.xlu1 %v17267_v20, %s10942_s29  ;;  %v1667_v29 = vpop.permute.xlu1 %1666  ;;  %17552 = vst [vmem:[#allocation32_spill] sm:$0xff] %v12853_v0  ;;  %v12858_v20 = vsel %vm1821_vm2, %v12493_v50, %v12503_v55 }
 0x260   : > { %v2115_v38 = vsel %vm1908_vm1, %v1582_v3, %v1667_v29  ;;  %17553 = vst [vmem:[#allocation43_spill] sm:$0xff] %v12858_v20  ;;  %v12865_v29 = vrot.slane %v12772_v8, 4  ;;  %v2334_v55 = vsel %vm1850_vm3, %v12858_v20, %v12531_v57 }
 0x261   : > { %755 = vrot.lane.b32.xlu0 %v17270_v2, %s10942_s29  ;;  %v1665_v60 = vpop.permute.xlu0 %1664 }
 0x262   : > { %v2114_v2 = vsel %vm1908_vm1, %v1580_v37, %v1665_v60  ;;  %17554 = vst [vmem:[#allocation37_spill] sm:$0xff] %v12865_v29 }
 0x263   : > { %1150 = vrot.lane.b32.xlu1 %v17271_v28, %s10944_s14  ;;  %v17555_v28 = vrot.slane %v17489_v24, 3  ;;  %v17556_v24 = vrot.slane %v11266_v42, 3  ;;  %v17278_v42 = vrot.slane %v12772_v8, 5 }
 0x264   : > { %v2540_v39 = vpop.permute.xlu1 %2539 }
 0x265   : > { %1148 = vrot.lane.b32.xlu0 %v17274_v32, %s10944_s14  ;;  %9918 = vmatpush3.msra.mxu1 %v2540_v39  ;;  %v2143_v59 = vsel %vm1937_vm0, %v2115_v38, %v17555_v28  ;;  %v12879_v39 = vsel %vm1821_vm2, %v12499_v11, %v12510_v33  ;;  %v2142_v38 = vsel %vm1937_vm0, %v2114_v2, %v17556_v24 }
 0x266   : > { %v2532_v27 = vpop.permute.xlu0 %2531  ;;  %9919 = vmatprep.subr.mxu1 %v17432_v54  ;;  %v2333_v57 = vsel %vm1850_vm3, %v12879_v39, %v12536_v52  ;;  %v2362_v28 = vsel %vm1879_vm4, %v2334_v55, %v12785_v13  ;;  %v17558_v55 = vld [vmem:[#allocation14_spill] sm:$0xff] }
 0x267   : > { %2234 = vrot.lane.b32.xlu1 %v12853_v0, %s10945_s15  ;;  %9895 = vmatpush3.msra.mxu0 %v2532_v27  ;;  %v17557_v27 = vld [vmem:[#allocation35_spill] sm:$0xff] }
 0x268   : > { %v1411_v60 = vpop.permute.xlu1 %1410  ;;  %9896 = vmatprep.subr.mxu0 %v17432_v54  ;;  %9920 = vmatpush3.msra.mxu1 %v2143_v59  ;;  %v2361_v59 = vsel %vm1879_vm4, %v2333_v57, %v12801_v61 }
 0x269   : > { %2232 = vrot.lane.b32.xlu0 %v12865_v29, %s10945_s15  ;;  %9897 = vmatpush3.msra.mxu0 %v2142_v38  ;;  %v2031_v33 = vsel %vm1821_vm2, %v17557_v27, %v1411_v60  ;;  %v17277_v60 = vrot.slane %v12506_v30, 5 }
 0x26a   : > { %v1409_v32 = vpop.permute.xlu0 %1408  ;;  %9921 = vmatprep.subr.mxu1 %v17432_v54  ;;  %9898 = vmatprep.subr.mxu0 %v17432_v54 }
 0x26b   : > { %2573 = vrot.lane.b32.xlu1 %v2362_v28, %s10943_s12  ;;  %v2030_v24 = vsel %vm1821_vm2, %v17558_v55, %v1409_v32 }
 0x26c   : > { %v1497_v52 = vpop.permute.xlu1 %1496 }
 0x26d   : > { %v2059_v2 = vsel %vm1850_vm3, %v2031_v33, %v1497_v52  ;;  %2565 = vrot.lane.b32.xlu0 %v2361_v59, %s10943_s12 }
 0x26e   : > { %v1495_v38 = vpop.permute.xlu0 %1494  ;;  %v2087_v29 = vsel %vm1879_vm4, %v2059_v2, %v1582_v3  ;;  %v17560_v2 = vld [vmem:[#allocation63_spill] sm:$0xff] }
 0x26f   : > { %533 = vrot.lane.b32.xlu1 %v17278_v42, %s10943_s12  ;;  %v2058_v28 = vsel %vm1850_vm3, %v2030_v24, %v1495_v38  ;;  %9922 = vmatpush3.msra.mxu1 %v2087_v29 }
 0x270   : > { %v1294_v57 = vpop.permute.xlu1 %1293  ;;  %v2086_v33 = vsel %vm1879_vm4, %v2058_v28, %v1580_v37  ;;  %9923 = vmatprep.subr.mxu1 %v17432_v54  ;;  %v17559_v37 = vld [vmem:[#allocation30_spill] sm:$0xff] }
 0x271   : > { %v1975_v52 = vsel %vm1763_vm5, %v11590_v21, %v1294_v57  ;;  %531 = vrot.lane.b32.xlu0 %v17277_v60, %s10943_s12  ;;  %9899 = vmatpush3.msra.mxu0 %v2086_v33  ;;  %v10827_v57 = vld [vmem:[%s11083_s26 + $0x40] sm:$0x7]  ;;  %v17562_v33 = vrot.slane %v11758_v7, 6  ;;  %v13055_v60 = vrot.slane %v12257_v43, 1 }
 0x272   : > { %v1292_v32 = vpop.permute.xlu0 %1291  ;;  %v2003_v3 = vsel %vm1792_vm6, %v1975_v52, %v17557_v27  ;;  %9900 = vmatprep.subr.mxu0 %v17432_v54  ;;  %v17561_v27 = vld [vmem:[#allocation58_spill] sm:$0xff] }
 0x273   : > { %1589 = vrot.lane.b32.xlu1 %v12526_v41, %s10942_s29  ;;  %v1974_v29 = vsel %vm1763_vm5, %v17559_v37, %v1292_v32  ;;  %9924 = vmatpush3.msra.mxu1 %v2003_v3  ;;  %v17563_v52 = vld [vmem:[#allocation50_spill] sm:$0xff] }
 0x274   : > { %v844_v21 = vpop.permute.xlu1 %843  ;;  %9925 = vmatprep.subr.mxu1 %v17432_v54  ;;  %v2002_v59 = vsel %vm1792_vm6, %v1974_v29, %v17558_v55  ;;  %v1780_v55 = vsel %vm1763_vm5, %v10827_v57, %v12565_v62  ;;  %v17564_v3 = vld [vmem:[#allocation46_spill] sm:$0xff]  ;;  %v17565_v29 = vld [vmem:[#allocation45_spill] sm:$0xff]  ;;  %v17566_v62 = vrot.slane %v11765_v19, 6  ;;  %v17571_v57 = vrot.slane %v11758_v7, 7 }
 0x275   : > { %v1860_v24 = vsel %vm1850_vm3, %v17560_v2, %v844_v21  ;;  %1587 = vrot.lane.b32.xlu0 %v12542_v36, %s10942_s29  ;;  %9901 = vmatpush3.msra.mxu0 %v2002_v59  ;;  %v10828_v21 = vld [vmem:[%s11083_s26 + $0x3c] sm:$0x7]  ;;  %v17567_v2 = vld [vmem:[#allocation18_spill] sm:$0xff] }
 0x276   : > { %9926 = vmatpush3.msra.mxu1 %v17561_v27  ;;  %9902 = vmatprep.subr.mxu0 %v17432_v54  ;;  %v842_v38 = vpop.permute.xlu0 %841  ;;  %v1889_v28 = vsel %vm1879_vm4, %v1860_v24, %v12034_v6  ;;  %v1779_v59 = vsel %vm1763_vm5, %v10828_v21, %v12573_v25  ;;  %v12958_v24 = vsel %vm1792_vm6, %v1780_v55, %v12493_v50  ;;  %v17569_v25 = vld [vmem:[#allocation54_spill] sm:$0xff]  ;;  %v17573_v55 = vrot.slane %v11765_v19, 7 }
 0x277   : > { %1674 = vrot.lane.b32.xlu1 %v17562_v33, %s10946_s16  ;;  %9927 = vmatprep.subr.mxu1 %v17432_v54  ;;  %v1859_v32 = vsel %vm1850_vm3, %v17563_v52, %v842_v38  ;;  %17568 = vst [vmem:[#allocation39_spill] sm:$0xff] %v12958_v24  ;;  %v12971_v50 = vsel %vm1792_vm6, %v1779_v59, %v12499_v11  ;;  %v17575_v52 = vld [vmem:[#allocation49_spill] sm:$0xff] }
 0x278   : > { %9903 = vmatpush3.msra.mxu0 %v17564_v3  ;;  %9928 = vmatpush3.msra.mxu1 %v1889_v28  ;;  %v2562_v37 = vpop.permute.xlu1 %2561  ;;  %v1888_v6 = vsel %vm1879_vm4, %v1859_v32, %v17565_v29  ;;  %17570 = vst [vmem:[#allocation35_spill] sm:$0xff] %v12971_v50  ;;  %v17576_v3 = vld [vmem:[#allocation51_spill] sm:$0xff]  ;;  %v17577_v29 = vrot.slane %v11765_v19, 5 }
 0x279   : > { %9929 = vmatprep.subr.mxu1 %v17432_v54  ;;  %1672 = vrot.lane.b32.xlu0 %v17566_v62, %s10946_s16  ;;  %v17578_v62 = vrot.slane %v11512_v48, 5 }
 0x27a   : > { %9904 = vmatprep.subr.mxu0 %v17432_v54  ;;  %9930 = vmatpush3.msra.mxu1 %v17567_v2  ;;  %v2554_v27 = vpop.permute.xlu0 %2553  ;;  %v13019_v2 = vld [vmem:[%s11083_s26 + $0x64] sm:$0x7] }
 0x27b   : > { %9905 = vmatpush3.msra.mxu0 %v1888_v6  ;;  %2571 = vrot.lane.b32.xlu1 %v12958_v24, %s10943_s12  ;;  %v17296_v24 = vrot.slane %v13019_v2, 3 }
 0x27c   : > { %9906 = vmatprep.subr.mxu0 %v17432_v54  ;;  %9957 = vmatprep.subr.mxu1 %v17432_v54  ;;  %v12964_v38 = vpop.permute.xlu1 %1034 }
 0x27d   : > { %9907 = vmatpush3.msra.mxu0 %v17569_v25  ;;  %9932 = vmatmul.mubr.msk.f32.vlgmr.msra.gmra.mxu1 %vm2780_vm8, %v12723_v16  ;;  %v13026_v25 = vld [vmem:[%s11083_s26 + $0x60] sm:$0x7] }
 0x27e   : > { %9958 = vmatpush3.msk.msra.mxu1 %vm1763_vm5, %v2562_v37  ;;  %2563 = vrot.lane.b32.xlu0 %v12971_v50, %s10943_s12  ;;  %v12976_v28 = vpop.permute.xlu0 %1032 }
 0x27f   : > { %9934 = vmatprep.subr.mxu0 %v17432_v54  ;;  %9909 = vmatmul.mubr.msk.f32.vlgmr.msra.gmra.mxu0 %vm2780_vm8, %v12723_v16 }
 0x280   : > { %9935 = vmatpush3.msk.msra.mxu0 %vm1763_vm5, %v2554_v27  ;;  %1418 = vrot.lane.b32.xlu1 %v17571_v57, %s10943_s12  ;;  %v12985_v11 = vpop.permute.xlu1 %1230 }
 0x281   : > { %17572 = vst [vmem:[#allocation14_spill] sm:$0xff] %v12985_v11  ;;  %9959 = vmatprep.subr.mxu1 %v17432_v54  ;;  %9936 = vmatprep.subr.mxu0 %v17432_v54 }
 0x282   : > { %1416 = vrot.lane.b32.xlu0 %v17573_v55, %s10943_s12  ;;  %v12992_v33 = vpop.permute.xlu0 %1228  ;;  %9977 = vmatprep.mubr.msk.f32.mxu1 %vm10948_vm7, %v17432_v54  ;;  %v17279_v55 = vrot.slane %v13019_v2, 6 }
 0x283   : > { %17574 = vst [vmem:[#allocation30_spill] sm:$0xff] %v12992_v33  ;;  %9954 = vmatprep.mubr.msk.f32.mxu0 %vm10948_vm7, %v17432_v54 }
 0x284   : > { %1504 = vrot.lane.b32.xlu1 %v17575_v52, %s10944_s14  ;;  %v2560_v32 = vpop.permute.xlu1 %2559 }
 0x285   : > { %9960 = vmatpush3.msra.mxu1 %v2560_v32  ;;  %v17280_v32 = vrot.slane %v13026_v25, 6 }
 0x286   : > { %1502 = vrot.lane.b32.xlu0 %v17576_v3, %s10944_s14  ;;  %v2552_v37 = vpop.permute.xlu0 %2551  ;;  %9961 = vmatprep.subr.mxu1 %v17432_v54 }
 0x287   : > { %9937 = vmatpush3.msra.mxu0 %v2552_v37 }
 0x288   : > { %1301 = vrot.lane.b32.xlu1 %v17577_v29, %s10946_s16  ;;  %v13006_v6 = vpop.permute.xlu1 %641  ;;  %9938 = vmatprep.subr.mxu0 %v17432_v54 }
 0x28a   : > { %1299 = vrot.lane.b32.xlu0 %v17578_v62, %s10946_s16  ;;  %v13012_v21 = vpop.permute.xlu0 %639 }
 0x28c   : > { %851 = vrot.lane.b32.xlu1 %v17544_v26, %s10946_s16  ;;  %v13016_v59 = vpop.permute.xlu1 %753 }
 0x28e   : > { %849 = vrot.lane.b32.xlu0 %v17545_v44, %s10946_s16  ;;  %v13023_v27 = vpop.permute.xlu0 %751  ;;  %v13039_v44 = vrot.slane %v12250_v46, 1 }
 0x290   : > { %2593 = vrot.lane.b32.xlu1 %v12731_v45, %s10943_s12  ;;  %v13030_v57 = vpop.permute.xlu1 %1146  ;;  %v1927_v62 = vsel %vm1908_vm1, %v13039_v44, %v12705_v53  ;;  %v1926_v53 = vsel %vm1908_vm1, %v13055_v60, %v12717_v31  ;;  %v13086_v31 = vrot.slane %v12765_v22, 2 }
 0x291   : > { %v13079_v0 = vsel %vm1937_vm0, %v1926_v53, %v12781_v47  ;;  %v17295_v47 = vrot.slane %v12765_v22, 7 }
 0x292   : > { %2585 = vrot.lane.b32.xlu0 %v12738_v34, %s10943_s12  ;;  %v13035_v26 = vpop.permute.xlu0 %1144  ;;  %17581 = vst [vmem:[#allocation50_spill] sm:$0xff] %v13079_v0  ;;  %17582 = vst [vmem:[#allocation46_spill] sm:$0xff] %v13086_v31  ;;  %v13107_v34 = vrot.slane %v13019_v2, 4 }
 0x294   : > { %1042 = vrot.lane.b32.xlu1 %v17279_v55, %s10943_s12  ;;  %v13044_v37 = vpop.permute.xlu1 %2230  ;;  %17583 = vst [vmem:[#allocation45_spill] sm:$0xff] %v13107_v34 }
 0x296   : > { %1040 = vrot.lane.b32.xlu0 %v17280_v32, %s10943_s12  ;;  %v13049_v29 = vpop.permute.xlu0 %2228  ;;  %v13064_v32 = vsel %vm1937_vm0, %v1927_v62, %v12776_v12  ;;  %v17293_v62 = vrot.slane %v13026_v25, 7 }
 0x297   : > { %17579 = vst [vmem:[#allocation63_spill] sm:$0xff] %v13064_v32 }
 0x298   : > { %1238 = vrot.lane.b32.xlu1 %v13019_v2, %s10942_s29  ;;  %v2558_v42 = vpop.permute.xlu1 %2557 }
 0x299   : > { %9962 = vmatpush3.msra.mxu1 %v2558_v42  ;;  %v13074_v42 = vrot.slane %v13026_v25, 2 }
 0x29a   : > { %1236 = vrot.lane.b32.xlu0 %v13026_v25, %s10942_s29  ;;  %v2550_v55 = vpop.permute.xlu0 %2549  ;;  %9963 = vmatprep.subr.mxu1 %v17432_v54 }
 0x29b   : > { %9939 = vmatpush3.msra.mxu0 %v2550_v55  ;;  %17580 = vst [vmem:[#allocation58_spill] sm:$0xff] %v13074_v42 }
 0x29c   : > { %2591 = vrot.lane.b32.xlu1 %v13064_v32, %s10943_s12  ;;  %v13071_v45 = vpop.permute.xlu1 %529  ;;  %9940 = vmatprep.subr.mxu0 %v17432_v54 }
 0x29e   : > { %2583 = vrot.lane.b32.xlu0 %v13079_v0, %s10943_s12  ;;  %v13083_v12 = vpop.permute.xlu0 %527  ;;  %v17297_v0 = vrot.slane %v13026_v25, 3 }
 0x2a0   : > { %649 = vrot.lane.b32.xlu1 %v13074_v42, %s10944_s14  ;;  %v1586_v55 = vpop.permute.xlu1 %1585 }
 0x2a2   : > { %647 = vrot.lane.b32.xlu0 %v13086_v31, %s10944_s14  ;;  %v1584_v32 = vpop.permute.xlu0 %1583 }
 0x2a4   : > { %761 = vrot.lane.b32.xlu1 %v17293_v62, %s10942_s29  ;;  %v1671_v53 = vpop.permute.xlu1 %1670  ;;  %v17584_v62 = vrot.slane %v11765_v19, 3 }
 0x2a5   : > { %v2117_v20 = vsel %vm1908_vm1, %v1586_v55, %v1671_v53  ;;  %v13115_v53 = vsel %vm1821_vm2, %v12752_v15, %v12762_v23  ;;  %v13133_v23 = vsel %vm1821_vm2, %v12758_v35, %v12769_v49 }
 0x2a6   : > { %759 = vrot.lane.b32.xlu0 %v17295_v47, %s10942_s29  ;;  %v1669_v42 = vpop.permute.xlu0 %1668  ;;  %v2145_v50 = vsel %vm1937_vm0, %v2117_v20, %v17584_v62  ;;  %17585 = vst [vmem:[#allocation18_spill] sm:$0xff] %v13115_v53  ;;  %v2336_v20 = vsel %vm1850_vm3, %v13115_v53, %v12790_v4  ;;  %17587 = vst [vmem:[#allocation49_spill] sm:$0xff] %v13133_v23  ;;  %v2335_v4 = vsel %vm1850_vm3, %v13133_v23, %v12795_v9  ;;  %v17589_v62 = vld [vmem:[#allocation48_spill] sm:$0xff] }
 0x2a7   : > { %v2116_v47 = vsel %vm1908_vm1, %v1584_v32, %v1669_v42  ;;  %v2363_v9 = vsel %vm1879_vm4, %v2335_v4, %v13055_v60 }
 0x2a8   : > { %1154 = vrot.lane.b32.xlu1 %v17296_v24, %s10944_s14  ;;  %v2556_v31 = vpop.permute.xlu1 %2555  ;;  %v13122_v24 = vrot.slane %v13026_v25, 4 }
 0x2a9   : > { %9964 = vmatpush3.msra.mxu1 %v2556_v31  ;;  %v17588_v31 = vrot.slane %v11512_v48, 3  ;;  %v17302_v48 = vrot.slane %v13026_v25, 5 }
 0x2aa   : > { %1152 = vrot.lane.b32.xlu0 %v17297_v0, %s10944_s14  ;;  %17586 = vst [vmem:[#allocation54_spill] sm:$0xff] %v13122_v24  ;;  %9965 = vmatprep.subr.mxu1 %v17432_v54 }
 0x2ab   : > { %v2548_v19 = vpop.permute.xlu0 %2547  ;;  %9966 = vmatpush3.msra.mxu1 %v2145_v50  ;;  %v2144_v50 = vsel %vm1937_vm0, %v2116_v47, %v17588_v31 }
 0x2ac   : > { %2238 = vrot.lane.b32.xlu1 %v13107_v34, %s10945_s15  ;;  %9941 = vmatpush3.msra.mxu0 %v2548_v19  ;;  %v2364_v19 = vsel %vm1879_vm4, %v2336_v20, %v13039_v44 }
 0x2ad   : > { %v1415_v42 = vpop.permute.xlu1 %1414  ;;  %9942 = vmatprep.subr.mxu0 %v17432_v54  ;;  %9967 = vmatprep.subr.mxu1 %v17432_v54 }
 0x2ae   : > { %2236 = vrot.lane.b32.xlu0 %v13122_v24, %s10945_s15  ;;  %9943 = vmatpush3.msra.mxu0 %v2144_v50  ;;  %v2033_v49 = vsel %vm1821_vm2, %v17589_v62, %v1415_v42  ;;  %v17301_v42 = vrot.slane %v12765_v22, 5  ;;  %v17590_v50 = vld [vmem:[#allocation33_spill] sm:$0xff] }
 0x2af   : > { %v1413_v0 = vpop.permute.xlu0 %1412  ;;  %9944 = vmatprep.subr.mxu0 %v17432_v54 }
 0x2b0   : > { %2589 = vrot.lane.b32.xlu1 %v2364_v19, %s10943_s12  ;;  %v2032_v20 = vsel %vm1821_vm2, %v17590_v50, %v1413_v0 }
 0x2b1   : > { %v1501_v47 = vpop.permute.xlu1 %1500 }
 0x2b2   : > { %v2061_v31 = vsel %vm1850_vm3, %v2033_v49, %v1501_v47  ;;  %2581 = vrot.lane.b32.xlu0 %v2363_v9, %s10943_s12  ;;  %v17591_v47 = vld [vmem:[#allocation53_spill] sm:$0xff] }
 0x2b3   : > { %v1499_v53 = vpop.permute.xlu0 %1498  ;;  %v2089_v24 = vsel %vm1879_vm4, %v2061_v31, %v1586_v55 }
 0x2b4   : > { %537 = vrot.lane.b32.xlu1 %v17302_v48, %s10943_s12  ;;  %v2060_v19 = vsel %vm1850_vm3, %v2032_v20, %v1499_v53  ;;  %9968 = vmatpush3.msra.mxu1 %v2089_v24  ;;  %v17592_v24 = vld [vmem:[#allocation36_spill] sm:$0xff]  ;;  %v17593_v20 = vld [vmem:[#allocation65_spill] sm:$0xff]  ;;  %v13309_v48 = vrot.slane %v12513_v14, 1 }
 0x2b5   : > { %v1298_v4 = vpop.permute.xlu1 %1297  ;;  %v2088_v49 = vsel %vm1879_vm4, %v2060_v19, %v1584_v32  ;;  %9969 = vmatprep.subr.mxu1 %v17432_v54 }
 0x2b6   : > { %v1977_v9 = vsel %vm1763_vm5, %v17591_v47, %v1298_v4  ;;  %535 = vrot.lane.b32.xlu0 %v17301_v42, %s10943_s12  ;;  %9945 = vmatpush3.msra.mxu0 %v2088_v49  ;;  %v10829_v47 = vld [vmem:[%s11083_s26 + $0x48] sm:$0x7] }
 0x2b7   : > { %v1296_v0 = vpop.permute.xlu0 %1295  ;;  %v2005_v55 = vsel %vm1792_vm6, %v1977_v9, %v17589_v62  ;;  %9946 = vmatprep.subr.mxu0 %v17432_v54  ;;  %v17594_v62 = vld [vmem:[#allocation27_spill] sm:$0xff]  ;;  %v17595_v9 = vrot.slane %v12005_v17, 6 }
 0x2b8   : > { %1593 = vrot.lane.b32.xlu1 %v12785_v13, %s10942_s29  ;;  %v1976_v32 = vsel %vm1763_vm5, %v17592_v24, %v1296_v0  ;;  %9970 = vmatpush3.msra.mxu1 %v2005_v55  ;;  %v17596_v0 = vld [vmem:[#allocation61_spill] sm:$0xff]  ;;  %v17597_v24 = vld [vmem:[#allocation56_spill] sm:$0xff] }
 0x2b9   : > { %v848_v53 = vpop.permute.xlu1 %847  ;;  %9971 = vmatprep.subr.mxu1 %v17432_v54  ;;  %v2004_v31 = vsel %vm1792_vm6, %v1976_v32, %v17590_v50  ;;  %v1782_v50 = vsel %vm1763_vm5, %v10829_v47, %v12817_v40  ;;  %v17599_v40 = vrot.slane %v12010_v56, 6 }
 0x2ba   : > { %v1862_v19 = vsel %vm1850_vm3, %v17593_v20, %v848_v53  ;;  %1591 = vrot.lane.b32.xlu0 %v12801_v61, %s10942_s29  ;;  %9947 = vmatpush3.msra.mxu0 %v2004_v31  ;;  %v17598_v53 = vld [vmem:[#allocation55_spill] sm:$0xff]  ;;  %v10830_v31 = vld [vmem:[%s11083_s26 + $0x44] sm:$0x7] }
 0x2bb   : > { %9972 = vmatpush3.msra.mxu1 %v17594_v62  ;;  %9948 = vmatprep.subr.mxu0 %v17432_v54  ;;  %v846_v4 = vpop.permute.xlu0 %845  ;;  %v1891_v49 = vsel %vm1879_vm4, %v1862_v19, %v12286_v58  ;;  %v1781_v20 = vsel %vm1763_vm5, %v10830_v31, %v12829_v51  ;;  %v17600_v19 = vld [vmem:[#allocation9_spill] sm:$0xff]  ;;  %v13212_v62 = vsel %vm1792_vm6, %v1782_v50, %v12752_v15  ;;  %v17602_v51 = vld [vmem:[#allocation24_spill] sm:$0xff]  ;;  %v17604_v50 = vrot.slane %v12005_v17, 7 }
 0x2bc   : > { %1678 = vrot.lane.b32.xlu1 %v17595_v9, %s10946_s16  ;;  %9973 = vmatprep.subr.mxu1 %v17432_v54  ;;  %v1861_v55 = vsel %vm1850_vm3, %v17596_v0, %v846_v4  ;;  %17601 = vst [vmem:[#allocation51_spill] sm:$0xff] %v13212_v62  ;;  %v13225_v15 = vsel %vm1792_vm6, %v1781_v20, %v12758_v35  ;;  %v17606_v9 = vrot.slane %v12010_v56, 7  ;;  %v17611_v31 = vrot.slane %v11758_v7, 5 }
 0x2bd   : > { %9949 = vmatpush3.msra.mxu0 %v17597_v24  ;;  %9974 = vmatpush3.msra.mxu1 %v1891_v49  ;;  %v2578_v32 = vpop.permute.xlu1 %2577  ;;  %v1890_v58 = vsel %vm1879_vm4, %v1861_v55, %v17598_v53  ;;  %17603 = vst [vmem:[#allocation48_spill] sm:$0xff] %v13225_v15  ;;  %v17608_v55 = vld [vmem:[#allocation60_spill] sm:$0xff] }
 0x2be   : > { %9975 = vmatprep.subr.mxu1 %v17432_v54  ;;  %1676 = vrot.lane.b32.xlu0 %v17599_v40, %s10946_s16 }
 0x2bf   : > { %9950 = vmatprep.subr.mxu0 %v17432_v54  ;;  %9976 = vmatpush3.msra.mxu1 %v17600_v19  ;;  %v2570_v4 = vpop.permute.xlu0 %2569 }
 0x2c0   : > { %9951 = vmatpush3.msra.mxu0 %v1890_v58  ;;  %2587 = vrot.lane.b32.xlu1 %v13212_v62, %s10943_s12  ;;  %v17610_v58 = vrot.slane %v12010_v56, 5 }
 0x2c1   : > { %9952 = vmatprep.subr.mxu0 %v17432_v54  ;;  %10003 = vmatprep.subr.mxu1 %v17432_v54  ;;  %v13218_v49 = vpop.permute.xlu1 %1038 }
 0x2c2   : > { %9953 = vmatpush3.msra.mxu0 %v17602_v51  ;;  %9978 = vmatmul.mubr.msk.f32.vlgmr.msra.gmra.mxu1 %vm2780_vm8, %v12723_v16 }
 0x2c3   : > { %10004 = vmatpush3.msk.msra.mxu1 %vm1763_vm5, %v2578_v32  ;;  %2579 = vrot.lane.b32.xlu0 %v13225_v15, %s10943_s12  ;;  %v13230_v47 = vpop.permute.xlu0 %1036  ;;  %v17609_v32 = vld [vmem:[#allocation62_spill] sm:$0xff] }
 0x2c4   : > { %9980 = vmatprep.subr.mxu0 %v17432_v54  ;;  %9955 = vmatmul.mubr.msk.f32.vlgmr.msra.gmra.mxu0 %vm2780_vm8, %v12723_v16 }
 0x2c5   : > { %9981 = vmatpush3.msk.msra.mxu0 %vm1763_vm5, %v2570_v4  ;;  %1422 = vrot.lane.b32.xlu1 %v17604_v50, %s10943_s12  ;;  %v13239_v35 = vpop.permute.xlu1 %1234  ;;  %v13273_v4 = vld [vmem:[%s11083_s26 + $0x6c] sm:$0x7]  ;;  %v13280_v50 = vld [vmem:[%s11083_s26 + $0x68] sm:$0x7] }
 0x2c6   : > { %17605 = vst [vmem:[#allocation33_spill] sm:$0xff] %v13239_v35  ;;  %10005 = vmatprep.subr.mxu1 %v17432_v54  ;;  %9982 = vmatprep.subr.mxu0 %v17432_v54  ;;  %v17322_v15 = vrot.slane %v13280_v50, 3  ;;  %v13361_v13 = vrot.slane %v13273_v4, 4 }
 0x2c7   : > { %1420 = vrot.lane.b32.xlu0 %v17606_v9, %s10943_s12  ;;  %v13246_v0 = vpop.permute.xlu0 %1232  ;;  %10023 = vmatprep.mubr.msk.f32.mxu1 %vm10948_vm7, %v17432_v54 }
 0x2c8   : > { %17607 = vst [vmem:[#allocation53_spill] sm:$0xff] %v13246_v0  ;;  %10000 = vmatprep.mubr.msk.f32.mxu0 %vm10948_vm7, %v17432_v54 }
 0x2c9   : > { %1508 = vrot.lane.b32.xlu1 %v17608_v55, %s10944_s14  ;;  %v2576_v24 = vpop.permute.xlu1 %2575 }
 0x2ca   : > { %10006 = vmatpush3.msra.mxu1 %v2576_v24  ;;  %v17304_v24 = vrot.slane %v13273_v4, 6 }
 0x2cb   : > { %1506 = vrot.lane.b32.xlu0 %v17609_v32, %s10944_s14  ;;  %v2568_v53 = vpop.permute.xlu0 %2567  ;;  %10007 = vmatprep.subr.mxu1 %v17432_v54 }
 0x2cc   : > { %9983 = vmatpush3.msra.mxu0 %v2568_v53  ;;  %v17305_v53 = vrot.slane %v13280_v50, 6 }
 0x2cd   : > { %1305 = vrot.lane.b32.xlu1 %v17610_v58, %s10946_s16  ;;  %v13260_v40 = vpop.permute.xlu1 %645  ;;  %9984 = vmatprep.subr.mxu0 %v17432_v54 }
 0x2cf   : > { %1303 = vrot.lane.b32.xlu0 %v17611_v31, %s10946_s16  ;;  %v13266_v20 = vpop.permute.xlu0 %643 }
 0x2d1   : > { %855 = vrot.lane.b32.xlu1 %v17575_v52, %s10946_s16  ;;  %v13270_v19 = vpop.permute.xlu1 %757 }
 0x2d3   : > { %853 = vrot.lane.b32.xlu0 %v17576_v3, %s10946_s16  ;;  %v13277_v51 = vpop.permute.xlu0 %755  ;;  %v13293_v3 = vrot.slane %v12506_v30, 1 }
 0x2d5   : > { %2609 = vrot.lane.b32.xlu1 %v12985_v11, %s10943_s12  ;;  %v13284_v9 = vpop.permute.xlu1 %1150  ;;  %v1929_v42 = vsel %vm1908_vm1, %v13293_v3, %v12964_v38  ;;  %v1928_v38 = vsel %vm1908_vm1, %v13309_v48, %v12976_v28  ;;  %v13340_v28 = vrot.slane %v13019_v2, 2 }
 0x2d7   : > { %2601 = vrot.lane.b32.xlu0 %v12992_v33, %s10943_s12  ;;  %v13289_v52 = vpop.permute.xlu0 %1148  ;;  %v13333_v33 = vsel %vm1937_vm0, %v1928_v38, %v13035_v26  ;;  %17615 = vst [vmem:[#allocation61_spill] sm:$0xff] %v13340_v28  ;;  %v17320_v26 = vrot.slane %v13019_v2, 7 }
 0x2d8   : > { %17614 = vst [vmem:[#allocation27_spill] sm:$0xff] %v13333_v33 }
 0x2d9   : > { %1046 = vrot.lane.b32.xlu1 %v17304_v24, %s10943_s12  ;;  %v13298_v58 = vpop.permute.xlu1 %2234 }
 0x2db   : > { %1044 = vrot.lane.b32.xlu0 %v17305_v53, %s10943_s12  ;;  %v13303_v31 = vpop.permute.xlu0 %2232  ;;  %v13318_v53 = vsel %vm1937_vm0, %v1929_v42, %v13030_v57 }
 0x2dc   : > { %17612 = vst [vmem:[#allocation36_spill] sm:$0xff] %v13318_v53 }
 0x2dd   : > { %1242 = vrot.lane.b32.xlu1 %v13273_v4, %s10942_s29  ;;  %v2574_v11 = vpop.permute.xlu1 %2573 }
 0x2de   : > { %10008 = vmatpush3.msra.mxu1 %v2574_v11  ;;  %v13328_v11 = vrot.slane %v13280_v50, 2 }
 0x2df   : > { %1240 = vrot.lane.b32.xlu0 %v13280_v50, %s10942_s29  ;;  %v2566_v24 = vpop.permute.xlu0 %2565  ;;  %10009 = vmatprep.subr.mxu1 %v17432_v54 }
 0x2e0   : > { %9985 = vmatpush3.msra.mxu0 %v2566_v24  ;;  %17613 = vst [vmem:[#allocation65_spill] sm:$0xff] %v13328_v11  ;;  %v17318_v24 = vrot.slane %v13280_v50, 7 }
 0x2e1   : > { %2607 = vrot.lane.b32.xlu1 %v13318_v53, %s10943_s12  ;;  %v13325_v62 = vpop.permute.xlu1 %533  ;;  %9986 = vmatprep.subr.mxu0 %v17432_v54 }
 0x2e3   : > { %2599 = vrot.lane.b32.xlu0 %v13333_v33, %s10943_s12  ;;  %v13337_v57 = vpop.permute.xlu0 %531  ;;  %v17321_v33 = vrot.slane %v13273_v4, 3 }
 0x2e5   : > { %653 = vrot.lane.b32.xlu1 %v13328_v11, %s10944_s14  ;;  %v1590_v42 = vpop.permute.xlu1 %1589 }
 0x2e7   : > { %651 = vrot.lane.b32.xlu0 %v13340_v28, %s10944_s14  ;;  %v1588_v53 = vpop.permute.xlu0 %1587 }
 0x2e9   : > { %765 = vrot.lane.b32.xlu1 %v17318_v24, %s10942_s29  ;;  %v1675_v38 = vpop.permute.xlu1 %1674  ;;  %v17616_v24 = vrot.slane %v12010_v56, 3 }
 0x2ea   : > { %v2119_v34 = vsel %vm1908_vm1, %v1590_v42, %v1675_v38  ;;  %v13369_v38 = vsel %vm1821_vm2, %v13006_v6, %v13016_v59  ;;  %v13387_v59 = vsel %vm1821_vm2, %v13012_v21, %v13023_v27 }
 0x2eb   : > { %763 = vrot.lane.b32.xlu0 %v17320_v26, %s10942_s29  ;;  %v1673_v11 = vpop.permute.xlu0 %1672  ;;  %v2147_v23 = vsel %vm1937_vm0, %v2119_v34, %v17616_v24  ;;  %17617 = vst [vmem:[#allocation56_spill] sm:$0xff] %v13369_v38  ;;  %v2338_v34 = vsel %vm1850_vm3, %v13369_v38, %v13044_v37  ;;  %v2337_v37 = vsel %vm1850_vm3, %v13387_v59, %v13049_v29  ;;  %v17620_v24 = vld [vmem:[#allocation59_spill] sm:$0xff] }
 0x2ec   : > { %v2118_v26 = vsel %vm1908_vm1, %v1588_v53, %v1673_v11  ;;  %v2365_v29 = vsel %vm1879_vm4, %v2337_v37, %v13309_v48 }
 0x2ed   : > { %1158 = vrot.lane.b32.xlu1 %v17321_v33, %s10944_s14  ;;  %v2572_v28 = vpop.permute.xlu1 %2571  ;;  %v13376_v33 = vrot.slane %v13280_v50, 4 }
 0x2ee   : > { %10010 = vmatpush3.msra.mxu1 %v2572_v28  ;;  %v17619_v28 = vrot.slane %v11758_v7, 3  ;;  %v17329_v7 = vrot.slane %v13280_v50, 5 }
 0x2ef   : > { %1156 = vrot.lane.b32.xlu0 %v17322_v15, %s10944_s14  ;;  %17618 = vst [vmem:[#allocation55_spill] sm:$0xff] %v13376_v33  ;;  %10011 = vmatprep.subr.mxu1 %v17432_v54 }
 0x2f0   : > { %v2564_v56 = vpop.permute.xlu0 %2563  ;;  %10012 = vmatpush3.msra.mxu1 %v2147_v23  ;;  %v2146_v23 = vsel %vm1937_vm0, %v2118_v26, %v17619_v28 }
 0x2f1   : > { %2242 = vrot.lane.b32.xlu1 %v13361_v13, %s10945_s15  ;;  %9987 = vmatpush3.msra.mxu0 %v2564_v56  ;;  %v2366_v56 = vsel %vm1879_vm4, %v2338_v34, %v13293_v3 }
 0x2f2   : > { %v1419_v11 = vpop.permute.xlu1 %1418  ;;  %9988 = vmatprep.subr.mxu0 %v17432_v54  ;;  %10013 = vmatprep.subr.mxu1 %v17432_v54 }
 0x2f3   : > { %2240 = vrot.lane.b32.xlu0 %v13376_v33, %s10945_s15  ;;  %9989 = vmatpush3.msra.mxu0 %v2146_v23  ;;  %v2035_v27 = vsel %vm1821_vm2, %v17620_v24, %v1419_v11  ;;  %v17327_v11 = vrot.slane %v13019_v2, 5  ;;  %v17621_v23 = vld [vmem:[#allocation47_spill] sm:$0xff] }
 0x2f4   : > { %v1417_v15 = vpop.permute.xlu0 %1416  ;;  %9990 = vmatprep.subr.mxu0 %v17432_v54 }
 0x2f5   : > { %2605 = vrot.lane.b32.xlu1 %v2366_v56, %s10943_s12  ;;  %v2034_v34 = vsel %vm1821_vm2, %v17621_v23, %v1417_v15 }
 0x2f6   : > { %v1505_v26 = vpop.permute.xlu1 %1504 }
 0x2f7   : > { %v2063_v28 = vsel %vm1850_vm3, %v2035_v27, %v1505_v26  ;;  %2597 = vrot.lane.b32.xlu0 %v2365_v29, %s10943_s12  ;;  %v17622_v26 = vld [vmem:[#allocation25_spill] sm:$0xff] }
 0x2f8   : > { %v1503_v38 = vpop.permute.xlu0 %1502  ;;  %v2091_v33 = vsel %vm1879_vm4, %v2063_v28, %v1590_v42 }
 0x2f9   : > { %541 = vrot.lane.b32.xlu1 %v17329_v7, %s10943_s12  ;;  %v2062_v56 = vsel %vm1850_vm3, %v2034_v34, %v1503_v38  ;;  %10014 = vmatpush3.msra.mxu1 %v2091_v33  ;;  %v17623_v33 = vld [vmem:[#allocation52_spill] sm:$0xff] }
 0x2fa   : > { %v1302_v37 = vpop.permute.xlu1 %1301  ;;  %v2090_v27 = vsel %vm1879_vm4, %v2062_v56, %v1588_v53  ;;  %10015 = vmatprep.subr.mxu1 %v17432_v54 }
 0x2fb   : > { %v1979_v29 = vsel %vm1763_vm5, %v17622_v26, %v1302_v37  ;;  %539 = vrot.lane.b32.xlu0 %v17327_v11, %s10943_s12  ;;  %9991 = vmatpush3.msra.mxu0 %v2090_v27  ;;  %v10831_v27 = vld [vmem:[%s11083_s26 + $0x50] sm:$0x7]  ;;  %v17332_v11 = vrot.slane %v13273_v4, 7 }
 0x2fc   : > { %v1300_v15 = vpop.permute.xlu0 %1299  ;;  %v2007_v42 = vsel %vm1792_vm6, %v1979_v29, %v17620_v24  ;;  %9992 = vmatprep.subr.mxu0 %v17432_v54  ;;  %v17624_v24 = vld [vmem:[#allocation34_spill] sm:$0xff]  ;;  %v17626_v26 = vld [vmem:[#allocation31_spill] sm:$0xff] }
 0x2fd   : > { %1597 = vrot.lane.b32.xlu1 %v13039_v44, %s10942_s29  ;;  %v1978_v53 = vsel %vm1763_vm5, %v17623_v33, %v1300_v15  ;;  %10016 = vmatpush3.msra.mxu1 %v2007_v42  ;;  %v17627_v15 = vld [vmem:[#allocation42_spill] sm:$0xff] }
 0x2fe   : > { %v852_v38 = vpop.permute.xlu1 %851  ;;  %10017 = vmatprep.subr.mxu1 %v17432_v54  ;;  %v2006_v28 = vsel %vm1792_vm6, %v1978_v53, %v17621_v23  ;;  %v1784_v23 = vsel %vm1763_vm5, %v10831_v27, %v13071_v45  ;;  %v17628_v45 = vrot.slane %v12257_v43, 6  ;;  %v10832_v33 = vld [vmem:[%s11083_s26 + $0x4c] sm:$0x7]  ;;  %v17636_v27 = vld [vmem:[#allocation64_spill] sm:$0xff] }
 0x2ff   : > { %v1864_v34 = vsel %vm1850_vm3, %v12620_v1, %v852_v38  ;;  %1595 = vrot.lane.b32.xlu0 %v13055_v60, %s10942_s29  ;;  %9993 = vmatpush3.msra.mxu0 %v2006_v28  ;;  %v17625_v1 = vrot.slane %v12250_v46, 6  ;;  %v1783_v53 = vsel %vm1763_vm5, %v10832_v33, %v13083_v12  ;;  %v13466_v38 = vsel %vm1792_vm6, %v1784_v23, %v13006_v6  ;;  %v17630_v12 = vld [vmem:[#allocation11_spill] sm:$0xff] }
 0x300   : > { %10018 = vmatpush3.msra.mxu1 %v17624_v24  ;;  %9994 = vmatprep.subr.mxu0 %v17432_v54  ;;  %v850_v56 = vpop.permute.xlu0 %849  ;;  %v1893_v37 = vsel %vm1879_vm4, %v1864_v34, %v12542_v36  ;;  %17629 = vst [vmem:[#allocation9_spill] sm:$0xff] %v13466_v38  ;;  %v17631_v34 = vrot.slane %v12250_v46, 7  ;;  %v17633_v24 = vrot.slane %v12257_v43, 7 }
 0x301   : > { %1682 = vrot.lane.b32.xlu1 %v17625_v1, %s10946_s16  ;;  %10019 = vmatprep.subr.mxu1 %v17432_v54  ;;  %v1863_v29 = vsel %vm1850_vm3, %v17626_v26, %v850_v56  ;;  %v17637_v1 = vrot.slane %v12257_v43, 5 }
 0x302   : > { %9995 = vmatpush3.msra.mxu0 %v17627_v15  ;;  %10020 = vmatpush3.msra.mxu1 %v1893_v37  ;;  %v2594_v42 = vpop.permute.xlu1 %2593  ;;  %v1892_v36 = vsel %vm1879_vm4, %v1863_v29, %v12270_v5  ;;  %v17638_v29 = vrot.slane %v12005_v17, 5 }
 0x303   : > { %10021 = vmatprep.subr.mxu1 %v17432_v54  ;;  %1680 = vrot.lane.b32.xlu0 %v17628_v45, %s10946_s16  ;;  %v13531_v45 = vld [vmem:[%s11083_s26 + $0x70] sm:$0x7] }
 0x304   : > { %9996 = vmatprep.subr.mxu0 %v17432_v54  ;;  %10022 = vmatpush3.msra.mxu1 %v12712_v63  ;;  %v2586_v28 = vpop.permute.xlu0 %2585  ;;  %v13479_v63 = vsel %vm1792_vm6, %v1783_v53, %v13012_v21 }
 0x305   : > { %9997 = vmatpush3.msra.mxu0 %v1892_v36  ;;  %2603 = vrot.lane.b32.xlu1 %v13466_v38, %s10943_s12  ;;  %v17343_v38 = vrot.slane %v13531_v45, 7 }
 0x306   : > { %9998 = vmatprep.subr.mxu0 %v17432_v54  ;;  %10049 = vmatprep.subr.mxu1 %v17432_v54  ;;  %v13472_v5 = vpop.permute.xlu1 %1042 }
 0x307   : > { %9999 = vmatpush3.msra.mxu0 %v17630_v12  ;;  %10024 = vmatmul.mubr.msk.f32.vlgmr.msra.gmra.mxu1 %vm2780_vm8, %v12723_v16 }
 0x308   : > { %10050 = vmatpush3.msk.msra.mxu1 %vm1763_vm5, %v2594_v42  ;;  %2595 = vrot.lane.b32.xlu0 %v13479_v63, %s10943_s12  ;;  %v13484_v6 = vpop.permute.xlu0 %1040 }
 0x309   : > { %10026 = vmatprep.subr.mxu0 %v17432_v54  ;;  %10001 = vmatmul.mubr.msk.f32.vlgmr.msra.gmra.mxu0 %vm2780_vm8, %v12723_v16  ;;  %v17635_v16 = vld [vmem:[#allocation13_spill] sm:$0xff] }
 0x30a   : > { %10027 = vmatpush3.msk.msra.mxu0 %vm1763_vm5, %v2586_v28  ;;  %1426 = vrot.lane.b32.xlu1 %v17631_v34, %s10943_s12  ;;  %v13493_v21 = vpop.permute.xlu1 %1238  ;;  %v13543_v28 = vld [vmem:[%s11083_s26 + $0x74] sm:$0x7] }
 0x30b   : > { %17632 = vst [vmem:[#allocation24_spill] sm:$0xff] %v13493_v21  ;;  %10051 = vmatprep.subr.mxu1 %v17432_v54  ;;  %10028 = vmatprep.subr.mxu0 %v17432_v54 }
 0x30c   : > { %1424 = vrot.lane.b32.xlu0 %v17633_v24, %s10943_s12  ;;  %v13500_v56 = vpop.permute.xlu0 %1236  ;;  %10069 = vmatprep.mubr.msk.f32.mxu1 %vm10948_vm7, %v17432_v54  ;;  %v17328_v24 = vrot.slane %v13543_v28, 6 }
 0x30d   : > { %17634 = vst [vmem:[#allocation60_spill] sm:$0xff] %v13500_v56  ;;  %10046 = vmatprep.mubr.msk.f32.mxu0 %vm10948_vm7, %v17432_v54 }
 0x30e   : > { %1512 = vrot.lane.b32.xlu1 %v17635_v16, %s10944_s14  ;;  %v2592_v37 = vpop.permute.xlu1 %2591 }
 0x30f   : > { %10052 = vmatpush3.msra.mxu1 %v2592_v37 }
 0x310   : > { %1510 = vrot.lane.b32.xlu0 %v17636_v27, %s10944_s14  ;;  %v2584_v23 = vpop.permute.xlu0 %2583  ;;  %10053 = vmatprep.subr.mxu1 %v17432_v54 }
 0x311   : > { %10029 = vmatpush3.msra.mxu0 %v2584_v23  ;;  %v13562_v23 = vrot.slane %v12772_v8, 1 }
 0x312   : > { %1309 = vrot.lane.b32.xlu1 %v17637_v1, %s10946_s16  ;;  %v13514_v26 = vpop.permute.xlu1 %649  ;;  %10030 = vmatprep.subr.mxu0 %v17432_v54 }
 0x314   : > { %1307 = vrot.lane.b32.xlu0 %v17638_v29, %s10946_s16  ;;  %v13520_v15 = vpop.permute.xlu0 %647 }
 0x316   : > { %859 = vrot.lane.b32.xlu1 %v17608_v55, %s10946_s16  ;;  %v13524_v42 = vpop.permute.xlu1 %761  ;;  %v17326_v55 = vrot.slane %v13531_v45, 6 }
 0x318   : > { %857 = vrot.lane.b32.xlu0 %v17609_v32, %s10946_s16  ;;  %v13528_v36 = vpop.permute.xlu0 %759  ;;  %v13546_v32 = vrot.slane %v12765_v22, 1 }
 0x31a   : > { %2625 = vrot.lane.b32.xlu1 %v13239_v35, %s10943_s12  ;;  %v13535_v33 = vpop.permute.xlu1 %1154  ;;  %v1931_v37 = vsel %vm1908_vm1, %v13546_v32, %v13218_v49  ;;  %v1930_v49 = vsel %vm1908_vm1, %v13562_v23, %v13230_v47  ;;  %v13592_v47 = vrot.slane %v13273_v4, 2 }
 0x31c   : > { %2617 = vrot.lane.b32.xlu0 %v13246_v0, %s10943_s12  ;;  %v13539_v53 = vpop.permute.xlu0 %1152  ;;  %17641 = vst [vmem:[#allocation47_spill] sm:$0xff] %v13592_v47 }
 0x31e   : > { %1244 = vrot.lane.b32.xlu1 %v13531_v45, %s10942_s29  ;;  %v13550_v12 = vpop.permute.xlu1 %2238 }
 0x320   : > { %1048 = vrot.lane.b32.xlu0 %v17326_v55, %s10943_s12  ;;  %v13555_v34 = vpop.permute.xlu0 %2236  ;;  %v13572_v55 = vsel %vm1937_vm0, %v1931_v37, %v13284_v9 }
 0x321   : > { %17639 = vst [vmem:[#allocation62_spill] sm:$0xff] %v13572_v55 }
 0x322   : > { %2306 = vrot.lane.b32.xlu1 %v13543_v28, %s10942_s29  ;;  %v2590_v1 = vpop.permute.xlu1 %2589 }
 0x323   : > { %10054 = vmatpush3.msra.mxu1 %v2590_v1 }
 0x324   : > { %2287 = vrot.lane.b32.xlu0 %v17328_v24, %s10943_s12  ;;  %v2582_v29 = vpop.permute.xlu0 %2581  ;;  %10055 = vmatprep.subr.mxu1 %v17432_v54  ;;  %v13585_v24 = vsel %vm1937_vm0, %v1930_v49, %v13289_v52  ;;  %v17340_v49 = vrot.slane %v13531_v45, 3 }
 0x325   : > { %10031 = vmatpush3.msra.mxu0 %v2582_v29  ;;  %17640 = vst [vmem:[#allocation59_spill] sm:$0xff] %v13585_v24  ;;  %v13598_v29 = vrot.slane %v13531_v45, 2 }
 0x326   : > { %2623 = vrot.lane.b32.xlu1 %v13572_v55, %s10943_s12  ;;  %v13579_v1 = vpop.permute.xlu1 %537  ;;  %10032 = vmatprep.subr.mxu0 %v17432_v54  ;;  %v17341_v55 = vrot.slane %v13543_v28, 3 }
 0x327   : > { %17642 = vst [vmem:[#allocation25_spill] sm:$0xff] %v13598_v29 }
 0x328   : > { %2615 = vrot.lane.b32.xlu0 %v13585_v24, %s10943_s12  ;;  %v13589_v9 = vpop.permute.xlu0 %535 }
 0x32a   : > { %767 = vrot.lane.b32.xlu1 %v17332_v11, %s10942_s29  ;;  %v1594_v37 = vpop.permute.xlu1 %1593 }
 0x32c   : > { %655 = vrot.lane.b32.xlu0 %v13592_v47, %s10944_s14  ;;  %v1592_v52 = vpop.permute.xlu0 %1591 }
 0x32e   : > { %2174 = vrot.lane.b32.xlu1 %v13598_v29, %s10944_s14  ;;  %v1679_v7 = vpop.permute.xlu1 %1678  ;;  %v17643_v29 = vrot.slane %v12257_v43, 3 }
 0x32f   : > { %v2121_v35 = vsel %vm1908_vm1, %v1594_v37, %v1679_v7  ;;  %v13621_v7 = vsel %vm1821_vm2, %v13260_v40, %v13270_v19  ;;  %v13638_v19 = vsel %vm1821_vm2, %v13266_v20, %v13277_v51  ;;  %v17647_v51 = vld [vmem:[#allocation12_spill] sm:$0xff] }
 0x330   : > { %1160 = vrot.lane.b32.xlu0 %v17340_v49, %s10944_s14  ;;  %v1677_v11 = vpop.permute.xlu0 %1676  ;;  %v2149_v0 = vsel %vm1937_vm0, %v2121_v35, %v17643_v29  ;;  %17644 = vst [vmem:[#allocation52_spill] sm:$0xff] %v13621_v7  ;;  %v2340_v43 = vsel %vm1850_vm3, %v13621_v7, %v13298_v58  ;;  %v17645_v35 = vrot.slane %v13543_v28, 4  ;;  %v2339_v58 = vsel %vm1850_vm3, %v13638_v19, %v13303_v31 }
 0x331   : > { %v2120_v49 = vsel %vm1908_vm1, %v1592_v52, %v1677_v11  ;;  %v2368_v29 = vsel %vm1879_vm4, %v2340_v43, %v13546_v32  ;;  %v2367_v31 = vsel %vm1879_vm4, %v2339_v58, %v13562_v23 }
 0x332   : > { %2297 = vrot.lane.b32.xlu1 %v17341_v55, %s10944_s14  ;;  %v2588_v47 = vpop.permute.xlu1 %2587  ;;  %v17342_v55 = vrot.slane %v13531_v45, 4 }
 0x333   : > { %10056 = vmatpush3.msra.mxu1 %v2588_v47  ;;  %v17646_v47 = vrot.slane %v12005_v17, 3 }
 0x334   : > { %2184 = vrot.lane.b32.xlu0 %v17343_v38, %s10942_s29  ;;  %10057 = vmatprep.subr.mxu1 %v17432_v54 }
 0x335   : > { %v2580_v24 = vpop.permute.xlu0 %2579  ;;  %10058 = vmatpush3.msra.mxu1 %v2149_v0  ;;  %v2148_v0 = vsel %vm1937_vm0, %v2120_v49, %v17646_v47  ;;  %v17344_v47 = vrot.slane %v13273_v4, 5 }
 0x336   : > { %2246 = vrot.lane.b32.xlu1 %v17645_v35, %s10945_s15  ;;  %10033 = vmatpush3.msra.mxu0 %v2580_v24 }
 0x337   : > { %v1423_v11 = vpop.permute.xlu1 %1422  ;;  %10034 = vmatprep.subr.mxu0 %v17432_v54  ;;  %10059 = vmatprep.subr.mxu1 %v17432_v54 }
 0x338   : > { %2244 = vrot.lane.b32.xlu0 %v17342_v55, %s10945_s15  ;;  %10035 = vmatpush3.msra.mxu0 %v2148_v0  ;;  %v2037_v24 = vsel %vm1821_vm2, %v17647_v51, %v1423_v11  ;;  %v17648_v0 = vld [vmem:[#allocation57_spill] sm:$0xff] }
 0x339   : > { %v1421_v17 = vpop.permute.xlu0 %1420  ;;  %10036 = vmatprep.subr.mxu0 %v17432_v54 }
 0x33a   : > { %2621 = vrot.lane.b32.xlu1 %v2368_v29, %s10943_s12  ;;  %v2036_v11 = vsel %vm1821_vm2, %v17648_v0, %v1421_v17 }
 0x33b   : > { %v1509_v49 = vpop.permute.xlu1 %1508 }
 0x33c   : > { %v2065_v35 = vsel %vm1850_vm3, %v2037_v24, %v1509_v49  ;;  %2613 = vrot.lane.b32.xlu0 %v2367_v31, %s10943_s12 }
 0x33d   : > { %v1507_v55 = vpop.permute.xlu0 %1506  ;;  %v2093_v43 = vsel %vm1879_vm4, %v2065_v35, %v1594_v37 }
 0x33e   : > { %1599 = vrot.lane.b32.xlu1 %v13309_v48, %s10942_s29  ;;  %v2064_v29 = vsel %vm1850_vm3, %v2036_v11, %v1507_v55  ;;  %10060 = vmatpush3.msra.mxu1 %v2093_v43  ;;  %v17649_v55 = vrot.slane %v12513_v14, 6  ;;  %v10833_v43 = vld [vmem:[%s11083_s26 + $0x58] sm:$0x7] }
 0x33f   : > { %v1306_v38 = vpop.permute.xlu1 %1305  ;;  %v2092_v58 = vsel %vm1879_vm4, %v2064_v29, %v1592_v52  ;;  %10061 = vmatprep.subr.mxu1 %v17432_v54  ;;  %v17650_v52 = vld [vmem:[#allocation41_spill] sm:$0xff] }
 0x340   : > { %v1981_v24 = vsel %vm1763_vm5, %v12479_v10, %v1306_v38  ;;  %543 = vrot.lane.b32.xlu0 %v17344_v47, %s10943_s12  ;;  %10037 = vmatpush3.msra.mxu0 %v2092_v58  ;;  %v17345_v10 = vrot.slane %v13531_v45, 5 }
 0x341   : > { %v1304_v37 = vpop.permute.xlu0 %1303  ;;  %v2009_v17 = vsel %vm1792_vm6, %v1981_v24, %v17647_v51  ;;  %10038 = vmatprep.subr.mxu0 %v17432_v54  ;;  %v10834_v24 = vld [vmem:[%s11083_s26 + $0x54] sm:$0x7] }
 0x342   : > { %1684 = vrot.lane.b32.xlu1 %v17649_v55, %s10946_s16  ;;  %v1980_v49 = vsel %vm1763_vm5, %v17650_v52, %v1304_v37  ;;  %10062 = vmatpush3.msra.mxu1 %v2009_v17  ;;  %v1785_v37 = vsel %vm1763_vm5, %v10834_v24, %v13337_v57  ;;  %v17654_v17 = vld [vmem:[#allocation35_spill] sm:$0xff]  ;;  %v17656_v57 = vld [vmem:[#allocation26_spill] sm:$0xff]  ;;  %v13784_v24 = vld [vmem:[%s11083_s26 + $0x7c] sm:$0x7] }
 0x343   : > { %v856_v38 = vpop.permute.xlu1 %855  ;;  %10063 = vmatprep.subr.mxu1 %v17432_v54  ;;  %v2008_v31 = vsel %vm1792_vm6, %v1980_v49, %v17648_v0  ;;  %v1786_v0 = vsel %vm1763_vm5, %v10833_v43, %v13325_v62  ;;  %v17653_v62 = vrot.slane %v12506_v30, 6  ;;  %v13730_v49 = vld [vmem:[%s17068_s1] sm:$0x3f] }
 0x344   : > { %v1866_v51 = vsel %vm1850_vm3, %v12879_v39, %v856_v38  ;;  %1601 = vrot.lane.b32.xlu0 %v13293_v3, %s10942_s29  ;;  %10039 = vmatpush3.msra.mxu0 %v2008_v31  ;;  %v17651_v39 = vld [vmem:[#allocation20_spill] sm:$0xff]  ;;  %v13718_v55 = vsel %vm1792_vm6, %v1786_v0, %v13260_v40  ;;  %v13736_v40 = vsel %vm1792_vm6, %v1785_v37, %v13266_v20  ;;  %v17658_v31 = vrot.slane %v12506_v30, 7 }
 0x345   : > { %10064 = vmatpush3.msra.mxu1 %v12825_v18  ;;  %10040 = vmatprep.subr.mxu0 %v17432_v54  ;;  %v854_v35 = vpop.permute.xlu0 %853  ;;  %v1895_v11 = vsel %vm1879_vm4, %v1866_v51, %v12801_v61  ;;  %v17652_v18 = vld [vmem:[#allocation19_spill] sm:$0xff]  ;;  %17655 = vst [vmem:[#allocation34_spill] sm:$0xff] %v13718_v55  ;;  %17657 = vst [vmem:[#allocation31_spill] sm:$0xff] %v13736_v40  ;;  %v17660_v51 = vrot.slane %v12513_v14, 7  ;;  %v17662_v0 = vld [vmem:[#allocation44_spill] sm:$0xff] }
 0x346   : > { %2164 = vrot.lane.b32.xlu1 %v17345_v10, %s10943_s12  ;;  %10065 = vmatprep.subr.mxu1 %v17432_v54  ;;  %v1865_v29 = vsel %vm1850_vm3, %v17651_v39, %v854_v35 }
 0x347   : > { %10041 = vmatpush3.msra.mxu0 %v17652_v18  ;;  %10066 = vmatpush3.msra.mxu1 %v1895_v11  ;;  %v2610_v58 = vpop.permute.xlu1 %2609  ;;  %v1894_v61 = vsel %vm1879_vm4, %v1865_v29, %v12526_v41  ;;  %v17661_v11 = vld [vmem:[#allocation22_spill] sm:$0xff]  ;;  %v17663_v29 = vrot.slane %v12513_v14, 5 }
 0x348   : > { %10067 = vmatprep.subr.mxu1 %v17432_v54  ;;  %1686 = vrot.lane.b32.xlu0 %v17653_v62, %s10946_s16 }
 0x349   : > { %10042 = vmatprep.subr.mxu0 %v17432_v54  ;;  %10068 = vmatpush3.msra.mxu1 %v17654_v17  ;;  %v2602_v52 = vpop.permute.xlu0 %2601  ;;  %v13791_v17 = vld [vmem:[%s11083_s26 + $0x78] sm:$0x7] }
 0x34a   : > { %10043 = vmatpush3.msra.mxu0 %v1894_v61  ;;  %2619 = vrot.lane.b32.xlu1 %v13718_v55, %s10943_s12  ;;  %v17356_v7 = vrot.slane %v13791_v17, 3 }
 0x34b   : > { %10044 = vmatprep.subr.mxu0 %v17432_v54  ;;  %10095 = vmatprep.subr.mxu1 %v17432_v54  ;;  %v13724_v41 = vpop.permute.xlu1 %1046 }
 0x34c   : > { %10045 = vmatpush3.msra.mxu0 %v17656_v57  ;;  %10070 = vmatmul.mubr.msk.f32.vlgmr.msra.gmra.mxu1 %vm2780_vm8, %v13730_v49  ;;  %v2286_v57 = vrot.slane %v13784_v24, 6 }
 0x34d   : > { %10096 = vmatpush3.msk.msra.mxu1 %vm1763_vm5, %v2610_v58  ;;  %2611 = vrot.lane.b32.xlu0 %v13736_v40, %s10943_s12  ;;  %v13741_v38 = vpop.permute.xlu0 %1044  ;;  %v17664_v58 = vrot.slane %v12250_v46, 5 }
 0x34e   : > { %10072 = vmatprep.subr.mxu0 %v17432_v54  ;;  %10047 = vmatmul.mubr.msk.f32.vlgmr.msra.gmra.mxu0 %vm2780_vm8, %v13730_v49 }
 0x34f   : > { %10073 = vmatpush3.msk.msra.mxu0 %vm1763_vm5, %v2602_v52  ;;  %1430 = vrot.lane.b32.xlu1 %v17658_v31, %s10943_s12  ;;  %v13750_v20 = vpop.permute.xlu1 %1242  ;;  %v2285_v31 = vrot.slane %v13791_v17, 6 }
 0x350   : > { %17659 = vst [vmem:[#allocation42_spill] sm:$0xff] %v13750_v20  ;;  %10097 = vmatprep.subr.mxu1 %v17432_v54  ;;  %10074 = vmatprep.subr.mxu0 %v17432_v54 }
 0x351   : > { %1428 = vrot.lane.b32.xlu0 %v17660_v51, %s10943_s12  ;;  %v13757_v35 = vpop.permute.xlu0 %1240  ;;  %10115 = vmatprep.mubr.msk.f32.mxu1 %vm10948_vm7, %v17432_v54 }
 0x352   : > { %10092 = vmatprep.mubr.msk.f32.mxu0 %vm10948_vm7, %v17432_v54 }
 0x353   : > { %1516 = vrot.lane.b32.xlu1 %v17661_v11, %s10944_s14  ;;  %v2608_v43 = vpop.permute.xlu1 %2607 }
 0x354   : > { %10098 = vmatpush3.msra.mxu1 %v2608_v43 }
 0x355   : > { %1514 = vrot.lane.b32.xlu0 %v17662_v0, %s10944_s14  ;;  %v2600_v39 = vpop.permute.xlu0 %2599  ;;  %10099 = vmatprep.subr.mxu1 %v17432_v54 }
 0x356   : > { %10075 = vmatpush3.msra.mxu0 %v2600_v39 }
 0x357   : > { %1313 = vrot.lane.b32.xlu1 %v17663_v29, %s10946_s16  ;;  %v13771_v18 = vpop.permute.xlu1 %653  ;;  %10076 = vmatprep.subr.mxu0 %v17432_v54  ;;  %v13816_v29 = vrot.slane %v13026_v25, 1 }
 0x359   : > { %1311 = vrot.lane.b32.xlu0 %v17664_v58, %s10946_s16  ;;  %v13777_v61 = vpop.permute.xlu0 %651 }
 0x35b   : > { %863 = vrot.lane.b32.xlu1 %v17635_v16, %s10946_s16  ;;  %v13781_v62 = vpop.permute.xlu1 %765 }
 0x35d   : > { %861 = vrot.lane.b32.xlu0 %v17636_v27, %s10946_s16  ;;  %v13788_v37 = vpop.permute.xlu0 %763  ;;  %v13804_v27 = vrot.slane %v13019_v2, 1 }
 0x35f   : > { %2641 = vrot.lane.b32.xlu1 %v13493_v21, %s10943_s12  ;;  %v13795_v52 = vpop.permute.xlu1 %1158  ;;  %v1933_v39 = vsel %vm1908_vm1, %v13804_v27, %v13472_v5  ;;  %v1932_v5 = vsel %vm1908_vm1, %v13816_v29, %v13484_v6  ;;  %v13845_v6 = vrot.slane %v13543_v28, 2  ;;  %v2296_v21 = vrot.slane %v13784_v24, 3 }
 0x360   : > { %v13838_v10 = vsel %vm1937_vm0, %v1932_v5, %v13539_v53  ;;  %v17354_v53 = vrot.slane %v13543_v28, 7 }
 0x361   : > { %2633 = vrot.lane.b32.xlu0 %v13500_v56, %s10943_s12  ;;  %v13800_v16 = vpop.permute.xlu0 %1156  ;;  %17666 = vst [vmem:[#allocation13_spill] sm:$0xff] %v13838_v10  ;;  %17667 = vst [vmem:[#allocation64_spill] sm:$0xff] %v13845_v6  ;;  %v17668_v56 = vrot.slane %v12513_v14, 3 }
 0x363   : > { %2291 = vrot.lane.b32.xlu1 %v2286_v57, %s10943_s12  ;;  %v13807_v51 = vpop.permute.xlu1 %2242 }
 0x365   : > { %2289 = vrot.lane.b32.xlu0 %v2285_v31, %s10943_s12  ;;  %v13810_v43 = vpop.permute.xlu0 %2240  ;;  %v13825_v31 = vsel %vm1937_vm0, %v1933_v39, %v13535_v33 }
 0x366   : > { %17665 = vst [vmem:[#allocation11_spill] sm:$0xff] %v13825_v31 }
 0x367   : > { %2310 = vrot.lane.b32.xlu1 %v13784_v24, %s10942_s29  ;;  %v2606_v58 = vpop.permute.xlu1 %2605 }
 0x368   : > { %10100 = vmatpush3.msra.mxu1 %v2606_v58  ;;  %v2173_v58 = vrot.slane %v13791_v17, 2 }
 0x369   : > { %2308 = vrot.lane.b32.xlu0 %v13791_v17, %s10942_s29  ;;  %v2598_v57 = vpop.permute.xlu0 %2597  ;;  %10101 = vmatprep.subr.mxu1 %v17432_v54 }
 0x36a   : > { %10077 = vmatpush3.msra.mxu0 %v2598_v57  ;;  %v2183_v57 = vrot.slane %v13791_v17, 7 }
 0x36b   : > { %2639 = vrot.lane.b32.xlu1 %v13825_v31, %s10943_s12  ;;  %v13832_v47 = vpop.permute.xlu1 %541  ;;  %10078 = vmatprep.subr.mxu0 %v17432_v54 }
 0x36d   : > { %2631 = vrot.lane.b32.xlu0 %v13838_v10, %s10943_s12  ;;  %v13842_v33 = vpop.permute.xlu0 %539  ;;  %v2195_v10 = vrot.slane %v13784_v24, 4 }
 0x36f   : > { %2178 = vrot.lane.b32.xlu1 %v2173_v58, %s10944_s14  ;;  %v1598_v39 = vpop.permute.xlu1 %1597 }
 0x371   : > { %2176 = vrot.lane.b32.xlu0 %v13845_v6, %s10944_s14  ;;  %v1596_v31 = vpop.permute.xlu0 %1595 }
 0x373   : > { %2188 = vrot.lane.b32.xlu1 %v2183_v57, %s10942_s29  ;;  %v1683_v5 = vpop.permute.xlu1 %1682 }
 0x374   : > { %v2123_v55 = vsel %vm1908_vm1, %v1598_v39, %v1683_v5  ;;  %v13867_v5 = vsel %vm1821_vm2, %v13514_v26, %v13524_v42 }
 0x375   : > { %2186 = vrot.lane.b32.xlu0 %v17354_v53, %s10942_s29  ;;  %v1681_v58 = vpop.permute.xlu0 %1680  ;;  %v2151_v57 = vsel %vm1937_vm0, %v2123_v55, %v17668_v56  ;;  %v2342_v14 = vsel %vm1850_vm3, %v13867_v5, %v13550_v12  ;;  %v13882_v56 = vsel %vm1821_vm2, %v13520_v15, %v13528_v36  ;;  %v17669_v55 = vrot.slane %v12250_v46, 3 }
 0x376   : > { %v2122_v53 = vsel %vm1908_vm1, %v1596_v31, %v1681_v58  ;;  %v2341_v12 = vsel %vm1850_vm3, %v13882_v56, %v13555_v34 }
 0x377   : > { %2301 = vrot.lane.b32.xlu1 %v2296_v21, %s10944_s14  ;;  %v2604_v6 = vpop.permute.xlu1 %2603  ;;  %v2194_v21 = vrot.slane %v13791_v17, 4 }
 0x378   : > { %10102 = vmatpush3.msra.mxu1 %v2604_v6  ;;  %v2150_v6 = vsel %vm1937_vm0, %v2122_v53, %v17669_v55  ;;  %v2369_v53 = vsel %vm1879_vm4, %v2341_v12, %v13816_v29  ;;  %v17672_v12 = vld [vmem:[#allocation17_spill] sm:$0xff] }
 0x379   : > { %2299 = vrot.lane.b32.xlu0 %v17356_v7, %s10944_s14  ;;  %10103 = vmatprep.subr.mxu1 %v17432_v54 }
 0x37a   : > { %v2596_v40 = vpop.permute.xlu0 %2595  ;;  %10104 = vmatpush3.msra.mxu1 %v2151_v57  ;;  %v17671_v57 = vld [vmem:[#allocation21_spill] sm:$0xff] }
 0x37b   : > { %2250 = vrot.lane.b32.xlu1 %v2195_v10, %s10945_s15  ;;  %10079 = vmatpush3.msra.mxu0 %v2596_v40  ;;  %v17670_v10 = vld [vmem:[#allocation23_spill] sm:$0xff]  ;;  %v2370_v40 = vsel %vm1879_vm4, %v2342_v14, %v13804_v27 }
 0x37c   : > { %v1427_v42 = vpop.permute.xlu1 %1426  ;;  %10080 = vmatprep.subr.mxu0 %v17432_v54  ;;  %10105 = vmatprep.subr.mxu1 %v17432_v54 }
 0x37d   : > { %2248 = vrot.lane.b32.xlu0 %v2194_v21, %s10945_s15  ;;  %10081 = vmatpush3.msra.mxu0 %v2150_v6  ;;  %v2039_v36 = vsel %vm1821_vm2, %v17670_v10, %v1427_v42 }
 0x37e   : > { %v1425_v58 = vpop.permute.xlu0 %1424  ;;  %10082 = vmatprep.subr.mxu0 %v17432_v54 }
 0x37f   : > { %2637 = vrot.lane.b32.xlu1 %v2370_v40, %s10943_s12  ;;  %v2038_v21 = vsel %vm1821_vm2, %v17671_v57, %v1425_v58 }
 0x380   : > { %v1513_v46 = vpop.permute.xlu1 %1512 }
 0x381   : > { %v2067_v34 = vsel %vm1850_vm3, %v2039_v36, %v1513_v46  ;;  %2629 = vrot.lane.b32.xlu0 %v2369_v53, %s10943_s12  ;;  %v17673_v46 = vrot.slane %v12765_v22, 6 }
 0x382   : > { %v1511_v42 = vpop.permute.xlu0 %1510  ;;  %v2095_v55 = vsel %vm1879_vm4, %v2067_v34, %v1598_v39  ;;  %v2163_v34 = vrot.slane %v13791_v17, 5 }
 0x383   : > { %1605 = vrot.lane.b32.xlu1 %v13546_v32, %s10942_s29  ;;  %v2066_v14 = vsel %vm1850_vm3, %v2038_v21, %v1511_v42  ;;  %10106 = vmatpush3.msra.mxu1 %v2095_v55 }
 0x384   : > { %v1310_v6 = vpop.permute.xlu1 %1309  ;;  %v2094_v40 = vsel %vm1879_vm4, %v2066_v14, %v1596_v31  ;;  %10107 = vmatprep.subr.mxu1 %v17432_v54  ;;  %v17674_v31 = vld [vmem:[#allocation29_spill] sm:$0xff]  ;;  %v17676_v14 = vrot.slane %v12772_v8, 6 }
 0x385   : > { %v1983_v36 = vsel %vm1763_vm5, %v17672_v12, %v1310_v6  ;;  %1603 = vrot.lane.b32.xlu0 %v13562_v23, %s10942_s29  ;;  %10083 = vmatpush3.msra.mxu0 %v2094_v40  ;;  %v2162_v6 = vrot.slane %v13543_v28, 5  ;;  %v17677_v40 = vld [vmem:[#allocation50_spill] sm:$0xff] }
 0x386   : > { %v1308_v58 = vpop.permute.xlu0 %1307  ;;  %v2011_v39 = vsel %vm1792_vm6, %v1983_v36, %v17670_v10  ;;  %10084 = vmatprep.subr.mxu0 %v17432_v54  ;;  %v17675_v10 = vld [vmem:[#allocation49_spill] sm:$0xff] }
 0x387   : > { %1690 = vrot.lane.b32.xlu1 %v17673_v46, %s10946_s16  ;;  %v1982_v53 = vsel %vm1763_vm5, %v17674_v31, %v1308_v58  ;;  %10108 = vmatpush3.msra.mxu1 %v2011_v39  ;;  %v17678_v39 = vld [vmem:[#allocation43_spill] sm:$0xff]  ;;  %v17679_v31 = vld [vmem:[#allocation10_spill] sm:$0xff] }
 0x388   : > { %v860_v21 = vpop.permute.xlu1 %859  ;;  %10109 = vmatprep.subr.mxu1 %v17432_v54  ;;  %v2010_v42 = vsel %vm1792_vm6, %v1982_v53, %v17671_v57  ;;  %v10836_v57 = vld [vmem:[%s11083_s26 + $0x60] sm:$0x7] }
 0x389   : > { %v1868_v55 = vsel %vm1850_vm3, %v17675_v10, %v860_v21  ;;  %1688 = vrot.lane.b32.xlu0 %v17676_v14, %s10946_s16  ;;  %10085 = vmatpush3.msra.mxu0 %v2010_v42  ;;  %v1788_v58 = vsel %vm1763_vm5, %v10836_v57, %v13579_v1  ;;  %v17680_v21 = vld [vmem:[#allocation15_spill] sm:$0xff]  ;;  %v17686_v57 = vld [vmem:[#allocation32_spill] sm:$0xff] }
 0x38a   : > { %10110 = vmatpush3.msra.mxu1 %v17677_v40  ;;  %10086 = vmatprep.subr.mxu0 %v17432_v54  ;;  %v858_v12 = vpop.permute.xlu0 %857  ;;  %v1897_v36 = vsel %vm1879_vm4, %v1868_v55, %v13055_v60  ;;  %v10837_v60 = vld [vmem:[%s11083_s26 + $0x5c] sm:$0x7]  ;;  %v13956_v10 = vsel %vm1792_vm6, %v1788_v58, %v13514_v26  ;;  %v17684_v40 = vrot.slane %v12765_v22, 7 }
 0x38b   : > { %2168 = vrot.lane.b32.xlu1 %v2163_v34, %s10943_s12  ;;  %10111 = vmatprep.subr.mxu1 %v17432_v54  ;;  %v1867_v46 = vsel %vm1850_vm3, %v17678_v39, %v858_v12  ;;  %v1787_v1 = vsel %vm1763_vm5, %v10837_v60, %v13589_v9  ;;  %v17681_v34 = vld [vmem:[#allocation48_spill] sm:$0xff]  ;;  %17682 = vst [vmem:[#allocation12_spill] sm:$0xff] %v13956_v10  ;;  %v17683_v9 = vld [vmem:[#allocation39_spill] sm:$0xff]  ;;  %v17685_v12 = vrot.slane %v12772_v8, 7  ;;  %v17687_v39 = vld [vmem:[#allocation37_spill] sm:$0xff]  ;;  %v14013_v60 = vrot.slane %v13273_v4, 1 }
 0x38c   : > { %10087 = vmatpush3.msra.mxu0 %v17679_v31  ;;  %10112 = vmatpush3.msra.mxu1 %v1897_v36  ;;  %v2626_v53 = vpop.permute.xlu1 %2625  ;;  %v1896_v42 = vsel %vm1879_vm4, %v1867_v46, %v17680_v21  ;;  %v13969_v26 = vsel %vm1792_vm6, %v1787_v1, %v13520_v15  ;;  %v17688_v31 = vrot.slane %v12772_v8, 5  ;;  %v17689_v21 = vrot.slane %v12506_v30, 5 }
 0x38d   : > { %10113 = vmatprep.subr.mxu1 %v17432_v54  ;;  %2166 = vrot.lane.b32.xlu0 %v2162_v6, %s10943_s12 }
 0x38e   : > { %10088 = vmatprep.subr.mxu0 %v17432_v54  ;;  %10114 = vmatpush3.msra.mxu1 %v17681_v34  ;;  %v2618_v55 = vpop.permute.xlu0 %2617  ;;  %v10949_v34 = vmov 0  }
 0x38f   : > { %10089 = vmatpush3.msra.mxu0 %v1896_v42  ;;  %2635 = vrot.lane.b32.xlu1 %v13956_v10, %s10943_s12 }
 0x390   : > { %10090 = vmatprep.subr.mxu0 %v17432_v54  ;;  %10141 = vmatprep.subr.mxu1 %v17432_v54  ;;  %v13962_v14 = vpop.permute.xlu1 %1244 }
 0x391   : > { %10091 = vmatpush3.msra.mxu0 %v17683_v9  ;;  %10116 = vmatmul.mubr.msk.f32.vlgmr.msra.gmra.mxu1 %vm2780_vm8, %v13730_v49  ;;  %v1935_v9 = vsel %vm1908_vm1, %v14013_v60, %v13724_v41 }
 0x392   : > { %10142 = vmatpush3.msk.msra.mxu1 %vm1763_vm5, %v2626_v53  ;;  %2627 = vrot.lane.b32.xlu0 %v13969_v26, %s10943_s12  ;;  %v13974_v6 = vpop.permute.xlu0 %1048  ;;  %v14044_v41 = vsel %vm1937_vm0, %v1935_v9, %v13795_v52 }
 0x393   : > { %10118 = vmatprep.subr.mxu0 %v17432_v54  ;;  %10093 = vmatmul.mubr.msk.f32.vlgmr.msra.gmra.mxu0 %vm2780_vm8, %v13730_v49  ;;  %17691 = vst [vmem:[#allocation41_spill] sm:$0xff] %v14044_v41 }
 0x394   : > { %10119 = vmatpush3.msk.msra.mxu0 %vm1763_vm5, %v2618_v55  ;;  %1434 = vrot.lane.b32.xlu1 %v17684_v40, %s10943_s12  ;;  %v13983_v15 = vpop.permute.xlu1 %2306  ;;  %v14027_v40 = vrot.slane %v13280_v50, 1 }
 0x395   : > { %10143 = vmatprep.subr.mxu1 %v17432_v54  ;;  %10120 = vmatprep.subr.mxu0 %v17432_v54 }
 0x396   : > { %1432 = vrot.lane.b32.xlu0 %v17685_v12, %s10943_s12  ;;  %v13990_v36 = vpop.permute.xlu0 %2287  ;;  %10161 = vmatprep.mubr.msk.f32.mxu1 %vm10948_vm7, %v17432_v54  ;;  %v14036_v12 = vsel %vm1821_vm2, %v13771_v18, %v13781_v62 }
 0x397   : > { %10138 = vmatprep.mubr.msk.f32.mxu0 %vm10948_vm7, %v17432_v54  ;;  %10656 = vset.pattern.permute.xlu0 %v10949_v34  ;;  %17690 = vst [vmem:[#allocation57_spill] sm:$0xff] %v14036_v12 }
 0x398   : > { %1520 = vrot.lane.b32.xlu1 %v17686_v57, %s10944_s14  ;;  %v2624_v58 = vpop.permute.xlu1 %2623 }
 0x399   : > { %10144 = vmatpush3.msra.mxu1 %v2624_v58  ;;  %10657 = vset.pattern.permute.xlu1 %v10949_v34  ;;  %v1934_v58 = vsel %vm1908_vm1, %v14027_v40, %v13741_v38 }
 0x39a   : > { %1518 = vrot.lane.b32.xlu0 %v17687_v39, %s10944_s14  ;;  %v2616_v46 = vpop.permute.xlu0 %2615  ;;  %10145 = vmatprep.subr.mxu1 %v17432_v54  ;;  %v14063_v52 = vsel %vm1937_vm0, %v1934_v58, %v13800_v16  ;;  %v10838_v58 = vld [vmem:[%s11083_s26 + $0x68] sm:$0x7] }
 0x39b   : > { %10121 = vmatpush3.msra.mxu0 %v2616_v46  ;;  %v2344_v46 = vsel %vm1850_vm3, %v14036_v12, %v13807_v51 }
 0x39c   : > { %1317 = vrot.lane.b32.xlu1 %v17688_v31, %s10946_s16  ;;  %v14004_v53 = vpop.permute.xlu1 %767  ;;  %10122 = vmatprep.subr.mxu0 %v17432_v54  ;;  %v14059_v31 = vsel %vm1821_vm2, %v13777_v61, %v13788_v37 }
 0x39d   : > { %v2343_v38 = vsel %vm1850_vm3, %v14059_v31, %v13810_v43 }
 0x39e   : > { %1315 = vrot.lane.b32.xlu0 %v17689_v21, %s10946_s16  ;;  %v14010_v42 = vpop.permute.xlu0 %655  ;;  %v2372_v21 = vsel %vm1879_vm4, %v2344_v46, %v14013_v60  ;;  %v2371_v16 = vsel %vm1879_vm4, %v2343_v38, %v14027_v40  ;;  %v1790_v46 = vsel %vm1763_vm5, %v10838_v58, %v13832_v47  ;;  %v17692_v38 = vrot.slane %v13019_v2, 6 }
 0x39f   : > { %v14100_v12 = vsel %vm1792_vm6, %v1790_v46, %v13771_v18  ;;  %v17695_v18 = vrot.slane %v13019_v2, 7 }
 0x3a0   : > { %867 = vrot.lane.b32.xlu1 %v17661_v11, %s10946_s16  ;;  %v14017_v1 = vpop.permute.xlu1 %2174  ;;  %17694 = vst [vmem:[#allocation20_spill] sm:$0xff] %v14100_v12 }
 0x3a2   : > { %865 = vrot.lane.b32.xlu0 %v17662_v0, %s10946_s16  ;;  %v14021_v55 = vpop.permute.xlu0 %1160 }
 0x3a4   : > { %2657 = vrot.lane.b32.xlu1 %v13750_v20, %s10943_s12  ;;  %v14031_v11 = vpop.permute.xlu1 %2297 }
 0x3a6   : > { %2649 = vrot.lane.b32.xlu0 %v13757_v35, %s10943_s12  ;;  %v14040_v0 = vpop.permute.xlu0 %2184 }
 0x3a8   : > { %2655 = vrot.lane.b32.xlu1 %v14044_v41, %s10943_s12  ;;  %v14054_v62 = vpop.permute.xlu1 %2246 }
 0x3aa   : > { %2647 = vrot.lane.b32.xlu0 %v14063_v52, %s10943_s12  ;;  %v14070_v51 = vpop.permute.xlu0 %2244 }
 0x3ac   : > { %2653 = vrot.lane.b32.xlu1 %v2372_v21, %s10943_s12  ;;  %v2622_v37 = vpop.permute.xlu1 %2621 }
 0x3ad   : > { %10146 = vmatpush3.msra.mxu1 %v2622_v37  ;;  %v10839_v37 = vld [vmem:[%s11083_s26 + $0x64] sm:$0x7] }
 0x3ae   : > { %2645 = vrot.lane.b32.xlu0 %v2371_v16, %s10943_s12  ;;  %v2614_v43 = vpop.permute.xlu0 %2613  ;;  %10147 = vmatprep.subr.mxu1 %v17432_v54  ;;  %v1789_v16 = vsel %vm1763_vm5, %v10839_v37, %v13842_v33 }
 0x3af   : > { %10123 = vmatpush3.msra.mxu0 %v2614_v43  ;;  %v17693_v43 = vrot.slane %v13026_v25, 6  ;;  %v14108_v58 = vsel %vm1792_vm6, %v1789_v16, %v13777_v61  ;;  %v17697_v61 = vrot.slane %v12772_v8, 3  ;;  %v17701_v8 = vld [vmem:[#allocation38_spill] sm:$0xff] }
 0x3b0   : > { %1609 = vrot.lane.b32.xlu1 %v13804_v27, %s10942_s29  ;;  %v1600_v34 = vpop.permute.xlu1 %1599  ;;  %10124 = vmatprep.subr.mxu0 %v17432_v54 }
 0x3b2   : > { %1607 = vrot.lane.b32.xlu0 %v13816_v29, %s10942_s29  ;;  %v14084_v9 = vpop.permute.xlu0 %543 }
 0x3b4   : > { %1694 = vrot.lane.b32.xlu1 %v17692_v38, %s10946_s16  ;;  %v1685_v21 = vpop.permute.xlu1 %1684 }
 0x3b5   : > { %v2124_v37 = vsel %vm1908_vm1, %v1600_v34, %v1685_v21  ;;  %v17698_v21 = vrot.slane %v12506_v30, 3  ;;  %v17702_v30 = vrot.slane %v13026_v25, 5 }
 0x3b6   : > { %1692 = vrot.lane.b32.xlu0 %v17693_v43, %s10946_s16  ;;  %v1602_v7 = vpop.permute.xlu0 %1601  ;;  %v17696_v43 = vrot.slane %v13026_v25, 7 }
 0x3b8   : > { %2651 = vrot.lane.b32.xlu1 %v14100_v12, %s10943_s12  ;;  %v14104_v47 = vpop.permute.xlu1 %2164 }
 0x3ba   : > { %2643 = vrot.lane.b32.xlu0 %v14108_v58, %s10943_s12  ;;  %v1687_v33 = vpop.permute.xlu0 %1686 }
 0x3bb   : > { %v2125_v38 = vsel %vm1908_vm1, %v1602_v7, %v1687_v33  ;;  %v2152_v33 = vsel %vm1937_vm0, %v2124_v37, %v17698_v21  ;;  %v17704_v21 = vld [vmem:[#allocation40_spill] sm:$0xff] }
 0x3bc   : > { %1438 = vrot.lane.b32.xlu1 %v17695_v18, %s10943_s12  ;;  %v2620_v46 = vpop.permute.xlu1 %2619  ;;  %v2153_v16 = vsel %vm1937_vm0, %v2125_v38, %v17697_v61  ;;  %v17699_v18 = vld [vmem:[#allocation45_spill] sm:$0xff] }
 0x3bd   : > { %10148 = vmatpush3.msra.mxu1 %v2620_v46 }
 0x3be   : > { %1436 = vrot.lane.b32.xlu0 %v17696_v43, %s10943_s12  ;;  %10149 = vmatprep.subr.mxu1 %v17432_v54  ;;  %v17700_v43 = vld [vmem:[#allocation54_spill] sm:$0xff] }
 0x3bf   : > { %v2612_v12 = vpop.permute.xlu0 %2611  ;;  %10150 = vmatpush3.msra.mxu1 %v2153_v16  ;;  %v17703_v16 = vrot.slane %v12765_v22, 5 }
 0x3c0   : > { %1524 = vrot.lane.b32.xlu1 %v17699_v18, %s10944_s14  ;;  %10125 = vmatpush3.msra.mxu0 %v2612_v12 }
 0x3c1   : > { %v1431_v46 = vpop.permute.xlu1 %1430  ;;  %10126 = vmatprep.subr.mxu0 %v17432_v54  ;;  %10151 = vmatprep.subr.mxu1 %v17432_v54 }
 0x3c2   : > { %1522 = vrot.lane.b32.xlu0 %v17700_v43, %s10944_s14  ;;  %10127 = vmatpush3.msra.mxu0 %v2152_v33  ;;  %v2041_v38 = vsel %vm1821_vm2, %v17701_v8, %v1431_v46 }
 0x3c3   : > { %v1429_v61 = vpop.permute.xlu0 %1428  ;;  %10128 = vmatprep.subr.mxu0 %v17432_v54 }
 0x3c4   : > { %1321 = vrot.lane.b32.xlu1 %v17702_v30, %s10946_s16  ;;  %v2040_v33 = vsel %vm1821_vm2, %v17704_v21, %v1429_v61 }
 0x3c5   : > { %v1517_v12 = vpop.permute.xlu1 %1516 }
 0x3c6   : > { %v2069_v37 = vsel %vm1850_vm3, %v2041_v38, %v1517_v12  ;;  %1319 = vrot.lane.b32.xlu0 %v17703_v16, %s10946_s16  ;;  %v14152_v38 = vrot.slane %v13543_v28, 1  ;;  %v17705_v12 = vld [vmem:[#allocation30_spill] sm:$0xff] }
 0x3c7   : > { %v1515_v41 = vpop.permute.xlu0 %1514  ;;  %v2097_v46 = vsel %vm1879_vm4, %v2069_v37, %v1602_v7 }
 0x3c8   : > { %871 = vrot.lane.b32.xlu1 %v17686_v57, %s10946_s16  ;;  %v2068_v20 = vsel %vm1850_vm3, %v2040_v33, %v1515_v41  ;;  %10152 = vmatpush3.msra.mxu1 %v2097_v46  ;;  %v14161_v41 = vpop.f32.mrf.mxu0 }
 0x3c9   : > { %v1314_v30 = vpop.permute.xlu1 %1313  ;;  %v2096_v10 = vsel %vm1879_vm4, %v2068_v20, %v1600_v34  ;;  %10153 = vmatprep.subr.mxu1 %v17432_v54  ;;  %v14164_v20 = vrot.slane %v13531_v45, 1  ;;  %v17706_v34 = vld [vmem:[#allocation16_spill] sm:$0xff] }
 0x3ca   : > { %v1985_v61 = vsel %vm1763_vm5, %v17705_v12, %v1314_v30  ;;  %869 = vrot.lane.b32.xlu0 %v17687_v39, %s10946_s16  ;;  %10129 = vmatpush3.msra.mxu0 %v2096_v10  ;;  %v14170_v39 = vpop.f32.mrf.mxu1  ;;  %v2318_v10 = vsel %vm1821_vm2, %v14017_v1, %v14040_v0  ;;  %v9726_v33 = vpop.f32.mrf.mxu0  ;;  %v17707_v12 = vld [vmem:[#allocation27_spill] sm:$0xff] }
 0x3cb   : > { %v1312_v7 = vpop.permute.xlu0 %1311  ;;  %v2013_v57 = vsel %vm1792_vm6, %v1985_v61, %v17701_v8  ;;  %10130 = vmatprep.subr.mxu0 %v17432_v54 }
 0x3cc   : > { %2673 = vrot.lane.b32.xlu1 %v13983_v15, %s10943_s12  ;;  %v1984_v37 = vsel %vm1763_vm5, %v17706_v34, %v1312_v7  ;;  %10154 = vmatpush3.msra.mxu1 %v2013_v57  ;;  %v2377_v15 = vsel %vm1908_vm1, %v14152_v38, %v13990_v36  ;;  %v9749_v30 = vpop.f32.mrf.mxu1  ;;  %v2346_v36 = vsel %vm1850_vm3, %v2318_v10, %v14054_v62  ;;  %v17709_v34 = vld [vmem:[#allocation63_spill] sm:$0xff] }
 0x3cd   : > { %v864_v8 = vpop.permute.xlu1 %863  ;;  %10155 = vmatprep.subr.mxu1 %v17432_v54  ;;  %v2012_v16 = vsel %vm1792_vm6, %v1984_v37, %v17704_v21  ;;  %v2380_v0 = vsel %vm1937_vm0, %v2377_v15, %v14031_v11  ;;  %v17708_v11 = vld [vmem:[#allocation18_spill] sm:$0xff]  ;;  %v14210_v62 = vsel %vm1821_vm2, %v14010_v42, %v14004_v53  ;;  %v17710_v10 = vld [vmem:[#allocation51_spill] sm:$0xff]  ;;  %v17711_v15 = vrot.slane %v13273_v4, 6 }
 0x3ce   : > { %v1870_v46 = vsel %vm1850_vm3, %v13387_v59, %v864_v8  ;;  %2665 = vrot.lane.b32.xlu0 %v13962_v14, %s10943_s12  ;;  %10131 = vmatpush3.msra.mxu0 %v2012_v16  ;;  %v1936_v59 = vsel %vm1908_vm1, %v14164_v20, %v13974_v6  ;;  %v2312_v16 = vsel %vm1763_vm5, %v13531_v45, %v14104_v47  ;;  %v10840_v47 = vld [vmem:[%s11083_s26 + $0x6c] sm:$0x7] }
 0x3cf   : > { %10156 = vmatpush3.msra.mxu1 %v17707_v12  ;;  %10132 = vmatprep.subr.mxu0 %v17432_v54  ;;  %v862_v21 = vpop.permute.xlu0 %861  ;;  %v1899_v61 = vsel %vm1879_vm4, %v1870_v46, %v13309_v48  ;;  %v14202_v57 = vsel %vm1937_vm0, %v1936_v59, %v14021_v55  ;;  %v2345_v55 = vsel %vm1850_vm3, %v14210_v62, %v14070_v51  ;;  %v17712_v12 = vrot.slane %v13280_v50, 6  ;;  %v14265_v59 = vpop.f32.mrf.mxu1 }
 0x3d0   : > { %2671 = vrot.lane.b32.xlu1 %v2380_v0, %s10943_s12  ;;  %10157 = vmatprep.subr.mxu1 %v17432_v54  ;;  %v1869_v7 = vsel %vm1850_vm3, %v17708_v11, %v862_v21  ;;  %v2373_v51 = vsel %vm1879_vm4, %v2345_v55, %v14164_v20  ;;  %v2315_v30 = vsel %vm1792_vm6, %v2312_v16, %v14017_v1  ;;  %v2281_v16 = vrot.slane %v13784_v24, 1 }
 0x3d1   : > { %10133 = vmatpush3.msra.mxu0 %v17709_v34  ;;  %10158 = vmatpush3.msra.mxu1 %v1899_v61  ;;  %v2642_v48 = vpop.permute.xlu1 %2641  ;;  %v1898_v6 = vsel %vm1879_vm4, %v1869_v7, %v13039_v44  ;;  %v2374_v44 = vsel %vm1879_vm4, %v2346_v36, %v14152_v38  ;;  %v1791_v0 = vsel %vm1763_vm5, %v10840_v47, %v14084_v9  ;;  %v14263_v61 = vpop.f32.mrf.mxu0  ;;  %v17713_v34 = vrot.slane %v13273_v4, 7 }
 0x3d2   : > { %2663 = vrot.lane.b32.xlu0 %v14202_v57, %s10943_s12  ;;  %10134 = vmatprep.subr.mxu0 %v17432_v54  ;;  %v14273_v1 = vsel %vm1792_vm6, %v1791_v0, %v14010_v42  ;;  %v9795_v11 = vpop.f32.mrf.mxu1 }
 0x3d3   : > { %10159 = vmatprep.subr.mxu1 %v17432_v54  ;;  %10135 = vmatpush3.msra.mxu0 %v1898_v6  ;;  %v2634_v37 = vpop.permute.xlu0 %2633  ;;  %v9772_v9 = vpop.f32.mrf.mxu0  ;;  %v17714_v6 = vrot.slane %v13280_v50, 7 }
 0x3d4   : > { %10160 = vmatpush3.msra.mxu1 %v13479_v63  ;;  %2669 = vrot.lane.b32.xlu1 %v2374_v44, %s10943_s12  ;;  %v17715_v44 = vld [vmem:[#allocation55_spill] sm:$0xff] }
 0x3d5   : > { %10136 = vmatprep.subr.mxu0 %v17432_v54  ;;  %10187 = vmatprep.subr.mxu1 %v17432_v54  ;;  %v2292_v53 = vpop.permute.xlu1 %2291 }
 0x3d6   : > { %10137 = vmatpush3.msra.mxu0 %v17710_v10  ;;  %10162 = vmatmul.mubr.msk.f32.vlgmr.msra.gmra.mxu1 %vm2780_vm8, %v13730_v49  ;;  %v17716_v10 = vrot.slane %v13280_v50, 5  ;;  %v2379_v47 = vsel %vm1908_vm1, %v2281_v16, %v2292_v53 }
 0x3d7   : > { %10188 = vmatpush3.msk.msra.mxu1 %vm1763_vm5, %v2642_v48  ;;  %2661 = vrot.lane.b32.xlu0 %v2373_v51, %s10943_s12  ;;  %v14232_v63 = vpop.permute.xlu0 %2289 }
 0x3d8   : > { %10164 = vmatprep.subr.mxu0 %v17432_v54  ;;  %10139 = vmatmul.mubr.msk.f32.vlgmr.msra.gmra.mxu0 %vm2780_vm8, %v13730_v49 }
 0x3d9   : > { %10165 = vmatpush3.msk.msra.mxu0 %vm1763_vm5, %v2634_v37  ;;  %1613 = vrot.lane.b32.xlu1 %v14013_v60, %s10942_s29  ;;  %v2311_v8 = vpop.permute.xlu1 %2310 }
 0x3da   : > { %10189 = vmatprep.subr.mxu1 %v17432_v54  ;;  %10166 = vmatprep.subr.mxu0 %v17432_v54 }
 0x3db   : > { %1611 = vrot.lane.b32.xlu0 %v14027_v40, %s10942_s29  ;;  %v2309_v33 = vpop.permute.xlu0 %2308  ;;  %10207 = vmatprep.mubr.msk.f32.mxu1 %vm10948_vm7, %v17432_v54 }
 0x3dc   : > { %10184 = vmatprep.mubr.msk.f32.mxu0 %vm10948_vm7, %v17432_v54 }
 0x3dd   : > { %1698 = vrot.lane.b32.xlu1 %v17711_v15, %s10946_s16  ;;  %v2640_v46 = vpop.permute.xlu1 %2639  ;;  %v17717_v15 = vrot.slane %v13019_v2, 5 }
 0x3de   : > { %10190 = vmatpush3.msra.mxu1 %v2640_v46 }
 0x3df   : > { %1696 = vrot.lane.b32.xlu0 %v17712_v12, %s10946_s16  ;;  %v2632_v21 = vpop.permute.xlu0 %2631  ;;  %10191 = vmatprep.subr.mxu1 %v17432_v54  ;;  %v14302_v12 = vpop.f32.mrf.mxu0 }
 0x3e0   : > { %10167 = vmatpush3.msra.mxu0 %v2632_v21  ;;  %v14306_v21 = vpop.f32.mrf.mxu1 }
 0x3e1   : > { %2667 = vrot.lane.b32.xlu1 %v2315_v30, %s10943_s12  ;;  %v14268_v36 = vpop.permute.xlu1 %2178  ;;  %10168 = vmatprep.subr.mxu0 %v17432_v54 }
 0x3e2   : > { %v9841_v11 = vpop.f32.mrf.mxu1 }
 0x3e3   : > { %2659 = vrot.lane.b32.xlu0 %v14273_v1, %s10943_s12  ;;  %v14277_v7 = vpop.permute.xlu0 %2176 }
 0x3e5   : > { %1442 = vrot.lane.b32.xlu1 %v17713_v34, %s10943_s12  ;;  %v2189_v48 = vpop.permute.xlu1 %2188 }
 0x3e6   : > { %v2320_v24 = vsel %vm1821_vm2, %v14268_v36, %v2189_v48 }
 0x3e7   : > { %1440 = vrot.lane.b32.xlu0 %v17714_v6, %s10943_s12  ;;  %v2187_v55 = vpop.permute.xlu0 %2186 }
 0x3e9   : > { %1528 = vrot.lane.b32.xlu1 %v13361_v13, %s10944_s14  ;;  %v2302_v42 = vpop.permute.xlu1 %2301 }
 0x3ea   : > { %v2382_v53 = vsel %vm1937_vm0, %v2379_v47, %v2302_v42 }
 0x3eb   : > { %1526 = vrot.lane.b32.xlu0 %v17715_v44, %s10944_s14  ;;  %v2300_v37 = vpop.permute.xlu0 %2299 }
 0x3ed   : > { %1325 = vrot.lane.b32.xlu1 %v17716_v10, %s10946_s16  ;;  %v2251_v51 = vpop.permute.xlu1 %2250  ;;  %v2319_v10 = vsel %vm1821_vm2, %v14277_v7, %v2187_v55 }
 0x3ee   : > { %v2348_v34 = vsel %vm1850_vm3, %v2320_v24, %v2251_v51  ;;  %v14339_v24 = vpop.f32.mrf.mxu1 }
 0x3ef   : > { %1323 = vrot.lane.b32.xlu0 %v17717_v15, %s10946_s16  ;;  %v2249_v46 = vpop.permute.xlu0 %2248  ;;  %v2376_v42 = vsel %vm1879_vm4, %v2348_v34, %v2281_v16  ;;  %v17718_v16 = vrot.slane %v13026_v25, 3 }
 0x3f0   : > { %v9887_v11 = vpop.f32.mrf.mxu1 }
 0x3f1   : > { %875 = vrot.lane.b32.xlu1 %v17699_v18, %s10946_s16  ;;  %v2638_v30 = vpop.permute.xlu1 %2637  ;;  %v2280_v18 = vrot.slane %v13791_v17, 1 }
 0x3f2   : > { %10192 = vmatpush3.msra.mxu1 %v2638_v30  ;;  %v2347_v30 = vsel %vm1850_vm3, %v2319_v10, %v2249_v46 }
 0x3f3   : > { %873 = vrot.lane.b32.xlu0 %v17700_v43, %s10946_s16  ;;  %v2630_v0 = vpop.permute.xlu0 %2629  ;;  %10193 = vmatprep.subr.mxu1 %v17432_v54  ;;  %v9818_v43 = vpop.f32.mrf.mxu0  ;;  %v2378_v6 = vsel %vm1908_vm1, %v2280_v18, %v14232_v63  ;;  %v2375_v47 = vsel %vm1879_vm4, %v2347_v30, %v2280_v18 }
 0x3f4   : > { %10169 = vmatpush3.msra.mxu0 %v2630_v0  ;;  %v2381_v15 = vsel %vm1937_vm0, %v2378_v6, %v2300_v37  ;;  %v17720_v6 = vrot.slane %v12765_v22, 3  ;;  %v17722_v22 = vld [vmem:[#allocation46_spill] sm:$0xff] }
 0x3f5   : > { %2689 = vrot.lane.b32.xlu1 %v2311_v8, %s10943_s12  ;;  %v14310_v9 = vpop.permute.xlu1 %1605  ;;  %10170 = vmatprep.subr.mxu0 %v17432_v54  ;;  %v14337_v0 = vpop.f32.mrf.mxu0 }
 0x3f7   : > { %2681 = vrot.lane.b32.xlu0 %v2309_v33, %s10943_s12  ;;  %v14316_v48 = vpop.permute.xlu0 %1603 }
 0x3f9   : > { %2687 = vrot.lane.b32.xlu1 %v2382_v53, %s10943_s12  ;;  %v1691_v8 = vpop.permute.xlu1 %1690  ;;  %v17719_v53 = vrot.slane %v13543_v28, 6 }
 0x3fa   : > { %v2127_v63 = vsel %vm1908_vm1, %v14310_v9, %v1691_v8 }
 0x3fb   : > { %2679 = vrot.lane.b32.xlu0 %v2381_v15, %s10943_s12  ;;  %v1689_v33 = vpop.permute.xlu0 %1688  ;;  %v2155_v46 = vsel %vm1937_vm0, %v2127_v63, %v17718_v16 }
 0x3fc   : > { %v2126_v43 = vsel %vm1908_vm1, %v14316_v48, %v1689_v33  ;;  %v17721_v33 = vrot.slane %v13531_v45, 6 }
 0x3fd   : > { %2685 = vrot.lane.b32.xlu1 %v2376_v42, %s10943_s12  ;;  %v2169_v51 = vpop.permute.xlu1 %2168  ;;  %v2154_v8 = vsel %vm1937_vm0, %v2126_v43, %v17720_v6  ;;  %v10841_v42 = vld [vmem:[%s11083_s26 + $0x74] sm:$0x7]  ;;  %v17724_v6 = vrot.slane %v13543_v28, 7 }
 0x3fe   : > { %v2314_v18 = vsel %vm1763_vm5, %v13791_v17, %v2169_v51  ;;  %v14365_v51 = vpop.f32.mrf.mxu1 }
 0x3ff   : > { %2677 = vrot.lane.b32.xlu0 %v2375_v47, %s10943_s12  ;;  %v2167_v55 = vpop.permute.xlu0 %2166  ;;  %v2317_v10 = vsel %vm1792_vm6, %v2314_v18, %v14268_v36 }
 0x400   : > { %v2313_v30 = vsel %vm1763_vm5, %v10841_v42, %v2167_v55 }
 0x401   : > { %1617 = vrot.lane.b32.xlu1 %v14152_v38, %s10942_s29  ;;  %v2636_v37 = vpop.permute.xlu1 %2635  ;;  %v9864_v38 = vpop.f32.mrf.mxu0  ;;  %v2316_v55 = vsel %vm1792_vm6, %v2313_v30, %v14277_v7  ;;  %v17725_v30 = vld [vmem:[#allocation53_spill] sm:$0xff] }
 0x402   : > { %10194 = vmatpush3.msra.mxu1 %v2636_v37  ;;  %v9933_v37 = vpop.f32.mrf.mxu1 }
 0x403   : > { %1615 = vrot.lane.b32.xlu0 %v14164_v20, %s10942_s29  ;;  %10195 = vmatprep.subr.mxu1 %v17432_v54  ;;  %v14358_v15 = vpop.f32.mrf.mxu0 }
 0x404   : > { %v2628_v25 = vpop.permute.xlu0 %2627  ;;  %10196 = vmatpush3.msra.mxu1 %v2155_v46  ;;  %v14377_v18 = vpop.f32.mrf.mxu1 }
 0x405   : > { %1702 = vrot.lane.b32.xlu1 %v17719_v53, %s10946_s16  ;;  %10171 = vmatpush3.msra.mxu0 %v2628_v25  ;;  %v9910_v36 = vpop.f32.mrf.mxu0  ;;  %v17723_v25 = vld [vmem:[#allocation28_spill] sm:$0xff] }
 0x406   : > { %v1435_v34 = vpop.permute.xlu1 %1434  ;;  %10172 = vmatprep.subr.mxu0 %v17432_v54  ;;  %10197 = vmatprep.subr.mxu1 %v17432_v54 }
 0x407   : > { %1700 = vrot.lane.b32.xlu0 %v17721_v33, %s10946_s16  ;;  %10173 = vmatpush3.msra.mxu0 %v2154_v8  ;;  %v2043_v63 = vsel %vm1821_vm2, %v17722_v22, %v1435_v34  ;;  %v14373_v46 = vpop.f32.mrf.mxu0  ;;  %v9979_v8 = vpop.f32.mrf.mxu1 }
 0x408   : > { %v1433_v47 = vpop.permute.xlu0 %1432  ;;  %10174 = vmatprep.subr.mxu0 %v17432_v54  ;;  %v17730_v8 = vld [vmem:[#allocation59_spill] sm:$0xff] }
 0x409   : > { %2683 = vrot.lane.b32.xlu1 %v2317_v10, %s10943_s12  ;;  %v2042_v38 = vsel %vm1821_vm2, %v17723_v25, %v1433_v47  ;;  %v9956_v34 = vpop.f32.mrf.mxu0  ;;  %v14397_v47 = vpop.f32.mrf.mxu1 }
 0x40a   : > { %v1521_v16 = vpop.permute.xlu1 %1520  ;;  %v17729_v34 = vrot.slane %v13531_v45, 4 }
 0x40b   : > { %v2071_v43 = vsel %vm1850_vm3, %v2043_v63, %v1521_v16  ;;  %2675 = vrot.lane.b32.xlu0 %v2316_v55, %s10943_s12  ;;  %v14395_v63 = vpop.f32.mrf.mxu0  ;;  %v17728_v16 = vld [vmem:[#allocation14_spill] sm:$0xff] }
 0x40c   : > { %v1519_v53 = vpop.permute.xlu0 %1518  ;;  %v2099_v11 = vsel %vm1879_vm4, %v2071_v43, %v14310_v9  ;;  %v17726_v9 = vrot.slane %v13531_v45, 7 }
 0x40d   : > { %1446 = vrot.lane.b32.xlu1 %v17724_v6, %s10943_s12  ;;  %v2070_v7 = vsel %vm1850_vm3, %v2042_v38, %v1519_v53  ;;  %10198 = vmatpush3.msra.mxu1 %v2099_v11  ;;  %v10002_v43 = vpop.f32.mrf.mxu0  ;;  %v10025_v38 = vpop.f32.mrf.mxu1 }
 0x40e   : > { %v1318_v10 = vpop.permute.xlu1 %1317  ;;  %v2098_v42 = vsel %vm1879_vm4, %v2070_v7, %v14316_v48  ;;  %10199 = vmatprep.subr.mxu1 %v17432_v54  ;;  %v17727_v48 = vrot.slane %v13543_v28, 4  ;;  %v17736_v43 = vld [vmem:[#allocation9_spill] sm:$0xff] }
 0x40f   : > { %v1987_v33 = vsel %vm1763_vm5, %v17725_v30, %v1318_v10  ;;  %1444 = vrot.lane.b32.xlu0 %v17726_v9, %s10943_s12  ;;  %10175 = vmatpush3.msra.mxu0 %v2098_v42  ;;  %v14415_v6 = vpop.f32.mrf.mxu0  ;;  %v14417_v7 = vpop.f32.mrf.mxu1  ;;  %v17732_v42 = vld [vmem:[#allocation56_spill] sm:$0xff] }
 0x410   : > { %v1316_v36 = vpop.permute.xlu0 %1315  ;;  %v2015_v37 = vsel %vm1792_vm6, %v1987_v33, %v17722_v22  ;;  %10176 = vmatprep.subr.mxu0 %v17432_v54 }
 0x411   : > { %1532 = vrot.lane.b32.xlu1 %v17727_v48, %s10944_s14  ;;  %v1986_v55 = vsel %vm1763_vm5, %v17728_v16, %v1316_v36  ;;  %10200 = vmatpush3.msra.mxu1 %v2015_v37  ;;  %v10048_v33 = vpop.f32.mrf.mxu0  ;;  %v10071_v9 = vpop.f32.mrf.mxu1  ;;  %v17733_v36 = vld [vmem:[#allocation36_spill] sm:$0xff]  ;;  %v17735_v16 = vld [vmem:[#allocation31_spill] sm:$0xff] }
 0x412   : > { %v868_v53 = vpop.permute.xlu1 %867  ;;  %10201 = vmatprep.subr.mxu1 %v17432_v54  ;;  %v2014_v11 = vsel %vm1792_vm6, %v1986_v55, %v17723_v25  ;;  %v17738_v9 = vrot.slane %v13019_v2, 3 }
 0x413   : > { %v1872_v22 = vsel %vm1850_vm3, %v13638_v19, %v868_v53  ;;  %1530 = vrot.lane.b32.xlu0 %v17729_v34, %s10944_s14  ;;  %10177 = vmatpush3.msra.mxu0 %v2014_v11  ;;  %v17731_v19 = vrot.slane %v13531_v45, 5 }
 0x414   : > { %10202 = vmatpush3.msra.mxu1 %v17730_v8  ;;  %10178 = vmatprep.subr.mxu0 %v17432_v54  ;;  %v866_v10 = vpop.permute.xlu0 %865  ;;  %v1901_v25 = vsel %vm1879_vm4, %v1872_v22, %v13562_v23  ;;  %v17734_v23 = vrot.slane %v13273_v4, 5 }
 0x415   : > { %1329 = vrot.lane.b32.xlu1 %v17731_v19, %s10946_s16  ;;  %10203 = vmatprep.subr.mxu1 %v17432_v54  ;;  %v1871_v30 = vsel %vm1850_vm3, %v17732_v42, %v866_v10 }
 0x416   : > { %10179 = vmatpush3.msra.mxu0 %v17733_v36  ;;  %10204 = vmatpush3.msra.mxu1 %v1901_v25  ;;  %v2658_v37 = vpop.permute.xlu1 %2657  ;;  %v1900_v48 = vsel %vm1879_vm4, %v1871_v30, %v13293_v3  ;;  %v17737_v25 = vrot.slane %v13280_v50, 3  ;;  %v17739_v50 = vld [vmem:[#allocation61_spill] sm:$0xff] }
 0x417   : > { %10205 = vmatprep.subr.mxu1 %v17432_v54  ;;  %1327 = vrot.lane.b32.xlu0 %v17734_v23, %s10946_s16 }
 0x418   : > { %10180 = vmatprep.subr.mxu0 %v17432_v54  ;;  %10206 = vmatpush3.msra.mxu1 %v17735_v16  ;;  %v2650_v55 = vpop.permute.xlu0 %2649 }
 0x419   : > { %10181 = vmatpush3.msra.mxu0 %v1900_v48  ;;  %879 = vrot.lane.b32.xlu1 %v13361_v13, %s10946_s16  ;;  %v432_v13 = vld [vmem:[%s17069_s2] sm:$0x3f] }
 0x41a   : > { %10182 = vmatprep.subr.mxu0 %v17432_v54  ;;  %10208 = vmatmul.mubr.msk.f32.vlgmr.msra.gmra.mxu1 %vm2780_vm8, %v13730_v49  ;;  %v2656_v3 = vpop.permute.xlu1 %2655 }
 0x41b   : > { %10233 = vmatprep.subr.mxu1 %v17432_v54  ;;  %10183 = vmatpush3.msra.mxu0 %v17736_v43 }
 0x41c   : > { %10234 = vmatpush3.msk.msra.mxu1 %vm1763_vm5, %v2658_v37  ;;  %877 = vrot.lane.b32.xlu0 %v17715_v44, %s10946_s16  ;;  %v2648_v38 = vpop.permute.xlu0 %2647 }
 0x41d   : > { %10235 = vmatprep.subr.mxu1 %v17432_v54  ;;  %10185 = vmatmul.mubr.msk.f32.vlgmr.msra.gmra.mxu0 %vm2780_vm8, %v13730_v49 }
 0x41e   : > { %10210 = vmatprep.subr.mxu0 %v17432_v54  ;;  %10236 = vmatpush3.msra.mxu1 %v2656_v3  ;;  %v2654_v53 = vpop.permute.xlu1 %2653 }
 0x41f   : > { %10211 = vmatpush3.msk.msra.mxu0 %vm1763_vm5, %v2650_v55  ;;  %10237 = vmatprep.subr.mxu1 %v17432_v54  ;;  %v17740_v55 = vld [vmem:[#allocation58_spill] sm:$0xff] }
 0x420   : > { %10212 = vmatprep.subr.mxu0 %v17432_v54  ;;  %2777 = vperm.xlu0 %10656, %v432_v13   ;;  %v2646_v44 = vpop.permute.xlu0 %2645 }
 0x421   : > { %10213 = vmatpush3.msra.mxu0 %v2648_v38  ;;  %10238 = vmatpush3.msra.mxu1 %v2654_v53 }
 0x422   : > { %10214 = vmatprep.subr.mxu0 %v17432_v54  ;;  %v1610_v49 = vpop.permute.xlu1 %1609  ;;  %10239 = vmatprep.subr.mxu1 %v17432_v54 }
 0x423   : > { %10215 = vmatpush3.msra.mxu0 %v2646_v44  ;;  %10253 = vmatprep.mubr.msk.f32.mxu1 %vm10948_vm7, %v17432_v54  ;;  %v17741_v44 = vld [vmem:[#allocation60_spill] sm:$0xff] }
 0x424   : > { %v1608_v11 = vpop.permute.xlu0 %1607  ;;  %10216 = vmatprep.subr.mxu0 %v17432_v54  ;;  %10230 = vmatprep.mubr.msk.f32.mxu0 %vm10948_vm7, %v17432_v54 }
 0x426   : > { %v1695_v22 = vpop.permute.xlu1 %1694 }
 0x427   : > { %v2129_v34 = vsel %vm1908_vm1, %v1610_v49, %v1695_v22 }
 0x428   : > { %v1693_v8 = vpop.permute.xlu0 %1692  ;;  %v2157_v19 = vsel %vm1937_vm0, %v2129_v34, %v17737_v25 }
 0x429   : > { %v2128_v42 = vsel %vm1908_vm1, %v1608_v11, %v1693_v8 }
 0x42a   : > { %v2652_v10 = vpop.permute.xlu1 %2651  ;;  %v2156_v36 = vsel %vm1937_vm0, %v2128_v42, %v17738_v9  ;;  %v17743_v42 = vld [vmem:[#allocation13_spill] sm:$0xff]  ;;  %v17744_v9 = vld [vmem:[#allocation52_spill] sm:$0xff] }
 0x42b   : > { %10240 = vmatpush3.msra.mxu1 %v2652_v10  ;;  %v17742_v10 = vld [vmem:[#allocation33_spill] sm:$0xff] }
 0x42c   : > { %v2644_v30 = vpop.permute.xlu0 %2643  ;;  %10241 = vmatprep.subr.mxu1 %v17432_v54 }
 0x42d   : > { %10217 = vmatpush3.msra.mxu0 %v2644_v30  ;;  %10242 = vmatpush3.msra.mxu1 %v2157_v19 }
 0x42e   : > { %v1439_v33 = vpop.permute.xlu1 %1438  ;;  %10218 = vmatprep.subr.mxu0 %v17432_v54  ;;  %10243 = vmatprep.subr.mxu1 %v17432_v54 }
 0x42f   : > { %10219 = vmatpush3.msra.mxu0 %v2156_v36  ;;  %v2045_v37 = vsel %vm1821_vm2, %v17739_v50, %v1439_v33 }
 0x430   : > { %v1437_v48 = vpop.permute.xlu0 %1436  ;;  %10220 = vmatprep.subr.mxu0 %v17432_v54 }
 0x431   : > { %v2044_v3 = vsel %vm1821_vm2, %v17740_v55, %v1437_v48 }
 0x432   : > { %v1525_v23 = vpop.permute.xlu1 %1524 }
 0x433   : > { %v2073_v16 = vsel %vm1850_vm3, %v2045_v37, %v1525_v23  ;;  %v17746_v23 = vld [vmem:[#allocation34_spill] sm:$0xff] }
 0x434   : > { %v1523_v43 = vpop.permute.xlu0 %1522  ;;  %v2101_v2 = vsel %vm1879_vm4, %v2073_v16, %v1610_v49 }
 0x435   : > { %v2072_v38 = vsel %vm1850_vm3, %v2044_v3, %v1523_v43  ;;  %10244 = vmatpush3.msra.mxu1 %v2101_v2 }
 0x436   : > { %v1322_v13 = vpop.permute.xlu1 %1321  ;;  %v2100_v53 = vsel %vm1879_vm4, %v2072_v38, %v1608_v11  ;;  %10245 = vmatprep.subr.mxu1 %v17432_v54 }
 0x437   : > { %v1989_v22 = vsel %vm1763_vm5, %v17741_v44, %v1322_v13  ;;  %10221 = vmatpush3.msra.mxu0 %v2100_v53 }
 0x438   : > { %v1320_v34 = vpop.permute.xlu0 %1319  ;;  %v2017_v8 = vsel %vm1792_vm6, %v1989_v22, %v17739_v50  ;;  %10222 = vmatprep.subr.mxu0 %v17432_v54  ;;  %v17745_v50 = vld [vmem:[#allocation62_spill] sm:$0xff]  ;;  %v17747_v22 = vrot.slane %v13531_v45, 3 }
 0x439   : > { %v1988_v49 = vsel %vm1763_vm5, %v17742_v10, %v1320_v34  ;;  %10246 = vmatpush3.msra.mxu1 %v2017_v8 }
 0x43a   : > { %v872_v25 = vpop.permute.xlu1 %871  ;;  %10247 = vmatprep.subr.mxu1 %v17432_v54  ;;  %v2016_v11 = vsel %vm1792_vm6, %v1988_v49, %v17740_v55 }
 0x43b   : > { %v1874_v19 = vsel %vm1850_vm3, %v13882_v56, %v872_v25  ;;  %10223 = vmatpush3.msra.mxu0 %v2016_v11  ;;  %10248 = vmatpush3.msra.mxu1 %v17743_v42  ;;  %v17748_v42 = vrot.slane %v13273_v4, 3 }
 0x43c   : > { %10224 = vmatprep.subr.mxu0 %v17432_v54  ;;  %10249 = vmatprep.subr.mxu1 %v17432_v54  ;;  %v870_v30 = vpop.permute.xlu0 %869  ;;  %v1903_v33 = vsel %vm1879_vm4, %v1874_v19, %v13816_v29  ;;  %v14515_v29 = vld [vmem:[%s17068_s1] sm:$0x3f] }
 0x43d   : > { %v1873_v36 = vsel %vm1850_vm3, %v17744_v9, %v870_v30  ;;  %10225 = vmatpush3.msra.mxu0 %v17745_v50  ;;  %10250 = vmatpush3.msra.mxu1 %v1903_v33  ;;  %v17749_v30 = vld [vmem:[#allocation47_spill] sm:$0xff] }
 0x43e   : > { %v2674_v37 = vpop.permute.xlu1 %2673  ;;  %10226 = vmatprep.subr.mxu0 %v17432_v54  ;;  %10251 = vmatprep.subr.mxu1 %v17432_v54  ;;  %v1902_v56 = vsel %vm1879_vm4, %v1873_v36, %v13546_v32 }
 0x43f   : > { %10227 = vmatpush3.msra.mxu0 %v1902_v56  ;;  %10252 = vmatpush3.msra.mxu1 %v13969_v26 }
 0x440   : > { %10228 = vmatprep.subr.mxu0 %v17432_v54  ;;  %10254 = vmatmul.mubr.msk.f32.vlgmr.msra.gmra.mxu1 %vm2780_vm8, %v14515_v29  ;;  %v2666_v48 = vpop.permute.xlu0 %2665 }
 0x441   : > { %10279 = vmatprep.subr.mxu1 %v17432_v54  ;;  %10229 = vmatpush3.msra.mxu0 %v17746_v23 }
 0x442   : > { %10280 = vmatpush3.msk.msra.mxu1 %vm1763_vm5, %v2674_v37  ;;  %v2672_v32 = vpop.permute.xlu1 %2671  ;;  %10231 = vmatmul.mubr.msk.f32.vlgmr.msra.gmra.mxu0 %vm2780_vm8, %v14515_v29  ;;  %v17750_v37 = vld [vmem:[#allocation65_spill] sm:$0xff] }
 0x443   : > { %10256 = vmatprep.subr.mxu0 %v17432_v54  ;;  %10281 = vmatprep.subr.mxu1 %v17432_v54 }
 0x444   : > { %10257 = vmatpush3.msk.msra.mxu0 %vm1763_vm5, %v2666_v48  ;;  %10282 = vmatpush3.msra.mxu1 %v2672_v32  ;;  %v2664_v26 = vpop.permute.xlu0 %2663 }
 0x445   : > { %10258 = vmatprep.subr.mxu0 %v17432_v54  ;;  %10283 = vmatprep.subr.mxu1 %v17432_v54 }
 0x446   : > { %10259 = vmatpush3.msra.mxu0 %v2664_v26  ;;  %v2670_v16 = vpop.permute.xlu1 %2669  ;;  %10299 = vmatprep.mubr.msk.f32.mxu1 %vm10948_vm7, %v17432_v54 }
 0x447   : > { %10284 = vmatpush3.msra.mxu1 %v2670_v16  ;;  %10260 = vmatprep.subr.mxu0 %v17432_v54 }
 0x448   : > { %10285 = vmatprep.subr.mxu1 %v17432_v54  ;;  %10276 = vmatprep.mubr.msk.f32.mxu0 %vm10948_vm7, %v17432_v54 }
 0x449   : > { %v2662_v55 = vpop.permute.xlu0 %2661 }
 0x44a   : > { %10261 = vmatpush3.msra.mxu0 %v2662_v55 }
 0x44b   : > { %v1614_v3 = vpop.permute.xlu1 %1613  ;;  %10262 = vmatprep.subr.mxu0 %v17432_v54 }
 0x44d   : > { %v1612_v43 = vpop.permute.xlu0 %1611 }
 0x44f   : > { %v1699_v2 = vpop.permute.xlu1 %1698 }
 0x450   : > { %v2131_v38 = vsel %vm1908_vm1, %v1614_v3, %v1699_v2 }
 0x451   : > { %v1697_v13 = vpop.permute.xlu0 %1696  ;;  %v14537_v53 = vpop.f32.mrf.mxu1  ;;  %v2159_v34 = vsel %vm1937_vm0, %v2131_v38, %v17747_v22  ;;  %v17751_v38 = vld [vmem:[#allocation24_spill] sm:$0xff] }
 0x452   : > { %v2130_v10 = vsel %vm1908_vm1, %v1612_v43, %v1697_v13 }
 0x453   : > { %v2668_v44 = vpop.permute.xlu1 %2667  ;;  %v14542_v8 = vpop.f32.mrf.mxu0  ;;  %v2158_v45 = vsel %vm1937_vm0, %v2130_v10, %v17748_v42  ;;  %v17752_v10 = vld [vmem:[#allocation11_spill] sm:$0xff] }
 0x454   : > { %10286 = vmatpush3.msra.mxu1 %v2668_v44  ;;  %v10117_v49 = vpop.f32.mrf.mxu1 }
 0x455   : > { %v2660_v25 = vpop.permute.xlu0 %2659  ;;  %10287 = vmatprep.subr.mxu1 %v17432_v54  ;;  %v10094_v11 = vpop.f32.mrf.mxu0 }
 0x456   : > { %10263 = vmatpush3.msra.mxu0 %v2660_v25  ;;  %10288 = vmatpush3.msra.mxu1 %v2159_v34 }
 0x457   : > { %v1443_v19 = vpop.permute.xlu1 %1442  ;;  %10264 = vmatprep.subr.mxu0 %v17432_v54  ;;  %10289 = vmatprep.subr.mxu1 %v17432_v54 }
 0x458   : > { %10265 = vmatpush3.msra.mxu0 %v2158_v45  ;;  %v2047_v33 = vsel %vm1821_vm2, %v17749_v30, %v1443_v19 }
 0x459   : > { %v1441_v9 = vpop.permute.xlu0 %1440  ;;  %10266 = vmatprep.subr.mxu0 %v17432_v54 }
 0x45a   : > { %v2046_v56 = vsel %vm1821_vm2, %v17750_v37, %v1441_v9  ;;  %v17754_v9 = vrot.slane %v13791_v17, 3  ;;  %v17756_v17 = vld [vmem:[#allocation64_spill] sm:$0xff] }
 0x45b   : > { %v1529_v36 = vpop.permute.xlu1 %1528 }
 0x45c   : > { %v2075_v50 = vsel %vm1850_vm3, %v2047_v33, %v1529_v36 }
 0x45d   : > { %v1527_v48 = vpop.permute.xlu0 %1526  ;;  %v2103_v4 = vsel %vm1879_vm4, %v2075_v50, %v1614_v3 }
 0x45e   : > { %v2074_v23 = vsel %vm1850_vm3, %v2046_v56, %v1527_v48  ;;  %10290 = vmatpush3.msra.mxu1 %v2103_v4  ;;  %v17755_v48 = vrot.slane %v13543_v28, 3 }
 0x45f   : > { %v1326_v32 = vpop.permute.xlu1 %1325  ;;  %v2102_v26 = vsel %vm1879_vm4, %v2074_v23, %v1612_v43  ;;  %10291 = vmatprep.subr.mxu1 %v17432_v54 }
 0x460   : > { %v1991_v16 = vsel %vm1763_vm5, %v13757_v35, %v1326_v32  ;;  %10267 = vmatpush3.msra.mxu0 %v2102_v26 }
 0x461   : > { %v1324_v55 = vpop.permute.xlu0 %1323  ;;  %v2019_v2 = vsel %vm1792_vm6, %v1991_v16, %v17749_v30  ;;  %10268 = vmatprep.subr.mxu0 %v17432_v54 }
 0x462   : > { %v1990_v3 = vsel %vm1763_vm5, %v17751_v38, %v1324_v55  ;;  %10292 = vmatpush3.msra.mxu1 %v2019_v2  ;;  %v17757_v55 = vld [vmem:[#allocation25_spill] sm:$0xff] }
 0x463   : > { %v876_v13 = vpop.permute.xlu1 %875  ;;  %10293 = vmatprep.subr.mxu1 %v17432_v54  ;;  %v2018_v43 = vsel %vm1792_vm6, %v1990_v3, %v17750_v37 }
 0x464   : > { %v1876_v35 = vsel %vm1850_vm3, %v14059_v31, %v876_v13  ;;  %10269 = vmatpush3.msra.mxu0 %v2018_v43  ;;  %10294 = vmatpush3.msra.mxu1 %v14063_v52 }
 0x465   : > { %10270 = vmatprep.subr.mxu0 %v17432_v54  ;;  %10295 = vmatprep.subr.mxu1 %v17432_v54  ;;  %v874_v44 = vpop.permute.xlu0 %873  ;;  %v1905_v22 = vsel %vm1879_vm4, %v1876_v35, %v14027_v40  ;;  %v17753_v40 = vld [vmem:[#allocation12_spill] sm:$0xff] }
 0x466   : > { %v1875_v34 = vsel %vm1850_vm3, %v13867_v5, %v874_v44  ;;  %10271 = vmatpush3.msra.mxu0 %v17752_v10  ;;  %10296 = vmatpush3.msra.mxu1 %v1905_v22 }
 0x467   : > { %v2690_v49 = vpop.permute.xlu1 %2689  ;;  %10272 = vmatprep.subr.mxu0 %v17432_v54  ;;  %10297 = vmatprep.subr.mxu1 %v17432_v54  ;;  %v1904_v31 = vsel %vm1879_vm4, %v1875_v34, %v13804_v27  ;;  %v17758_v34 = vld [vmem:[#allocation42_spill] sm:$0xff] }
 0x468   : > { %10273 = vmatpush3.msra.mxu0 %v1904_v31  ;;  %10298 = vmatpush3.msra.mxu1 %v14108_v58 }
 0x469   : > { %10274 = vmatprep.subr.mxu0 %v17432_v54  ;;  %10300 = vmatmul.mubr.msk.f32.vlgmr.msra.gmra.mxu1 %vm2780_vm8, %v14515_v29  ;;  %v2682_v5 = vpop.permute.xlu0 %2681 }
 0x46a   : > { %10275 = vmatpush3.msra.mxu0 %v17753_v40  ;;  %10325 = vmatprep.subr.mxu1 %v17432_v54 }
 0x46b   : > { %v2688_v52 = vpop.permute.xlu1 %2687  ;;  %10277 = vmatmul.mubr.msk.f32.vlgmr.msra.gmra.mxu0 %vm2780_vm8, %v14515_v29  ;;  %10302 = vmatprep.subr.mxu0 %v17432_v54 }
 0x46c   : > { %10303 = vmatpush3.msk.msra.mxu0 %vm1763_vm5, %v2682_v5  ;;  %10326 = vmatpush3.msk.msra.mxu1 %vm1763_vm5, %v2690_v49 }
 0x46d   : > { %10304 = vmatprep.subr.mxu0 %v17432_v54  ;;  %v2680_v27 = vpop.permute.xlu0 %2679  ;;  %10327 = vmatprep.subr.mxu1 %v17432_v54 }
 0x46e   : > { %10305 = vmatpush3.msra.mxu0 %v2680_v27  ;;  %10328 = vmatpush3.msra.mxu1 %v2688_v52  ;;  %v17759_v52 = vld [vmem:[#allocation41_spill] sm:$0xff] }
 0x46f   : > { %v2686_v58 = vpop.permute.xlu1 %2685  ;;  %10306 = vmatprep.subr.mxu0 %v17432_v54  ;;  %10329 = vmatprep.subr.mxu1 %v17432_v54  ;;  %v17760_v27 = vld [vmem:[#allocation57_spill] sm:$0xff] }
 0x470   : > { %10330 = vmatpush3.msra.mxu1 %v2686_v58  ;;  %10345 = vmatprep.mubr.msk.f32.mxu1 %vm10948_vm7, %v17432_v54 }
 0x471   : > { %v2678_v25 = vpop.permute.xlu0 %2677  ;;  %10331 = vmatprep.subr.mxu1 %v17432_v54  ;;  %10322 = vmatprep.mubr.msk.f32.mxu0 %vm10948_vm7, %v17432_v54 }
 0x472   : > { %10307 = vmatpush3.msra.mxu0 %v2678_v25 }
 0x473   : > { %v1618_v11 = vpop.permute.xlu1 %1617  ;;  %10308 = vmatprep.subr.mxu0 %v17432_v54 }
 0x475   : > { %v1616_v19 = vpop.permute.xlu0 %1615 }
 0x477   : > { %v1703_v42 = vpop.permute.xlu1 %1702 }
 0x478   : > { %v2133_v45 = vsel %vm1908_vm1, %v1618_v11, %v1703_v42 }
 0x479   : > { %v1701_v30 = vpop.permute.xlu0 %1700  ;;  %v2161_v36 = vsel %vm1937_vm0, %v2133_v45, %v17754_v9 }
 0x47a   : > { %v2132_v50 = vsel %vm1908_vm1, %v1616_v19, %v1701_v30 }
 0x47b   : > { %v2684_v33 = vpop.permute.xlu1 %2683  ;;  %v2160_v4 = vsel %vm1937_vm0, %v2132_v50, %v17755_v48  ;;  %v17764_v48 = vmov 0  ;;  %vm8630_vm0 = vcmask 130048  }
 0x47c   : > { %10332 = vmatpush3.msra.mxu1 %v2684_v33 }
 0x47d   : > { %v2676_v37 = vpop.permute.xlu0 %2675  ;;  %10333 = vmatprep.subr.mxu1 %v17432_v54 }
 0x47e   : > { %10309 = vmatpush3.msra.mxu0 %v2676_v37  ;;  %10334 = vmatpush3.msra.mxu1 %v2161_v36 }
 0x47f   : > { %v1447_v56 = vpop.permute.xlu1 %1446  ;;  %10310 = vmatprep.subr.mxu0 %v17432_v54  ;;  %10335 = vmatprep.subr.mxu1 %v17432_v54 }
 0x480   : > { %10311 = vmatpush3.msra.mxu0 %v2160_v4  ;;  %v2049_v23 = vsel %vm1821_vm2, %v17756_v17, %v1447_v56  ;;  %v17364_v4 = vmov 1.0  }
 0x481   : > { %v1445_v32 = vpop.permute.xlu0 %1444  ;;  %10312 = vmatprep.subr.mxu0 %v17432_v54 }
 0x482   : > { %v2048_v2 = vsel %vm1821_vm2, %v17757_v55, %v1445_v32  ;;  %v17767_v32 = vmov 0 }
 0x483   : > { %v1533_v26 = vpop.permute.xlu1 %1532 }
 0x484   : > { %v2077_v16 = vsel %vm1850_vm3, %v2049_v23, %v1533_v26 }
 0x485   : > { %v1531_v38 = vpop.permute.xlu0 %1530  ;;  %v2105_v28 = vsel %vm1879_vm4, %v2077_v16, %v1618_v11 }
 0x486   : > { %v2076_v3 = vsel %vm1850_vm3, %v2048_v2, %v1531_v38  ;;  %10336 = vmatpush3.msra.mxu1 %v2105_v28 }
 0x487   : > { %v1330_v13 = vpop.permute.xlu1 %1329  ;;  %v2104_v43 = vsel %vm1879_vm4, %v2076_v3, %v1616_v19  ;;  %10337 = vmatprep.subr.mxu1 %v17432_v54 }
 0x488   : > { %v1993_v35 = vsel %vm1763_vm5, %v13962_v14, %v1330_v13  ;;  %10313 = vmatpush3.msra.mxu0 %v2104_v43 }
 0x489   : > { %v1328_v44 = vpop.permute.xlu0 %1327  ;;  %v2021_v22 = vsel %vm1792_vm6, %v1993_v35, %v17756_v17  ;;  %10314 = vmatprep.subr.mxu0 %v17432_v54 }
 0x48a   : > { %v1992_v10 = vsel %vm1763_vm5, %v17758_v34, %v1328_v44  ;;  %10338 = vmatpush3.msra.mxu1 %v2021_v22 }
 0x48b   : > { %v880_v49 = vpop.permute.xlu1 %879  ;;  %10339 = vmatprep.subr.mxu1 %v17432_v54  ;;  %v2020_v31 = vsel %vm1792_vm6, %v1992_v10, %v17757_v55 }
 0x48c   : > { %v1878_v14 = vsel %vm1850_vm3, %v14210_v62, %v880_v49  ;;  %10315 = vmatpush3.msra.mxu0 %v2020_v31  ;;  %10340 = vmatpush3.msra.mxu1 %v14202_v57  ;;  %v4982_v62 = vlaneseq }
 0x48d   : > { %10316 = vmatprep.subr.mxu0 %v17432_v54  ;;  %10341 = vmatprep.subr.mxu1 %v17432_v54  ;;  %v1907_v5 = vsel %vm1879_vm4, %v1878_v14, %v14164_v20  ;;  %v17761_v20 = vld [vmem:[#allocation20_spill] sm:$0xff] }
 0x48e   : > { %v878_v40 = vpop.permute.xlu0 %877  ;;  %10317 = vmatpush3.msra.mxu0 %v17759_v52  ;;  %10342 = vmatpush3.msra.mxu1 %v1907_v5 }
 0x48f   : > { %v1877_v58 = vsel %vm1850_vm3, %v17760_v27, %v878_v40  ;;  %10318 = vmatprep.subr.mxu0 %v17432_v54  ;;  %10343 = vmatprep.subr.mxu1 %v17432_v54 }
 0x490   : > { %v1906_v57 = vsel %vm1879_vm4, %v1877_v58, %v14013_v60  ;;  %10344 = vmatpush3.msra.mxu1 %v14273_v1  ;;  %v4983_v60 = vshrl.u32 %v4982_v62, 7  ;;  %v4988_v1 = vand.u32 127, %v4982_v62 }
 0x491   : > { %10319 = vmatpush3.msra.mxu0 %v1906_v57  ;;  %10346 = vmatmul.mubr.msk.f32.vlgmr.msra.gmra.mxu1 %vm2780_vm8, %v14515_v29 }
 0x492   : > { %10320 = vmatprep.subr.mxu0 %v17432_v54  ;;  %10359 = vmatprep.subr.mxu1 %v17432_v54  ;;  %v4986_v11 = vadd.s32 24, %v4983_v60  ;;  %v4989_v19 = vmul.u32 2, %v4988_v1  ;;  %v4985_v42 = vadd.s32 16, %v4983_v60  ;;  %v4984_v33 = vadd.s32 8, %v4983_v60 }
 0x493   : > { %10321 = vmatpush3.msra.mxu0 %v17761_v20  ;;  %10367 = vmatprep.mubr.msk.f32.mxu1 %vm10948_vm7, %v17432_v54 }
 0x494   : > { %10323 = vmatmul.mubr.msk.f32.vlgmr.msra.gmra.mxu0 %vm2780_vm8, %v14515_v29  ;;  %10348 = vmatprep.subr.mxu0 %v17432_v54  ;;  %vm4993_vm9 = vcmp.eq.s32.totalorder %v4986_v11, %v4989_v19  ;;  %vm14671_vm10 = vcmp.eq.s32.totalorder %v4985_v42, %v4989_v19  ;;  %vm14690_vm11 = vcmp.eq.s32.totalorder %v4984_v33, %v4989_v19 }
 0x495   : > { %10356 = vmatprep.mubr.msk.f32.mxu0 %vm10948_vm7, %v17432_v54  ;;  %v14669_v29 = vsel %vm4993_vm9, 1.0, %v17432_v54  ;;  %v17765_v48 = vsel %vm14690_vm11, 4294967295, %v17764_v48  ;;  %vm14709_vm12 = vcmp.eq.s32.totalorder %v4983_v60, %v4989_v19 }
 0x496   : > { %v14664_v25 = vpop.f32.mrf.mxu1  ;;  %10349 = vmatpush3.msk.msra.mxu0 %vm1763_vm5, %v14669_v29  ;;  %10360 = vmatpush3.msk.msra.mxu1 %vm1763_vm5, %v14669_v29  ;;  %17766 = vst [vmem:[#allocation19_spill] sm:$0xff] %v17765_v48  ;;  %v17768_v32 = vsel %vm14709_vm12, 4294967295, %v17767_v32 }
 0x497   : > { %10350 = vmatprep.subr.mxu0 %v17432_v54  ;;  %10361 = vmatprep.subr.mxu1 %v17432_v54  ;;  %17769 = vst [vmem:[#allocation35_spill] sm:$0xff] %v17768_v32 }
 0x498   : > { %v14666_v45 = vpop.f32.mrf.mxu0  ;;  %v10163_v30 = vpop.f32.mrf.mxu1  ;;  %10351 = vmatpush3.msk.msra.mxu0 %vm14671_vm10, %v17364_v4  ;;  %10362 = vmatpush3.msk.msra.mxu1 %vm14671_vm10, %v17364_v4 }
 0x499   : > { %10352 = vmatprep.subr.mxu0 %v17432_v54  ;;  %10363 = vmatprep.subr.mxu1 %v17432_v54 }
 0x49a   : > { %v10140_v9 = vpop.f32.mrf.mxu0  ;;  %10353 = vmatpush3.msk.msra.mxu0 %vm14690_vm11, %v17364_v4  ;;  %10364 = vmatpush3.msk.msra.mxu1 %vm14690_vm11, %v17364_v4 }
 0x49b   : > { %v14675_v50 = vpop.permute.xlu0 %2777  ;;  %10354 = vmatprep.subr.mxu0 %v17432_v54  ;;  %10365 = vmatprep.subr.mxu1 %v17432_v54 }
 0x49c   : > { %v14683_v37 = vadd.f32 %v14263_v61, %v14675_v50  ;;  %v14687_v56 = vadd.f32 %v14161_v41, %v14675_v50  ;;  %v14701_v23 = vadd.f32 %v14302_v12, %v14675_v50  ;;  %v14705_v41 = vadd.f32 %v14170_v39, %v14675_v50  ;;  %10355 = vmatpush3.msk.msra.mxu0 %vm14709_vm12, %v17364_v4 }
 0x49d   : > { %v14730_v26 = vadd.f32 %v14337_v0, %v14675_v50  ;;  %v14734_v16 = vadd.f32 %v14265_v59, %v14675_v50  ;;  %10370 = vmatprep.subr.mxu0 %v17432_v54  ;;  %v14755_v55 = vadd.f32 %v14358_v15, %v14675_v50  ;;  %v14759_v2 = vadd.f32 %v14306_v21, %v14675_v50 }
 0x49e   : > { %v4802_v17 = vmax.f32 %v14683_v37, 0.0  ;;  %v4800_v61 = vmax.f32 %v14687_v56, 0.0  ;;  %v4804_v39 = vmax.f32 %v14701_v23, 0.0  ;;  %v4801_v12 = vmax.f32 %v14705_v41, 0.0  ;;  %10366 = vmatpush3.msk.msra.mxu1 %vm14709_vm12, %v17364_v4 }
 0x49f   : > { %v4806_v59 = vmax.f32 %v14730_v26, 0.0  ;;  %v4803_v0 = vmax.f32 %v14734_v16, 0.0  ;;  %10381 = vmatprep.subr.mxu1 %v17432_v54  ;;  %v4808_v15 = vmax.f32 %v14755_v55, 0.0  ;;  %v4805_v38 = vmax.f32 %v14759_v2, 0.0 }
 0x4a0   : > { %4860 = vrot.lane.b32.xlu0 %v4802_v17, %s10943_s12  ;;  %4856 = vrot.lane.b32.xlu1 %v4800_v61, %s10943_s12  ;;  %v14775_v21 = vadd.f32 %v14373_v46, %v14675_v50  ;;  %v14779_v28 = vadd.f32 %v14339_v24, %v14675_v50  ;;  %v14791_v46 = vadd.f32 %v14395_v63, %v14675_v50 }
 0x4a1   : > { %v14795_v24 = vadd.f32 %v14365_v51, %v14675_v50  ;;  %v14807_v63 = vadd.f32 %v14415_v6, %v14675_v50  ;;  %v14811_v51 = vadd.f32 %v14377_v18, %v14675_v50  ;;  %v14823_v6 = vadd.f32 %v14542_v8, %v14675_v50 }
 0x4a2   : > { %v4810_v3 = vmax.f32 %v14775_v21, 0.0  ;;  %v4807_v13 = vmax.f32 %v14779_v28, 0.0  ;;  %v4812_v43 = vmax.f32 %v14791_v46, 0.0  ;;  %v14827_v18 = vadd.f32 %v14397_v47, %v14675_v50 }
 0x4a3   : > { %v4809_v35 = vmax.f32 %v14795_v24, 0.0  ;;  %v4814_v44 = vmax.f32 %v14807_v63, 0.0  ;;  %v4811_v22 = vmax.f32 %v14811_v51, 0.0  ;;  %v4816_v34 = vmax.f32 %v14823_v6, 0.0 }
 0x4a4   : > { %4864 = vrot.lane.b32.xlu0 %v4804_v39, %s10943_s12  ;;  %4858 = vrot.lane.b32.xlu1 %v4801_v12, %s10943_s12  ;;  %v4813_v10 = vmax.f32 %v14827_v18, 0.0  ;;  %v14839_v8 = vadd.f32 %v14666_v45, %v14675_v50  ;;  %v14843_v47 = vadd.f32 %v14417_v7, %v14675_v50  ;;  %v14855_v14 = vadd.f32 %v14537_v53, %v14675_v50 }
 0x4a5   : > { %v14866_v5 = vadd.f32 %v14664_v25, %v14675_v50 }
 0x4a6   : > { %v4818_v49 = vmax.f32 %v14839_v8, 0.0  ;;  %v4815_v31 = vmax.f32 %v14843_v47, 0.0  ;;  %v4817_v7 = vmax.f32 %v14855_v14, 0.0 }
 0x4a7   : > { %v4819_v53 = vmax.f32 %v14866_v5, 0.0 }
 0x4a8   : > { %4868 = vrot.lane.b32.xlu0 %v4806_v59, %s10943_s12  ;;  %4862 = vrot.lane.b32.xlu1 %v4803_v0, %s10943_s12 }
 0x4ac   : > { %4872 = vrot.lane.b32.xlu0 %v4808_v15, %s10943_s12  ;;  %4866 = vrot.lane.b32.xlu1 %v4805_v38, %s10943_s12 }
 0x4b0   : > { %4876 = vrot.lane.b32.xlu0 %v4810_v3, %s10943_s12  ;;  %4870 = vrot.lane.b32.xlu1 %v4807_v13, %s10943_s12 }
 0x4b4   : > { %4880 = vrot.lane.b32.xlu0 %v4812_v43, %s10943_s12  ;;  %4874 = vrot.lane.b32.xlu1 %v4809_v35, %s10943_s12 }
 0x4b8   : > { %4884 = vrot.lane.b32.xlu0 %v4814_v44, %s10943_s12  ;;  %4878 = vrot.lane.b32.xlu1 %v4811_v22, %s10943_s12 }
 0x4bc   : > { %4888 = vrot.lane.b32.xlu0 %v4816_v34, %s10943_s12  ;;  %4882 = vrot.lane.b32.xlu1 %v4813_v10, %s10943_s12 }
 0x4c0   : > { %4892 = vrot.lane.b32.xlu0 %v4818_v49, %s10943_s12  ;;  %4886 = vrot.lane.b32.xlu1 %v4815_v31, %s10943_s12 }
 0x4c4   : > { %4890 = vrot.lane.b32.xlu1 %v4817_v7, %s10943_s12 }
 0x4c8   : > { %4894 = vrot.lane.b32.xlu1 %v4819_v53, %s10943_s12 }
 0x4da   : > { %v4364_v40 = vpop.f32.mrf.mxu1 }
 0x4db   : > { %v14876_v52 = vadd.f32 %v4364_v40, %v14675_v50 }
 0x4dc   : > { %v10209_v27 = vpop.f32.mrf.mxu1 }
 0x4dd   : > { %v4821_v58 = vmax.f32 %v14876_v52, 0.0  ;;  %v4292_v57 = vpop.f32.mrf.mxu0 }
 0x4de   : > { %v14880_v20 = vadd.f32 %v4292_v57, %v14675_v50 }
 0x4df   : > { %4898 = vrot.lane.b32.xlu1 %v4821_v58, %s10943_s12  ;;  %v10186_v62 = vpop.f32.mrf.mxu0 }
 0x4e0   : > { %v4820_v60 = vmax.f32 %v14880_v20, 0.0 }
 0x4e2   : > { %4896 = vrot.lane.b32.xlu0 %v4820_v60, %s10943_s12 }
 0x500   : > { %v4508_v1 = vpop.f32.mrf.mxu1 }
 0x501   : > { %v14890_v25 = vadd.f32 %v4508_v1, %v14675_v50 }
 0x502   : > { %v4436_v11 = vpop.f32.mrf.mxu0  ;;  %v10255_v19 = vpop.f32.mrf.mxu1 }
 0x503   : > { %v17362_v42 = vmax.f32 %v14890_v25, 0.0  ;;  %v14894_v45 = vadd.f32 %v4436_v11, %v14675_v50 }
 0x504   : > { %v10232_v30 = vpop.f32.mrf.mxu0 }
 0x505   : > { %v17363_v33 = vmax.f32 %v14894_v45, 0.0  ;;  %4902 = vrot.lane.b32.xlu1 %v17362_v42, %s10943_s12 }
 0x507   : > { %4900 = vrot.lane.b32.xlu0 %v17363_v33, %s10943_s12 }
 0x512   : > { %v4861_v9 = vpop.permute.xlu0 %4860  ;;  %v4857_v40 = vpop.permute.xlu1 %4856 }
 0x513   : > { %v4940_v62 = vmax.f32 %v4800_v61, %v4857_v40  ;;  %v4942_v42 = vmax.f32 %v4802_v17, %v4861_v9 }
 0x516   : > { %v4865_v27 = vpop.permute.xlu0 %4864  ;;  %v4859_v57 = vpop.permute.xlu1 %4858 }
 0x517   : > { %v4941_v1 = vmax.f32 %v4801_v12, %v4859_v57  ;;  %v4944_v17 = vmax.f32 %v4804_v39, %v4865_v27 }
 0x519   : > { %v4968_v11 = vmax.f32 %v4940_v62, %v4941_v1 }
 0x51a   : > { %v4869_v19 = vpop.permute.xlu0 %4868  ;;  %v4863_v30 = vpop.permute.xlu1 %4862 }
 0x51b   : > { %v4943_v33 = vmax.f32 %v4803_v0, %v4863_v30  ;;  %10357 = vmatmul.mubr.msk.f32.vlgmr.msra.gmra.mxu0 %vm5002_vm13, %v4968_v11  ;;  %v4946_v39 = vmax.f32 %v4806_v59, %v4869_v19 }
 0x51c   : > { %10371 = vmatpush3.msk.msra.mxu0 %vm1763_vm5, %v14669_v29  ;;  %10378 = vmatprep.mubr.msk.f32.mxu0 %vm10948_vm7, %v17432_v54 }
 0x51d   : > { %v4969_v56 = vmax.f32 %v4942_v42, %v4943_v33  ;;  %10372 = vmatprep.subr.mxu0 %v17432_v54 }
 0x51e   : > { %v4873_v61 = vpop.permute.xlu0 %4872  ;;  %10373 = vmatpush3.msk.msra.mxu0 %vm14671_vm10, %v17364_v4  ;;  %v4867_v37 = vpop.permute.xlu1 %4866 }
 0x51f   : > { %v4945_v41 = vmax.f32 %v4805_v38, %v4867_v37  ;;  %10368 = vmatmul.mubr.msk.f32.vlgmr.msra.gmra.mxu1 %vm5002_vm13, %v4969_v56  ;;  %10374 = vmatprep.subr.mxu0 %v17432_v54  ;;  %v4948_v59 = vmax.f32 %v4808_v15, %v4873_v61 }
 0x520   : > { %10375 = vmatpush3.msk.msra.mxu0 %vm14690_vm11, %v17364_v4  ;;  %10382 = vmatpush3.msk.msra.mxu1 %vm1763_vm5, %v14669_v29 }
 0x521   : > { %v4970_v12 = vmax.f32 %v4944_v17, %v4945_v41  ;;  %10376 = vmatprep.subr.mxu0 %v17432_v54  ;;  %10383 = vmatprep.subr.mxu1 %v17432_v54 }
 0x522   : > { %10377 = vmatpush3.msk.msra.mxu0 %vm14709_vm12, %v17364_v4  ;;  %10384 = vmatpush3.msk.msra.mxu1 %vm14671_vm10, %v17364_v4  ;;  %v4871_v23 = vpop.permute.xlu1 %4870  ;;  %v4877_v0 = vpop.permute.xlu0 %4876 }
 0x523   : > { %v4947_v16 = vmax.f32 %v4807_v13, %v4871_v23  ;;  %10379 = vmatmul.mubr.msk.f32.vlgmr.msra.gmra.mxu0 %vm5002_vm13, %v4970_v12  ;;  %10385 = vmatprep.subr.mxu1 %v17432_v54  ;;  %v4950_v9 = vmax.f32 %v4810_v3, %v4877_v0 }
 0x524   : > { %10392 = vmatprep.subr.mxu0 %v17432_v54  ;;  %10386 = vmatpush3.msk.msra.mxu1 %vm14690_vm11, %v17364_v4 }
 0x525   : > { %v4971_v2 = vmax.f32 %v4946_v39, %v4947_v16  ;;  %10393 = vmatpush3.msk.msra.mxu0 %vm1763_vm5, %v14669_v29  ;;  %10387 = vmatprep.subr.mxu1 %v17432_v54 }
 0x526   : > { %10394 = vmatprep.subr.mxu0 %v17432_v54  ;;  %10388 = vmatpush3.msk.msra.mxu1 %vm14709_vm12, %v17364_v4  ;;  %v4875_v26 = vpop.permute.xlu1 %4874  ;;  %v4881_v15 = vpop.permute.xlu0 %4880 }
 0x527   : > { %10389 = vmatprep.mubr.msk.f32.mxu1 %vm10948_vm7, %v17432_v54  ;;  %10395 = vmatpush3.msk.msra.mxu0 %vm14671_vm10, %v17364_v4  ;;  %v4949_v38 = vmax.f32 %v4809_v35, %v4875_v26  ;;  %v4952_v1 = vmax.f32 %v4812_v43, %v4881_v15 }
 0x528   : > { %10390 = vmatmul.mubr.msk.f32.vlgmr.msra.gmra.mxu1 %vm5002_vm13, %v4971_v2  ;;  %10396 = vmatprep.subr.mxu0 %v17432_v54 }
 0x529   : > { %v4972_v28 = vmax.f32 %v4948_v59, %v4949_v38  ;;  %10403 = vmatprep.subr.mxu1 %v17432_v54  ;;  %10397 = vmatpush3.msk.msra.mxu0 %vm14690_vm11, %v17364_v4  ;;  %v4652_v55 = vpop.f32.mrf.mxu1 }
 0x52a   : > { %10404 = vmatpush3.msk.msra.mxu1 %vm1763_vm5, %v14669_v29  ;;  %10398 = vmatprep.subr.mxu0 %v17432_v54  ;;  %v14975_v13 = vadd.f32 %v4652_v55, %v14675_v50  ;;  %v4879_v24 = vpop.permute.xlu1 %4878  ;;  %v4885_v57 = vpop.permute.xlu0 %4884 }
 0x52b   : > { %10405 = vmatprep.subr.mxu1 %v17432_v54  ;;  %10399 = vmatpush3.msk.msra.mxu0 %vm14709_vm12, %v17364_v4  ;;  %v4951_v35 = vmax.f32 %v4811_v22, %v4879_v24  ;;  %v4580_v42 = vpop.f32.mrf.mxu0  ;;  %v10301_v33 = vpop.f32.mrf.mxu1  ;;  %v4954_v11 = vmax.f32 %v4814_v44, %v4885_v57 }
 0x52c   : > { %10400 = vmatprep.mubr.msk.f32.mxu0 %vm10948_vm7, %v17432_v54  ;;  %10406 = vmatpush3.msk.msra.mxu1 %vm14671_vm10, %v17364_v4  ;;  %v14993_v40 = vadd.f32 %v4580_v42, %v14675_v50  ;;  %v4825_v22 = vmax.f32 %v14975_v13, 0.0 }
 0x52d   : > { %10401 = vmatmul.mubr.msk.f32.vlgmr.msra.gmra.mxu0 %vm5002_vm13, %v4972_v28  ;;  %10407 = vmatprep.subr.mxu1 %v17432_v54  ;;  %v10278_v51 = vpop.f32.mrf.mxu0  ;;  %v4973_v27 = vmax.f32 %v4950_v9, %v4951_v35 }
 0x52e   : > { %10414 = vmatprep.subr.mxu0 %v17432_v54  ;;  %10408 = vmatpush3.msk.msra.mxu1 %vm14690_vm11, %v17364_v4  ;;  %v4883_v21 = vpop.permute.xlu1 %4882  ;;  %v4824_v62 = vmax.f32 %v14993_v40, 0.0  ;;  %v4889_v19 = vpop.permute.xlu0 %4888 }
 0x52f   : > { %10415 = vmatpush3.msk.msra.mxu0 %vm1763_vm5, %v14669_v29  ;;  %10409 = vmatprep.subr.mxu1 %v17432_v54  ;;  %v4953_v3 = vmax.f32 %v4813_v10, %v4883_v21 }
 0x530   : > { %10416 = vmatprep.subr.mxu0 %v17432_v54  ;;  %10410 = vmatpush3.msk.msra.mxu1 %vm14709_vm12, %v17364_v4 }
 0x531   : > { %10411 = vmatprep.mubr.msk.f32.mxu1 %vm10948_vm7, %v17432_v54  ;;  %10417 = vmatpush3.msk.msra.mxu0 %vm14671_vm10, %v17364_v4  ;;  %v4974_v10 = vmax.f32 %v4952_v1, %v4953_v3 }
 0x532   : > { %4906 = vrot.lane.b32.xlu1 %v4825_v22, %s10943_s12  ;;  %10412 = vmatmul.mubr.msk.f32.vlgmr.msra.gmra.mxu1 %vm5002_vm13, %v4973_v27  ;;  %v4887_v18 = vpop.permute.xlu1 %4886  ;;  %v4893_v30 = vpop.permute.xlu0 %4892 }
 0x533   : > { %10418 = vmatprep.subr.mxu0 %v17432_v54  ;;  %10425 = vmatprep.subr.mxu1 %v17432_v54  ;;  %v4955_v46 = vmax.f32 %v4815_v31, %v4887_v18  ;;  %v4956_v31 = vmax.f32 %v4816_v34, %v4889_v19  ;;  %v4958_v34 = vmax.f32 %v4818_v49, %v4893_v30 }
 0x534   : > { %10419 = vmatpush3.msk.msra.mxu0 %vm14690_vm11, %v17364_v4  ;;  %10426 = vmatpush3.msk.msra.mxu1 %vm1763_vm5, %v14669_v29 }
 0x535   : > { %4904 = vrot.lane.b32.xlu0 %v4824_v62, %s10943_s12  ;;  %10420 = vmatprep.subr.mxu0 %v17432_v54  ;;  %v4975_v47 = vmax.f32 %v4954_v11, %v4955_v46 }
 0x536   : > { %10427 = vmatprep.subr.mxu1 %v17432_v54  ;;  %10421 = vmatpush3.msk.msra.mxu0 %vm14709_vm12, %v17364_v4  ;;  %v4891_v43 = vpop.permute.xlu1 %4890 }
 0x537   : > { %10422 = vmatprep.mubr.msk.f32.mxu0 %vm10948_vm7, %v17432_v54  ;;  %10428 = vmatpush3.msk.msra.mxu1 %vm14671_vm10, %v17364_v4  ;;  %v4957_v63 = vmax.f32 %v4817_v7, %v4891_v43 }
 0x538   : > { %10423 = vmatmul.mubr.msk.f32.vlgmr.msra.gmra.mxu0 %vm5002_vm13, %v4974_v10  ;;  %10429 = vmatprep.subr.mxu1 %v17432_v54 }
 0x539   : > { %10436 = vmatprep.subr.mxu0 %v17432_v54  ;;  %10430 = vmatpush3.msk.msra.mxu1 %vm14690_vm11, %v17364_v4  ;;  %v4976_v14 = vmax.f32 %v4956_v31, %v4957_v63 }
 0x53a   : > { %10437 = vmatpush3.msk.msra.mxu0 %vm1763_vm5, %v14669_v29  ;;  %10431 = vmatprep.subr.mxu1 %v17432_v54  ;;  %v4895_v44 = vpop.permute.xlu1 %4894 }
 0x53b   : > { %10438 = vmatprep.subr.mxu0 %v17432_v54  ;;  %10432 = vmatpush3.msk.msra.mxu1 %vm14709_vm12, %v17364_v4  ;;  %v4959_v6 = vmax.f32 %v4819_v53, %v4895_v44 }
 0x53c   : > { %10433 = vmatprep.mubr.msk.f32.mxu1 %vm10948_vm7, %v17432_v54  ;;  %10439 = vmatpush3.msk.msra.mxu0 %vm14671_vm10, %v17364_v4 }
 0x53d   : > { %10434 = vmatmul.mubr.msk.f32.vlgmr.msra.gmra.mxu1 %vm5002_vm13, %v4975_v47  ;;  %10440 = vmatprep.subr.mxu0 %v17432_v54  ;;  %v4977_v7 = vmax.f32 %v4958_v34, %v4959_v6 }
 0x53e   : > { %10447 = vmatprep.subr.mxu1 %v17432_v54  ;;  %10441 = vmatpush3.msk.msra.mxu0 %vm14690_vm11, %v17364_v4 }
 0x53f   : > { %10448 = vmatpush3.msk.msra.mxu1 %vm1763_vm5, %v14669_v29  ;;  %10442 = vmatprep.subr.mxu0 %v17432_v54 }
 0x540   : > { %10449 = vmatprep.subr.mxu1 %v17432_v54  ;;  %10443 = vmatpush3.msk.msra.mxu0 %vm14709_vm12, %v17364_v4 }
 0x541   : > { %10444 = vmatprep.mubr.msk.f32.mxu0 %vm10948_vm7, %v17432_v54  ;;  %10450 = vmatpush3.msk.msra.mxu1 %vm14671_vm10, %v17364_v4 }
 0x542   : > { %10445 = vmatmul.mubr.msk.f32.vlgmr.msra.gmra.mxu0 %vm5002_vm13, %v4976_v14  ;;  %10451 = vmatprep.subr.mxu1 %v17432_v54 }
 0x543   : > { %10452 = vmatpush3.msk.msra.mxu1 %vm14690_vm11, %v17364_v4  ;;  %10455 = vmatprep.mubr.msk.f32.mxu1 %vm10948_vm7, %v17432_v54 }
 0x544   : > { %10453 = vmatprep.subr.mxu1 %v17432_v54  ;;  %10458 = vmatprep.subr.mxu0 %v17432_v54 }
 0x545   : > { %10454 = vmatpush3.msk.msra.mxu1 %vm14709_vm12, %v17364_v4  ;;  %10459 = vmatpush3.msk.msra.mxu0 %vm1763_vm5, %v14669_v29 }
 0x546   : > { %10456 = vmatmul.mubr.msk.f32.vlgmr.msra.gmra.mxu1 %vm5002_vm13, %v4977_v7  ;;  %10460 = vmatprep.subr.mxu0 %v17432_v54 }
 0x547   : > { %10461 = vmatpush3.msk.msra.mxu0 %vm14671_vm10, %v17364_v4  ;;  %10466 = vmatprep.mubr.msk.f32.mxu0 %vm10948_vm7, %v17432_v54 }
 0x548   : > { %10462 = vmatprep.subr.mxu0 %v17432_v54  ;;  %10469 = vmatprep.subr.mxu1 %v17432_v54 }
 0x549   : > { %10463 = vmatpush3.msk.msra.mxu0 %vm14690_vm11, %v17364_v4  ;;  %10470 = vmatpush3.msk.msra.mxu1 %vm1763_vm5, %v14669_v29 }
 0x54a   : > { %10464 = vmatprep.subr.mxu0 %v17432_v54  ;;  %10471 = vmatprep.subr.mxu1 %v17432_v54 }
 0x54b   : > { %10465 = vmatpush3.msk.msra.mxu0 %vm14709_vm12, %v17364_v4  ;;  %10472 = vmatpush3.msk.msra.mxu1 %vm14671_vm10, %v17364_v4 }
 0x54c   : > { %10473 = vmatprep.subr.mxu1 %v17432_v54  ;;  %10477 = vmatprep.mubr.msk.f32.mxu1 %vm10948_vm7, %v17432_v54 }
 0x54d   : > { %10474 = vmatpush3.msk.msra.mxu1 %vm14690_vm11, %v17364_v4  ;;  %10480 = vmatprep.subr.mxu0 %v17432_v54 }
 0x54e   : > { %10475 = vmatprep.subr.mxu1 %v17432_v54 }
 0x54f   : > { %10476 = vmatpush3.msk.msra.mxu1 %vm14709_vm12, %v17364_v4 }
 0x550   : > { %10491 = vmatprep.subr.mxu1 %v17432_v54 }
 0x551   : > { %v4796_v8 = vpop.f32.mrf.mxu1  ;;  %v4899_v49 = vpop.permute.xlu1 %4898 }
 0x552   : > { %v4797_v5 = vadd.f32 %v4796_v8, %v14675_v50  ;;  %v4961_v17 = vmax.f32 %v4821_v58, %v4899_v49  ;;  %v17770_v58 = vmax.f32 %v14890_v25, 0.0 }
 0x553   : > { %v10347_v53 = vpop.f32.mrf.mxu1 }
 0x554   : > { %v4827_v56 = vmax.f32 %v4797_v5, 0.0  ;;  %v4897_v61 = vpop.permute.xlu0 %4896  ;;  %v4724_v37 = vpop.f32.mrf.mxu0 }
 0x555   : > { %v4960_v41 = vmax.f32 %v4820_v60, %v4897_v61  ;;  %v4725_v12 = vadd.f32 %v4724_v37, %v14675_v50  ;;  %v17771_v60 = vmax.f32 %v14894_v45, 0.0 }
 0x556   : > { %4910 = vrot.lane.b32.xlu1 %v4827_v56, %s10943_s12  ;;  %v10324_v23 = vpop.f32.mrf.mxu0 }
 0x557   : > { %v4978_v39 = vmax.f32 %v4960_v41, %v4961_v17  ;;  %v4826_v16 = vmax.f32 %v4725_v12, 0.0 }
 0x559   : > { %10467 = vmatmul.mubr.msk.f32.vlgmr.msra.gmra.mxu0 %vm5002_vm13, %v4978_v39  ;;  %4908 = vrot.lane.b32.xlu0 %v4826_v16, %s10943_s12 }
 0x55a   : > { %10481 = vmatpush3.msk.msra.mxu0 %vm1763_vm5, %v14669_v29  ;;  %10488 = vmatprep.mubr.msk.f32.mxu0 %vm10948_vm7, %v17432_v54 }
 0x55b   : > { %10482 = vmatprep.subr.mxu0 %v17432_v54 }
 0x55c   : > { %10483 = vmatpush3.msk.msra.mxu0 %vm14671_vm10, %v17364_v4 }
 0x55d   : > { %10484 = vmatprep.subr.mxu0 %v17432_v54 }
 0x55e   : > { %10485 = vmatpush3.msk.msra.mxu0 %vm14690_vm11, %v17364_v4 }
 0x55f   : > { %10486 = vmatprep.subr.mxu0 %v17432_v54 }
 0x560   : > { %10487 = vmatpush3.msk.msra.mxu0 %vm14709_vm12, %v17364_v4 }
 0x561   : > { %6988 = vmatprep.subr.mxu0 %v17432_v54 }
 0x577   : > { %v4903_v50 = vpop.permute.xlu1 %4902 }
 0x578   : > { %v4963_v20 = vmax.f32 %v17770_v58, %v4903_v50 }
 0x579   : > { %v4901_v52 = vpop.permute.xlu0 %4900 }
 0x57a   : > { %v4962_v0 = vmax.f32 %v17771_v60, %v4901_v52 }
 0x57c   : > { %v4979_v2 = vmax.f32 %v4962_v0, %v4963_v20 }
 0x57e   : > { %10478 = vmatmul.mubr.msk.f32.vlgmr.msra.gmra.mxu1 %vm5002_vm13, %v4979_v2 }
 0x57f   : > { %10492 = vmatpush3.msk.msra.mxu1 %vm1763_vm5, %v14669_v29  ;;  %10499 = vmatprep.mubr.msk.f32.mxu1 %vm10948_vm7, %v17432_v54 }
 0x580   : > { %10493 = vmatprep.subr.mxu1 %v17432_v54 }
 0x581   : > { %10494 = vmatpush3.msk.msra.mxu1 %vm14671_vm10, %v17364_v4 }
 0x582   : > { %10495 = vmatprep.subr.mxu1 %v17432_v54 }
 0x583   : > { %10496 = vmatpush3.msk.msra.mxu1 %vm14690_vm11, %v17364_v4 }
 0x584   : > { %10497 = vmatprep.subr.mxu1 %v17432_v54 }
 0x585   : > { %10498 = vmatpush3.msk.msra.mxu1 %vm14709_vm12, %v17364_v4 }
 0x586   : > { %7065 = vmatprep.subr.mxu1 %v17432_v54 }
 0x5a4   : > { %v4907_v29 = vpop.permute.xlu1 %4906 }
 0x5a5   : > { %v4965_v36 = vmax.f32 %v4825_v22, %v4907_v29 }
 0x5a7   : > { %v4905_v25 = vpop.permute.xlu0 %4904 }
 0x5a8   : > { %v4964_v45 = vmax.f32 %v4824_v62, %v4905_v25 }
 0x5aa   : > { %v4980_v26 = vmax.f32 %v4964_v45, %v4965_v36 }
 0x5ac   : > { %10489 = vmatmul.mubr.msk.f32.vlgmr.msra.gmra.mxu0 %vm5002_vm13, %v4980_v26 }
 0x5c8   : > { %v4911_v59 = vpop.permute.xlu1 %4910 }
 0x5c9   : > { %v4967_v28 = vmax.f32 %v4827_v56, %v4911_v59 }
 0x5cb   : > { %v4909_v38 = vpop.permute.xlu0 %4908 }
 0x5cc   : > { %v4966_v55 = vmax.f32 %v4826_v16, %v4909_v38 }
 0x5ce   : > { %v4981_v15 = vmax.f32 %v4966_v55, %v4967_v28 }
 0x5d0   : > { %10500 = vmatmul.mubr.msk.f32.vlgmr.msra.gmra.mxu1 %vm5002_vm13, %v4981_v15 }
 0x5db   : > { %v15191_v24 = vpop.f32.mrf.mxu0 }
 0x5dd   : > { %v10358_v35 = vpop.f32.mrf.mxu0 }
 0x5df   : > { %v15193_v42 = vpop.f32.mrf.mxu1 }
 0x5e0   : > { %v15377_v15 = vrot.slane %v15193_v42, 2 }
 0x5e1   : > { %v10369_v13 = vpop.f32.mrf.mxu1 }
 0x5e3   : > { %v15195_v33 = vpop.f32.mrf.mxu0 }
 0x5e4   : > { %v15330_v45 = vrot.slane %v15195_v33, 4  ;;  %v15341_v59 = vrot.slane %v15195_v33, 2  ;;  %v15367_v28 = vrot.slane %v15195_v33, 6 }
 0x5e5   : > { %v10380_v9 = vpop.f32.mrf.mxu0 }
 0x5e8   : > { %v15197_v40 = vpop.f32.mrf.mxu1 }
 0x5e9   : > { %v15204_v21 = vrot.slane %v15197_v40, 4  ;;  %v15213_v62 = vrot.slane %v15197_v40, 6  ;;  %v15225_v10 = vrot.slane %v15197_v40, 2 }
 0x5ea   : > { %v10391_v51 = vpop.f32.mrf.mxu1 }
 0x5eb   : > { %v6085_v51 = vrot.slane %v15193_v42, 4 }
 0x5ed   : > { %v15199_v22 = vpop.f32.mrf.mxu0 }
 0x5ee   : > { %6624 = vrot.lane.b32.xlu0 %v15199_v22, %s10945_s15  ;;  %v15216_v1 = vrot.slane %v15199_v22, 4  ;;  %v15228_v46 = vrot.slane %v15199_v22, 6  ;;  %v15237_v19 = vrot.slane %v15199_v22, 2 }
 0x5ef   : > { %v10402_v27 = vpop.f32.mrf.mxu0 }
 0x5f2   : > { %v15206_v3 = vpop.f32.mrf.mxu1  ;;  %6100 = vrot.lane.b32.xlu0 %v15204_v21, %s10944_s14 }
 0x5f3   : > { %6626 = vrot.lane.b32.xlu1 %v15206_v3, %s10945_s15  ;;  %v15250_v31 = vrot.slane %v15206_v3, 4  ;;  %v15259_v6 = vrot.slane %v15206_v3, 6  ;;  %v15277_v7 = vrot.slane %v15206_v3, 2 }
 0x5f4   : > { %v10413_v57 = vpop.f32.mrf.mxu1 }
 0x5f5   : > { %v6125_v57 = vrot.slane %v15193_v42, 6 }
 0x5f6   : > { %6140 = vrot.lane.b32.xlu0 %v15213_v62, %s10942_s29 }
 0x5f7   : > { %6102 = vrot.lane.b32.xlu1 %v15216_v1, %s10944_s14 }
 0x5f8   : > { %v15222_v18 = vpop.f32.mrf.mxu0 }
 0x5f9   : > { %v15270_v34 = vrot.slane %v15222_v18, 4  ;;  %v15280_v8 = vrot.slane %v15222_v18, 6  ;;  %v15287_v49 = vrot.slane %v15222_v18, 2 }
 0x5fa   : > { %v10424_v43 = vpop.f32.mrf.mxu0  ;;  %6060 = vrot.lane.b32.xlu0 %v15225_v10, %s10943_s12 }
 0x5fb   : > { %6142 = vrot.lane.b32.xlu1 %v15228_v46, %s10942_s29 }
 0x5fd   : > { %v15234_v11 = vpop.f32.mrf.mxu1 }
 0x5fe   : > { %6274 = vrot.lane.b32.xlu0 %v15199_v22, %s10942_s29  ;;  %v15360_v38 = vrot.slane %v15234_v11, 4  ;;  %v15370_v55 = vrot.slane %v15234_v11, 6 }
 0x5ff   : > { %v10435_v47 = vpop.f32.mrf.mxu1  ;;  %6062 = vrot.lane.b32.xlu1 %v15237_v19, %s10943_s12 }
 0x600   : > { %v15418_v47 = vrot.slane %v15234_v11, 2 }
 0x602   : > { %v15243_v63 = vpop.f32.mrf.mxu0  ;;  %6213 = vrot.lane.b32.xlu0 %v15216_v1, %s10943_s12 }
 0x603   : > { %6276 = vrot.lane.b32.xlu1 %v15206_v3, %s10942_s29  ;;  %v15398_v9 = vrot.slane %v15243_v63, 4  ;;  %v15406_v27 = vrot.slane %v15243_v63, 6 }
 0x604   : > { %v10446_v44 = vpop.f32.mrf.mxu0 }
 0x606   : > { %v15252_v30 = vpop.f32.mrf.mxu1  ;;  %6244 = vrot.lane.b32.xlu0 %v15228_v46, %s10944_s14 }
 0x607   : > { %6215 = vrot.lane.b32.xlu1 %v15250_v31, %s10943_s12 }
 0x608   : > { %v10457_v14 = vpop.f32.mrf.mxu1 }
 0x609   : > { %v15427_v14 = vrot.slane %v15243_v63, 2 }
 0x60a   : > { %6628 = vrot.lane.b32.xlu0 %v15222_v18, %s10945_s15 }
 0x60b   : > { %6246 = vrot.lane.b32.xlu1 %v15259_v6, %s10944_s14 }
 0x60e   : > { %6104 = vrot.lane.b32.xlu0 %v15250_v31, %s10944_s14 }
 0x60f   : > { %6630 = vrot.lane.b32.xlu1 %v15234_v11, %s10945_s15 }
 0x612   : > { %6144 = vrot.lane.b32.xlu0 %v15259_v6, %s10942_s29 }
 0x613   : > { %6106 = vrot.lane.b32.xlu1 %v15270_v34, %s10944_s14 }
 0x616   : > { %6064 = vrot.lane.b32.xlu0 %v15277_v7, %s10943_s12 }
 0x617   : > { %6146 = vrot.lane.b32.xlu1 %v15280_v8, %s10942_s29 }
 0x619   : > { %v15289_v5 = vpop.f32.mrf.mxu0 }
 0x61b   : > { %6066 = vrot.lane.b32.xlu1 %v15287_v49, %s10943_s12  ;;  %v10468_v53 = vpop.f32.mrf.mxu0 }
 0x63e   : > { %v15293_v56 = vpop.f32.mrf.mxu1 }
 0x640   : > { %v10479_v61 = vpop.f32.mrf.mxu1 }
 0x641   : > { %v6084_v61 = vrot.slane %v15191_v24, 4 }
 0x660   : > { %v6625_v37 = vpop.permute.xlu0 %6624 }
 0x661   : > { %v6693_v17 = vsel %vm1792_vm6, %v6625_v37, %v15237_v19 }
 0x662   : > { %6775 = vrot.lane.b32.xlu0 %v6693_v17, %s10943_s12 }
 0x664   : > { %v6101_v41 = vpop.permute.xlu0 %6100 }
 0x665   : > { %v6627_v12 = vpop.permute.xlu1 %6626 }
 0x666   : > { %v6694_v23 = vsel %vm1792_vm6, %v6627_v12, %v15277_v7  ;;  %v6044_v12 = vrot.slane %v15191_v24, 2 }
 0x667   : > { %6789 = vrot.lane.b32.xlu1 %v6694_v23, %s10943_s12 }
 0x668   : > { %v6141_v39 = vpop.permute.xlu0 %6140 }
 0x669   : > { %v15302_v16 = vsel %vm1908_vm1, %v6101_v41, %v6141_v39  ;;  %v6103_v50 = vpop.permute.xlu1 %6102 }
 0x66a   : > { %6773 = vrot.lane.b32.xlu0 %v15302_v16, %s10943_s12 }
 0x66c   : > { %v15306_v52 = vpop.f32.mrf.mxu0  ;;  %v6061_v58 = vpop.permute.xlu0 %6060 }
 0x66d   : > { %v6143_v20 = vpop.permute.xlu1 %6142  ;;  %v15309_v60 = vsel %vm1850_vm3, %v6061_v58, %v6101_v41  ;;  %v15320_v25 = vsel %vm1792_vm6, %v15197_v40, %v6061_v58  ;;  %v6124_v41 = vrot.slane %v15191_v24, 6 }
 0x66e   : > { %v10490_v0 = vpop.f32.mrf.mxu0  ;;  %v15312_v2 = vsel %vm1908_vm1, %v6103_v50, %v6143_v20  ;;  %6771 = vrot.lane.b32.xlu0 %v15309_v60, %s10943_s12 }
 0x66f   : > { %17772 = vst [vmem:[#allocation26_spill] sm:$0xff] %v15312_v2  ;;  %6787 = vrot.lane.b32.xlu1 %v15312_v2, %s10943_s12 }
 0x670   : > { %v15415_v43 = vpop.permute.xlu0 %6274 }
 0x671   : > { %v6063_v29 = vpop.permute.xlu1 %6062 }
 0x672   : > { %6769 = vrot.lane.b32.xlu0 %v15320_v25, %s10943_s12  ;;  %v15325_v36 = vsel %vm1850_vm3, %v6063_v29, %v6103_v50  ;;  %v15336_v26 = vsel %vm1792_vm6, %v15199_v22, %v6063_v29  ;;  %v15443_v50 = vld [vmem:[#allocation2 + $0x8] sm:$0xff] }
 0x673   : > { %17773 = vst [vmem:[#allocation22_spill] sm:$0xff] %v15325_v36  ;;  %6785 = vrot.lane.b32.xlu1 %v15325_v36, %s10943_s12  ;;  %17774 = vst [vmem:[#allocation44_spill] sm:$0xff] %v15336_v26  ;;  %9186 = vmatprep.mubr.msk.f32.mxu0 %vm6979_vm14, %v15443_v50 }
 0x674   : > { %v6214_v53 = vpop.permute.xlu0 %6213  ;;  %9189 = vmatprep.mubr.msk.f32.mxu1 %vm6979_vm14, %v15443_v50 }
 0x675   : > { %v15424_v44 = vpop.permute.xlu1 %6276 }
 0x676   : > { %6432 = vrot.lane.b32.xlu0 %v15330_v45, %s10946_s16 }
 0x677   : > { %6783 = vrot.lane.b32.xlu1 %v15336_v26, %s10943_s12 }
 0x678   : > { %v6245_v17 = vpop.permute.xlu0 %6244 }
 0x679   : > { %v6216_v37 = vpop.permute.xlu1 %6215  ;;  %v15454_v0 = vsel %vm1908_vm1, %v6214_v53, %v6245_v17 }
 0x67a   : > { %6402 = vrot.lane.b32.xlu0 %v15341_v59, %s10942_s29  ;;  %v15476_v17 = vsel %vm1850_vm3, %v15277_v7, %v6216_v37 }
 0x67b   : > { %6434 = vrot.lane.b32.xlu1 %v15204_v21, %s10946_s16  ;;  %17776 = vst [vmem:[#allocation21_spill] sm:$0xff] %v15476_v17 }
 0x67c   : > { %v6629_v39 = vpop.permute.xlu0 %6628 }
 0x67d   : > { %v6247_v23 = vpop.permute.xlu1 %6246 }
 0x67e   : > { %6371 = vrot.lane.b32.xlu0 %v15195_v33, %s10944_s14 }
 0x67f   : > { %6404 = vrot.lane.b32.xlu1 %v15225_v10, %s10942_s29 }
 0x680   : > { %v6105_v20 = vpop.permute.xlu0 %6104 }
 0x681   : > { %v6631_v58 = vpop.permute.xlu1 %6630 }
 0x682   : > { %6278 = vrot.lane.b32.xlu0 %v15222_v18, %s10942_s29 }
 0x683   : > { %6373 = vrot.lane.b32.xlu1 %v15197_v40, %s10944_s14 }
 0x685   : > { %v6107_v29 = vpop.permute.xlu1 %6106 }
 0x686   : > { %6217 = vrot.lane.b32.xlu0 %v15270_v34, %s10943_s12 }
 0x687   : > { %6280 = vrot.lane.b32.xlu1 %v15234_v11, %s10942_s29 }
 0x68a   : > { %6248 = vrot.lane.b32.xlu0 %v15280_v8, %s10944_s14 }
 0x68b   : > { %6219 = vrot.lane.b32.xlu1 %v15360_v38, %s10943_s12 }
 0x68e   : > { %6341 = vrot.lane.b32.xlu0 %v15367_v28, %s10943_s12 }
 0x68f   : > { %6250 = vrot.lane.b32.xlu1 %v15370_v55, %s10944_s14 }
 0x690   : > { %v15379_v35 = vpop.f32.mrf.mxu1 }
 0x692   : > { %6298 = vrot.lane.b32.xlu0 %v15377_v15, %s10946_s16  ;;  %v10501_v13 = vpop.f32.mrf.mxu1 }
 0x693   : > { %6343 = vrot.lane.b32.xlu1 %v15213_v62, %s10943_s12  ;;  %v15462_v13 = vsel %vm1850_vm3, %v15237_v19, %v6214_v53  ;;  %v6147_v53 = vpop.permute.xlu1 %6146 }
 0x694   : > { %v15492_v4 = vsel %vm1908_vm1, %v6107_v29, %v6147_v53 }
 0x695   : > { %17779 = vst [vmem:[#allocation49_spill] sm:$0xff] %v15492_v4 }
 0x696   : > { %6268 = vrot.lane.b32.xlu0 %v15193_v42, %s10942_s29 }
 0x697   : > { %6300 = vrot.lane.b32.xlu1 %v15341_v59, %s10946_s16 }
 0x69a   : > { %6632 = vrot.lane.b32.xlu0 %v15243_v63, %s10945_s15 }
 0x69b   : > { %6270 = vrot.lane.b32.xlu1 %v15195_v33, %s10942_s29 }
 0x69e   : > { %6108 = vrot.lane.b32.xlu0 %v15360_v38, %s10944_s14 }
 0x69f   : > { %6634 = vrot.lane.b32.xlu1 %v15252_v30, %s10945_s15 }
 0x6a2   : > { %6148 = vrot.lane.b32.xlu0 %v15370_v55, %s10942_s29 }
 0x6a3   : > { %6110 = vrot.lane.b32.xlu1 %v15398_v9, %s10944_s14 }
 0x6a6   : > { %6207 = vrot.lane.b32.xlu0 %v6085_v51, %s10943_s12 }
 0x6a7   : > { %6150 = vrot.lane.b32.xlu1 %v15406_v27, %s10942_s29 }
 0x6aa   : > { %6238 = vrot.lane.b32.xlu0 %v6125_v57, %s10944_s14 }
 0x6ab   : > { %6209 = vrot.lane.b32.xlu1 %v15330_v45, %s10943_s12 }
 0x6ae   : > { %6068 = vrot.lane.b32.xlu0 %v15418_v47, %s10943_s12 }
 0x6af   : > { %6240 = vrot.lane.b32.xlu1 %v15367_v28, %s10944_s14 }
 0x6b2   : > { %6164 = vrot.lane.b32.xlu0 %v15191_v24, %s10946_s16 }
 0x6b3   : > { %6070 = vrot.lane.b32.xlu1 %v15427_v14, %s10943_s12 }
 0x6b6   : > { %6094 = vrot.lane.b32.xlu0 %v6084_v61, %s10944_s14  ;;  %v6695_v61 = vsel %vm1792_vm6, %v6629_v39, %v15287_v49 }
 0x6b7   : > { %6166 = vrot.lane.b32.xlu1 %v15193_v42, %s10946_s16 }
 0x6ba   : > { %6134 = vrot.lane.b32.xlu0 %v6124_v41, %s10942_s29 }
 0x6bb   : > { %6096 = vrot.lane.b32.xlu1 %v6085_v51, %s10944_s14  ;;  %v15465_v51 = vsel %vm1908_vm1, %v6216_v37, %v6247_v23  ;;  %v6696_v23 = vsel %vm1792_vm6, %v6631_v58, %v15418_v47 }
 0x6bc   : > { %17775 = vst [vmem:[#allocation23_spill] sm:$0xff] %v15465_v51 }
 0x6be   : > { %6054 = vrot.lane.b32.xlu0 %v6044_v12, %s10943_s12 }
 0x6bf   : > { %6136 = vrot.lane.b32.xlu1 %v6125_v57, %s10942_s29  ;;  %v6145_v57 = vpop.permute.xlu0 %6144 }
 0x6c0   : > { %v15481_v12 = vsel %vm1908_vm1, %v6105_v20, %v6145_v57 }
 0x6c1   : > { %17777 = vst [vmem:[#allocation17_spill] sm:$0xff] %v15481_v12 }
 0x6c2   : > { %6781 = vrot.lane.b32.xlu0 %v15415_v43, %s10943_s12 }
 0x6c3   : > { %6056 = vrot.lane.b32.xlu1 %v15377_v15, %s10943_s12  ;;  %v6065_v41 = vpop.permute.xlu0 %6064 }
 0x6c4   : > { %v15489_v37 = vsel %vm1850_vm3, %v6065_v41, %v6105_v20  ;;  %v15501_v57 = vsel %vm1792_vm6, %v15206_v3, %v6065_v41 }
 0x6c5   : > { %17778 = vst [vmem:[#allocation29_spill] sm:$0xff] %v15489_v37  ;;  %17780 = vst [vmem:[#allocation50_spill] sm:$0xff] %v15501_v57 }
 0x6c6   : > { %6779 = vrot.lane.b32.xlu0 %v15454_v0, %s10943_s12 }
 0x6c7   : > { %6795 = vrot.lane.b32.xlu1 %v15424_v44, %s10943_s12 }
 0x6ca   : > { %6777 = vrot.lane.b32.xlu0 %v15462_v13, %s10943_s12 }
 0x6cb   : > { %6793 = vrot.lane.b32.xlu1 %v15465_v51, %s10943_s12 }
 0x6ce   : > { %6803 = vrot.lane.b32.xlu0 %v6695_v61, %s10943_s12  ;;  %v6067_v61 = vpop.permute.xlu1 %6066 }
 0x6cf   : > { %6791 = vrot.lane.b32.xlu1 %v15476_v17, %s10943_s12  ;;  %v15506_v20 = vsel %vm1850_vm3, %v6067_v61, %v6107_v29  ;;  %v15515_v41 = vsel %vm1792_vm6, %v15222_v18, %v6067_v61 }
 0x6d0   : > { %17781 = vst [vmem:[#allocation43_spill] sm:$0xff] %v15506_v20  ;;  %17782 = vst [vmem:[#allocation10_spill] sm:$0xff] %v15515_v41 }
 0x6d2   : > { %6801 = vrot.lane.b32.xlu0 %v15481_v12, %s10943_s12 }
 0x6d3   : > { %6817 = vrot.lane.b32.xlu1 %v6696_v23, %s10943_s12 }
 0x6d4   : > { %v6776_v39 = vpop.permute.xlu0 %6775 }
 0x6d5   : > { %6989 = vmatpush1.msra.mxu0 %v6776_v39 }
 0x6d6   : > { %6799 = vrot.lane.b32.xlu0 %v15489_v37, %s10943_s12  ;;  %6990 = vmatprep.subr.mxu0 %v17432_v54 }
 0x6d7   : > { %6815 = vrot.lane.b32.xlu1 %v15492_v4, %s10943_s12 }
 0x6d9   : > { %v6790_v58 = vpop.permute.xlu1 %6789 }
 0x6da   : > { %7066 = vmatpush1.msra.mxu1 %v6790_v58  ;;  %6797 = vrot.lane.b32.xlu0 %v15501_v57, %s10943_s12 }
 0x6db   : > { %6813 = vrot.lane.b32.xlu1 %v15506_v20, %s10943_s12  ;;  %7067 = vmatprep.subr.mxu1 %v17432_v54 }
 0x6dc   : > { %v6774_v53 = vpop.permute.xlu0 %6773 }
 0x6dd   : > { %6991 = vmatpush1.msra.mxu0 %v6774_v53 }
 0x6de   : > { %6436 = vrot.lane.b32.xlu0 %v15216_v1, %s10946_s16  ;;  %6992 = vmatprep.subr.mxu0 %v17432_v54 }
 0x6df   : > { %6811 = vrot.lane.b32.xlu1 %v15515_v41, %s10943_s12 }
 0x6e0   : > { %v6772_v29 = vpop.permute.xlu0 %6771 }
 0x6e1   : > { %v6788_v23 = vpop.permute.xlu1 %6787  ;;  %6993 = vmatpush1.msra.mxu0 %v6772_v29 }
 0x6e2   : > { %7068 = vmatpush1.msra.mxu1 %v6788_v23  ;;  %6406 = vrot.lane.b32.xlu0 %v15237_v19, %s10942_s29 }
 0x6e3   : > { %6438 = vrot.lane.b32.xlu1 %v15250_v31, %s10946_s16  ;;  %6994 = vmatprep.subr.mxu0 %v17432_v54 }
 0x6e4   : > { %v6770_v39 = vpop.permute.xlu0 %6769  ;;  %7069 = vmatprep.subr.mxu1 %v17432_v54 }
 0x6e5   : > { %v6786_v61 = vpop.permute.xlu1 %6785  ;;  %6995 = vmatpush1.msra.mxu0 %v6770_v39 }
 0x6e6   : > { %7070 = vmatpush1.msra.mxu1 %v6786_v61  ;;  %6375 = vrot.lane.b32.xlu0 %v15199_v22, %s10944_s14 }
 0x6e7   : > { %6408 = vrot.lane.b32.xlu1 %v15277_v7, %s10942_s29  ;;  %7071 = vmatprep.subr.mxu1 %v17432_v54 }
 0x6e8   : > { %v6433_v58 = vpop.permute.xlu0 %6432  ;;  %6996 = vmatprep.subr.mxu0 %v17432_v54 }
 0x6e9   : > { %v6784_v53 = vpop.permute.xlu1 %6783  ;;  %v6584_v29 = vsel %vm1908_vm1, %v6433_v58, %v15213_v62 }
 0x6ea   : > { %7072 = vmatpush1.msra.mxu1 %v6784_v53  ;;  %6282 = vrot.lane.b32.xlu0 %v15243_v63, %s10942_s29 }
 0x6eb   : > { %6997 = vmatpush1.msra.mxu0 %v6584_v29  ;;  %6377 = vrot.lane.b32.xlu1 %v15206_v3, %s10944_s14 }
 0x6ec   : > { %v6403_v23 = vpop.permute.xlu0 %6402  ;;  %6998 = vmatprep.subr.mxu0 %v17432_v54  ;;  %7073 = vmatprep.subr.mxu1 %v17432_v54 }
 0x6ed   : > { %v6435_v39 = vpop.permute.xlu1 %6434  ;;  %v6574_v61 = vsel %vm1850_vm3, %v6403_v23, %v6433_v58  ;;  %v15551_v58 = vrot.slane %v15252_v30, 4 }
 0x6ee   : > { %6221 = vrot.lane.b32.xlu0 %v15398_v9, %s10943_s12  ;;  %6999 = vmatpush1.msra.mxu0 %v6574_v61  ;;  %v6585_v53 = vsel %vm1908_vm1, %v6435_v39, %v15228_v46 }
 0x6ef   : > { %6284 = vrot.lane.b32.xlu1 %v15252_v30, %s10942_s29  ;;  %7074 = vmatpush1.msra.mxu1 %v6585_v53 }
 0x6f0   : > { %v6372_v29 = vpop.permute.xlu0 %6371  ;;  %7000 = vmatprep.subr.mxu0 %v17432_v54  ;;  %7075 = vmatprep.subr.mxu1 %v17432_v54 }
 0x6f1   : > { %v6564_v32 = vsel %vm1792_vm6, %v6372_v29, %v6403_v23  ;;  %v6405_v48 = vpop.permute.xlu1 %6404  ;;  %v15563_v29 = vrot.slane %v15252_v30, 6 }
 0x6f2   : > { %6252 = vrot.lane.b32.xlu0 %v15406_v27, %s10944_s14  ;;  %7001 = vmatpush1.msra.mxu0 %v6564_v32  ;;  %v6575_v61 = vsel %vm1850_vm3, %v6405_v48, %v6435_v39 }
 0x6f3   : > { %6223 = vrot.lane.b32.xlu1 %v15551_v58, %s10943_s12  ;;  %7076 = vmatpush1.msra.mxu1 %v6575_v61 }
 0x6f4   : > { %v15558_v53 = vpop.permute.xlu0 %6278  ;;  %7077 = vmatprep.subr.mxu1 %v17432_v54  ;;  %7002 = vmatprep.subr.mxu0 %v17432_v54 }
 0x6f5   : > { %17783 = vst [vmem:[#allocation15_spill] sm:$0xff] %v15558_v53  ;;  %v6374_v23 = vpop.permute.xlu1 %6373 }
 0x6f6   : > { %v6565_v41 = vsel %vm1792_vm6, %v6374_v23, %v6405_v48  ;;  %6345 = vrot.lane.b32.xlu0 %v15228_v46, %s10943_s12 }
 0x6f7   : > { %6254 = vrot.lane.b32.xlu1 %v15563_v29, %s10944_s14  ;;  %7078 = vmatpush1.msra.mxu1 %v6565_v41 }
 0x6f8   : > { %v15570_v32 = vpop.permute.xlu0 %6217  ;;  %7079 = vmatprep.subr.mxu1 %v17432_v54 }
 0x6f9   : > { %v15573_v39 = vpop.permute.xlu1 %6280 }
 0x6fa   : > { %6302 = vrot.lane.b32.xlu0 %v15225_v10, %s10946_s16 }
 0x6fb   : > { %6347 = vrot.lane.b32.xlu1 %v15259_v6, %s10943_s12 }
 0x6fc   : > { %v15579_v48 = vpop.permute.xlu0 %6248 }
 0x6fd   : > { %v15581_v61 = vpop.permute.xlu1 %6219 }
 0x6fe   : > { %6272 = vrot.lane.b32.xlu0 %v15197_v40, %s10942_s29 }
 0x6ff   : > { %6304 = vrot.lane.b32.xlu1 %v15237_v19, %s10946_s16 }
 0x700   : > { %v6342_v46 = vpop.permute.xlu0 %6341 }
 0x701   : > { %v6554_v41 = vsel %vm1908_vm1, %v15330_v45, %v6342_v46  ;;  %v15589_v23 = vpop.permute.xlu1 %6250 }
 0x702   : > { %6638 = vrot.lane.b32.xlu0 %v15293_v56, %s10945_s15  ;;  %7003 = vmatpush1.msra.mxu0 %v6554_v41 }
 0x703   : > { %6636 = vrot.lane.b32.xlu1 %v15289_v5, %s10945_s15  ;;  %7004 = vmatprep.subr.mxu0 %v17432_v54 }
 0x704   : > { %v6299_v20 = vpop.permute.xlu0 %6298 }
 0x705   : > { %v6344_v4 = vpop.permute.xlu1 %6343  ;;  %v6544_v57 = vsel %vm1850_vm3, %v6299_v20, %v15330_v45 }
 0x706   : > { %v6555_v37 = vsel %vm1908_vm1, %v15204_v21, %v6344_v4  ;;  %6152 = vrot.lane.b32.xlu0 %v15563_v29, %s10942_s29  ;;  %7005 = vmatpush1.msra.mxu0 %v6544_v57  ;;  %v15615_v57 = vrot.slane %v15289_v5, 6 }
 0x707   : > { %6112 = vrot.lane.b32.xlu1 %v15551_v58, %s10944_s14  ;;  %7080 = vmatpush1.msra.mxu1 %v6555_v37 }
 0x708   : > { %v6269_v46 = vpop.permute.xlu0 %6268  ;;  %7006 = vmatprep.subr.mxu0 %v17432_v54  ;;  %7081 = vmatprep.subr.mxu1 %v17432_v54 }
 0x709   : > { %v6534_v41 = vsel %vm1792_vm6, %v6269_v46, %v6299_v20  ;;  %v6301_v12 = vpop.permute.xlu1 %6300  ;;  %v15619_v46 = vrot.slane %v15289_v5, 4 }
 0x70a   : > { %6242 = vrot.lane.b32.xlu0 %v15213_v62, %s10944_s14  ;;  %7007 = vmatpush1.msra.mxu0 %v6534_v41  ;;  %v6545_v4 = vsel %vm1850_vm3, %v6301_v12, %v15204_v21 }
 0x70b   : > { %6211 = vrot.lane.b32.xlu1 %v15204_v21, %s10943_s12  ;;  %7082 = vmatpush1.msra.mxu1 %v6545_v4  ;;  %v15627_v21 = vrot.slane %v15289_v5, 2  ;;  %v15633_v4 = vrot.slane %v15252_v30, 2 }
 0x70c   : > { %v6633_v37 = vpop.permute.xlu0 %6632  ;;  %7083 = vmatprep.subr.mxu1 %v17432_v54  ;;  %7008 = vmatprep.subr.mxu0 %v17432_v54 }
 0x70d   : > { %v6271_v20 = vpop.permute.xlu1 %6270 }
 0x70e   : > { %v6535_v62 = vsel %vm1792_vm6, %v6271_v20, %v6301_v12  ;;  %6614 = vrot.lane.b32.xlu0 %v15615_v57, %s10942_s29 }
 0x70f   : > { %6605 = vrot.lane.b32.xlu1 %v15619_v46, %s10944_s14  ;;  %7084 = vmatpush1.msra.mxu1 %v6535_v62 }
 0x710   : > { %v15629_v41 = vpop.permute.xlu0 %6108  ;;  %7085 = vmatprep.subr.mxu1 %v17432_v54 }
 0x711   : > { %v6635_v26 = vpop.permute.xlu1 %6634 }
 0x712   : > { %6595 = vrot.lane.b32.xlu0 %v15627_v21, %s10943_s12 }
 0x713   : > { %6072 = vrot.lane.b32.xlu1 %v15633_v4, %s10943_s12 }
 0x714   : > { %v6149_v12 = vpop.permute.xlu0 %6148 }
 0x715   : > { %v15639_v20 = vpop.permute.xlu1 %6110 }
 0x716   : > { %6170 = vrot.lane.b32.xlu0 %v15197_v40, %s10946_s16 }
 0x717   : > { %6168 = vrot.lane.b32.xlu1 %v15195_v33, %s10946_s16 }
 0x718   : > { %v6208_v62 = vpop.permute.xlu0 %6207 }
 0x719   : > { %v6151_v36 = vpop.permute.xlu1 %6150  ;;  %v6514_v40 = vsel %vm1850_vm3, %v15377_v15, %v6208_v62 }
 0x71a   : > { %6138 = vrot.lane.b32.xlu0 %v15367_v28, %s10942_s29 }
 0x71b   : > { %6098 = vrot.lane.b32.xlu1 %v15330_v45, %s10944_s14  ;;  %v15660_v45 = vsel %vm1908_vm1, %v15570_v32, %v15579_v48 }
 0x71c   : > { %v6239_v2 = vpop.permute.xlu0 %6238 }
 0x71d   : > { %v6524_v17 = vsel %vm1908_vm1, %v6208_v62, %v6239_v2  ;;  %v6210_v51 = vpop.permute.xlu1 %6209 }
 0x71e   : > { %6809 = vrot.lane.b32.xlu0 %v15558_v53, %s10943_s12  ;;  %7009 = vmatpush1.msra.mxu0 %v6524_v17 }
 0x71f   : > { %6058 = vrot.lane.b32.xlu1 %v15341_v59, %s10943_s12  ;;  %7010 = vmatprep.subr.mxu0 %v17432_v54 }
 0x720   : > { %v6069_v28 = vpop.permute.xlu0 %6068  ;;  %7011 = vmatpush1.msra.mxu0 %v6514_v40  ;;  %v6515_v40 = vsel %vm1850_vm3, %v15341_v59, %v6210_v51 }
 0x721   : > { %v6241_v2 = vpop.permute.xlu1 %6240  ;;  %7012 = vmatprep.subr.mxu0 %v17432_v54 }
 0x722   : > { %v6525_v17 = vsel %vm1908_vm1, %v6210_v51, %v6241_v2  ;;  %6807 = vrot.lane.b32.xlu0 %v15660_v45, %s10943_s12  ;;  %v15676_v2 = vsel %vm1850_vm3, %v15287_v49, %v15570_v32  ;;  %v6697_v51 = vsel %vm1792_vm6, %v6633_v37, %v15427_v14  ;;  %v15704_v37 = vsel %vm1908_vm1, %v15629_v41, %v6149_v12 }
 0x723   : > { %6823 = vrot.lane.b32.xlu1 %v15573_v39, %s10943_s12  ;;  %7086 = vmatpush1.msra.mxu1 %v6525_v17  ;;  %v15681_v17 = vsel %vm1908_vm1, %v15581_v61, %v15589_v23  ;;  %17784 = vst [vmem:[#allocation48_spill] sm:$0xff] %v15704_v37  ;;  %v15715_v12 = vsel %vm1850_vm3, %v6069_v28, %v15629_v41 }
 0x724   : > { %7087 = vmatprep.subr.mxu1 %v17432_v54  ;;  %v6165_v62 = vpop.permute.xlu0 %6164  ;;  %17785 = vst [vmem:[#allocation39_spill] sm:$0xff] %v15715_v12 }
 0x725   : > { %v6504_v48 = vsel %vm1792_vm6, %v6165_v62, %v15377_v15  ;;  %7088 = vmatpush1.msra.mxu1 %v6515_v40  ;;  %v6071_v53 = vpop.permute.xlu1 %6070  ;;  %v15697_v62 = vsel %vm1850_vm3, %v15418_v47, %v15581_v61 }
 0x726   : > { %6805 = vrot.lane.b32.xlu0 %v15676_v2, %s10943_s12  ;;  %7013 = vmatpush1.msra.mxu0 %v6504_v48 }
 0x727   : > { %6821 = vrot.lane.b32.xlu1 %v15681_v17, %s10943_s12  ;;  %7089 = vmatprep.subr.mxu1 %v17432_v54 }
 0x728   : > { %v6095_v15 = vpop.permute.xlu0 %6094  ;;  %7014 = vmatprep.subr.mxu0 %v17432_v54 }
 0x729   : > { %v6167_v32 = vpop.permute.xlu1 %6166 }
 0x72a   : > { %v6505_v23 = vsel %vm1792_vm6, %v6167_v32, %v15341_v59  ;;  %6831 = vrot.lane.b32.xlu0 %v6697_v51, %s10943_s12  ;;  %v6698_v51 = vsel %vm1792_vm6, %v6635_v26, %v15633_v4 }
 0x72b   : > { %6819 = vrot.lane.b32.xlu1 %v15697_v62, %s10943_s12  ;;  %7090 = vmatpush1.msra.mxu1 %v6505_v23 }
 0x72c   : > { %v6135_v40 = vpop.permute.xlu0 %6134  ;;  %7091 = vmatprep.subr.mxu1 %v17432_v54 }
 0x72d   : > { %v6494_v59 = vsel %vm1908_vm1, %v6095_v15, %v6135_v40  ;;  %v6097_v48 = vpop.permute.xlu1 %6096  ;;  %v15720_v40 = vsel %vm1908_vm1, %v15639_v20, %v6151_v36 }
 0x72e   : > { %6829 = vrot.lane.b32.xlu0 %v15704_v37, %s10943_s12  ;;  %7015 = vmatpush1.msra.mxu0 %v6494_v59  ;;  %17786 = vst [vmem:[#allocation32_spill] sm:$0xff] %v15720_v40  ;;  %v15733_v59 = vsel %vm1792_vm6, %v15234_v11, %v6069_v28 }
 0x72f   : > { %6845 = vrot.lane.b32.xlu1 %v6698_v51, %s10943_s12  ;;  %7016 = vmatprep.subr.mxu0 %v17432_v54  ;;  %17787 = vst [vmem:[#allocation37_spill] sm:$0xff] %v15733_v59  ;;  %v15740_v51 = vsel %vm1850_vm3, %v6071_v53, %v15639_v20  ;;  %v15754_v20 = vsel %vm1792_vm6, %v15243_v63, %v6071_v53  ;;  %v15766_v53 = vld [vmem:[#allocation2 + $0x18] sm:$0xff] }
 0x730   : > { %v6055_v61 = vpop.permute.xlu0 %6054  ;;  %17788 = vst [vmem:[#allocation45_spill] sm:$0xff] %v15740_v51  ;;  %17789 = vst [vmem:[#allocation54_spill] sm:$0xff] %v15754_v20 }
 0x731   : > { %v6137_v32 = vpop.permute.xlu1 %6136  ;;  %v6484_v23 = vsel %vm1850_vm3, %v6055_v61, %v6095_v15  ;;  %v6474_v15 = vsel %vm1792_vm6, %v15191_v24, %v6055_v61 }
 0x732   : > { %v6495_v26 = vsel %vm1908_vm1, %v6097_v48, %v6137_v32  ;;  %6827 = vrot.lane.b32.xlu0 %v15715_v12, %s10943_s12  ;;  %7017 = vmatpush1.msra.mxu0 %v6484_v23  ;;  %v15762_v23 = vld [vmem:[#allocation2] sm:$0xff] }
 0x733   : > { %6843 = vrot.lane.b32.xlu1 %v15720_v40, %s10943_s12  ;;  %7092 = vmatpush1.msra.mxu1 %v6495_v26 }
 0x734   : > { %7018 = vmatprep.subr.mxu0 %v17432_v54  ;;  %v6782_v41 = vpop.permute.xlu0 %6781  ;;  %7093 = vmatprep.subr.mxu1 %v17432_v54 }
 0x735   : > { %7019 = vmatpush1.msra.mxu0 %v6474_v15  ;;  %v6057_v36 = vpop.permute.xlu1 %6056 }
 0x736   : > { %7046 = vmatprep.subr.mxu0 %v17432_v54  ;;  %6825 = vrot.lane.b32.xlu0 %v15733_v59, %s10943_s12  ;;  %v6485_v32 = vsel %vm1850_vm3, %v6057_v36, %v6097_v48  ;;  %v6475_v28 = vsel %vm1792_vm6, %v15193_v42, %v6057_v36 }
 0x737   : > { %9185 = vmatpush2.msk.msra.mxu0 %vm1792_vm6, %v6782_v41  ;;  %6841 = vrot.lane.b32.xlu1 %v15740_v51, %s10943_s12 }
 0x738   : > { %7094 = vmatpush1.msra.mxu1 %v6485_v32  ;;  %v6780_v24 = vpop.permute.xlu0 %6779  ;;  %7048 = vmatprep.subr.mxu0 %v17432_v54  ;;  %v15782_v32 = vld [vmem:[#allocation2 + $0x10] sm:$0xff] }
 0x739   : > { %7095 = vmatprep.subr.mxu1 %v17432_v54  ;;  %v6796_v61 = vpop.permute.xlu1 %6795  ;;  %7049 = vmatpush2.msra.mxu0 %v6780_v24 }
 0x73a   : > { %7096 = vmatpush1.msra.mxu1 %v6475_v28  ;;  %6440 = vrot.lane.b32.xlu0 %v15270_v34, %s10946_s16 }
 0x73b   : > { %7123 = vmatprep.subr.mxu1 %v17432_v54  ;;  %6839 = vrot.lane.b32.xlu1 %v15754_v20, %s10943_s12 }
 0x73c   : > { %9188 = vmatpush2.msk.msra.mxu1 %vm1792_vm6, %v6796_v61  ;;  %v6778_v48 = vpop.permute.xlu0 %6777  ;;  %7050 = vmatprep.subr.mxu0 %v17432_v54 }
 0x73d   : > { %7125 = vmatprep.subr.mxu1 %v17432_v54  ;;  %v6794_v42 = vpop.permute.xlu1 %6793  ;;  %7051 = vmatpush2.msra.mxu0 %v6778_v48 }
 0x73e   : > { %7126 = vmatpush2.msra.mxu1 %v6794_v42  ;;  %6410 = vrot.lane.b32.xlu0 %v15287_v49, %s10942_s29 }
 0x73f   : > { %6442 = vrot.lane.b32.xlu1 %v15360_v38, %s10946_s16  ;;  %7127 = vmatprep.subr.mxu1 %v17432_v54 }
 0x740   : > { %v6804_v26 = vpop.permute.xlu0 %6803  ;;  %7142 = vmatprep.subr.mxu0 %v17432_v54  ;;  %7053 = vmatmul.mubr.f32.vlgmr.msra.gmra.mxu0 %v15762_v23 }
 0x741   : > { %v6792_v41 = vpop.permute.xlu1 %6791  ;;  %7143 = vmatpush1.msra.mxu0 %v6804_v26  ;;  %9187 = vmatprep.mubr.msk.f32.mxu0 %vm6979_vm14, %v15766_v53  ;;  %v15811_v26 = vrot.slane %v15293_v56, 4 }
 0x742   : > { %7128 = vmatpush2.msra.mxu1 %v6792_v41  ;;  %6379 = vrot.lane.b32.xlu0 %v15222_v18, %s10944_s14 }
 0x743   : > { %6412 = vrot.lane.b32.xlu1 %v15418_v47, %s10942_s29  ;;  %7144 = vmatprep.subr.mxu0 %v17432_v54 }
 0x744   : > { %v6802_v15 = vpop.permute.xlu0 %6801  ;;  %7219 = vmatprep.subr.mxu1 %v17432_v54  ;;  %7130 = vmatmul.mubr.f32.vlgmr.msra.gmra.mxu1 %v15762_v23 }
 0x745   : > { %v6818_v36 = vpop.permute.xlu1 %6817  ;;  %7145 = vmatpush1.msra.mxu0 %v6802_v15  ;;  %9190 = vmatprep.mubr.msk.f32.mxu1 %vm6979_vm14, %v15766_v53 }
 0x746   : > { %7220 = vmatpush1.msra.mxu1 %v6818_v36  ;;  %6286 = vrot.lane.b32.xlu0 %v15289_v5, %s10942_s29 }
 0x747   : > { %6381 = vrot.lane.b32.xlu1 %v15234_v11, %s10944_s14  ;;  %7146 = vmatprep.subr.mxu0 %v17432_v54 }
 0x748   : > { %v6800_v24 = vpop.permute.xlu0 %6799  ;;  %7221 = vmatprep.subr.mxu1 %v17432_v54  ;;  %7058 = vmatmul.mubr.f32.gmra.mxu0 %v15782_v32 }
 0x749   : > { %v6816_v28 = vpop.permute.xlu1 %6815  ;;  %7147 = vmatpush1.msra.mxu0 %v6800_v24  ;;  %9192 = vmatprep.mubr.msk.f32.mxu0 %vm6979_vm14, %v15443_v50 }
 0x74a   : > { %7222 = vmatpush1.msra.mxu1 %v6816_v28  ;;  %6225 = vrot.lane.b32.xlu0 %v15619_v46, %s10943_s12 }
 0x74b   : > { %6678 = vrot.lane.b32.xlu1 %v15293_v56, %s10942_s29  ;;  %7148 = vmatprep.subr.mxu0 %v17432_v54 }
 0x74c   : > { %v6798_v61 = vpop.permute.xlu0 %6797  ;;  %7223 = vmatprep.subr.mxu1 %v17432_v54  ;;  %7135 = vmatmul.mubr.f32.gmra.mxu1 %v15782_v32 }
 0x74d   : > { %v6814_v48 = vpop.permute.xlu1 %6813  ;;  %7149 = vmatpush1.msra.mxu0 %v6798_v61  ;;  %9195 = vmatprep.mubr.msk.f32.mxu1 %vm6979_vm14, %v15443_v50  ;;  %v15823_v61 = vrot.slane %v15293_v56, 6 }
 0x74e   : > { %7224 = vmatpush1.msra.mxu1 %v6814_v48  ;;  %6349 = vrot.lane.b32.xlu0 %v15280_v8, %s10943_s12 }
 0x74f   : > { %6256 = vrot.lane.b32.xlu1 %v15615_v57, %s10944_s14  ;;  %7225 = vmatprep.subr.mxu1 %v17432_v54 }
 0x750   : > { %v6437_v42 = vpop.permute.xlu0 %6436  ;;  %7150 = vmatprep.subr.mxu0 %v17432_v54 }
 0x751   : > { %v6812_v41 = vpop.permute.xlu1 %6811  ;;  %v6586_v15 = vsel %vm1908_vm1, %v6437_v42, %v15259_v6 }
 0x752   : > { %7226 = vmatpush1.msra.mxu1 %v6812_v41  ;;  %6659 = vrot.lane.b32.xlu0 %v15811_v26, %s10943_s12 }
 0x753   : > { %7151 = vmatpush1.msra.mxu0 %v6586_v15  ;;  %6351 = vrot.lane.b32.xlu1 %v15370_v55, %s10943_s12 }
 0x754   : > { %v6407_v36 = vpop.permute.xlu0 %6406  ;;  %7152 = vmatprep.subr.mxu0 %v17432_v54  ;;  %7227 = vmatprep.subr.mxu1 %v17432_v54 }
 0x755   : > { %v6439_v24 = vpop.permute.xlu1 %6438  ;;  %v6576_v28 = vsel %vm1850_vm3, %v6407_v36, %v6437_v42 }
 0x756   : > { %6306 = vrot.lane.b32.xlu0 %v15277_v7, %s10946_s16  ;;  %7153 = vmatpush1.msra.mxu0 %v6576_v28  ;;  %v6587_v6 = vsel %vm1908_vm1, %v6439_v24, %v15280_v8 }
 0x757   : > { %6669 = vrot.lane.b32.xlu1 %v15823_v61, %s10944_s14  ;;  %7228 = vmatpush1.msra.mxu1 %v6587_v6 }
 0x758   : > { %v6376_v48 = vpop.permute.xlu0 %6375  ;;  %7154 = vmatprep.subr.mxu0 %v17432_v54  ;;  %7229 = vmatprep.subr.mxu1 %v17432_v54 }
 0x759   : > { %v6566_v42 = vsel %vm1792_vm6, %v6376_v48, %v6407_v36  ;;  %v6409_v41 = vpop.permute.xlu1 %6408  ;;  %v17383_v48 = vrot.slane %v15306_v52, 4 }
 0x75a   : > { %7155 = vmatpush1.msra.mxu0 %v6566_v42  ;;  %6640 = vrot.lane.b32.xlu0 %v15306_v52, %s10945_s15  ;;  %v6577_v15 = vsel %vm1850_vm3, %v6409_v41, %v6439_v24 }
 0x75b   : > { %6308 = vrot.lane.b32.xlu1 %v15287_v49, %s10946_s16  ;;  %7230 = vmatpush1.msra.mxu1 %v6577_v15 }
 0x75c   : > { %v15839_v8 = vpop.permute.xlu0 %6282  ;;  %7231 = vmatprep.subr.mxu1 %v17432_v54  ;;  %7156 = vmatprep.subr.mxu0 %v17432_v54 }
 0x75d   : > { %v6378_v28 = vpop.permute.xlu1 %6377 }
 0x75e   : > { %v6567_v36 = vsel %vm1792_vm6, %v6378_v28, %v6409_v41  ;;  %6607 = vrot.lane.b32.xlu0 %v15811_v26, %s10944_s14  ;;  %v15858_v41 = vrot.slane %v15293_v56, 2  ;;  %v15861_v28 = vrot.slane %v15306_v52, 6 }
 0x75f   : > { %6642 = vrot.lane.b32.xlu1 %v15379_v35, %s10945_s15  ;;  %7232 = vmatpush1.msra.mxu1 %v6567_v36 }
 0x760   : > { %v6222_v24 = vpop.permute.xlu0 %6221  ;;  %7233 = vmatprep.subr.mxu1 %v17432_v54 }
 0x761   : > { %v15849_v6 = vpop.permute.xlu1 %6284 }
 0x762   : > { %6616 = vrot.lane.b32.xlu0 %v15823_v61, %s10942_s29 }
 0x763   : > { %6609 = vrot.lane.b32.xlu1 %v17383_v48, %s10944_s14  ;;  %v15870_v48 = vrot.slane %v15306_v52, 2 }
 0x764   : > { %v6253_v42 = vpop.permute.xlu0 %6252 }
 0x765   : > { %v6224_v15 = vpop.permute.xlu1 %6223 }
 0x766   : > { %6597 = vrot.lane.b32.xlu0 %v15858_v41, %s10943_s12 }
 0x767   : > { %6618 = vrot.lane.b32.xlu1 %v15861_v28, %s10942_s29 }
 0x768   : > { %v6346_v36 = vpop.permute.xlu0 %6345 }
 0x769   : > { %v6556_v20 = vsel %vm1908_vm1, %v15216_v1, %v6346_v36  ;;  %v6255_v51 = vpop.permute.xlu1 %6254 }
 0x76a   : > { %7157 = vmatpush1.msra.mxu0 %v6556_v20  ;;  %6172 = vrot.lane.b32.xlu0 %v15199_v22, %s10946_s16  ;;  %v15888_v20 = vsel %vm1908_vm1, %v6222_v24, %v6253_v42  ;;  %v15903_v42 = vsel %vm1850_vm3, %v15427_v14, %v6222_v24  ;;  %v15920_v24 = vsel %vm1850_vm3, %v15633_v4, %v6224_v15 }
 0x76b   : > { %6599 = vrot.lane.b32.xlu1 %v15870_v48, %s10943_s12  ;;  %7158 = vmatprep.subr.mxu0 %v17432_v54 }
 0x76c   : > { %v6303_v40 = vpop.permute.xlu0 %6302 }
 0x76d   : > { %v6348_v59 = vpop.permute.xlu1 %6347  ;;  %v6546_v12 = vsel %vm1850_vm3, %v6303_v40, %v15216_v1 }
 0x76e   : > { %v6557_v36 = vsel %vm1908_vm1, %v15250_v31, %v6348_v59  ;;  %7159 = vmatpush1.msra.mxu0 %v6546_v12  ;;  %6837 = vrot.lane.b32.xlu0 %v15839_v8, %s10943_s12 }
 0x76f   : > { %6174 = vrot.lane.b32.xlu1 %v15206_v3, %s10946_s16  ;;  %7234 = vmatpush1.msra.mxu1 %v6557_v36 }
 0x770   : > { %v6273_v22 = vpop.permute.xlu0 %6272  ;;  %7160 = vmatprep.subr.mxu0 %v17432_v54  ;;  %7235 = vmatprep.subr.mxu1 %v17432_v54 }
 0x771   : > { %v6536_v1 = vsel %vm1792_vm6, %v6273_v22, %v6303_v40  ;;  %v6305_v37 = vpop.permute.xlu1 %6304 }
 0x772   : > { %7161 = vmatpush1.msra.mxu0 %v6536_v1  ;;  %6835 = vrot.lane.b32.xlu0 %v15888_v20, %s10943_s12  ;;  %v6547_v12 = vsel %vm1850_vm3, %v6305_v37, %v15250_v31  ;;  %v6537_v59 = vsel %vm1792_vm6, %v15415_v43, %v6305_v37  ;;  %v15906_v31 = vsel %vm1908_vm1, %v6224_v15, %v6255_v51 }
 0x773   : > { %6851 = vrot.lane.b32.xlu1 %v15849_v6, %s10943_s12  ;;  %7236 = vmatpush1.msra.mxu1 %v6547_v12 }
 0x774   : > { %7237 = vmatprep.subr.mxu1 %v17432_v54  ;;  %v6639_v3 = vpop.permute.xlu0 %6638  ;;  %7162 = vmatprep.subr.mxu0 %v17432_v54 }
 0x775   : > { %7238 = vmatpush1.msra.mxu1 %v6537_v59  ;;  %v6637_v40 = vpop.permute.xlu1 %6636 }
 0x776   : > { %7239 = vmatprep.subr.mxu1 %v17432_v54  ;;  %6833 = vrot.lane.b32.xlu0 %v15903_v42, %s10943_s12  ;;  %v6699_v37 = vsel %vm1792_vm6, %v6637_v40, %v15627_v21 }
 0x777   : > { %6849 = vrot.lane.b32.xlu1 %v15906_v31, %s10943_s12  ;;  %7240 = vmatpush1.msra.mxu1 %v15454_v0 }
 0x778   : > { %7241 = vmatprep.subr.mxu1 %v17432_v54  ;;  %v6153_v43 = vpop.permute.xlu0 %6152 }
 0x779   : > { %7242 = vmatpush1.msra.mxu1 %v15462_v13  ;;  %v6113_v51 = vpop.permute.xlu1 %6112  ;;  %v6700_v13 = vsel %vm1792_vm6, %v6639_v3, %v15858_v41 }
 0x77a   : > { %6859 = vrot.lane.b32.xlu0 %v6699_v37, %s10943_s12  ;;  %7243 = vmatprep.subr.mxu1 %v17432_v54  ;;  %v15927_v22 = vsel %vm1908_vm1, %v6113_v51, %v6153_v43 }
 0x77b   : > { %6847 = vrot.lane.b32.xlu1 %v15920_v24, %s10943_s12 }
 0x77c   : > { %v6243_v0 = vpop.permute.xlu0 %6242 }
 0x77d   : > { %v6212_v36 = vpop.permute.xlu1 %6211 }
 0x77e   : > { %6857 = vrot.lane.b32.xlu0 %v15927_v22, %s10943_s12  ;;  %v6526_v15 = vsel %vm1908_vm1, %v6212_v36, %v6243_v0  ;;  %v6516_v12 = vsel %vm1850_vm3, %v15225_v10, %v6212_v36 }
 0x77f   : > { %6873 = vrot.lane.b32.xlu1 %v6700_v13, %s10943_s12  ;;  %7163 = vmatpush1.msra.mxu0 %v6526_v15 }
 0x780   : > { %7164 = vmatprep.subr.mxu0 %v17432_v54  ;;  %v6615_v1 = vpop.permute.xlu0 %6614 }
 0x781   : > { %7165 = vmatpush1.msra.mxu0 %v6516_v12  ;;  %v6606_v59 = vpop.permute.xlu1 %6605 }
 0x782   : > { %v6690_v40 = vsel %vm1908_vm1, %v6606_v59, %v6615_v1  ;;  %7166 = vmatprep.subr.mxu0 %v17432_v54 }
 0x783   : > { %6871 = vrot.lane.b32.xlu1 %v6690_v40, %s10943_s12 }
 0x784   : > { %v6596_v3 = vpop.permute.xlu0 %6595 }
 0x785   : > { %v6073_v43 = vpop.permute.xlu1 %6072  ;;  %v6687_v37 = vsel %vm1850_vm3, %v6596_v3, %v6606_v59  ;;  %v6684_v12 = vsel %vm1792_vm6, %v15289_v5, %v6596_v3 }
 0x786   : > { %v15943_v0 = vsel %vm1850_vm3, %v6073_v43, %v6113_v51  ;;  %v15956_v51 = vsel %vm1792_vm6, %v15252_v30, %v6073_v43 }
 0x787   : > { %6869 = vrot.lane.b32.xlu1 %v6687_v37, %s10943_s12  ;;  %6855 = vrot.lane.b32.xlu0 %v15943_v0, %s10943_s12 }
 0x788   : > { %v6171_v36 = vpop.permute.xlu0 %6170 }
 0x789   : > { %v6507_v13 = vsel %vm1792_vm6, %v6171_v36, %v15237_v19  ;;  %v6169_v15 = vpop.permute.xlu1 %6168 }
 0x78a   : > { %v6506_v1 = vsel %vm1792_vm6, %v6169_v15, %v15225_v10  ;;  %7244 = vmatpush1.msra.mxu1 %v6507_v13 }
 0x78b   : > { %6867 = vrot.lane.b32.xlu1 %v6684_v12, %s10943_s12  ;;  %6853 = vrot.lane.b32.xlu0 %v15956_v51, %s10943_s12  ;;  %v6658_v12 = vrot.slane %v15379_v35, 4 }
 0x78c   : > { %7167 = vmatpush1.msra.mxu0 %v6506_v1  ;;  %7245 = vmatprep.subr.mxu1 %v17432_v54  ;;  %v6139_v19 = vpop.permute.xlu0 %6138 }
 0x78d   : > { %7246 = vmatpush1.msra.mxu1 %v15302_v16  ;;  %v6099_v10 = vpop.permute.xlu1 %6098  ;;  %7168 = vmatprep.subr.mxu0 %v17432_v54 }
 0x78e   : > { %7247 = vmatprep.subr.mxu1 %v17432_v54  ;;  %v6496_v59 = vsel %vm1908_vm1, %v6099_v10, %v6139_v19  ;;  %v17790_v19 = vrot.slane %v15306_v52, 4 }
 0x78f   : > { %7248 = vmatpush1.msra.mxu1 %v15309_v60  ;;  %6446 = vrot.lane.b32.xlu1 %v15551_v58, %s10946_s16 }
 0x790   : > { %6444 = vrot.lane.b32.xlu0 %v15398_v9, %s10946_s16  ;;  %7169 = vmatpush1.msra.mxu0 %v6496_v59  ;;  %v6810_v40 = vpop.permute.xlu0 %6809 }
 0x791   : > { %7249 = vmatprep.subr.mxu1 %v17432_v54  ;;  %v6059_v16 = vpop.permute.xlu1 %6058  ;;  %7170 = vmatprep.subr.mxu0 %v17432_v54 }
 0x792   : > { %7250 = vmatpush1.msra.mxu1 %v15320_v25  ;;  %v6486_v3 = vsel %vm1850_vm3, %v6059_v16, %v6099_v10  ;;  %v6476_v43 = vsel %vm1792_vm6, %v15195_v33, %v6059_v16 }
 0x793   : > { %6416 = vrot.lane.b32.xlu1 %v15633_v4, %s10942_s29  ;;  %7171 = vmatpush1.msra.mxu0 %v6486_v3 }
 0x794   : > { %6414 = vrot.lane.b32.xlu0 %v15427_v14, %s10942_s29  ;;  %7172 = vmatprep.subr.mxu0 %v17432_v54  ;;  %v6808_v60 = vpop.permute.xlu0 %6807 }
 0x795   : > { %7173 = vmatpush1.msra.mxu0 %v6476_v43  ;;  %7277 = vmatprep.subr.mxu1 %v17432_v54  ;;  %v6824_v37 = vpop.permute.xlu1 %6823 }
 0x796   : > { %7200 = vmatprep.subr.mxu0 %v17432_v54  ;;  %9194 = vmatpush2.msk.msra.mxu1 %vm1792_vm6, %v6824_v37 }
 0x797   : > { %6385 = vrot.lane.b32.xlu1 %v15252_v30, %s10944_s14  ;;  %9191 = vmatpush2.msk.msra.mxu0 %vm1792_vm6, %v6810_v40  ;;  %v6668_v40 = vrot.slane %v15379_v35, 6 }
 0x798   : > { %6383 = vrot.lane.b32.xlu0 %v15243_v63, %s10944_s14  ;;  %7202 = vmatprep.subr.mxu0 %v17432_v54  ;;  %v6806_v25 = vpop.permute.xlu0 %6805 }
 0x799   : > { %7203 = vmatpush2.msra.mxu0 %v6808_v60  ;;  %7279 = vmatprep.subr.mxu1 %v17432_v54  ;;  %v6822_v33 = vpop.permute.xlu1 %6821 }
 0x79a   : > { %7204 = vmatprep.subr.mxu0 %v17432_v54  ;;  %7280 = vmatpush2.msra.mxu1 %v6822_v33 }
 0x79b   : > { %6682 = vrot.lane.b32.xlu1 %v15379_v35, %s10942_s29  ;;  %7205 = vmatpush2.msra.mxu0 %v6806_v25  ;;  %v16036_v25 = vld [vmem:[#allocation2 + $0x8] sm:$0xff] }
 0x79c   : > { %6680 = vrot.lane.b32.xlu0 %v15306_v52, %s10942_s29  ;;  %v6832_v36 = vpop.permute.xlu0 %6831  ;;  %7281 = vmatprep.subr.mxu1 %v17432_v54 }
 0x79d   : > { %7296 = vmatprep.subr.mxu0 %v17432_v54  ;;  %v6820_v13 = vpop.permute.xlu1 %6819  ;;  %7207 = vmatmul.mubr.f32.vlgmr.msra.gmra.mxu0 %v15762_v23 }
 0x79e   : > { %7282 = vmatpush2.msra.mxu1 %v6820_v13  ;;  %7297 = vmatpush1.msra.mxu0 %v6832_v36 }
 0x79f   : > { %6355 = vrot.lane.b32.xlu1 %v15563_v29, %s10943_s12  ;;  %7298 = vmatprep.subr.mxu0 %v17432_v54 }
 0x7a0   : > { %6353 = vrot.lane.b32.xlu0 %v15406_v27, %s10943_s12  ;;  %v6830_v15 = vpop.permute.xlu0 %6829  ;;  %7373 = vmatprep.subr.mxu1 %v17432_v54 }
 0x7a1   : > { %v6846_v1 = vpop.permute.xlu1 %6845  ;;  %7284 = vmatmul.mubr.f32.vlgmr.msra.gmra.mxu1 %v15762_v23  ;;  %7299 = vmatpush1.msra.mxu0 %v6830_v15 }
 0x7a2   : > { %7374 = vmatpush1.msra.mxu1 %v6846_v1  ;;  %7300 = vmatprep.subr.mxu0 %v17432_v54 }
 0x7a3   : > { %6663 = vrot.lane.b32.xlu1 %v6658_v12, %s10943_s12  ;;  %7375 = vmatprep.subr.mxu1 %v17432_v54 }
 0x7a4   : > { %6661 = vrot.lane.b32.xlu0 %v17790_v19, %s10943_s12  ;;  %v6828_v10 = vpop.permute.xlu0 %6827  ;;  %9193 = vmatprep.mubr.msk.f32.mxu0 %vm6979_vm14, %v15766_v53 }
 0x7a5   : > { %v6844_v59 = vpop.permute.xlu1 %6843  ;;  %7301 = vmatpush1.msra.mxu0 %v6828_v10  ;;  %9196 = vmatprep.mubr.msk.f32.mxu1 %vm6979_vm14, %v15766_v53 }
 0x7a6   : > { %7376 = vmatpush1.msra.mxu1 %v6844_v59  ;;  %7302 = vmatprep.subr.mxu0 %v17432_v54 }
 0x7a7   : > { %6673 = vrot.lane.b32.xlu1 %v6668_v40, %s10944_s14  ;;  %7377 = vmatprep.subr.mxu1 %v17432_v54 }
 0x7a8   : > { %6671 = vrot.lane.b32.xlu0 %v15861_v28, %s10944_s14  ;;  %v6826_v16 = vpop.permute.xlu0 %6825  ;;  %7212 = vmatmul.mubr.f32.gmra.mxu0 %v15782_v32 }
 0x7a9   : > { %v6842_v3 = vpop.permute.xlu1 %6841  ;;  %7303 = vmatpush1.msra.mxu0 %v6826_v16  ;;  %7289 = vmatmul.mubr.f32.gmra.mxu1 %v15782_v32 }
 0x7aa   : > { %7378 = vmatpush1.msra.mxu1 %v6842_v3  ;;  %7304 = vmatprep.subr.mxu0 %v17432_v54 }
 0x7ab   : > { %6312 = vrot.lane.b32.xlu1 %v15427_v14, %s10946_s16  ;;  %7379 = vmatprep.subr.mxu1 %v17432_v54 }
 0x7ac   : > { %6310 = vrot.lane.b32.xlu0 %v15418_v47, %s10946_s16  ;;  %v6441_v60 = vpop.permute.xlu0 %6440  ;;  %9198 = vmatprep.mubr.msk.f32.mxu0 %vm6979_vm14, %v15443_v50 }
 0x7ad   : > { %v6840_v43 = vpop.permute.xlu1 %6839  ;;  %v6588_v37 = vsel %vm1908_vm1, %v6441_v60, %v15370_v55  ;;  %9201 = vmatprep.mubr.msk.f32.mxu1 %vm6979_vm14, %v16036_v25 }
 0x7ae   : > { %7380 = vmatpush1.msra.mxu1 %v6840_v43  ;;  %7305 = vmatpush1.msra.mxu0 %v6588_v37 }
 0x7af   : > { %6178 = vrot.lane.b32.xlu1 %v15234_v11, %s10946_s16  ;;  %7306 = vmatprep.subr.mxu0 %v17432_v54 }
 0x7b0   : > { %6176 = vrot.lane.b32.xlu0 %v15222_v18, %s10946_s16  ;;  %v6411_v50 = vpop.permute.xlu0 %6410  ;;  %7381 = vmatprep.subr.mxu1 %v17432_v54 }
 0x7b1   : > { %v6443_v33 = vpop.permute.xlu1 %6442  ;;  %v6578_v55 = vsel %vm1850_vm3, %v6411_v50, %v6441_v60 }
 0x7b2   : > { %7307 = vmatpush1.msra.mxu0 %v6578_v55  ;;  %v6589_v36 = vsel %vm1908_vm1, %v6443_v33, %v15406_v27 }
 0x7b3   : > { %7382 = vmatpush1.msra.mxu1 %v6589_v36  ;;  %7308 = vmatprep.subr.mxu0 %v17432_v54 }
 0x7b4   : > { %v6380_v13 = vpop.permute.xlu0 %6379  ;;  %7383 = vmatprep.subr.mxu1 %v17432_v54 }
 0x7b5   : > { %v6568_v11 = vsel %vm1792_vm6, %v6380_v13, %v6411_v50  ;;  %v6413_v15 = vpop.permute.xlu1 %6412 }
 0x7b6   : > { %7309 = vmatpush1.msra.mxu0 %v6568_v11  ;;  %v6579_v18 = vsel %vm1850_vm3, %v6413_v15, %v6443_v33 }
 0x7b7   : > { %7384 = vmatpush1.msra.mxu1 %v6579_v18  ;;  %7310 = vmatprep.subr.mxu0 %v17432_v54 }
 0x7b8   : > { %v16054_v1 = vpop.permute.xlu0 %6286  ;;  %7385 = vmatprep.subr.mxu1 %v17432_v54 }
 0x7b9   : > { %v6382_v27 = vpop.permute.xlu1 %6381  ;;  %6865 = vrot.lane.b32.xlu0 %v16054_v1, %s10943_s12 }
 0x7ba   : > { %v6569_v12 = vsel %vm1792_vm6, %v6382_v27, %v6413_v15 }
 0x7bb   : > { %7386 = vmatpush1.msra.mxu1 %v6569_v12  ;;  %v17791_v12 = vld [vmem:[#allocation23_spill] sm:$0xff] }
 0x7bc   : > { %v6226_v19 = vpop.permute.xlu0 %6225  ;;  %7387 = vmatprep.subr.mxu1 %v17432_v54 }
 0x7bd   : > { %v6679_v10 = vpop.permute.xlu1 %6678  ;;  %v16074_v50 = vsel %vm1850_vm3, %v15627_v21, %v6226_v19 }
 0x7be   : > { %6879 = vrot.lane.b32.xlu1 %v6679_v10, %s10943_s12  ;;  %v17792_v10 = vld [vmem:[#allocation15_spill] sm:$0xff] }
 0x7c0   : > { %v6350_v59 = vpop.permute.xlu0 %6349 }
 0x7c1   : > { %v6558_v40 = vsel %vm1908_vm1, %v15270_v34, %v6350_v59  ;;  %v6257_v16 = vpop.permute.xlu1 %6256 }
 0x7c2   : > { %v16065_v3 = vsel %vm1908_vm1, %v6226_v19, %v6257_v16  ;;  %7311 = vmatpush1.msra.mxu0 %v6558_v40  ;;  %v6654_v40 = vrot.slane %v15379_v35, 2  ;;  %v17793_v16 = vld [vmem:[#allocation21_spill] sm:$0xff] }
 0x7c3   : > { %6863 = vrot.lane.b32.xlu0 %v16065_v3, %s10943_s12  ;;  %7312 = vmatprep.subr.mxu0 %v17432_v54 }
 0x7c4   : > { %v6660_v60 = vpop.permute.xlu0 %6659 }
 0x7c5   : > { %v6352_v43 = vpop.permute.xlu1 %6351 }
 0x7c6   : > { %v6559_v37 = vsel %vm1908_vm1, %v15360_v38, %v6352_v43 }
 0x7c7   : > { %6861 = vrot.lane.b32.xlu0 %v16074_v50, %s10943_s12  ;;  %7388 = vmatpush1.msra.mxu1 %v6559_v37 }
 0x7c8   : > { %v6307_v33 = vpop.permute.xlu0 %6306  ;;  %7389 = vmatprep.subr.mxu1 %v17432_v54 }
 0x7c9   : > { %v6670_v55 = vpop.permute.xlu1 %6669  ;;  %v6548_v36 = vsel %vm1850_vm3, %v6307_v33, %v15270_v34  ;;  %v6538_v11 = vsel %vm1792_vm6, %v15424_v44, %v6307_v33  ;;  %v6703_v34 = vsel %vm1850_vm3, %v15858_v41, %v6660_v60 }
 0x7ca   : > { %v6706_v13 = vsel %vm1908_vm1, %v6660_v60, %v6670_v55  ;;  %7313 = vmatpush1.msra.mxu0 %v6548_v36 }
 0x7cb   : > { %6877 = vrot.lane.b32.xlu1 %v6706_v13, %s10943_s12  ;;  %7314 = vmatprep.subr.mxu0 %v17432_v54 }
 0x7cc   : > { %v6641_v15 = vpop.permute.xlu0 %6640  ;;  %7315 = vmatpush1.msra.mxu0 %v6538_v11 }
 0x7cd   : > { %v6701_v18 = vsel %vm1792_vm6, %v6641_v15, %v15870_v48  ;;  %v6309_v27 = vpop.permute.xlu1 %6308  ;;  %7316 = vmatprep.subr.mxu0 %v17432_v54 }
 0x7ce   : > { %7317 = vmatpush1.msra.mxu0 %v17791_v12  ;;  %6887 = vrot.lane.b32.xlu0 %v6701_v18, %s10943_s12  ;;  %v6549_v19 = vsel %vm1850_vm3, %v6309_v27, %v15360_v38  ;;  %v6539_v59 = vsel %vm1792_vm6, %v17792_v10, %v6309_v27 }
 0x7cf   : > { %6875 = vrot.lane.b32.xlu1 %v6703_v34, %s10943_s12  ;;  %7390 = vmatpush1.msra.mxu1 %v6549_v19  ;;  %v17794_v34 = vld [vmem:[#allocation26_spill] sm:$0xff] }
 0x7d0   : > { %7318 = vmatprep.subr.mxu0 %v17432_v54  ;;  %7391 = vmatprep.subr.mxu1 %v17432_v54  ;;  %v6608_v44 = vpop.permute.xlu0 %6607 }
 0x7d1   : > { %7319 = vmatpush1.msra.mxu0 %v17793_v16  ;;  %7392 = vmatpush1.msra.mxu1 %v6539_v59  ;;  %v6643_v60 = vpop.permute.xlu1 %6642  ;;  %v17796_v16 = vld [vmem:[#allocation44_spill] sm:$0xff] }
 0x7d2   : > { %v6702_v38 = vsel %vm1792_vm6, %v6643_v60, %v6654_v40  ;;  %7393 = vmatprep.subr.mxu1 %v17432_v54  ;;  %7320 = vmatprep.subr.mxu0 %v17432_v54  ;;  %v17797_v60 = vld [vmem:[#allocation17_spill] sm:$0xff] }
 0x7d3   : > { %7394 = vmatpush1.msra.mxu1 %v15660_v45  ;;  %6901 = vrot.lane.b32.xlu1 %v6702_v38, %s10943_s12 }
 0x7d4   : > { %7395 = vmatprep.subr.mxu1 %v17432_v54  ;;  %v6617_v43 = vpop.permute.xlu0 %6616 }
 0x7d5   : > { %v6691_v37 = vsel %vm1908_vm1, %v6608_v44, %v6617_v43  ;;  %7396 = vmatpush1.msra.mxu1 %v15676_v2  ;;  %v6610_v33 = vpop.permute.xlu1 %6609 }
 0x7d6   : > { %6885 = vrot.lane.b32.xlu0 %v6691_v37, %s10943_s12  ;;  %7397 = vmatprep.subr.mxu1 %v17432_v54  ;;  %v17799_v37 = vld [vmem:[#allocation50_spill] sm:$0xff] }
 0x7d8   : > { %v6598_v55 = vpop.permute.xlu0 %6597 }
 0x7d9   : > { %v6619_v36 = vpop.permute.xlu1 %6618  ;;  %v6688_v13 = vsel %vm1850_vm3, %v6598_v55, %v6608_v44  ;;  %v6685_v18 = vsel %vm1792_vm6, %v15293_v56, %v6598_v55  ;;  %v17795_v44 = vld [vmem:[#allocation22_spill] sm:$0xff] }
 0x7da   : > { %v6692_v45 = vsel %vm1908_vm1, %v6610_v33, %v6619_v36  ;;  %6883 = vrot.lane.b32.xlu0 %v6688_v13, %s10943_s12 }
 0x7db   : > { %6899 = vrot.lane.b32.xlu1 %v6692_v45, %s10943_s12 }
 0x7dc   : > { %v6173_v11 = vpop.permute.xlu0 %6172 }
 0x7dd   : > { %v6508_v15 = vsel %vm1792_vm6, %v6173_v11, %v15277_v7  ;;  %v6600_v2 = vpop.permute.xlu1 %6599 }
 0x7de   : > { %7321 = vmatpush1.msra.mxu0 %v6508_v15  ;;  %6881 = vrot.lane.b32.xlu0 %v6685_v18, %s10943_s12  ;;  %v6689_v27 = vsel %vm1850_vm3, %v6600_v2, %v6610_v33  ;;  %v6686_v10 = vsel %vm1792_vm6, %v15306_v52, %v6600_v2  ;;  %v17798_v52 = vld [vmem:[#allocation29_spill] sm:$0xff] }
 0x7df   : > { %6897 = vrot.lane.b32.xlu1 %v6689_v27, %s10943_s12  ;;  %7322 = vmatprep.subr.mxu0 %v17432_v54 }
 0x7e0   : > { %v6838_v12 = vpop.permute.xlu0 %6837  ;;  %7323 = vmatpush1.msra.mxu0 %v17794_v34 }
 0x7e1   : > { %v6175_v19 = vpop.permute.xlu1 %6174  ;;  %7324 = vmatprep.subr.mxu0 %v17432_v54 }
 0x7e2   : > { %v6509_v7 = vsel %vm1792_vm6, %v6175_v19, %v15287_v49  ;;  %7325 = vmatpush1.msra.mxu0 %v17795_v44  ;;  %6448 = vrot.lane.b32.xlu0 %v15619_v46, %s10946_s16 }
 0x7e3   : > { %6895 = vrot.lane.b32.xlu1 %v6686_v10, %s10943_s12  ;;  %7398 = vmatpush1.msra.mxu1 %v6509_v7 }
 0x7e4   : > { %7326 = vmatprep.subr.mxu0 %v17432_v54  ;;  %7399 = vmatprep.subr.mxu1 %v17432_v54  ;;  %v6836_v59 = vpop.permute.xlu0 %6835 }
 0x7e5   : > { %7327 = vmatpush1.msra.mxu0 %v17796_v16  ;;  %7400 = vmatpush1.msra.mxu1 %v17797_v60  ;;  %v6852_v49 = vpop.permute.xlu1 %6851 }
 0x7e6   : > { %7354 = vmatprep.subr.mxu0 %v17432_v54  ;;  %7401 = vmatprep.subr.mxu1 %v17432_v54 }
 0x7e7   : > { %9197 = vmatpush2.msk.msra.mxu0 %vm1792_vm6, %v6838_v12  ;;  %6418 = vrot.lane.b32.xlu0 %v15627_v21, %s10942_s29 }
 0x7e8   : > { %6450 = vrot.lane.b32.xlu1 %v15811_v26, %s10946_s16  ;;  %7402 = vmatpush1.msra.mxu1 %v17798_v52  ;;  %v6834_v38 = vpop.permute.xlu0 %6833 }
 0x7e9   : > { %7356 = vmatprep.subr.mxu0 %v17432_v54  ;;  %7403 = vmatprep.subr.mxu1 %v17432_v54  ;;  %v6850_v43 = vpop.permute.xlu1 %6849 }
 0x7ea   : > { %7357 = vmatpush2.msra.mxu0 %v6836_v59  ;;  %7404 = vmatpush1.msra.mxu1 %v17799_v37 }
 0x7eb   : > { %7358 = vmatprep.subr.mxu0 %v17432_v54  ;;  %7431 = vmatprep.subr.mxu1 %v17432_v54 }
 0x7ec   : > { %7359 = vmatpush2.msra.mxu0 %v6834_v38  ;;  %6387 = vrot.lane.b32.xlu0 %v15289_v5, %s10944_s14  ;;  %v6860_v33 = vpop.permute.xlu0 %6859 }
 0x7ed   : > { %6420 = vrot.lane.b32.xlu1 %v15858_v41, %s10942_s29  ;;  %9200 = vmatpush2.msk.msra.mxu1 %vm1792_vm6, %v6852_v49  ;;  %v6848_v55 = vpop.permute.xlu1 %6847 }
 0x7ee   : > { %7361 = vmatmul.mubr.f32.vlgmr.msra.gmra.mxu0 %v15762_v23  ;;  %7433 = vmatprep.subr.mxu1 %v17432_v54 }
 0x7ef   : > { %7434 = vmatpush2.msra.mxu1 %v6850_v43  ;;  %7450 = vmatprep.subr.mxu0 %v17432_v54 }
 0x7f0   : > { %7435 = vmatprep.subr.mxu1 %v17432_v54  ;;  %7451 = vmatpush1.msra.mxu0 %v6860_v33  ;;  %v6858_v5 = vpop.permute.xlu0 %6857 }
 0x7f1   : > { %6357 = vrot.lane.b32.xlu0 %v15615_v57, %s10943_s12  ;;  %6389 = vrot.lane.b32.xlu1 %v15293_v56, %s10944_s14  ;;  %v6874_v41 = vpop.permute.xlu1 %6873 }
 0x7f2   : > { %7436 = vmatpush2.msra.mxu1 %v6848_v55  ;;  %7452 = vmatprep.subr.mxu0 %v17432_v54 }
 0x7f3   : > { %7438 = vmatmul.mubr.f32.vlgmr.msra.gmra.mxu1 %v15762_v23  ;;  %7527 = vmatprep.subr.mxu1 %v17432_v54 }
 0x7f4   : > { %7453 = vmatpush1.msra.mxu0 %v6858_v5  ;;  %7528 = vmatpush1.msra.mxu1 %v6874_v41 }
 0x7f5   : > { %6314 = vrot.lane.b32.xlu0 %v15633_v4, %s10946_s16  ;;  %6359 = vrot.lane.b32.xlu1 %v15823_v61, %s10943_s12  ;;  %v6872_v36 = vpop.permute.xlu1 %6871 }
 0x7f6   : > { %7529 = vmatprep.subr.mxu1 %v17432_v54  ;;  %7454 = vmatprep.subr.mxu0 %v17432_v54 }
 0x7f7   : > { %7530 = vmatpush1.msra.mxu1 %v6872_v36  ;;  %9199 = vmatprep.mubr.msk.f32.mxu0 %vm6979_vm14, %v15766_v53 }
 0x7f8   : > { %7531 = vmatprep.subr.mxu1 %v17432_v54  ;;  %7366 = vmatmul.mubr.f32.gmra.mxu0 %v15782_v32 }
 0x7f9   : > { %6180 = vrot.lane.b32.xlu0 %v15243_v63, %s10946_s16  ;;  %6316 = vrot.lane.b32.xlu1 %v15627_v21, %s10946_s16  ;;  %v6856_v56 = vpop.permute.xlu0 %6855  ;;  %v6870_v23 = vpop.permute.xlu1 %6869 }
 0x7fa   : > { %7455 = vmatpush1.msra.mxu0 %v6856_v56  ;;  %7532 = vmatpush1.msra.mxu1 %v6870_v23 }
 0x7fb   : > { %7456 = vmatprep.subr.mxu0 %v17432_v54  ;;  %7533 = vmatprep.subr.mxu1 %v17432_v54 }
 0x7fc   : > { %9204 = vmatprep.mubr.msk.f32.mxu0 %vm6979_vm14, %v16036_v25  ;;  %9202 = vmatprep.mubr.msk.f32.mxu1 %vm6979_vm14, %v15766_v53 }
 0x7fd   : > { %6182 = vrot.lane.b32.xlu1 %v15252_v30, %s10946_s16  ;;  %v6854_v63 = vpop.permute.xlu0 %6853  ;;  %v6868_v13 = vpop.permute.xlu1 %6867  ;;  %7443 = vmatmul.mubr.f32.gmra.mxu1 %v15782_v32 }
 0x7fe   : > { %7457 = vmatpush1.msra.mxu0 %v6854_v63  ;;  %7534 = vmatpush1.msra.mxu1 %v6868_v13 }
 0x7ff   : > { %7458 = vmatprep.subr.mxu0 %v17432_v54  ;;  %7535 = vmatprep.subr.mxu1 %v17432_v54 }
 0x800   : > { %9207 = vmatprep.mubr.msk.f32.mxu1 %vm6979_vm14, %v16036_v25  ;;  %v16217_v16 = vpop.f32.mrf.mxu0 }
 0x801   : > { %v6447_v45 = vpop.permute.xlu1 %6446 }
 0x802   : > { %v6445_v11 = vpop.permute.xlu0 %6444  ;;  %v6591_v53 = vsel %vm1908_vm1, %v6447_v45, %v15615_v57  ;;  %v7056_v38 = vpop.f32.mrf.mxu0 }
 0x803   : > { %v6590_v30 = vsel %vm1908_vm1, %v6445_v11, %v15563_v29  ;;  %7536 = vmatpush1.msra.mxu1 %v6591_v53 }
 0x804   : > { %7459 = vmatpush1.msra.mxu0 %v6590_v30  ;;  %7537 = vmatprep.subr.mxu1 %v17432_v54  ;;  %v16219_v60 = vpop.f32.mrf.mxu1 }
 0x805   : > { %v6417_v32 = vpop.permute.xlu1 %6416  ;;  %7460 = vmatprep.subr.mxu0 %v17432_v54 }
 0x806   : > { %v6415_v15 = vpop.permute.xlu0 %6414  ;;  %v6581_v2 = vsel %vm1850_vm3, %v6417_v32, %v6447_v45  ;;  %v7133_v43 = vpop.f32.mrf.mxu1 }
 0x807   : > { %v6580_v18 = vsel %vm1850_vm3, %v6415_v15, %v6445_v11  ;;  %7538 = vmatpush1.msra.mxu1 %v6581_v2 }
 0x808   : > { %7461 = vmatpush1.msra.mxu0 %v6580_v18  ;;  %7539 = vmatprep.subr.mxu1 %v17432_v54  ;;  %v16222_v37 = vpop.f32.mrf.mxu0 }
 0x809   : > { %v6386_v57 = vpop.permute.xlu1 %6385  ;;  %7462 = vmatprep.subr.mxu0 %v17432_v54 }
 0x80a   : > { %v6384_v29 = vpop.permute.xlu0 %6383  ;;  %v6571_v27 = vsel %vm1792_vm6, %v6386_v57, %v6417_v32  ;;  %v7061_v36 = vpop.f32.mrf.mxu0  ;;  %v17805_v32 = vld [vmem:[#allocation37_spill] sm:$0xff] }
 0x80b   : > { %v6570_v12 = vsel %vm1792_vm6, %v6384_v29, %v6415_v15  ;;  %7540 = vmatpush1.msra.mxu1 %v6571_v27  ;;  %v16286_v29 = vld [vmem:[#allocation2] sm:$0xff]  ;;  %v16290_v27 = vld [vmem:[#allocation2 + $0x18] sm:$0xff] }
 0x80c   : > { %7463 = vmatpush1.msra.mxu0 %v6570_v12  ;;  %7541 = vmatprep.subr.mxu1 %v17432_v54  ;;  %v16224_v55 = vpop.f32.mrf.mxu1 }
 0x80d   : > { %v6683_v34 = vpop.permute.xlu1 %6682  ;;  %7464 = vmatprep.subr.mxu0 %v17432_v54 }
 0x80e   : > { %v6681_v19 = vpop.permute.xlu0 %6680  ;;  %6907 = vrot.lane.b32.xlu1 %v6683_v34, %s10943_s12  ;;  %v7138_v23 = vpop.f32.mrf.mxu1  ;;  %v16294_v34 = vld [vmem:[#allocation2 + $0x10] sm:$0xff] }
 0x80f   : > { %6893 = vrot.lane.b32.xlu0 %v6681_v19, %s10943_s12 }
 0x811   : > { %v6356_v7 = vpop.permute.xlu1 %6355 }
 0x812   : > { %v6354_v44 = vpop.permute.xlu0 %6353  ;;  %v6561_v10 = vsel %vm1908_vm1, %v15551_v58, %v6356_v7 }
 0x813   : > { %v6560_v59 = vsel %vm1908_vm1, %v15398_v9, %v6354_v44  ;;  %7542 = vmatpush1.msra.mxu1 %v6561_v10 }
 0x814   : > { %7465 = vmatpush1.msra.mxu0 %v6560_v59  ;;  %7543 = vmatprep.subr.mxu1 %v17432_v54 }
 0x815   : > { %v6664_v49 = vpop.permute.xlu1 %6663  ;;  %7466 = vmatprep.subr.mxu0 %v17432_v54 }
 0x816   : > { %v6662_v52 = vpop.permute.xlu0 %6661  ;;  %v6705_v13 = vsel %vm1850_vm3, %v6654_v40, %v6664_v49 }
 0x817   : > { %v6704_v53 = vsel %vm1850_vm3, %v15870_v48, %v6662_v52 }
 0x819   : > { %v6674_v33 = vpop.permute.xlu1 %6673 }
 0x81a   : > { %v6672_v5 = vpop.permute.xlu0 %6671  ;;  %v6708_v41 = vsel %vm1908_vm1, %v6664_v49, %v6674_v33 }
 0x81b   : > { %v6707_v56 = vsel %vm1908_vm1, %v6662_v52, %v6672_v5  ;;  %6905 = vrot.lane.b32.xlu1 %v6708_v41, %s10943_s12 }
 0x81c   : > { %6891 = vrot.lane.b32.xlu0 %v6707_v56, %s10943_s12 }
 0x81d   : > { %v6313_v63 = vpop.permute.xlu1 %6312 }
 0x81e   : > { %v6311_v45 = vpop.permute.xlu0 %6310  ;;  %v6551_v11 = vsel %vm1850_vm3, %v6313_v63, %v15551_v58  ;;  %v6541_v40 = vsel %vm1792_vm6, %v15839_v8, %v6313_v63  ;;  %v6033_v8 = vld [vmem:[%s17071_s4 + $0x8] sm:$0xff] }
 0x81f   : > { %v6550_v30 = vsel %vm1850_vm3, %v6311_v45, %v15398_v9  ;;  %6903 = vrot.lane.b32.xlu1 %v6705_v13, %s10943_s12  ;;  %7544 = vmatpush1.msra.mxu1 %v6551_v11  ;;  %v6540_v35 = vsel %vm1792_vm6, %v15573_v39, %v6311_v45  ;;  %v6032_v9 = vld [vmem:[%s17071_s4] sm:$0xff] }
 0x820   : > { %7467 = vmatpush1.msra.mxu0 %v6550_v30  ;;  %6889 = vrot.lane.b32.xlu0 %v6704_v53, %s10943_s12 }
 0x821   : > { %7468 = vmatprep.subr.mxu0 %v17432_v54  ;;  %7545 = vmatprep.subr.mxu1 %v17432_v54  ;;  %v6179_v39 = vpop.permute.xlu1 %6178 }
 0x822   : > { %7469 = vmatpush1.msra.mxu0 %v6540_v35  ;;  %7546 = vmatpush1.msra.mxu1 %v6541_v40  ;;  %v6177_v58 = vpop.permute.xlu0 %6176 }
 0x823   : > { %7470 = vmatprep.subr.mxu0 %v17432_v54  ;;  %7547 = vmatprep.subr.mxu1 %v17432_v54  ;;  %v6510_v48 = vsel %vm1792_vm6, %v6177_v58, %v15418_v47  ;;  %v17802_v47 = vld [vmem:[#allocation43_spill] sm:$0xff] }
 0x824   : > { %7471 = vmatpush1.msra.mxu0 %v15681_v17  ;;  %6971 = vperm.xlu0 %10656, %v6032_v9   ;;  %v6511_v17 = vsel %vm1792_vm6, %v6179_v39, %v15427_v14  ;;  %v17803_v14 = vld [vmem:[#allocation39_spill] sm:$0xff] }
 0x825   : > { %7548 = vmatpush1.msra.mxu1 %v15888_v20  ;;  %7472 = vmatprep.subr.mxu0 %v17432_v54  ;;  %v17801_v20 = vld [vmem:[#allocation48_spill] sm:$0xff] }
 0x826   : > { %7549 = vmatprep.subr.mxu1 %v17432_v54  ;;  %7473 = vmatpush1.msra.mxu0 %v15697_v62  ;;  %v17800_v62 = vld [vmem:[#allocation49_spill] sm:$0xff] }
 0x827   : > { %7550 = vmatpush1.msra.mxu1 %v15903_v42  ;;  %7474 = vmatprep.subr.mxu0 %v17432_v54  ;;  %v17804_v42 = vld [vmem:[#allocation10_spill] sm:$0xff] }
 0x828   : > { %7551 = vmatprep.subr.mxu1 %v17432_v54  ;;  %7475 = vmatpush1.msra.mxu0 %v6510_v48 }
 0x829   : > { %6976 = vperm.xlu1 %10657, %v6033_v8   ;;  %7552 = vmatpush1.msra.mxu1 %v6511_v17 }
 0x82a   : > { %7476 = vmatprep.subr.mxu0 %v17432_v54  ;;  %7553 = vmatprep.subr.mxu1 %v17432_v54 }
 0x82b   : > { %7477 = vmatpush1.msra.mxu0 %v17800_v62  ;;  %7554 = vmatpush1.msra.mxu1 %v17801_v20  ;;  %v6866_v15 = vpop.permute.xlu0 %6865 }
 0x82c   : > { %7478 = vmatprep.subr.mxu0 %v17432_v54  ;;  %7555 = vmatprep.subr.mxu1 %v17432_v54 }
 0x82d   : > { %7479 = vmatpush1.msra.mxu0 %v17802_v47  ;;  %7556 = vmatpush1.msra.mxu1 %v17803_v14 }
 0x82e   : > { %7480 = vmatprep.subr.mxu0 %v17432_v54  ;;  %7557 = vmatprep.subr.mxu1 %v17432_v54 }
 0x82f   : > { %7481 = vmatpush1.msra.mxu0 %v17804_v42  ;;  %7558 = vmatpush1.msra.mxu1 %v17805_v32 }
 0x830   : > { %7508 = vmatprep.subr.mxu0 %v17432_v54  ;;  %7585 = vmatprep.subr.mxu1 %v17432_v54  ;;  %v6880_v2 = vpop.permute.xlu1 %6879 }
 0x831   : > { %9203 = vmatpush2.msk.msra.mxu0 %vm1792_vm6, %v6866_v15  ;;  %9206 = vmatpush2.msk.msra.mxu1 %vm1792_vm6, %v6880_v2 }
 0x832   : > { %7510 = vmatprep.subr.mxu0 %v17432_v54  ;;  %7587 = vmatprep.subr.mxu1 %v17432_v54 }
 0x835   : > { %v6864_v18 = vpop.permute.xlu0 %6863 }
 0x836   : > { %7511 = vmatpush2.msra.mxu0 %v6864_v18  ;;  %v16398_v18 = vsel %vm14690_vm11, 1.0, %v17432_v54 }
 0x837   : > { %7512 = vmatprep.subr.mxu0 %v17432_v54 }
 0x839   : > { %v6862_v57 = vpop.permute.xlu0 %6861 }
 0x83a   : > { %7513 = vmatpush2.msra.mxu0 %v6862_v57 }
 0x83b   : > { %7515 = vmatmul.mubr.f32.vlgmr.msra.gmra.mxu0 %v16286_v29  ;;  %7604 = vmatprep.subr.mxu0 %v17432_v54 }
 0x83c   : > { %9205 = vmatprep.mubr.msk.f32.mxu0 %vm6979_vm14, %v16290_v27 }
 0x83d   : > { %v6878_v12 = vpop.permute.xlu1 %6877 }
 0x83e   : > { %7588 = vmatpush2.msra.mxu1 %v6878_v12  ;;  %v17810_v12 = vmov 1.0  }
 0x83f   : > { %7520 = vmatmul.mubr.f32.gmra.mxu0 %v16294_v34  ;;  %7589 = vmatprep.subr.mxu1 %v17432_v54 }
 0x840   : > { %v6888_v19 = vpop.permute.xlu0 %6887  ;;  %9210 = vmatprep.mubr.msk.f32.mxu0 %vm6979_vm14, %v16036_v25 }
 0x841   : > { %v6876_v7 = vpop.permute.xlu1 %6875  ;;  %7605 = vmatpush1.msra.mxu0 %v6888_v19 }
 0x842   : > { %7590 = vmatpush2.msra.mxu1 %v6876_v7  ;;  %7606 = vmatprep.subr.mxu0 %v17432_v54 }
 0x843   : > { %7592 = vmatmul.mubr.f32.vlgmr.msra.gmra.mxu1 %v16286_v29  ;;  %7681 = vmatprep.subr.mxu1 %v17432_v54 }
 0x844   : > { %9208 = vmatprep.mubr.msk.f32.mxu1 %vm6979_vm14, %v16290_v27 }
 0x845   : > { %v6902_v44 = vpop.permute.xlu1 %6901 }
 0x846   : > { %7682 = vmatpush1.msra.mxu1 %v6902_v44 }
 0x847   : > { %7597 = vmatmul.mubr.f32.gmra.mxu1 %v16294_v34  ;;  %7683 = vmatprep.subr.mxu1 %v17432_v54 }
 0x848   : > { %v6886_v10 = vpop.permute.xlu0 %6885  ;;  %9213 = vmatprep.mubr.msk.f32.mxu1 %vm6979_vm14, %v16036_v25 }
 0x849   : > { %7607 = vmatpush1.msra.mxu0 %v6886_v10 }
 0x84a   : > { %7608 = vmatprep.subr.mxu0 %v17432_v54 }
 0x84c   : > { %v6884_v59 = vpop.permute.xlu0 %6883 }
 0x84d   : > { %v6900_v49 = vpop.permute.xlu1 %6899  ;;  %7609 = vmatpush1.msra.mxu0 %v6884_v59 }
 0x84e   : > { %7684 = vmatpush1.msra.mxu1 %v6900_v49  ;;  %7610 = vmatprep.subr.mxu0 %v17432_v54 }
 0x84f   : > { %7685 = vmatprep.subr.mxu1 %v17432_v54 }
 0x850   : > { %v6882_v52 = vpop.permute.xlu0 %6881 }
 0x851   : > { %v6898_v38 = vpop.permute.xlu1 %6897  ;;  %7611 = vmatpush1.msra.mxu0 %v6882_v52 }
 0x852   : > { %7686 = vmatpush1.msra.mxu1 %v6898_v38  ;;  %7612 = vmatprep.subr.mxu0 %v17432_v54 }
 0x853   : > { %7687 = vmatprep.subr.mxu1 %v17432_v54 }
 0x854   : > { %v6449_v25 = vpop.permute.xlu0 %6448 }
 0x855   : > { %v6592_v43 = vsel %vm1908_vm1, %v6449_v25, %v15823_v61  ;;  %v6896_v33 = vpop.permute.xlu1 %6895 }
 0x856   : > { %7688 = vmatpush1.msra.mxu1 %v6896_v33  ;;  %7613 = vmatpush1.msra.mxu0 %v6592_v43 }
 0x857   : > { %7614 = vmatprep.subr.mxu0 %v17432_v54  ;;  %7689 = vmatprep.subr.mxu1 %v17432_v54 }
 0x859   : > { %v6419_v5 = vpop.permute.xlu0 %6418 }
 0x85a   : > { %v6582_v41 = vsel %vm1850_vm3, %v6419_v5, %v6449_v25  ;;  %v6451_v36 = vpop.permute.xlu1 %6450 }
 0x85b   : > { %v6593_v56 = vsel %vm1908_vm1, %v6451_v36, %v15861_v28  ;;  %7615 = vmatpush1.msra.mxu0 %v6582_v41 }
 0x85c   : > { %7690 = vmatpush1.msra.mxu1 %v6593_v56  ;;  %7616 = vmatprep.subr.mxu0 %v17432_v54 }
 0x85d   : > { %7691 = vmatprep.subr.mxu1 %v17432_v54  ;;  %v16323_v61 = vpop.f32.mrf.mxu0 }
 0x85e   : > { %v6388_v23 = vpop.permute.xlu0 %6387 }
 0x85f   : > { %v6572_v63 = vsel %vm1792_vm6, %v6388_v23, %v6419_v5  ;;  %v6421_v13 = vpop.permute.xlu1 %6420  ;;  %v7210_v45 = vpop.f32.mrf.mxu0 }
 0x860   : > { %v6583_v11 = vsel %vm1850_vm3, %v6421_v13, %v6451_v36  ;;  %7617 = vmatpush1.msra.mxu0 %v6572_v63 }
 0x861   : > { %7692 = vmatpush1.msra.mxu1 %v6583_v11  ;;  %7618 = vmatprep.subr.mxu0 %v17432_v54  ;;  %v16328_v28 = vpop.f32.mrf.mxu1 }
 0x862   : > { %7693 = vmatprep.subr.mxu1 %v17432_v54 }
 0x863   : > { %v6358_v53 = vpop.permute.xlu0 %6357  ;;  %v6390_v30 = vpop.permute.xlu1 %6389 }
 0x864   : > { %v6562_v35 = vsel %vm1908_vm1, %v15619_v46, %v6358_v53  ;;  %v6573_v40 = vsel %vm1792_vm6, %v6390_v30, %v6421_v13  ;;  %v7287_v9 = vpop.f32.mrf.mxu1 }
 0x865   : > { %7619 = vmatpush1.msra.mxu0 %v6562_v35  ;;  %7694 = vmatpush1.msra.mxu1 %v6573_v40 }
 0x866   : > { %7620 = vmatprep.subr.mxu0 %v17432_v54  ;;  %7695 = vmatprep.subr.mxu1 %v17432_v54 }
 0x867   : > { %v6315_v58 = vpop.permute.xlu0 %6314  ;;  %v6360_v39 = vpop.permute.xlu1 %6359 }
 0x868   : > { %v6552_v8 = vsel %vm1850_vm3, %v6315_v58, %v15619_v46  ;;  %v6563_v48 = vsel %vm1908_vm1, %v15811_v26, %v6360_v39  ;;  %v16340_v17 = vpop.f32.mrf.mxu0  ;;  %v6542_v62 = vsel %vm1792_vm6, %v15849_v6, %v6315_v58  ;;  %vm8791_vm1 = vcmask 982016  }
 0x869   : > { %7621 = vmatpush1.msra.mxu0 %v6552_v8  ;;  %7696 = vmatpush1.msra.mxu1 %v6563_v48  ;;  %v16346_v20 = vpop.f32.mrf.mxu1 }
 0x86a   : > { %7622 = vmatprep.subr.mxu0 %v17432_v54  ;;  %7697 = vmatprep.subr.mxu1 %v17432_v54  ;;  %v7215_v47 = vpop.f32.mrf.mxu0 }
 0x86b   : > { %7623 = vmatpush1.msra.mxu0 %v6542_v62  ;;  %v6317_v14 = vpop.permute.xlu1 %6316  ;;  %v7292_v42 = vpop.f32.mrf.mxu1 }
 0x86c   : > { %v6553_v46 = vsel %vm1850_vm3, %v6317_v14, %v15811_v26  ;;  %7624 = vmatprep.subr.mxu0 %v17432_v54  ;;  %v6181_v32 = vpop.permute.xlu0 %6180  ;;  %v6543_v6 = vsel %vm1792_vm6, %v16054_v1, %v6317_v14  ;;  %v17808_v1 = vld [vmem:[#allocation54_spill] sm:$0xff] }
 0x86d   : > { %7625 = vmatpush1.msra.mxu0 %v15906_v31  ;;  %7698 = vmatpush1.msra.mxu1 %v6553_v46  ;;  %v6512_v26 = vsel %vm1792_vm6, %v6181_v32, %v15633_v4  ;;  %v17806_v31 = vld [vmem:[#allocation32_spill] sm:$0xff]  ;;  %v17807_v4 = vld [vmem:[#allocation45_spill] sm:$0xff] }
 0x86e   : > { %7626 = vmatprep.subr.mxu0 %v17432_v54  ;;  %7699 = vmatprep.subr.mxu1 %v17432_v54 }
 0x86f   : > { %7627 = vmatpush1.msra.mxu0 %v15920_v24  ;;  %7700 = vmatpush1.msra.mxu1 %v6543_v6  ;;  %v6183_v15 = vpop.permute.xlu1 %6182 }
 0x870   : > { %7628 = vmatprep.subr.mxu0 %v17432_v54  ;;  %7701 = vmatprep.subr.mxu1 %v17432_v54  ;;  %v6513_v24 = vsel %vm1792_vm6, %v6183_v15, %v15627_v21 }
 0x871   : > { %7629 = vmatpush1.msra.mxu0 %v6512_v26  ;;  %7702 = vmatpush1.msra.mxu1 %v16065_v3 }
 0x872   : > { %7630 = vmatprep.subr.mxu0 %v17432_v54  ;;  %7703 = vmatprep.subr.mxu1 %v17432_v54 }
 0x873   : > { %7631 = vmatpush1.msra.mxu0 %v17806_v31  ;;  %7704 = vmatpush1.msra.mxu1 %v16074_v50 }
 0x874   : > { %7632 = vmatprep.subr.mxu0 %v17432_v54  ;;  %7705 = vmatprep.subr.mxu1 %v17432_v54 }
 0x875   : > { %7633 = vmatpush1.msra.mxu0 %v17807_v4  ;;  %7706 = vmatpush1.msra.mxu1 %v6513_v24 }
 0x876   : > { %7634 = vmatprep.subr.mxu0 %v17432_v54  ;;  %7707 = vmatprep.subr.mxu1 %v17432_v54 }
 0x877   : > { %7635 = vmatpush1.msra.mxu0 %v17808_v1  ;;  %7708 = vmatpush1.msra.mxu1 %v15927_v22 }
 0x878   : > { %7709 = vmatprep.subr.mxu1 %v17432_v54  ;;  %7662 = vmatprep.subr.mxu0 %v17432_v54 }
 0x879   : > { %7710 = vmatpush1.msra.mxu1 %v15943_v0 }
 0x87a   : > { %7711 = vmatprep.subr.mxu1 %v17432_v54 }
 0x87b   : > { %7712 = vmatpush1.msra.mxu1 %v15956_v51 }
 0x87c   : > { %7739 = vmatprep.subr.mxu1 %v17432_v54 }
 0x880   : > { %v6908_v21 = vpop.permute.xlu1 %6907 }
 0x881   : > { %v6894_v3 = vpop.permute.xlu0 %6893  ;;  %9212 = vmatpush2.msk.msra.mxu1 %vm1792_vm6, %v6908_v21 }
 0x882   : > { %9209 = vmatpush2.msk.msra.mxu0 %vm1792_vm6, %v6894_v3  ;;  %7741 = vmatprep.subr.mxu1 %v17432_v54 }
 0x883   : > { %7664 = vmatprep.subr.mxu0 %v17432_v54 }
 0x88d   : > { %v6906_v22 = vpop.permute.xlu1 %6905 }
 0x88e   : > { %v6892_v50 = vpop.permute.xlu0 %6891  ;;  %7742 = vmatpush2.msra.mxu1 %v6906_v22 }
 0x88f   : > { %7665 = vmatpush2.msra.mxu0 %v6892_v50  ;;  %7743 = vmatprep.subr.mxu1 %v17432_v54 }
 0x890   : > { %7666 = vmatprep.subr.mxu0 %v17432_v54 }
 0x891   : > { %v6904_v0 = vpop.permute.xlu1 %6903 }
 0x892   : > { %v6890_v51 = vpop.permute.xlu0 %6889  ;;  %7744 = vmatpush2.msra.mxu1 %v6904_v0 }
 0x893   : > { %7667 = vmatpush2.msra.mxu0 %v6890_v51  ;;  %7746 = vmatmul.mubr.f32.vlgmr.msra.gmra.mxu1 %v16286_v29 }
 0x894   : > { %7669 = vmatmul.mubr.f32.vlgmr.msra.gmra.mxu0 %v16286_v29  ;;  %9214 = vmatprep.mubr.msk.f32.mxu1 %vm6979_vm14, %v16290_v27 }
 0x895   : > { %9211 = vmatprep.mubr.msk.f32.mxu0 %vm6979_vm14, %v16290_v27  ;;  %10509 = vmatprep.subr.msk.mxu1 %vm1821_vm2, %v16398_v18 }
 0x896   : > { %10502 = vmatprep.subr.msk.mxu0 %vm1821_vm2, %v16398_v18  ;;  %10510 = vmatpush3.msk.msra.mxu1 %vm1821_vm2, %v16398_v18 }
 0x897   : > { %7751 = vmatmul.mubr.f32.gmra.mxu1 %v16294_v34  ;;  %10511 = vmatprep.subr.msk.mxu1 %vm14709_vm12, %v17810_v12 }
 0x898   : > { %7674 = vmatmul.mubr.f32.gmra.mxu0 %v16294_v34  ;;  %10512 = vmatpush3.msk.msra.mxu1 %vm14709_vm12, %v17810_v12 }
 0x899   : > { %10503 = vmatpush3.msk.msra.mxu0 %vm1821_vm2, %v16398_v18  ;;  %10523 = vmatprep.subr.msk.mxu1 %vm1821_vm2, %v16398_v18 }
 0x89a   : > { %10504 = vmatprep.subr.msk.mxu0 %vm14709_vm12, %v17810_v12 }
 0x89b   : > { %10505 = vmatpush3.msk.msra.mxu0 %vm14709_vm12, %v17810_v12 }
 0x89c   : > { %10516 = vmatprep.subr.msk.mxu0 %vm1821_vm2, %v16398_v18 }
 0x89f   : > { %v16400_v57 = vpop.permute.xlu0 %6971 }
 0x8a0   : > { %v16408_v29 = vadd.f32 %v16323_v61, %v16400_v57  ;;  %v16412_v27 = vadd.f32 %v16328_v28, %v16400_v57  ;;  %v16473_v30 = vadd.f32 %v16217_v16, %v16400_v57  ;;  %v16503_v47 = vadd.f32 %v16219_v60, %v16400_v57 }
 0x8a2   : > { %v7760_v19 = vmax.f32 %v16408_v29, 0.0  ;;  %v7762_v7 = vmax.f32 %v16412_v27, 0.0  ;;  %v7756_v39 = vmax.f32 %v16473_v30, 0.0  ;;  %v7758_v42 = vmax.f32 %v16503_v47, 0.0 }
 0x8a4   : > { %v16434_v44 = vpop.permute.xlu1 %6976  ;;  %7804 = vrot.lane.b32.xlu0 %v7760_v19, %s10943_s12  ;;  %7808 = vrot.lane.b32.xlu1 %v7762_v7, %s10943_s12 }
 0x8a5   : > { %v16444_v10 = vadd.f32 %v16346_v20, %v16434_v44  ;;  %v16448_v59 = vadd.f32 %v16340_v17, %v16434_v44  ;;  %v16485_v8 = vadd.f32 %v16222_v37, %v16434_v44  ;;  %v16518_v32 = vadd.f32 %v16224_v55, %v16434_v44 }
 0x8a7   : > { %v7763_v49 = vmax.f32 %v16444_v10, 0.0  ;;  %v7761_v52 = vmax.f32 %v16448_v59, 0.0  ;;  %v7757_v37 = vmax.f32 %v16485_v8, 0.0  ;;  %v7759_v26 = vmax.f32 %v16518_v32, 0.0 }
 0x8a9   : > { %7810 = vrot.lane.b32.xlu1 %v7763_v49, %s10943_s12  ;;  %7806 = vrot.lane.b32.xlu0 %v7761_v52, %s10943_s12 }
 0x8ae   : > { %v7362_v38 = vpop.f32.mrf.mxu0 }
 0x8af   : > { %v16497_v62 = vadd.f32 %v7362_v38, %v16400_v57 }
 0x8b0   : > { %v7364_v25 = vpop.f32.mrf.mxu0 }
 0x8b1   : > { %v7764_v46 = vmax.f32 %v16497_v62, 0.0 }
 0x8b3   : > { %v7439_v43 = vpop.f32.mrf.mxu1 }
 0x8b4   : > { %v16528_v6 = vadd.f32 %v7439_v43, %v16400_v57 }
 0x8b5   : > { %v7441_v33 = vpop.f32.mrf.mxu1 }
 0x8b6   : > { %v7766_v55 = vmax.f32 %v16528_v6, 0.0 }
 0x8b8   : > { %v7367_v5 = vpop.f32.mrf.mxu0 }
 0x8b9   : > { %v16506_v14 = vadd.f32 %v7367_v5, %v16434_v44 }
 0x8ba   : > { %v7369_v41 = vpop.f32.mrf.mxu0 }
 0x8bb   : > { %v7765_v60 = vmax.f32 %v16506_v14, 0.0 }
 0x8bd   : > { %v7444_v36 = vpop.f32.mrf.mxu1 }
 0x8be   : > { %v16532_v15 = vadd.f32 %v7444_v36, %v16434_v44 }
 0x8bf   : > { %v7446_v56 = vpop.f32.mrf.mxu1 }
 0x8c0   : > { %v7767_v21 = vmax.f32 %v16532_v15, 0.0 }
 0x8fb   : > { %v7516_v61 = vpop.f32.mrf.mxu0 }
 0x8fc   : > { %v16461_v23 = vadd.f32 %v7516_v61, %v16400_v57 }
 0x8fd   : > { %v7518_v63 = vpop.f32.mrf.mxu0 }
 0x8fe   : > { %v7768_v13 = vmax.f32 %v16461_v23, 0.0 }
 0x8ff   : > { %v7521_v45 = vpop.f32.mrf.mxu0 }
 0x900   : > { %v16465_v11 = vadd.f32 %v7521_v45, %v16434_v44  ;;  %7820 = vrot.lane.b32.xlu0 %v7768_v13, %s10943_s12 }
 0x901   : > { %v7523_v28 = vpop.f32.mrf.mxu0 }
 0x902   : > { %v7769_v53 = vmax.f32 %v16465_v11, 0.0 }
 0x903   : > { %v7593_v35 = vpop.f32.mrf.mxu1 }
 0x904   : > { %v16476_v40 = vadd.f32 %v7593_v35, %v16400_v57  ;;  %7822 = vrot.lane.b32.xlu0 %v7769_v53, %s10943_s12 }
 0x905   : > { %v7595_v9 = vpop.f32.mrf.mxu1 }
 0x906   : > { %v7770_v58 = vmax.f32 %v16476_v40, 0.0 }
 0x907   : > { %v7598_v48 = vpop.f32.mrf.mxu1 }
 0x908   : > { %v16488_v16 = vadd.f32 %v7598_v48, %v16434_v44  ;;  %7824 = vrot.lane.b32.xlu1 %v7770_v58, %s10943_s12  ;;  %7796 = vrot.lane.b32.xlu0 %v7756_v39, %s10943_s12 }
 0x909   : > { %v7600_v17 = vpop.f32.mrf.mxu1 }
 0x90a   : > { %v7771_v20 = vmax.f32 %v16488_v16, 0.0 }
 0x90c   : > { %7826 = vrot.lane.b32.xlu1 %v7771_v20, %s10943_s12  ;;  %7798 = vrot.lane.b32.xlu0 %v7757_v37, %s10943_s12 }
 0x910   : > { %7800 = vrot.lane.b32.xlu1 %v7758_v42, %s10943_s12  ;;  %7812 = vrot.lane.b32.xlu0 %v7764_v46, %s10943_s12 }
 0x914   : > { %7802 = vrot.lane.b32.xlu1 %v7759_v26, %s10943_s12  ;;  %7814 = vrot.lane.b32.xlu0 %v7765_v60, %s10943_s12 }
 0x916   : > { %v7805_v31 = vpop.permute.xlu0 %7804  ;;  %v7809_v24 = vpop.permute.xlu1 %7808 }
 0x917   : > { %v7860_v4 = vmax.f32 %v7760_v19, %v7805_v31  ;;  %v7862_v1 = vmax.f32 %v7762_v7, %v7809_v24 }
 0x918   : > { %7816 = vrot.lane.b32.xlu1 %v7766_v55, %s10943_s12 }
 0x919   : > { %v7878_v3 = vmax.f32 %v7860_v4, %v7862_v1 }
 0x91b   : > { %v7807_v22 = vpop.permute.xlu0 %7806  ;;  %v7811_v50 = vpop.permute.xlu1 %7810  ;;  %10513 = vmatprep.mubr.msk.f32.mxu1 %vm7886_vm15, %v7878_v3 }
 0x91c   : > { %v7861_v0 = vmax.f32 %v7761_v52, %v7807_v22  ;;  %v7863_v51 = vmax.f32 %v7763_v49, %v7811_v50  ;;  %7818 = vrot.lane.b32.xlu1 %v7767_v21, %s10943_s12 }
 0x91e   : > { %v7879_v2 = vmax.f32 %v7861_v0, %v7863_v51 }
 0x920   : > { %10514 = vmatmul.mubr.msk.f32.vlgmr.msra.gmra.mxu1 %vm7886_vm15, %v7879_v2 }
 0x921   : > { %10524 = vmatpush3.msk.msra.mxu1 %vm1821_vm2, %v16398_v18 }
 0x922   : > { %10525 = vmatprep.subr.msk.mxu1 %vm14709_vm12, %v17810_v12 }
 0x923   : > { %10526 = vmatpush3.msk.msra.mxu1 %vm14709_vm12, %v17810_v12 }
 0x953   : > { %v7747_v29 = vpop.f32.mrf.mxu1 }
 0x954   : > { %v7670_v27 = vpop.f32.mrf.mxu0  ;;  %v16567_v19 = vadd.f32 %v7747_v29, %v16400_v57 }
 0x955   : > { %v16570_v7 = vadd.f32 %v7670_v27, %v16400_v57  ;;  %v7749_v10 = vpop.f32.mrf.mxu1 }
 0x956   : > { %v7774_v59 = vmax.f32 %v16567_v19, 0.0  ;;  %v7672_v49 = vpop.f32.mrf.mxu0 }
 0x957   : > { %v7772_v52 = vmax.f32 %v16570_v7, 0.0  ;;  %v7752_v38 = vpop.f32.mrf.mxu1 }
 0x958   : > { %v7675_v25 = vpop.f32.mrf.mxu0  ;;  %v7753_v43 = vadd.f32 %v7752_v38, %v16434_v44  ;;  %7832 = vrot.lane.b32.xlu1 %v7774_v59, %s10943_s12 }
 0x959   : > { %v7676_v33 = vadd.f32 %v7675_v25, %v16434_v44  ;;  %7828 = vrot.lane.b32.xlu0 %v7772_v52, %s10943_s12  ;;  %v7754_v5 = vpop.f32.mrf.mxu1 }
 0x95a   : > { %v7775_v41 = vmax.f32 %v7753_v43, 0.0  ;;  %v7677_v57 = vpop.f32.mrf.mxu0 }
 0x95b   : > { %v7773_v36 = vmax.f32 %v7676_v33, 0.0 }
 0x95c   : > { %7834 = vrot.lane.b32.xlu1 %v7775_v41, %s10943_s12 }
 0x95d   : > { %7830 = vrot.lane.b32.xlu0 %v7773_v36, %s10943_s12 }
 0x972   : > { %v7821_v56 = vpop.permute.xlu0 %7820 }
 0x973   : > { %v7868_v28 = vmax.f32 %v7768_v13, %v7821_v56 }
 0x976   : > { %v7823_v61 = vpop.permute.xlu0 %7822 }
 0x977   : > { %v7869_v48 = vmax.f32 %v7769_v53, %v7823_v61 }
 0x97a   : > { %v7797_v63 = vpop.permute.xlu0 %7796  ;;  %v7825_v45 = vpop.permute.xlu1 %7824 }
 0x97b   : > { %v7870_v44 = vmax.f32 %v7770_v58, %v7825_v45  ;;  %v7856_v23 = vmax.f32 %v7756_v39, %v7797_v63 }
 0x97d   : > { %v7882_v35 = vmax.f32 %v7868_v28, %v7870_v44 }
 0x97e   : > { %v7827_v9 = vpop.permute.xlu1 %7826  ;;  %v7799_v31 = vpop.permute.xlu0 %7798 }
 0x97f   : > { %v7871_v17 = vmax.f32 %v7771_v20, %v7827_v9  ;;  %10527 = vmatprep.mubr.msk.f32.mxu1 %vm7886_vm15, %v7882_v35  ;;  %v7857_v53 = vmax.f32 %v7757_v37, %v7799_v31 }
 0x981   : > { %v7883_v24 = vmax.f32 %v7869_v48, %v7871_v17 }
 0x982   : > { %v7801_v4 = vpop.permute.xlu1 %7800  ;;  %v7813_v58 = vpop.permute.xlu0 %7812 }
 0x983   : > { %v7858_v13 = vmax.f32 %v7758_v42, %v7801_v4  ;;  %10528 = vmatmul.mubr.msk.f32.vlgmr.msra.gmra.mxu1 %vm7886_vm15, %v7883_v24  ;;  %v7864_v30 = vmax.f32 %v7764_v46, %v7813_v58 }
 0x985   : > { %v7876_v40 = vmax.f32 %v7856_v23, %v7858_v13 }
 0x986   : > { %v7803_v11 = vpop.permute.xlu1 %7802  ;;  %v7815_v47 = vpop.permute.xlu0 %7814 }
 0x987   : > { %v7859_v16 = vmax.f32 %v7759_v26, %v7803_v11  ;;  %10506 = vmatprep.mubr.msk.f32.mxu0 %vm7886_vm15, %v7876_v40  ;;  %v7865_v62 = vmax.f32 %v7765_v60, %v7815_v47 }
 0x989   : > { %v7877_v20 = vmax.f32 %v7857_v53, %v7859_v16 }
 0x98a   : > { %v7817_v1 = vpop.permute.xlu1 %7816 }
 0x98b   : > { %v7866_v39 = vmax.f32 %v7766_v55, %v7817_v1  ;;  %10507 = vmatmul.mubr.msk.f32.vlgmr.msra.gmra.mxu0 %vm7886_vm15, %v7877_v20 }
 0x98c   : > { %10517 = vmatpush3.msk.msra.mxu0 %vm1821_vm2, %v16398_v18 }
 0x98d   : > { %v7880_v8 = vmax.f32 %v7864_v30, %v7866_v39  ;;  %10518 = vmatprep.subr.msk.mxu0 %vm14709_vm12, %v17810_v12 }
 0x98e   : > { %v7819_v37 = vpop.permute.xlu1 %7818  ;;  %10519 = vmatpush3.msk.msra.mxu0 %vm14709_vm12, %v17810_v12 }
 0x98f   : > { %v7867_v46 = vmax.f32 %v7767_v21, %v7819_v37  ;;  %10520 = vmatprep.mubr.msk.f32.mxu0 %vm7886_vm15, %v7880_v8  ;;  %10530 = vmatprep.subr.msk.mxu0 %vm1821_vm2, %v16398_v18 }
 0x991   : > { %v7881_v42 = vmax.f32 %v7865_v62, %v7867_v46 }
 0x993   : > { %10521 = vmatmul.mubr.msk.f32.vlgmr.msra.gmra.mxu0 %vm7886_vm15, %v7881_v42 }
 0x994   : > { %10531 = vmatpush3.msk.msra.mxu0 %vm1821_vm2, %v16398_v18 }
 0x995   : > { %10532 = vmatprep.subr.msk.mxu0 %vm14709_vm12, %v17810_v12 }
 0x996   : > { %10533 = vmatpush3.msk.msra.mxu0 %vm14709_vm12, %v17810_v12 }
 0x997   : > { %8704 = vmatprep.subr.mxu0 %v17432_v54 }
 0x9ca   : > { %v7833_v14 = vpop.permute.xlu1 %7832 }
 0x9cb   : > { %v7829_v32 = vpop.permute.xlu0 %7828  ;;  %v7874_v60 = vmax.f32 %v7774_v59, %v7833_v14 }
 0x9cc   : > { %v7872_v6 = vmax.f32 %v7772_v52, %v7829_v32 }
 0x9ce   : > { %v7884_v26 = vmax.f32 %v7872_v6, %v7874_v60  ;;  %v7835_v15 = vpop.permute.xlu1 %7834 }
 0x9cf   : > { %v7831_v55 = vpop.permute.xlu0 %7830  ;;  %v7875_v21 = vmax.f32 %v7775_v41, %v7835_v15 }
 0x9d0   : > { %v7873_v3 = vmax.f32 %v7773_v36, %v7831_v55  ;;  %10534 = vmatprep.mubr.msk.f32.mxu0 %vm7886_vm15, %v7884_v26 }
 0x9d2   : > { %v7885_v18 = vmax.f32 %v7873_v3, %v7875_v21 }
 0x9d4   : > { %10535 = vmatmul.mubr.msk.f32.vlgmr.msra.gmra.mxu0 %vm7886_vm15, %v7885_v18 }
 0x9e0   : > { %v16631_v22 = vpop.f32.mrf.mxu1 }
 0x9e2   : > { %v16633_v34 = vpop.f32.mrf.mxu1 }
 0x9e3   : > { %v10663_v12 = vpack.i.bf16 %v16631_v22, %v16633_v34 }
 0x9e5   : > { %10664 = vrot.lane.b32.xlu1 %v10663_v12, %s10946_s16  ;;  %10659 = vrot.lane.b32.xlu0 %v10663_v12, %s10942_s29 }
 0xa43   : > { %v16639_v50 = vpop.f32.mrf.mxu1 }
 0xa45   : > { %v16641_v0 = vpop.f32.mrf.mxu1 }
 0xa46   : > { %v10668_v51 = vpack.i.bf16 %v16639_v50, %v16641_v0 }
 0xa48   : > { %10669 = vrot.lane.b32.xlu0 %v10668_v51, %s10943_s12 }
 0xa4b   : > { %v16646_v2 = vpop.f32.mrf.mxu0 }
 0xa4d   : > { %v16648_v29 = vpop.f32.mrf.mxu0 }
 0xa4e   : > { %v10678_v27 = vpack.i.bf16 %v16646_v2, %v16648_v29 }
 0xa50   : > { %10679 = vrot.lane.b32.xlu1 %v10678_v27, %s10944_s14  ;;  %10674 = vrot.lane.b32.xlu0 %v10678_v27, %s10943_s12 }
 0xa53   : > { %v16654_v19 = vpop.f32.mrf.mxu0 }
 0xa54   : > { %10684 = vrot.lane.b32.xlu1 %v10678_v27, %s10942_s29  ;;  %10694 = vrot.lane.b32.xlu0 %v10668_v51, %s10942_s29 }
 0xa55   : > { %v16658_v7 = vpop.f32.mrf.mxu0 }
 0xa56   : > { %v10698_v10 = vpack.i.bf16 %v16654_v19, %v16658_v7 }
 0xa57   : > { %v10660_v38 = vpop.permute.xlu0 %10659  ;;  %v10665_v41 = vpop.permute.xlu1 %10664 }
 0xa58   : > { %10689 = vrot.lane.b32.xlu1 %v10668_v51, %s10944_s14  ;;  %10699 = vrot.lane.b32.xlu0 %v10698_v10, %s10944_s14  ;;  %v10661_v37 = vunpack.i.l.bf16 %v10660_v38  ;;  %v10662_v62 = vunpack.i.h.bf16 %v10660_v38  ;;  %v10666_v32 = vunpack.i.l.bf16 %v10665_v41  ;;  %v10667_v26 = vunpack.i.h.bf16 %v10665_v41  ;;  %v8498_v38 = vld [vmem:[%s17072_s5 + $0x178] sm:$0xff]  ;;  %v8464_v41 = vld [vmem:[%s17072_s5 + $0x68] sm:$0xff] }
 0xa59   : > { %8705 = vmatpush1.msra.mxu0 %v8498_v38 }
 0xa5a   : > { %v10778_v46 = vpack.i.bf16 %v16648_v29, %v10661_v37  ;;  %v10780_v42 = vpack.i.bf16 %v16646_v2, %v10662_v62  ;;  %8706 = vmatprep.subr.mxu0 %v17432_v54  ;;  %v8457_v62 = vld [vmem:[%s17072_s5 + $0x30] sm:$0xff] }
 0xa5c   : > { %10704 = vrot.lane.b32.xlu1 %v10678_v27, %s10946_s16  ;;  %v8482_v27 = vld [vmem:[%s17072_s5 + $0xf8] sm:$0xff] }
 0xa5d   : > { %9641 = vmatprep.subr.mxu1 %v8482_v27  ;;  %v8486_v27 = vld [vmem:[%s17072_s5 + $0x118] sm:$0xff] }
 0xa60   : > { %10709 = vrot.lane.b32.xlu1 %v10698_v10, %s10942_s29 }
 0xa94   : > { %v10536_v59 = vpop.f32.mrf.mxu0 }
 0xa95   : > { %8403 = vrot.lane.b32.xlu1 %v10536_v59, %s10942_s29 }
 0xa96   : > { %v8286_v49 = vpop.f32.mrf.mxu0 }
 0xa97   : > { %v10728_v52 = vpack.i.bf16 %v10536_v59, %v8286_v49 }
 0xa99   : > { %10729 = vrot.lane.b32.xlu0 %v10728_v52, %s10943_s12  ;;  %10714 = vrot.lane.b32.xlu1 %v10728_v52, %s10945_s15 }
 0xa9d   : > { %10734 = vrot.lane.b32.xlu0 %v10728_v52, %s10944_s14  ;;  %10719 = vrot.lane.b32.xlu1 %v10698_v10, %s10946_s16  ;;  %v8466_v10 = vld [vmem:[%s17072_s5 + $0x78] sm:$0xff]  ;;  %v8480_v52 = vld [vmem:[%s17072_s5 + $0xe8] sm:$0xff]  ;;  %s392_s16 = sand.u32 1, %s10929_s18  }
 0xa9e   : > { %9642 = vmatpush3.msra.mxu1 %v8466_v10  ;;  %v8451_v10 = vld [vmem:[%s17072_s5] sm:$0xff]  ;;  %s393_s30 = scalar_lea.vmem [#allocation5], %s392_s16 }
 0xa9f   : > { %s8980_s13 = sshll.u32 %s393_s30, 4  ;;  %s8981_s13 = int_to_ptr.vmem [resolvable:$true] %s8980_s13 }
 0xaa1   : > { %10724 = vrot.lane.b32.xlu1 %v10663_v12, %s10944_s14  ;;  %s10951_s14 = smov [#allocation5]  }
 0xaa2   : > { %s10877_s15 = sshll.u32 %s10951_s14, 4  ;;  %s10878_s15 = int_to_ptr.vmem [resolvable:$false] %s10877_s15 }
 0xaa3   : > { %s10879_s21 = scalar_lea.vmem %s10878_s15, 32  ;;  %p10880_p11 = scmp.lt.s32.totalorder %s8981_s13, %s10878_s15 }
 0xaa5   : > { %8401 = vrot.lane.b32.xlu1 %v8286_v49, %s10942_s29  ;;  %v8465_v49 = vld [vmem:[%s17072_s5 + $0x70] sm:$0xff]  ;;  %s8968_s29 = scalar_lea.sflag [#allocation4], %s392_s16 }
 0xaba   : > { %v16673_v25 = vpop.permute.xlu0 %10669 }
 0xabb   : > { %v10672_v43 = vunpack.i.h.bf16 %v16673_v25  ;;  %v10671_v33 = vunpack.i.l.bf16 %v16673_v25 }
 0xabd   : > { %v10738_v5 = vpack.i.bf16 %v16654_v19, %v10672_v43  ;;  %v10743_v57 = vpack.i.bf16 %v16658_v7, %v10671_v33 }
 0xabf   : > { %10739 = vrot.lane.b32.xlu0 %v10738_v5, %s10943_s12 }
 0xac2   : > { %v10675_v36 = vpop.permute.xlu0 %10674  ;;  %v10680_v56 = vpop.permute.xlu1 %10679 }
 0xac3   : > { %10744 = vrot.lane.b32.xlu0 %v10743_v57, %s10943_s12  ;;  %v10676_v14 = vunpack.i.l.bf16 %v10675_v36  ;;  %v10677_v60 = vunpack.i.h.bf16 %v10675_v36  ;;  %v10681_v21 = vunpack.i.l.bf16 %v10680_v56  ;;  %v10682_v3 = vunpack.i.h.bf16 %v10680_v56  ;;  %v8497_v57 = vld [vmem:[%s17072_s5 + $0x170] sm:$0xff]  ;;  %v8479_v36 = vld [vmem:[%s17072_s5 + $0xe0] sm:$0xff] }
 0xac4   : > { %8707 = vmatpush1.msra.mxu0 %v8497_v57 }
 0xac5   : > { %v10782_v6 = vpack.i.bf16 %v10676_v14, %v10666_v32  ;;  %v10784_v55 = vpack.i.bf16 %v10677_v60, %v10667_v26  ;;  %v10786_v18 = vpack.i.bf16 %v10681_v21, %v16658_v7  ;;  %v10788_v51 = vpack.i.bf16 %v10682_v3, %v16654_v19  ;;  %v8481_v7 = vld [vmem:[%s17072_s5 + $0xf0] sm:$0xff]  ;;  %8708 = vmatprep.subr.mxu0 %v17432_v54  ;;  %v8471_v14 = vld [vmem:[%s17072_s5 + $0xa0] sm:$0xff]  ;;  %v8490_v32 = vld [vmem:[%s17072_s5 + $0x138] sm:$0xff] }
 0xac6   : > { %v10695_v61 = vpop.permute.xlu0 %10694  ;;  %v16685_v63 = vpop.permute.xlu1 %10684  ;;  %9643 = vmatprep.subr.mxu1 %v8481_v7  ;;  %v8455_v60 = vld [vmem:[%s17072_s5 + $0x20] sm:$0xff]  ;;  %v8454_v26 = vld [vmem:[%s17072_s5 + $0x18] sm:$0xff]  ;;  %v8488_v21 = vld [vmem:[%s17072_s5 + $0x128] sm:$0xff] }
 0xac7   : > { %10754 = vrot.lane.b32.xlu0 %v10695_v61, %s10943_s12  ;;  %v10686_v29 = vunpack.i.l.bf16 %v16685_v63  ;;  %v10687_v5 = vunpack.i.h.bf16 %v16685_v63  ;;  %9644 = vmatpush3.msra.mxu1 %v8465_v49  ;;  %v8463_v61 = vld [vmem:[%s17072_s5 + $0x60] sm:$0xff]  ;;  %v8478_v63 = vld [vmem:[%s17072_s5 + $0xd8] sm:$0xff]  ;;  %v8453_v3 = vld [vmem:[%s17072_s5 + $0x10] sm:$0xff] }
 0xac8   : > { %9645 = vmatprep.subr.mxu1 %v8480_v52  ;;  %v8485_v7 = vld [vmem:[%s17072_s5 + $0x110] sm:$0xff] }
 0xac9   : > { %9646 = vmatpush3.msra.mxu1 %v8464_v41 }
 0xaca   : > { %v10690_v45 = vpop.permute.xlu1 %10689  ;;  %v10700_v28 = vpop.permute.xlu0 %10699  ;;  %9647 = vmatprep.subr.mxu1 %v8479_v36 }
 0xacb   : > { %v10702_v35 = vunpack.i.h.bf16 %v10700_v28  ;;  %v10701_v9 = vunpack.i.l.bf16 %v10700_v28  ;;  %10749 = vrot.lane.b32.xlu1 %v10690_v45, %s10943_s12  ;;  %v8496_v45 = vld [vmem:[%s17072_s5 + $0x168] sm:$0xff]  ;;  %v8462_v28 = vld [vmem:[%s17072_s5 + $0x58] sm:$0xff]  ;;  %9648 = vmatpush3.msra.mxu1 %v8463_v61 }
 0xacc   : > { %9649 = vmatprep.subr.mxu1 %v8478_v63  ;;  %8709 = vmatpush1.msra.mxu0 %v8496_v45  ;;  %v8499_v45 = vld [vmem:[%s17072_s5 + $0x180] sm:$0xff] }
 0xacd   : > { %9650 = vmatpush3.msra.mxu1 %v8462_v28  ;;  %8710 = vmatprep.subr.mxu0 %v17432_v54 }
 0xace   : > { %v10705_v44 = vpop.permute.xlu1 %10704 }
 0xacf   : > { %v10707_v48 = vunpack.i.h.bf16 %v10705_v44  ;;  %v10706_v17 = vunpack.i.l.bf16 %v10705_v44  ;;  %v8477_v44 = vld [vmem:[%s17072_s5 + $0xd0] sm:$0xff] }
 0xad0   : > { %9651 = vmatprep.subr.mxu1 %v8477_v44 }
 0xad1   : > { %v16689_v31 = vpack.i.bf16 %v10707_v48, %v10702_v35  ;;  %v16691_v24 = vpack.i.bf16 %v10706_v17, %v10701_v9  ;;  %v8461_v35 = vld [vmem:[%s17072_s5 + $0x50] sm:$0xff]  ;;  %v8495_v9 = vld [vmem:[%s17072_s5 + $0x160] sm:$0xff]  ;;  %v8476_v48 = vld [vmem:[%s17072_s5 + $0xc8] sm:$0xff] }
 0xad2   : > { %v16693_v4 = vpop.permute.xlu1 %10709  ;;  %v8460_v17 = vld [vmem:[%s17072_s5 + $0x48] sm:$0xff]  ;;  %9652 = vmatpush3.msra.mxu1 %v8461_v35  ;;  %8711 = vmatpush1.msra.mxu0 %v8495_v9 }
 0xad3   : > { %9653 = vmatprep.subr.mxu1 %v8476_v48  ;;  %8712 = vmatprep.subr.mxu0 %v17432_v54 }
 0xad4   : > { %9654 = vmatpush3.msra.mxu1 %v8460_v17 }
 0xb07   : > { %v8404_v23 = vpop.permute.xlu1 %8403 }
 0xb08   : > { %8431 = vrot.lane.b32.xlu1 %v8404_v23, %s10943_s12  ;;  %v8494_v23 = vld [vmem:[%s17072_s5 + $0x158] sm:$0xff] }
 0xb09   : > { %8713 = vmatpush1.msra.mxu0 %v8494_v23 }
 0xb0a   : > { %8714 = vmatprep.subr.mxu0 %v17432_v54 }
 0xb0b   : > { %v10715_v13 = vpop.permute.xlu1 %10714  ;;  %v16696_v58 = vpop.permute.xlu0 %10729 }
 0xb0c   : > { %v10717_v40 = vunpack.i.h.bf16 %v10715_v13  ;;  %v10716_v53 = vunpack.i.l.bf16 %v10715_v13  ;;  %v10732_v20 = vunpack.i.h.bf16 %v16696_v58  ;;  %v10731_v1 = vunpack.i.l.bf16 %v16696_v58  ;;  %v8475_v13 = vld [vmem:[%s17072_s5 + $0xc0] sm:$0xff] }
 0xb0d   : > { %9655 = vmatprep.subr.mxu1 %v8475_v13 }
 0xb0e   : > { %v10758_v11 = vpack.i.bf16 %v16631_v22, %v10717_v40  ;;  %v10763_v30 = vpack.i.bf16 %v16633_v34, %v10716_v53  ;;  %v10711_v40 = vunpack.i.l.bf16 %v16693_v4  ;;  %v8493_v53 = vld [vmem:[%s17072_s5 + $0x150] sm:$0xff] }
 0xb0f   : > { %v16699_v16 = vpop.permute.xlu1 %10719  ;;  %v10735_v39 = vpop.permute.xlu0 %10734  ;;  %8715 = vmatpush1.msra.mxu0 %v8493_v53 }
 0xb10   : > { %10759 = vrot.lane.b32.xlu0 %v10758_v11, %s10943_s12  ;;  %v8474_v11 = vld [vmem:[%s17072_s5 + $0xb8] sm:$0xff]  ;;  %v10798_v37 = vpack.i.bf16 %v16633_v34, %v10711_v40  ;;  %8716 = vmatprep.subr.mxu0 %v17432_v54  ;;  %v8491_v34 = vld [vmem:[%s17072_s5 + $0x140] sm:$0xff]  ;;  %v10721_v57 = vunpack.i.l.bf16 %v16699_v16  ;;  %v10722_v44 = vunpack.i.h.bf16 %v16699_v16 }
 0xb13   : > { %v16705_v47 = vpop.permute.xlu1 %10724 }
 0xb14   : > { %10764 = vrot.lane.b32.xlu0 %v10763_v30, %s10943_s12  ;;  %v8458_v30 = vld [vmem:[%s17072_s5 + $0x38] sm:$0xff]  ;;  %v10726_v35 = vunpack.i.l.bf16 %v16705_v47  ;;  %v10727_v48 = vunpack.i.h.bf16 %v16705_v47 }
 0xb16   : > { %v10806_v17 = vpack.i.bf16 %v10726_v35, %v16641_v0  ;;  %v10808_v16 = vpack.i.bf16 %v10727_v48, %v16639_v50 }
 0xb17   : > { %v8402_v8 = vpop.permute.xlu1 %8401 }
 0xb18   : > { %10769 = vrot.lane.b32.xlu0 %v16696_v58, %s10943_s12  ;;  %8429 = vrot.lane.b32.xlu1 %v8402_v8, %s10943_s12  ;;  %v10712_v8 = vunpack.i.h.bf16 %v16693_v4  ;;  %v8456_v4 = vld [vmem:[%s17072_s5 + $0x28] sm:$0xff] }
 0xb19   : > { %v8788_v58 = vld [vmem:[%s17074_s7 + $0x68] sm:$0xff] }
 0xb1c   : > { %10774 = vrot.lane.b32.xlu0 %v10735_v39, %s10943_s12  ;;  %v8473_v39 = vld [vmem:[%s17072_s5 + $0xb0] sm:$0xff]  ;;  %s10873_s12 = scalar_lea.vmem %s8981_s13, 16 }
 0xb1d   : > { %p10874_p6 = scmp.ne.s32.totalorder %s8981_s13, %s10873_s12  ;;  %p10881_p12 = scmp.lt.s32.totalorder %s10879_s21, %s10873_s12 }
 0xb1f   : > { %p10875_p9 = pnand %p10874_p6, %p11050_p5  ;;  %p10882_p13 = por %p10881_p12, %p10880_p11 }
 0xb21   : > { %p10876_p10 = pneg %p10875_p9 }
 0xb23   : > { %p10883_p0 = pnand %p10882_p13, %p10876_p10 }
 0xb31   : > { %v16714_v15 = vpop.permute.xlu0 %10739 }
 0xb32   : > { %v10742_v59 = vunpack.i.h.bf16 %v16714_v15  ;;  %v10741_v13 = vunpack.i.l.bf16 %v16714_v15 }
 0xb34   : > { %v10792_v56 = vpack.i.bf16 %v10687_v5, %v10742_v59  ;;  %v8484_v59 = vld [vmem:[%s17072_s5 + $0x108] sm:$0xff] }
 0xb35   : > { %v16717_v12 = vpop.permute.xlu0 %10744 }
 0xb36   : > { %v10747_v2 = vunpack.i.h.bf16 %v16717_v12  ;;  %v10746_v23 = vunpack.i.l.bf16 %v16717_v12 }
 0xb38   : > { %v10790_v19 = vpack.i.bf16 %v10686_v29, %v10747_v2  ;;  %v8452_v2 = vld [vmem:[%s17072_s5 + $0x8] sm:$0xff]  ;;  %v8467_v29 = vld [vmem:[%s17072_s5 + $0x80] sm:$0xff] }
 0xb39   : > { %v10755_v49 = vpop.permute.xlu0 %10754 }
 0xb3a   : > { %10779 = vxpose.xlu0.b32.start [1/16] (narrow) %v10778_v46, 8  ;;  %v8472_v46 = vld [vmem:[%s17072_s5 + $0xa8] sm:$0xff]  ;;  %v10756_v0 = vunpack.i.l.bf16 %v10755_v49 }
 0xb3d   : > { %v10750_v52 = vpop.permute.xlu1 %10749 }
 0xb3e   : > { %10781 = vxpose.xlu0.b32.cont [2/16] (narrow) %v10780_v42, 8  ;;  %v10800_v42 = vpack.i.bf16 %v16631_v22, %v10712_v8  ;;  %v8470_v22 = vld [vmem:[%s17072_s5 + $0x98] sm:$0xff]  ;;  %v10751_v40 = vunpack.i.l.bf16 %v10750_v52  ;;  %v10752_v47 = vunpack.i.h.bf16 %v10750_v52 }
 0xb42   : > { %10783 = vxpose.xlu0.b32.cont [3/16] (narrow) %v10782_v6, 8  ;;  %v8489_v6 = vld [vmem:[%s17072_s5 + $0x130] sm:$0xff] }
 0xb46   : > { %10785 = vxpose.xlu0.b32.cont [4/16] (narrow) %v10784_v55, 8  ;;  %v8469_v55 = vld [vmem:[%s17072_s5 + $0x90] sm:$0xff] }
 0xb4a   : > { %10787 = vxpose.xlu0.b32.cont [5/16] (narrow) %v10786_v18, 8  ;;  %v8468_v18 = vld [vmem:[%s17072_s5 + $0x88] sm:$0xff] }
 0xb4e   : > { %10789 = vxpose.xlu0.b32.cont [6/16] (narrow) %v10788_v51, 8  ;;  %v8487_v51 = vld [vmem:[%s17072_s5 + $0x120] sm:$0xff] }
 0xb52   : > { %10791 = vxpose.xlu0.b32.cont [7/16] (narrow) %v10790_v19, 8  ;;  %v8483_v19 = vld [vmem:[%s17072_s5 + $0x100] sm:$0xff] }
 0xb56   : > { %10793 = vxpose.xlu0.b32.cont [8/16] (narrow) %v10792_v56, 8  ;;  %v8500_v56 = vld [vmem:[%s17072_s5 + $0x188] sm:$0xff] }
 0xb5a   : > { %10795 = vxpose.xlu0.b32.cont [9/16] (narrow) %v16691_v24, 8  ;;  %v8459_v24 = vld [vmem:[%s17072_s5 + $0x40] sm:$0xff] }
 0xb5b   : > { %9656 = vmatpush3.msra.mxu1 %v8459_v24 }
 0xb5c   : > { %9657 = vmatprep.subr.mxu1 %v8474_v11 }
 0xb5d   : > { %9658 = vmatpush3.msra.mxu1 %v8458_v30 }
 0xb5e   : > { %10797 = vxpose.xlu0.b32.cont [10/16] (narrow) %v16689_v31, 8  ;;  %v8492_v31 = vld [vmem:[%s17072_s5 + $0x148] sm:$0xff]  ;;  %9659 = vmatprep.subr.mxu1 %v8473_v39 }
 0xb5f   : > { %8717 = vmatpush1.msra.mxu0 %v8492_v31  ;;  %9660 = vmatpush3.msra.mxu1 %v8457_v62  ;;  %v8785_v31 = vld [vmem:[%s17074_s7 + $0x50] sm:$0xff]  ;;  %v8784_v62 = vld [vmem:[%s17074_s7 + $0x48] sm:$0xff] }
 0xb60   : > { %8718 = vmatprep.subr.mxu0 %v17432_v54  ;;  %9661 = vmatprep.subr.mxu1 %v8472_v46  ;;  %v8783_v46 = vld [vmem:[%s17074_s7 + $0x40] sm:$0xff] }
 0xb61   : > { %8719 = vmatpush1.msra.mxu0 %v8491_v34  ;;  %9662 = vmatpush3.msra.mxu1 %v8456_v4  ;;  %v8782_v34 = vld [vmem:[%s17074_s7 + $0x38] sm:$0xff] }
 0xb62   : > { %10799 = vxpose.xlu0.b32.cont [11/16] (narrow) %v10798_v37, 8  ;;  %8720 = vmatprep.subr.mxu0 %v17432_v54  ;;  %v8786_v37 = vld [vmem:[%s17074_s7 + $0x58] sm:$0xff] }
 0xb63   : > { %9663 = vmatprep.subr.mxu1 %v8471_v14  ;;  %8721 = vmatpush1.msra.mxu0 %v8490_v32  ;;  %v8781_v14 = vld [vmem:[%s17074_s7 + $0x30] sm:$0xff]  ;;  %v8780_v32 = vld [vmem:[%s17074_s7 + $0x28] sm:$0xff] }
 0xb64   : > { %9664 = vmatpush3.msra.mxu1 %v8455_v60  ;;  %8722 = vmatprep.subr.mxu0 %v17432_v54  ;;  %v8779_v60 = vld [vmem:[%s17074_s7 + $0x20] sm:$0xff] }
 0xb65   : > { %9665 = vmatprep.subr.mxu1 %v8470_v22  ;;  %8723 = vmatpush1.msra.mxu0 %v8489_v6  ;;  %v8778_v22 = vld [vmem:[%s17074_s7 + $0x18] sm:$0xff]  ;;  %v8777_v6 = vld [vmem:[%s17074_s7 + $0x10] sm:$0xff] }
 0xb66   : > { %10801 = vxpose.xlu0.b32.cont [12/16] (narrow) %v10800_v42, 8  ;;  %9666 = vmatpush3.msra.mxu1 %v8454_v26  ;;  %v8776_v26 = vld [vmem:[%s17074_s7 + $0x8] sm:$0xff] }
 0xb67   : > { %8724 = vmatprep.subr.mxu0 %v17432_v54  ;;  %9667 = vmatprep.subr.mxu1 %v8469_v55  ;;  %v8775_v55 = vld [vmem:[%s17074_s7] sm:$0xff] }
 0xb68   : > { %8725 = vmatpush1.msra.mxu0 %v8488_v21  ;;  %9668 = vmatpush3.msra.mxu1 %v8453_v3  ;;  %v8876_v21 = vld [vmem:[%s17076_s9 + $0x50] sm:$0xf]  ;;  %v8875_v3 = vld [vmem:[%s17076_s9 + $0x48] sm:$0xff] }
 0xb69   : > { %8726 = vmatprep.subr.mxu0 %v17432_v54  ;;  %9669 = vmatprep.subr.mxu1 %v8468_v18  ;;  %v8874_v18 = vld [vmem:[%s17076_s9 + $0x40] sm:$0xff] }
 0xb6a   : > { %8727 = vmatpush1.msra.mxu0 %v8487_v51  ;;  %9670 = vmatpush3.msra.mxu1 %v8452_v2  ;;  %v8873_v51 = vld [vmem:[%s17076_s9 + $0x38] sm:$0xff]  ;;  %v8872_v2 = vld [vmem:[%s17076_s9 + $0x30] sm:$0xff] }
 0xb6b   : > { %8728 = vmatprep.subr.mxu0 %v17432_v54  ;;  %9671 = vmatprep.subr.mxu1 %v8467_v29  ;;  %v8871_v29 = vld [vmem:[%s17076_s9 + $0x28] sm:$0xff] }
 0xb6c   : > { %8729 = vmatpush1.msra.mxu0 %v8486_v27  ;;  %9672 = vmatpush3.msra.mxu1 %v8451_v10  ;;  %v8870_v27 = vld [vmem:[%s17076_s9 + $0x20] sm:$0xff]  ;;  %v8869_v10 = vld [vmem:[%s17076_s9 + $0x18] sm:$0xff] }
 0xb6d   : > { %8730 = vmatprep.subr.mxu0 %v17432_v54  ;;  %10537 = vmatprep.subr.mxu1 %v17432_v54 }
 0xb6e   : > { %8731 = vmatpush1.msra.mxu0 %v8485_v7 }
 0xb6f   : > { %8732 = vmatprep.subr.mxu0 %v17432_v54 }
 0xb70   : > { %8733 = vmatpush1.msra.mxu0 %v8484_v59 }
 0xb71   : > { %8734 = vmatprep.subr.mxu0 %v17432_v54 }
 0xb72   : > { %8735 = vmatpush1.msra.mxu0 %v8483_v19 }
 0xb73   : > { %8764 = vmatprep.subr.mxu0 %v17432_v54 }
 0xb74   : > { %8765 = vmatpush2.msra.mxu0 %v8500_v56  ;;  %v8867_v56 = vld [vmem:[%s17076_s9 + $0x8] sm:$0xff] }
 0xb75   : > { %8766 = vmatprep.subr.mxu0 %v17432_v54 }
 0xb76   : > { %8767 = vmatpush2.msra.mxu0 %v8499_v45 }
 0xb77   : > { %10570 = vmatprep.subr.mxu0 %v17432_v54 }
 0xb7a   : > { %v8432_v5 = vpop.permute.xlu1 %8431 }
 0xb82   : > { %v10760_v38 = vpop.permute.xlu0 %10759 }
 0xb83   : > { %v10762_v61 = vunpack.i.h.bf16 %v10760_v38  ;;  %v10761_v50 = vunpack.i.l.bf16 %v10760_v38 }
 0xb85   : > { %v10804_v9 = vpack.i.bf16 %v10762_v61, %v10722_v44  ;;  %v8866_v61 = vld [vmem:[%s17076_s9] sm:$0xff] }
 0xb86   : > { %v10765_v41 = vpop.permute.xlu0 %10764 }
 0xb87   : > { %v10767_v36 = vunpack.i.h.bf16 %v10765_v41  ;;  %v10766_v24 = vunpack.i.l.bf16 %v10765_v41 }
 0xb89   : > { %v10802_v63 = vpack.i.bf16 %v10767_v36, %v10721_v57  ;;  %v8868_v36 = vld [vmem:[%s17076_s9 + $0x10] sm:$0xff] }
 0xb8a   : > { %v8430_v28 = vpop.permute.xlu1 %8429  ;;  %v10770_v25 = vpop.permute.xlu0 %10769 }
 0xb8b   : > { %8598 = vxpose.xlu1.b32.start [1/2] (short) (narrow) %v8430_v28, 8  ;;  %10803 = vxpose.xlu0.b32.cont [13/16] (narrow) %v10802_v63, 8  ;;  %v10772_v15 = vunpack.i.h.bf16 %v10770_v25  ;;  %v8790_v63 = vld [vmem:[%s17075_s8] sm:$0x1] }
 0xb8e   : > { %v10775_v12 = vpop.permute.xlu0 %10774 }
 0xb8f   : > { %8599 = vxpose.xlu1.b32.end [2/2] (short) (narrow) %v8432_v5, 8  ;;  %10805 = vxpose.xlu0.b32.cont [14/16] (narrow) %v10804_v9, 8  ;;  %v10776_v11 = vunpack.i.l.bf16 %v10775_v12  ;;  %v10777_v53 = vunpack.i.h.bf16 %v10775_v12  ;;  %v8877_v9 = vld [vmem:[%s17077_s10] sm:$0x1] }
 0xb93   : > { %8566 = vxpose.xlu1.b32.start [1/16] (narrow) %v10671_v33, 8  ;;  %10807 = vxpose.xlu0.b32.cont [15/16] (narrow) %v10806_v17, 8  ;;  %v10757_v33 = vunpack.i.h.bf16 %v10755_v49  ;;  %v8501_v49 = vld [vmem:[%s17073_s6] sm:$0x1] }
 0xb97   : > { %8567 = vxpose.xlu1.b32.cont [2/16] (narrow) %v10672_v43, 8  ;;  %10809 = vxpose.xlu0.b32.end [16/16] (narrow) %v10808_v16, 8  ;;  %v10771_v43 = vunpack.i.l.bf16 %v10770_v25 }
 0xb9b   : > { %8568 = vxpose.xlu1.b32.cont [3/16] (narrow) %v10746_v23, 8 }
 0xb9f   : > { %8569 = vxpose.xlu1.b32.cont [4/16] (narrow) %v10741_v13, 8 }
 0xba3   : > { %8570 = vxpose.xlu1.b32.cont [5/16] (narrow) %v10751_v40, 8 }
 0xba7   : > { %8571 = vxpose.xlu1.b32.cont [6/16] (narrow) %v10752_v47, 8 }
 0xbab   : > { %8572 = vxpose.xlu1.b32.cont [7/16] (narrow) %v10756_v0, 8 }
 0xbaf   : > { %8573 = vxpose.xlu1.b32.cont [8/16] (narrow) %v10757_v33, 8 }
 0xbb3   : > { %8574 = vxpose.xlu1.b32.cont [9/16] (narrow) %v10766_v24, 8 }
 0xbb7   : > { %8575 = vxpose.xlu1.b32.cont [10/16] (narrow) %v10761_v50, 8 }
 0xbbb   : > { %8576 = vxpose.xlu1.b32.cont [11/16] (narrow) %v10731_v1, 8  ;;  %v8789_v1 = vld [vmem:[%s17074_s7 + $0x70] sm:$0xff] }
 0xbbf   : > { %8577 = vxpose.xlu1.b32.cont [12/16] (narrow) %v10732_v20, 8  ;;  %v8787_v20 = vld [vmem:[%s17074_s7 + $0x60] sm:$0xff] }
 0xbc3   : > { %8578 = vxpose.xlu1.b32.cont [13/16] (narrow) %v10771_v43, 8 }
 0xbc7   : > { %8579 = vxpose.xlu1.b32.cont [14/16] (narrow) %v10772_v15, 8 }
 0xbcb   : > { %8580 = vxpose.xlu1.b32.cont [15/16] (narrow) %v10776_v11, 8 }
 0xbcf   : > { %8581 = vxpose.xlu1.b32.end [16/16] (narrow) %v10777_v53, 8 }
 0xbd7   : > { %v10810_v30 = vpop.trf.xlu0 }
 0xbd8   : > { %v10814_v39 = vunpack.i.h.bf16 %v10810_v30  ;;  %v10811_v8 = vunpack.i.l.bf16 %v10810_v30 }
 0xbda   : > { %8698 = vmatprep.mubr.f32.mxu1 %v10811_v8 }
 0xbdb   : > { %8699 = vmatmul.mubr.f32.vlgmr.msra.gmra.mxu1 %v10814_v39 }
 0xbdc   : > { %10538 = vmatpush3.msra.mxu1 %v8789_v1  ;;  %10567 = vmatprep.mubr.msk.f32.mxu1 %vm10948_vm7, %v17432_v54 }
 0xbdd   : > { %10539 = vmatprep.subr.mxu1 %v17432_v54 }
 0xbde   : > { %10540 = vmatpush3.msra.mxu1 %v8788_v58 }
 0xbdf   : > { %10541 = vmatprep.subr.mxu1 %v17432_v54 }
 0xbe0   : > { %10542 = vmatpush3.msra.mxu1 %v8787_v20 }
 0xbe1   : > { %10543 = vmatprep.subr.mxu1 %v17432_v54 }
 0xbe2   : > { %10544 = vmatpush3.msra.mxu1 %v8786_v37 }
 0xbe3   : > { %10545 = vmatprep.subr.mxu1 %v17432_v54 }
 0xbe4   : > { %10546 = vmatpush3.msra.mxu1 %v8785_v31 }
 0xbe5   : > { %10547 = vmatprep.subr.mxu1 %v17432_v54 }
 0xbe6   : > { %10548 = vmatpush3.msra.mxu1 %v8784_v62 }
 0xbe7   : > { %10549 = vmatprep.subr.mxu1 %v17432_v54 }
 0xbe8   : > { %10550 = vmatpush3.msra.mxu1 %v8783_v46 }
 0xbe9   : > { %10551 = vmatprep.subr.mxu1 %v17432_v54 }
 0xbea   : > { %10552 = vmatpush3.msra.mxu1 %v8782_v34 }
 0xbeb   : > { %10553 = vmatprep.subr.mxu1 %v17432_v54 }
 0xbec   : > { %10554 = vmatpush3.msra.mxu1 %v8781_v14 }
 0xbed   : > { %10555 = vmatprep.subr.mxu1 %v17432_v54 }
 0xbee   : > { %10556 = vmatpush3.msra.mxu1 %v8780_v32 }
 0xbef   : > { %10557 = vmatprep.subr.mxu1 %v17432_v54 }
 0xbf0   : > { %10558 = vmatpush3.msra.mxu1 %v8779_v60 }
 0xbf1   : > { %10559 = vmatprep.subr.mxu1 %v17432_v54 }
 0xbf2   : > { %10560 = vmatpush3.msra.mxu1 %v8778_v22 }
 0xbf3   : > { %10561 = vmatprep.subr.mxu1 %v17432_v54 }
 0xbf4   : > { %10562 = vmatpush3.msra.mxu1 %v8777_v6 }
 0xbf5   : > { %10563 = vmatprep.subr.mxu1 %v17432_v54 }
 0xbf6   : > { %10564 = vmatpush3.msra.mxu1 %v8776_v26 }
 0xbf7   : > { %10565 = vmatprep.subr.mxu1 %v17432_v54 }
 0xbf8   : > { %10566 = vmatpush3.msra.mxu1 %v8775_v55 }
 0xc07   : > { %v8614_v4 = vpop.trf.xlu1 }
 0xc08   : > { %9235 = vmatprep.mubr.msk.f32.mxu0 %vm8630_vm0, %v8614_v4 }
 0xc0f   : > { %v8582_v42 = vpop.trf.xlu1 }
 0xc10   : > { %8769 = vmatmul.mubr.f32.vlgmr.msra.gmra.mxu0 %v8582_v42 }
 0xc11   : > { %10592 = vmatprep.mubr.msk.f32.mxu0 %vm10948_vm7, %v17432_v54  ;;  %10571 = vmatpush3.msk.msra.mxu0 %vm1850_vm3, %v8876_v21  ;;  %vm8878_vm3 = vcmask 687104  }
 0xc12   : > { %10572 = vmatprep.subr.mxu0 %v17432_v54 }
 0xc13   : > { %10573 = vmatpush3.msra.mxu0 %v8875_v3 }
 0xc14   : > { %10574 = vmatprep.subr.mxu0 %v17432_v54 }
 0xc15   : > { %10575 = vmatpush3.msra.mxu0 %v8874_v18 }
 0xc16   : > { %10576 = vmatprep.subr.mxu0 %v17432_v54 }
 0xc17   : > { %10577 = vmatpush3.msra.mxu0 %v8873_v51 }
 0xc18   : > { %10578 = vmatprep.subr.mxu0 %v17432_v54 }
 0xc19   : > { %10579 = vmatpush3.msra.mxu0 %v8872_v2 }
 0xc1a   : > { %10580 = vmatprep.subr.mxu0 %v17432_v54 }
 0xc1b   : > { %10581 = vmatpush3.msra.mxu0 %v8871_v29 }
 0xc1c   : > { %10582 = vmatprep.subr.mxu0 %v17432_v54 }
 0xc1d   : > { %10583 = vmatpush3.msra.mxu0 %v8870_v27 }
 0xc1e   : > { %10584 = vmatprep.subr.mxu0 %v17432_v54 }
 0xc1f   : > { %10585 = vmatpush3.msra.mxu0 %v8869_v10 }
 0xc20   : > { %10586 = vmatprep.subr.mxu0 %v17432_v54 }
 0xc21   : > { %10587 = vmatpush3.msra.mxu0 %v8868_v36 }
 0xc22   : > { %10588 = vmatprep.subr.mxu0 %v17432_v54 }
 0xc23   : > { %10589 = vmatpush3.msra.mxu0 %v8867_v56 }
 0xc24   : > { %10590 = vmatprep.subr.mxu0 %v17432_v54 }
 0xc25   : > { %10591 = vmatpush3.msra.mxu0 %v8866_v61 }
 0xc9b   : > { %v9673_v7 = vpop.f32.mrf.mxu1 }
 0xc9d   : > { %v9674_v59 = vpop.f32.mrf.mxu1 }
 0xc9e   : > { %v9675_v19 = vadd.f32 %v9674_v59, %v9673_v7 }
 0xca0   : > { %v8701_v52 = vadd.f32 %v9675_v19, %v8501_v49 }
 0xcd0   : > { %v8770_v38 = vpop.f32.mrf.mxu0 }
 0xcd1   : > { %v8771_v5 = vadd.f32 %v8770_v38, %v8701_v52 }
 0xcd2   : > { %v8772_v41 = vpop.f32.mrf.mxu0 }
 0xcd3   : > { %v8774_v57 = vmax.f32 %v8771_v5, 0.0 }
 0xcd5   : > { %10568 = vmatmul.mubr.msk.f32.vlgmr.msra.gmra.mxu1 %vm8791_vm1, %v8774_v57 }
 0xd95   : > { %v8861_v45 = vpop.f32.mrf.mxu1 }
 0xd96   : > { %v8862_v28 = vadd.f32 %v8861_v45, %v8790_v63 }
 0xd97   : > { %v10569_v44 = vpop.f32.mrf.mxu1 }
 0xd98   : > { %v8865_v35 = vmax.f32 %v8862_v28, 0.0 }
 0xd9a   : > { %10593 = vmatmul.mubr.msk.f32.vlgmr.msra.gmra.mxu0 %vm8878_vm3, %v8865_v35 }
 0xe5a   : > { %v8951_v48 = vpop.f32.mrf.mxu0 }
 0xe5b   : > { %v8952_v17 = vadd.f32 %v8951_v48, %v8877_v9 }
 0xe5c   : > { %v10594_v54 = vpop.f32.mrf.mxu0 }
 0xe5d   : > { %v8955_v16 = vsel %vm1821_vm2, %v8952_v17, -inf }
 0xe5e   : > { %8956 = vmax.xlane.f32.xlu0 %v8955_v16 }
 0xee7   : > { %v8957_v23 = vpop.xlane.xlu0 %8956 }
 0xee8   : > { %v8958_v13 = vsub.f32 %v8952_v17, %v8957_v23 }
 0xeea   : > { %v8959_v40 = vmul.f32 1.442695, %v8958_v13 }
 0xeec   : > { %10815 = vpow2.f32 %v8959_v40 }
 0xef9   : > { %v10816_v47 = vpop.eup %10815 }
 0xefa   : > { %v8961_v0 = vsel %vm1821_vm2, %v10816_v47, 0.0 }
 0xefb   : > { %8962 = vadd.xlane.f32.xlu1 %v8961_v0 }
 0xf84   : > { %v8963_v33 = vpop.xlane.xlu1 %8962 }
 0xf85   : > { %10817 = vrcp.f32 %v8963_v33 }
 0xf92   : > { %v10818_v24 = vpop.eup %10817 }
 0xf93   : > { %v8965_v50 = vmul.f32 %v10818_v24, %v10816_v47 }
 0xf95   : > { %8966 = vst [vmem:[%s393_s30] sm:$0x1] %v8965_v50 }
 0xf96   : > { %10886 = shalt.err (!%p10883_p0)
}
 0xf97   : > { %s10887_s0 = scalar_lea.hbm %s8978_s24, 16  ;;  %s10891_s30 = scalar_lea.hbm %s17078_s11, 32 }
 0xf98   : > { %p10888_p1 = scmp.ne.s32.totalorder %s8978_s24, %s10887_s0  ;;  %p10892_p4 = scmp.lt.s32.totalorder %s8978_s24, %s17078_s11 }
 0xf99   : > { %p10893_p7 = scmp.lt.s32.totalorder %s10891_s30, %s10887_s0 }
 0xf9a   : > { %p10889_p2 = pnand %p10888_p1, %p11050_p5 }
 0xf9b   : > { %p10894_p8 = por %p10893_p7, %p10892_p4 }
 0xf9c   : > { %p10890_p3 = pneg %p10889_p2 }
 0xf9e   : > { %p10895_p6 = pnand %p10894_p8, %p10890_p3 }
 0xfa0   : > { %10898 = shalt.err (!%p10895_p6)
}
 0xfa1   : > { %10599 = dma.vmem_to_hbm [thread:$0]  (%p11050_p5), %s8981_s13, 16, %s8978_s24, %s8968_s29  }
 0xfa2 PF: > { %p10611_p9 = scmp.ge.s32.totalorder %s10937_s20, 2  ;;  %s8992_s12 = sand.u32 1, %s10925_s17  }
 0xfa3   : > { %p17812_p10 = scmp.ne.s32.totalorder %s17391_s28, 0  ;;  %s8993_s14 = scalar_lea.sflag [#allocation4], %s8992_s12 }
 0xfa5   : > { %p10606_p11 = pnand %p10611_p9, %p17812_p10 }
 0xfa7   : > { %p10607_p12 = pneg %p10606_p11 }
 0xfa9   : > { %10920 = dma.done.wait (%p10607_p12), %s8993_s14, 16  }
 0xfaa   : > { %10922 = vsyncadd (%p10607_p12), %s8993_s14, 4294967280  ;;  %s17813_s0 = sld [smem:[#allocation8_spill]]  ;;  %p22_p13 = scmp.ge.s32.totalorder %s11037_s23, 4  }
 0xfab   : > { %s17814_s17 = smov %s10929_s18  ;;  %s17815_s18 = smov %s10933_s19 }
 0xfac   : > { %s17817_s20 = smov %s11037_s23  ;;  %24 = sbr.rel (!%p22_p13) target bundleno = 6 (0x6), region = 104 }
 0xfb0   : > { %s17816_s19 = smov %s17813_s0 }
 0xfb1   :  { %8997 = vsyncpa [#allocation3], 1 }
 0xfb2   :  { %8999 = vsyncpa [#allocation3 + $0x1], 1 }
 0xfb3   :  { %9000 = vsyncpa [#allocation4], 1 }
 0xfb4   :  { %9002 = vsyncpa [#allocation4 + $0x1], 1 }

</bundles_post_ra>
